<compile_context>
chip_gen: v6e
topology: v6e:2x2x1
jax: 0.10.0
libtpu: 0.0.40
codegen_flags: <defaults>
</compile_context>

<pallas_src>
import functools
import math

import jax
import jax.numpy as jnp
from jax import lax
from jax.experimental import pallas as pl
from jax.experimental.pallas import tpu as pltpu

HIDDEN = 32
LANES = 128
TIME_DIM = HIDDEN // 2
NUM_LAYERS = 2
MAX_INT = 4
D_CVARS, D_IVARS, D_CONS, D_EDGE = 6, 6, 5, 1
NODE_PAD = 8
EPS = 1e-5

# Static packed-parameter layout: name -> slot/lane (weights) or row (vectors).
# Filled by init_params(); read at trace time by the kernel as Python constants.
_LAYOUT = {"w": {}, "vec": {}}


# ------------------------------------------------------------- fused kernel --
def _fused_forward_kernel(nodes_ref, ea_ref, idx_ref, temb_ref, w_ref, vec_ref,
                          out_ref, p_ref, *, nC, nI, ncons, eI, eC):
    f32 = jnp.float32
    bf16 = jnp.bfloat16
    H = HIDDEN
    ntot = ncons + nI + nC
    ntotp = p_ref.shape[0]
    E = eI + eC
    OFF_I = ncons
    OFF_C = ncons + nI

    layw = _LAYOUT["w"]
    layv = _LAYOUT["vec"]

    # packed-weight stack cast to bf16 once (MXU-native rate; f32 accumulation).
    w_bf = w_ref[...].astype(bf16)

    def V(name):                                           # (1, 32) bias/scale row
        i = layv[name]
        return vec_ref[i:i + 1, :]

    def dot_group(x, *names):
        # ONE MXU pass against a lane-packed (<=32, 128) weight slot; the per-name
        # results are static 32-lane slices of the (n, 128) product.
        slots = {layw[n][0] for n in names}
        assert len(slots) == 1, names
        s = slots.pop()
        k = x.shape[-1]
        y = jnp.dot(x.astype(bf16), w_bf[s * H:s * H + k, :],
                    preferred_element_type=f32)
        return tuple(y[:, layw[n][1]:layw[n][1] + H] for n in names)

    def mm(x, name):
        return dot_group(x, name)[0]

    def bdot(a, b):
        return jnp.dot(a.astype(bf16), b.astype(bf16), preferred_element_type=f32)

    def relu(x):
        return jnp.maximum(x, 0.0)

    def silu(x):
        # exp and the approx reciprocal both ride the EUP slot (VALU stays free)
        return x * pl.reciprocal(1.0 + jnp.exp(-x), approx=True)

    def layernorm(x, g, b):
        # one-pass stats: the two reduces are independent (shorter serial chain)
        inv_n = 1.0 / x.shape[-1]
        mu = jnp.sum(x, axis=-1, keepdims=True) * inv_n
        ex2 = jnp.sum(x * x, axis=-1, keepdims=True) * inv_n
        var = jnp.maximum(ex2 - mu * mu, 0.0)
        return (x - mu) * lax.rsqrt(var + EPS) * g + b

    # ---- shared incidence matrix G: (E, ntotp) bf16, exactly two 1s per row ----
    # column space: [0,ncons)=cons, [ncons,ncons+nI)=Ivars, [ncons+nI,ntot)=Cvars.
    # gather per edge = dot(G, P); scatter-add to nodes = G^T @ messages.
    col_iota = lax.broadcasted_iota(jnp.int32, (E, ntotp), 1)
    cons_col = idx_ref[:, 0:1]
    var_col = idx_ref[:, 1:2]
    G = jnp.where((col_iota == cons_col) | (col_iota == var_col),
                  1.0, 0.0).astype(bf16)
    ea = ea_ref[...]                                       # (E, 1)
    is_I_edge = lax.broadcasted_iota(jnp.int32, (E, 1), 0) < eI

    def scatterT(m):
        # G^T @ m -> (ntotp, H): aggregations for every node class in one dot.
        return lax.dot_general(G, m.astype(bf16),
                               (((0,), (0,)), ((), ())),
                               preferred_element_type=f32)

    def edge_message(pfx, we_vec):
        # per-edge: Linear(ReLU(LN( p_tgt[dst_e] + p_src[src_e] + ea_e * we )))
        s = bdot(G, p_ref[...]) + ea * we_vec
        h = relu(layernorm(s, V(f"{pfx}/ln_g"), V(f"{pfx}/ln_b")))
        return mm(h, f"{pfx}/wf") + V(f"{pfx}/bf")

    def conv_out(pfx, agg, x_w1b):
        # MLP2(concat[LN(agg), x_tgt]); the x_tgt @ w1b half was lane-packed
        # into an earlier projection dot (split weights avoid a lane concat).
        a = layernorm(agg, V(f"{pfx}/post_g"), V(f"{pfx}/post_b"))
        h = relu(mm(a, f"{pfx}/w1a") + x_w1b + V(f"{pfx}/b1"))
        return mm(h, f"{pfx}/w2") + V(f"{pfx}/b2")

    def per_layer_out(pfx, x):
        y = silu(layernorm(x, V(f"{pfx}/ln_g"), V(f"{pfx}/ln_b")))
        return mm(y, f"{pfx}/w") + V(f"{pfx}/b")

    # zero the stacked-projection scratch once: padded rows multiply zero columns
    # of G but must not hold NaN garbage (0 * NaN would poison the MXU sum).
    p_ref[...] = jnp.zeros_like(p_ref)

    # ---- input embedding MLPs ---------------------------------------------------
    def in_mlp(rows, pfx):
        h = relu(mm(rows, f"in/{pfx}/w1") + V(f"in/{pfx}/b1"))
        return mm(h, f"in/{pfx}/w2") + V(f"in/{pfx}/b2")

    xc = in_mlp(nodes_ref[0:ncons, :], "cons")
    xI = in_mlp(nodes_ref[OFF_I:OFF_I + nI, :], "I")
    xC = in_mlp(nodes_ref[OFF_C:OFF_C + nC, :], "C")

    # time-embed MLP; real dims 32->16->16 zero-padded to 32 lanes (exact).
    th = relu(mm(temb_ref[...], "time/w1") + V("time/b1"))
    temb = mm(th, "time/w2") + V("time/b2")
    bcast = temb_ref.shape[0] == 1

    # ---- layer loop (statically unrolled) ----------------------------------------
    for l in range(NUM_LAYERS):
        # lane-packed projections of the layer inputs (one MXU pass per operand)
        p_tgt_cons, xc_w1b = dot_group(xc, f"L{l}/tri/wl", f"L{l}/tri/w1b")
        p_tgt_cons = p_tgt_cons + V(f"L{l}/tri/bl")
        p_srcI, tgt_I, xI_w1b = dot_group(
            xI, f"L{l}/tri/wrI", f"L{l}/bipI/wl", f"L{l}/bipI/w1b")
        tgt_I = tgt_I + V(f"L{l}/bipI/bl")
        p_srcC, tgt_C, xC_w1b = dot_group(
            xC, f"L{l}/tri/wrC", f"L{l}/bipC/wl", f"L{l}/bipC/w1b")
        tgt_C = tgt_C + V(f"L{l}/bipC/bl")

        # --- tripartite {I,C}vars -> cons: all edges processed as one stream ------
        p_ref[0:ncons, :] = p_tgt_cons
        p_ref[OFF_I:OFF_I + nI, :] = p_srcI
        p_ref[OFF_C:OFF_C + nC, :] = p_srcC
        we_tri = jnp.where(is_I_edge, V(f"L{l}/tri/weI"), V(f"L{l}/tri/weC"))
        m = edge_message(f"L{l}/tri", we_tri)
        agg = scatterT(m)
        xc_new = conv_out(f"L{l}/tri", agg[0:ncons, :], xc_w1b)

        # --- two bipartite cons -> vars convs (share the new xc and G) ------------
        srcI, srcC = dot_group(xc_new, f"L{l}/bipI/wr", f"L{l}/bipC/wr")
        p_ref[OFF_I:OFF_I + nI, :] = tgt_I
        p_ref[OFF_C:OFF_C + nC, :] = tgt_C
        p_ref[0:ncons, :] = srcI
        mI = edge_message(f"L{l}/bipI", V(f"L{l}/bipI/we"))
        aggI = scatterT(mI)
        p_ref[0:ncons, :] = srcC
        mC = edge_message(f"L{l}/bipC", V(f"L{l}/bipC/we"))
        aggC = scatterT(mC)
        # rows from the "wrong" edge set scatter with all-zero coefficients into
        # the slices below, so processing all E edges per bip conv is exact.
        xI_c = conv_out(f"L{l}/bipI", aggI[OFF_I:OFF_I + nI, :], xI_w1b)
        xC_c = conv_out(f"L{l}/bipC", aggC[OFF_C:OFF_C + nC, :], xC_w1b)

        # --- time embedding + per-layer outputs -----------------------------------
        t = mm(relu(temb), f"L{l}/time/w") + V(f"L{l}/time/b")
        if bcast:
            tI, tC = t, t                          # (1,H): broadcast via the adds
        else:
            tI, tC = t[:nI, :], t[nI:nI + nC, :]   # reference batches as [I ; C]
        xI = per_layer_out(f"L{l}/plo/Ivars", xI_c) + tI
        xC = per_layer_out(f"L{l}/plo/Cvars", xC_c) + tC
        xc = per_layer_out(f"L{l}/plo/cons", xc_new)

    # ---- output heads: GroupNorm(32 groups, 32 ch) over (1,C,N,1) == per-channel
    #      stats over the node axis (one-pass), then ReLU, then 1x1-conv linear.
    def out_head(pfx, x):
        inv_n = 1.0 / x.shape[0]
        mu = jnp.sum(x, axis=0, keepdims=True) * inv_n
        ex2 = jnp.sum(x * x, axis=0, keepdims=True) * inv_n
        var = jnp.maximum(ex2 - mu * mu, 0.0)
        xn = (x - mu) * lax.rsqrt(var + EPS) * V(f"{pfx}/gn_g") + V(f"{pfx}/gn_b")
        return mm(relu(xn), f"{pfx}/w") + V(f"{pfx}/b")

    out_ref[0:nI, :] = out_head("Iout", xI)            # cols >= MAX_INT are zero
    out_ref[nI:nI + nC, :] = out_head("Cout", xC)      # cols >= 1 are zero


# ------------------------------------------------------------------ forward --
def timestep_embedding(timesteps, dim, max_period=10000.0):
    half = dim // 2
    freqs = jnp.exp(-math.log(max_period) * jnp.arange(half, dtype=jnp.float32) / half)
    args = timesteps.astype(jnp.float32)[:, None] * freqs[None, :]
    emb = jnp.concatenate([jnp.cos(args), jnp.sin(args)], axis=-1)
    if dim % 2:
        emb = jnp.concatenate([emb, jnp.zeros_like(emb[:, :1])], axis=-1)
    return emb


def milp_gcn_forward(params, x_Cvars, x_Ivars, x_cons,
                     C2cons_edge_attr, I2cons_edge_attr,
                     C2cons_edge_index, I2cons_edge_index, timesteps):
    nC, nI, ncons = x_Cvars.shape[0], x_Ivars.shape[0], x_cons.shape[0]
    eC, eI = C2cons_edge_attr.shape[0], I2cons_edge_attr.shape[0]
    ntot = ncons + nI + nC
    ntotp = -(-ntot // 8) * 8
    e_total = eI + eC

    def pad8(x):
        return jnp.pad(x.astype(jnp.float32), ((0, 0), (0, NODE_PAD - x.shape[1])))

    # merged operands: 6 input buffers + 1 output buffer (fixed-overhead cut)
    nodes = jnp.concatenate([pad8(x_cons), pad8(x_Ivars), pad8(x_Cvars)], axis=0)
    ea_all = jnp.concatenate([I2cons_edge_attr, C2cons_edge_attr],
                             axis=0).astype(jnp.float32)                    # (E,1)
    cons_col = jnp.concatenate([I2cons_edge_index[1], C2cons_edge_index[1]]
                               ).astype(jnp.int32)
    var_col = jnp.concatenate([I2cons_edge_index[0].astype(jnp.int32) + ncons,
                               C2cons_edge_index[0].astype(jnp.int32) + ncons + nI])
    idx_all = jnp.stack([cons_col, var_col], axis=1)                        # (E,2)
    temb = timestep_embedding(timesteps, HIDDEN)

    # explicit scoped-VMEM budget sized from the actual buffers
    est = 4 * (nodes.size + ea_all.size + idx_all.size + temb.size +
               params["w"].size + params["vec"].size + (nI + nC) * HIDDEN)
    est += 2 * e_total * ntotp                      # bf16 incidence matrix G
    est += 4 * ntotp * HIDDEN                       # stacked-projection scratch
    est += 4 * 16 * (e_total + ntot) * HIDDEN       # transient activations (rough)
    vmem_limit = int(min(64 * 2 ** 20, max(4 * 2 ** 20, 4 * est)))

    kernel = functools.partial(_fused_forward_kernel,
                               nC=nC, nI=nI, ncons=ncons, eI=eI, eC=eC)
    vmem = pl.BlockSpec(memory_space=pltpu.MemorySpace.VMEM)
    out = pl.pallas_call(
        kernel,
        out_shape=jax.ShapeDtypeStruct((nI + nC, HIDDEN), jnp.float32),
        in_specs=[vmem] * 6,
        out_specs=vmem,
        scratch_shapes=[pltpu.VMEM((ntotp, HIDDEN), jnp.float32)],
        compiler_params=pltpu.CompilerParams(vmem_limit_bytes=vmem_limit),
    )(nodes, ea_all, idx_all, temb, params["w"], params["vec"])
    return out[:nI, :MAX_INT], out[nI:nI + nC, 0]


# -------------------------------------------------------- parameter builder --
def init_params(key):
    _LAYOUT["w"].clear()
    _LAYOUT["vec"].clear()
    keys = iter(jax.random.split(key, 512))
    nk = lambda: next(keys)

    slot_list, vec_list = [], []

    def xavier(din, dout, scale=1.0):
        std = math.sqrt(2.0 / (din + dout)) * scale
        return jax.random.normal(nk(), (din, dout), jnp.float32) * std

    def add_slot(entries):
        # one (32,128) lane-packed weight slot; entries that share an input are
        # co-packed so the kernel can feed them with a single MXU pass.
        slot = len(slot_list)
        tile = jnp.zeros((HIDDEN, LANES), jnp.float32)
        off = 0
        for name, mat in entries:
            r, c = mat.shape
            assert r <= HIDDEN and c <= HIDDEN and off + HIDDEN <= LANES, name
            tile = tile.at[:r, off:off + c].set(mat)
            _LAYOUT["w"][name] = (slot, off)
            off += HIDDEN
        slot_list.append(tile)

    def add_vec(name, v):
        assert v.shape == (HIDDEN,), (name, v.shape)
        _LAYOUT["vec"][name] = len(vec_list)
        vec_list.append(v)

    def pad_row(v):
        return jnp.zeros((HIDDEN,), jnp.float32).at[:v.shape[0]].set(v)

    zeros = jnp.zeros((HIDDEN,), jnp.float32)
    ones = jnp.ones((HIDDEN,), jnp.float32)

    # input MLPs (first weights zero-padded to 8 feature rows at use time)
    for m, d in (("cons", D_CONS), ("I", D_IVARS), ("C", D_CVARS)):
        add_slot([(f"in/{m}/w1", xavier(d, HIDDEN)),
                  (f"in/{m}/w2", xavier(HIDDEN, HIDDEN))])
        add_vec(f"in/{m}/b1", zeros)
        add_vec(f"in/{m}/b2", zeros)

    # time-embed MLP (real dims 32->16->16, zero-padded to 32 lanes)
    add_slot([("time/w1", xavier(HIDDEN, TIME_DIM)),
              ("time/w2", xavier(TIME_DIM, TIME_DIM))])
    add_vec("time/b1", zeros)
    add_vec("time/b2", zeros)

    for l in range(NUM_LAYERS):
        # co-input lane-packed projection slots
        add_slot([(f"L{l}/tri/wl", xavier(HIDDEN, HIDDEN)),
                  (f"L{l}/tri/w1b", xavier(HIDDEN, HIDDEN))])
        add_slot([(f"L{l}/tri/wrI", xavier(HIDDEN, HIDDEN)),
                  (f"L{l}/bipI/wl", xavier(HIDDEN, HIDDEN)),
                  (f"L{l}/bipI/w1b", xavier(HIDDEN, HIDDEN))])
        add_slot([(f"L{l}/tri/wrC", xavier(HIDDEN, HIDDEN)),
                  (f"L{l}/bipC/wl", xavier(HIDDEN, HIDDEN)),
                  (f"L{l}/bipC/w1b", xavier(HIDDEN, HIDDEN))])
        add_slot([(f"L{l}/bipI/wr", xavier(HIDDEN, HIDDEN)),
                  (f"L{l}/bipC/wr", xavier(HIDDEN, HIDDEN))])
        # per-conv message / output weights and vectors
        for conv in ("tri", "bipI", "bipC"):
            p = f"L{l}/{conv}"
            add_slot([(f"{p}/wf", xavier(HIDDEN, HIDDEN)),
                      (f"{p}/w1a", xavier(HIDDEN, HIDDEN)),
                      (f"{p}/w2", xavier(HIDDEN, HIDDEN))])
            add_vec(f"{p}/bl", zeros)
            add_vec(f"{p}/ln_g", ones)
            add_vec(f"{p}/ln_b", zeros)
            add_vec(f"{p}/bf", zeros)
            add_vec(f"{p}/post_g", ones)
            add_vec(f"{p}/post_b", zeros)
            add_vec(f"{p}/b1", zeros)
            add_vec(f"{p}/b2", zeros)
        add_vec(f"L{l}/tri/weI", xavier(D_EDGE, HIDDEN)[0])
        add_vec(f"L{l}/tri/weC", xavier(D_EDGE, HIDDEN)[0])
        add_vec(f"L{l}/bipI/we", xavier(D_EDGE, HIDDEN)[0])
        add_vec(f"L{l}/bipC/we", xavier(D_EDGE, HIDDEN)[0])
        # time linear + per-layer-out linears (compactly packed; different inputs)
        # NOTE(synk): reference wraps the per-layer-out Linear in zero_module()
        # (all-zero init); small non-zero values are used so the LN+SiLU+Linear
        # path is actually exercised by the test.
        add_slot([(f"L{l}/time/w", xavier(TIME_DIM, HIDDEN)),
                  (f"L{l}/plo/Ivars/w", xavier(HIDDEN, HIDDEN, 0.1)),
                  (f"L{l}/plo/Cvars/w", xavier(HIDDEN, HIDDEN, 0.1)),
                  (f"L{l}/plo/cons/w", xavier(HIDDEN, HIDDEN, 0.1))])
        add_vec(f"L{l}/time/b", zeros)
        for m in ("Ivars", "Cvars", "cons"):
            add_vec(f"L{l}/plo/{m}/ln_g", ones)
            add_vec(f"L{l}/plo/{m}/ln_b", zeros)
            add_vec(f"L{l}/plo/{m}/b", zeros)

    # output heads
    add_slot([("Iout/w", xavier(HIDDEN, MAX_INT)),
              ("Cout/w", xavier(HIDDEN, 1))])
    for h, oc in (("Iout", MAX_INT), ("Cout", 1)):
        add_vec(f"{h}/gn_g", ones)
        add_vec(f"{h}/gn_b", zeros)
        add_vec(f"{h}/b",
                pad_row((jax.random.uniform(nk(), (oc,), jnp.float32) - 0.5) * 0.1))

    return {"w": jnp.concatenate(slot_list, axis=0),    # (num_slots*32, 128)
            "vec": jnp.stack(vec_list, axis=0)}         # (num_vec, 32)


# --------------------------------------------------------------------- main --
if __name__ == "__main__":
    key = jax.random.PRNGKey(0)
    pkey, dkey = jax.random.split(key)
    params = init_params(pkey)

    ks = jax.random.split(dkey, 10)
    nC, nI, ncons = 10, 12, 8
    eC, eI = 24, 30
    x_Cvars = jax.random.normal(ks[0], (nC, D_CVARS), jnp.float32)
    x_Ivars = jax.random.normal(ks[1], (nI, D_IVARS), jnp.float32)
    x_cons = jax.random.normal(ks[2], (ncons, D_CONS), jnp.float32)
    C2cons_edge_index = jnp.stack([jax.random.randint(ks[3], (eC,), 0, nC),
                                   jax.random.randint(ks[4], (eC,), 0, ncons)])
    I2cons_edge_index = jnp.stack([jax.random.randint(ks[5], (eI,), 0, nI),
                                   jax.random.randint(ks[6], (eI,), 0, ncons)])
    C2cons_edge_attr = jax.random.normal(ks[7], (eC, D_EDGE), jnp.float32)
    I2cons_edge_attr = jax.random.normal(ks[8], (eI, D_EDGE), jnp.float32)
    timesteps = jnp.array([37], dtype=jnp.int32)     # batch of 1 -> broadcast path

    fwd = jax.jit(milp_gcn_forward)
    x_Ivars_out, x_Cvars_out = fwd(params, x_Cvars, x_Ivars, x_cons,
                                   C2cons_edge_attr, I2cons_edge_attr,
                                   C2cons_edge_index, I2cons_edge_index,
                                   timesteps)
    jax.block_until_ready((x_Ivars_out, x_Cvars_out))

    assert x_Ivars_out.shape == (nI, MAX_INT)
    assert x_Cvars_out.shape == (nC,)
    assert bool(jnp.all(jnp.isfinite(x_Ivars_out)))
    assert bool(jnp.all(jnp.isfinite(x_Cvars_out)))
    print("KERNEL_OK")
</pallas_src>

<mosaic_0001>
module attributes {stable_mosaic.version = 11 : i64} {
  func.func @_fused_forward_kernel(%arg0: memref<30x8xf32, #tpu.memory_space<vmem>>, %arg1: memref<54x1xf32, #tpu.memory_space<vmem>>, %arg2: memref<54x2xi32, #tpu.memory_space<vmem>>, %arg3: memref<1x32xf32, #tpu.memory_space<vmem>>, %arg4: memref<672x128xf32, #tpu.memory_space<vmem>>, %arg5: memref<90x32xf32, #tpu.memory_space<vmem>>, %arg6: memref<22x32xf32, #tpu.memory_space<vmem>>, %arg7: memref<32x32xf32, #tpu.memory_space<vmem>>) attributes {dimension_semantics = [], scalar_prefetch = 0 : i64, scratch_operands = 1 : i64, tpu.core_type = #tpu.core_type<tc>} {
    %c0 = arith.constant 0 : index
    %c0_0 = arith.constant 0 : index
    %0 = vector.load %arg4[%c0, %c0_0] : memref<672x128xf32, #tpu.memory_space<vmem>>, vector<672x128xf32>
    %1 = arith.truncf %0 : vector<672x128xf32> to vector<672x128xbf16>
    %2 = tpu.iota {dimensions = array<i32: 1>} : vector<54x32xi32>
    %c0_1 = arith.constant 0 : index
    %c0_2 = arith.constant 0 : index
    %3 = vector.load %arg2[%c0_1, %c0_2] : memref<54x2xi32, #tpu.memory_space<vmem>>, vector<54x1xi32>
    %c0_3 = arith.constant 0 : index
    %c1 = arith.constant 1 : index
    %4 = vector.load %arg2[%c0_3, %c1] : memref<54x2xi32, #tpu.memory_space<vmem>>, vector<54x1xi32>
    %5 = vector.broadcast %3 : vector<54x1xi32> to vector<54x32xi32>
    %6 = arith.cmpi eq, %2, %5 : vector<54x32xi32>
    %7 = vector.broadcast %4 : vector<54x1xi32> to vector<54x32xi32>
    %8 = arith.cmpi eq, %2, %7 : vector<54x32xi32>
    %9 = arith.ori %6, %8 : vector<54x32xi1>
    %cst = arith.constant 1.000000e+00 : f32
    %cst_4 = arith.constant 0.000000e+00 : f32
    %10 = vector.broadcast %cst : f32 to vector<54x32xf32>
    %11 = vector.broadcast %cst_4 : f32 to vector<54x32xf32>
    %12 = arith.select %9, %10, %11 : vector<54x32xi1>, vector<54x32xf32>
    %13 = arith.truncf %12 : vector<54x32xf32> to vector<54x32xbf16>
    %c0_5 = arith.constant 0 : index
    %c0_6 = arith.constant 0 : index
    %14 = vector.load %arg1[%c0_5, %c0_6] : memref<54x1xf32, #tpu.memory_space<vmem>>, vector<54x1xf32>
    %15 = tpu.iota {dimensions = array<i32: 0>} : vector<54x1xi32>
    %c30_i32 = arith.constant 30 : i32
    %16 = vector.broadcast %c30_i32 : i32 to vector<54x1xi32>
    %17 = arith.cmpi slt, %15, %16 : vector<54x1xi32>
    %cst_7 = arith.constant 0.000000e+00 : f32
    %18 = vector.broadcast %cst_7 : f32 to vector<32x32xf32>
    %c0_8 = arith.constant 0 : index
    %c0_9 = arith.constant 0 : index
    %19 = vector.load %arg7[%c0_8, %c0_9] : memref<32x32xf32, #tpu.memory_space<vmem>>, vector<32x32xf32>
    tpu.vector_store %arg7[%c0_8, %c0_9], %18 {strides = array<i32>} : memref<32x32xf32, #tpu.memory_space<vmem>>, vector<32x32xf32>,
    %c0_10 = arith.constant 0 : index
    %c0_11 = arith.constant 0 : index
    %20 = vector.load %arg0[%c0_10, %c0_11] : memref<30x8xf32, #tpu.memory_space<vmem>>, vector<8x8xf32>
    %21 = arith.truncf %20 : vector<8x8xf32> to vector<8x8xbf16>
    %22 = vector.extract_strided_slice %1 {offsets = [0, 0], sizes = [8, 128], strides = [1, 1]} : vector<672x128xbf16> to vector<8x128xbf16>
    %cst_12 = arith.constant dense<0.000000e+00> : vector<8x128xf32>
    %23 = tpu.matmul %21, %22, %cst_12 {dimension_numbers = #tpu.dot_dimension_numbers<[1], [0], [0], [1], [0, 0, 1, 1], [], []>} : vector<8x8xbf16>, vector<8x128xbf16>, vector<8x128xf32> -> vector<8x128xf32>
    %24 = vector.extract_strided_slice %23 {offsets = [0, 0], sizes = [8, 32], strides = [1, 1]} : vector<8x128xf32> to vector<8x32xf32>
    %c0_13 = arith.constant 0 : index
    %c0_14 = arith.constant 0 : index
    %25 = vector.load %arg5[%c0_13, %c0_14] : memref<90x32xf32, #tpu.memory_space<vmem>>, vector<1x32xf32>
    %26 = vector.broadcast %25 : vector<1x32xf32> to vector<8x32xf32>
    %27 = arith.addf %24, %26 : vector<8x32xf32>
    %cst_15 = arith.constant 0.000000e+00 : f32
    %28 = vector.broadcast %cst_15 : f32 to vector<8x32xf32>
    %29 = arith.maximumf %27, %28 : vector<8x32xf32>
    %30 = arith.truncf %29 : vector<8x32xf32> to vector<8x32xbf16>
    %31 = vector.extract_strided_slice %1 {offsets = [0, 0], sizes = [32, 128], strides = [1, 1]} : vector<672x128xbf16> to vector<32x128xbf16>
    %cst_16 = arith.constant dense<0.000000e+00> : vector<8x128xf32>
    %32 = tpu.matmul %30, %31, %cst_16 {dimension_numbers = #tpu.dot_dimension_numbers<[1], [0], [0], [1], [0, 0, 1, 1], [], []>} : vector<8x32xbf16>, vector<32x128xbf16>, vector<8x128xf32> -> vector<8x128xf32>
    %33 = vector.extract_strided_slice %32 {offsets = [0, 32], sizes = [8, 32], strides = [1, 1]} : vector<8x128xf32> to vector<8x32xf32>
    %c1_17 = arith.constant 1 : index
    %c0_18 = arith.constant 0 : index
    %34 = vector.load %arg5[%c1_17, %c0_18] : memref<90x32xf32, #tpu.memory_space<vmem>>, vector<1x32xf32>
    %35 = vector.broadcast %34 : vector<1x32xf32> to vector<8x32xf32>
    %36 = arith.addf %33, %35 : vector<8x32xf32>
    %c8 = arith.constant 8 : index
    %c0_19 = arith.constant 0 : index
    %37 = vector.load %arg0[%c8, %c0_19] : memref<30x8xf32, #tpu.memory_space<vmem>>, vector<12x8xf32>
    %38 = arith.truncf %37 : vector<12x8xf32> to vector<12x8xbf16>
    %39 = vector.extract_strided_slice %1 {offsets = [32, 0], sizes = [8, 128], strides = [1, 1]} : vector<672x128xbf16> to vector<8x128xbf16>
    %cst_20 = arith.constant dense<0.000000e+00> : vector<12x128xf32>
    %40 = tpu.matmul %38, %39, %cst_20 {dimension_numbers = #tpu.dot_dimension_numbers<[1], [0], [0], [1], [0, 0, 1, 1], [], []>} : vector<12x8xbf16>, vector<8x128xbf16>, vector<12x128xf32> -> vector<12x128xf32>
    %41 = vector.extract_strided_slice %40 {offsets = [0, 0], sizes = [12, 32], strides = [1, 1]} : vector<12x128xf32> to vector<12x32xf32>
    %c2 = arith.constant 2 : index
    %c0_21 = arith.constant 0 : index
    %42 = vector.load %arg5[%c2, %c0_21] : memref<90x32xf32, #tpu.memory_space<vmem>>, vector<1x32xf32>
    %43 = vector.broadcast %42 : vector<1x32xf32> to vector<12x32xf32>
    %44 = arith.addf %41, %43 : vector<12x32xf32>
    %cst_22 = arith.constant 0.000000e+00 : f32
    %45 = vector.broadcast %cst_22 : f32 to vector<12x32xf32>
    %46 = arith.maximumf %44, %45 : vector<12x32xf32>
    %47 = arith.truncf %46 : vector<12x32xf32> to vector<12x32xbf16>
    %48 = vector.extract_strided_slice %1 {offsets = [32, 0], sizes = [32, 128], strides = [1, 1]} : vector<672x128xbf16> to vector<32x128xbf16>
    %cst_23 = arith.constant dense<0.000000e+00> : vector<12x128xf32>
    %49 = tpu.matmul %47, %48, %cst_23 {dimension_numbers = #tpu.dot_dimension_numbers<[1], [0], [0], [1], [0, 0, 1, 1], [], []>} : vector<12x32xbf16>, vector<32x128xbf16>, vector<12x128xf32> -> vector<12x128xf32>
    %50 = vector.extract_strided_slice %49 {offsets = [0, 32], sizes = [12, 32], strides = [1, 1]} : vector<12x128xf32> to vector<12x32xf32>
    %c3 = arith.constant 3 : index
    %c0_24 = arith.constant 0 : index
    %51 = vector.load %arg5[%c3, %c0_24] : memref<90x32xf32, #tpu.memory_space<vmem>>, vector<1x32xf32>
    %52 = vector.broadcast %51 : vector<1x32xf32> to vector<12x32xf32>
    %53 = arith.addf %50, %52 : vector<12x32xf32>
    %c20 = arith.constant 20 : index
    %c0_25 = arith.constant 0 : index
    %54 = vector.load %arg0[%c20, %c0_25] : memref<30x8xf32, #tpu.memory_space<vmem>>, vector<10x8xf32>
    %55 = arith.truncf %54 : vector<10x8xf32> to vector<10x8xbf16>
    %56 = vector.extract_strided_slice %1 {offsets = [64, 0], sizes = [8, 128], strides = [1, 1]} : vector<672x128xbf16> to vector<8x128xbf16>
    %cst_26 = arith.constant dense<0.000000e+00> : vector<10x128xf32>
    %57 = tpu.matmul %55, %56, %cst_26 {dimension_numbers = #tpu.dot_dimension_numbers<[1], [0], [0], [1], [0, 0, 1, 1], [], []>} : vector<10x8xbf16>, vector<8x128xbf16>, vector<10x128xf32> -> vector<10x128xf32>
    %58 = vector.extract_strided_slice %57 {offsets = [0, 0], sizes = [10, 32], strides = [1, 1]} : vector<10x128xf32> to vector<10x32xf32>
    %c4 = arith.constant 4 : index
    %c0_27 = arith.constant 0 : index
    %59 = vector.load %arg5[%c4, %c0_27] : memref<90x32xf32, #tpu.memory_space<vmem>>, vector<1x32xf32>
    %60 = vector.broadcast %59 : vector<1x32xf32> to vector<10x32xf32>
    %61 = arith.addf %58, %60 : vector<10x32xf32>
    %cst_28 = arith.constant 0.000000e+00 : f32
    %62 = vector.broadcast %cst_28 : f32 to vector<10x32xf32>
    %63 = arith.maximumf %61, %62 : vector<10x32xf32>
    %64 = arith.truncf %63 : vector<10x32xf32> to vector<10x32xbf16>
    %65 = vector.extract_strided_slice %1 {offsets = [64, 0], sizes = [32, 128], strides = [1, 1]} : vector<672x128xbf16> to vector<32x128xbf16>
    %cst_29 = arith.constant dense<0.000000e+00> : vector<10x128xf32>
    %66 = tpu.matmul %64, %65, %cst_29 {dimension_numbers = #tpu.dot_dimension_numbers<[1], [0], [0], [1], [0, 0, 1, 1], [], []>} : vector<10x32xbf16>, vector<32x128xbf16>, vector<10x128xf32> -> vector<10x128xf32>
    %67 = vector.extract_strided_slice %66 {offsets = [0, 32], sizes = [10, 32], strides = [1, 1]} : vector<10x128xf32> to vector<10x32xf32>
    %c5 = arith.constant 5 : index
    %c0_30 = arith.constant 0 : index
    %68 = vector.load %arg5[%c5, %c0_30] : memref<90x32xf32, #tpu.memory_space<vmem>>, vector<1x32xf32>
    %69 = vector.broadcast %68 : vector<1x32xf32> to vector<10x32xf32>
    %70 = arith.addf %67, %69 : vector<10x32xf32>
    %c0_31 = arith.constant 0 : index
    %c0_32 = arith.constant 0 : index
    %71 = vector.load %arg3[%c0_31, %c0_32] : memref<1x32xf32, #tpu.memory_space<vmem>>, vector<1x32xf32>
    %72 = arith.truncf %71 : vector<1x32xf32> to vector<1x32xbf16>
    %73 = vector.extract_strided_slice %1 {offsets = [96, 0], sizes = [32, 128], strides = [1, 1]} : vector<672x128xbf16> to vector<32x128xbf16>
    %cst_33 = arith.constant dense<0.000000e+00> : vector<1x128xf32>
    %74 = tpu.matmul %72, %73, %cst_33 {dimension_numbers = #tpu.dot_dimension_numbers<[1], [0], [0], [1], [0, 0, 1, 1], [], []>} : vector<1x32xbf16>, vector<32x128xbf16>, vector<1x128xf32> -> vector<1x128xf32>
    %75 = vector.extract_strided_slice %74 {offsets = [0, 0], sizes = [1, 32], strides = [1, 1]} : vector<1x128xf32> to vector<1x32xf32>
    %c6 = arith.constant 6 : index
    %c0_34 = arith.constant 0 : index
    %76 = vector.load %arg5[%c6, %c0_34] : memref<90x32xf32, #tpu.memory_space<vmem>>, vector<1x32xf32>
    %77 = arith.addf %75, %76 : vector<1x32xf32>
    %cst_35 = arith.constant 0.000000e+00 : f32
    %78 = vector.broadcast %cst_35 : f32 to vector<1x32xf32>
    %79 = arith.maximumf %77, %78 : vector<1x32xf32>
    %80 = arith.truncf %79 : vector<1x32xf32> to vector<1x32xbf16>
    %81 = vector.extract_strided_slice %1 {offsets = [96, 0], sizes = [32, 128], strides = [1, 1]} : vector<672x128xbf16> to vector<32x128xbf16>
    %cst_36 = arith.constant dense<0.000000e+00> : vector<1x128xf32>
    %82 = tpu.matmul %80, %81, %cst_36 {dimension_numbers = #tpu.dot_dimension_numbers<[1], [0], [0], [1], [0, 0, 1, 1], [], []>} : vector<1x32xbf16>, vector<32x128xbf16>, vector<1x128xf32> -> vector<1x128xf32>
    %83 = vector.extract_strided_slice %82 {offsets = [0, 32], sizes = [1, 32], strides = [1, 1]} : vector<1x128xf32> to vector<1x32xf32>
    %c7 = arith.constant 7 : index
    %c0_37 = arith.constant 0 : index
    %84 = vector.load %arg5[%c7, %c0_37] : memref<90x32xf32, #tpu.memory_space<vmem>>, vector<1x32xf32>
    %85 = arith.addf %83, %84 : vector<1x32xf32>
    %86 = arith.truncf %36 : vector<8x32xf32> to vector<8x32xbf16>
    %87 = vector.extract_strided_slice %1 {offsets = [128, 0], sizes = [32, 128], strides = [1, 1]} : vector<672x128xbf16> to vector<32x128xbf16>
    %cst_38 = arith.constant dense<0.000000e+00> : vector<8x128xf32>
    %88 = tpu.matmul %86, %87, %cst_38 {dimension_numbers = #tpu.dot_dimension_numbers<[1], [0], [0], [1], [0, 0, 1, 1], [], []>} : vector<8x32xbf16>, vector<32x128xbf16>, vector<8x128xf32> -> vector<8x128xf32>
    %89 = vector.extract_strided_slice %88 {offsets = [0, 0], sizes = [8, 32], strides = [1, 1]} : vector<8x128xf32> to vector<8x32xf32>
    %90 = vector.extract_strided_slice %88 {offsets = [0, 32], sizes = [8, 32], strides = [1, 1]} : vector<8x128xf32> to vector<8x32xf32>
    %c8_39 = arith.constant 8 : index
    %c0_40 = arith.constant 0 : index
    %91 = vector.load %arg5[%c8_39, %c0_40] : memref<90x32xf32, #tpu.memory_space<vmem>>, vector<1x32xf32>
    %92 = vector.broadcast %91 : vector<1x32xf32> to vector<8x32xf32>
    %93 = arith.addf %89, %92 : vector<8x32xf32>
    %94 = arith.truncf %53 : vector<12x32xf32> to vector<12x32xbf16>
    %95 = vector.extract_strided_slice %1 {offsets = [160, 0], sizes = [32, 128], strides = [1, 1]} : vector<672x128xbf16> to vector<32x128xbf16>
    %cst_41 = arith.constant dense<0.000000e+00> : vector<12x128xf32>
    %96 = tpu.matmul %94, %95, %cst_41 {dimension_numbers = #tpu.dot_dimension_numbers<[1], [0], [0], [1], [0, 0, 1, 1], [], []>} : vector<12x32xbf16>, vector<32x128xbf16>, vector<12x128xf32> -> vector<12x128xf32>
    %97 = vector.extract_strided_slice %96 {offsets = [0, 0], sizes = [12, 32], strides = [1, 1]} : vector<12x128xf32> to vector<12x32xf32>
    %98 = vector.extract_strided_slice %96 {offsets = [0, 32], sizes = [12, 32], strides = [1, 1]} : vector<12x128xf32> to vector<12x32xf32>
    %99 = vector.extract_strided_slice %96 {offsets = [0, 64], sizes = [12, 32], strides = [1, 1]} : vector<12x128xf32> to vector<12x32xf32>
    %c16 = arith.constant 16 : index
    %c0_42 = arith.constant 0 : index
    %100 = vector.load %arg5[%c16, %c0_42] : memref<90x32xf32, #tpu.memory_space<vmem>>, vector<1x32xf32>
    %101 = vector.broadcast %100 : vector<1x32xf32> to vector<12x32xf32>
    %102 = arith.addf %98, %101 : vector<12x32xf32>
    %103 = arith.truncf %70 : vector<10x32xf32> to vector<10x32xbf16>
    %104 = vector.extract_strided_slice %1 {offsets = [192, 0], sizes = [32, 128], strides = [1, 1]} : vector<672x128xbf16> to vector<32x128xbf16>
    %cst_43 = arith.constant dense<0.000000e+00> : vector<10x128xf32>
    %105 = tpu.matmul %103, %104, %cst_43 {dimension_numbers = #tpu.dot_dimension_numbers<[1], [0], [0], [1], [0, 0, 1, 1], [], []>} : vector<10x32xbf16>, vector<32x128xbf16>, vector<10x128xf32> -> vector<10x128xf32>
    %106 = vector.extract_strided_slice %105 {offsets = [0, 0], sizes = [10, 32], strides = [1, 1]} : vector<10x128xf32> to vector<10x32xf32>
    %107 = vector.extract_strided_slice %105 {offsets = [0, 32], sizes = [10, 32], strides = [1, 1]} : vector<10x128xf32> to vector<10x32xf32>
    %108 = vector.extract_strided_slice %105 {offsets = [0, 64], sizes = [10, 32], strides = [1, 1]} : vector<10x128xf32> to vector<10x32xf32>
    %c24 = arith.constant 24 : index
    %c0_44 = arith.constant 0 : index
    %109 = vector.load %arg5[%c24, %c0_44] : memref<90x32xf32, #tpu.memory_space<vmem>>, vector<1x32xf32>
    %110 = vector.broadcast %109 : vector<1x32xf32> to vector<10x32xf32>
    %111 = arith.addf %107, %110 : vector<10x32xf32>
    %c0_45 = arith.constant 0 : index
    %c0_46 = arith.constant 0 : index
    %112 = vector.load %arg7[%c0_45, %c0_46] : memref<32x32xf32, #tpu.memory_space<vmem>>, vector<8x32xf32>
    tpu.vector_store %arg7[%c0_45, %c0_46], %93 {strides = array<i32>} : memref<32x32xf32, #tpu.memory_space<vmem>>, vector<8x32xf32>,
    %c8_47 = arith.constant 8 : index
    %c0_48 = arith.constant 0 : index
    %113 = vector.load %arg7[%c8_47, %c0_48] : memref<32x32xf32, #tpu.memory_space<vmem>>, vector<12x32xf32>
    tpu.vector_store %arg7[%c8_47, %c0_48], %97 {strides = array<i32>} : memref<32x32xf32, #tpu.memory_space<vmem>>, vector<12x32xf32>,
    %c20_49 = arith.constant 20 : index
    %c0_50 = arith.constant 0 : index
    %114 = vector.load %arg7[%c20_49, %c0_50] : memref<32x32xf32, #tpu.memory_space<vmem>>, vector<10x32xf32>
    tpu.vector_store %arg7[%c20_49, %c0_50], %106 {strides = array<i32>} : memref<32x32xf32, #tpu.memory_space<vmem>>, vector<10x32xf32>,
    %c32 = arith.constant 32 : index
    %c0_51 = arith.constant 0 : index
    %115 = vector.load %arg5[%c32, %c0_51] : memref<90x32xf32, #tpu.memory_space<vmem>>, vector<1x32xf32>
    %c33 = arith.constant 33 : index
    %c0_52 = arith.constant 0 : index
    %116 = vector.load %arg5[%c33, %c0_52] : memref<90x32xf32, #tpu.memory_space<vmem>>, vector<1x32xf32>
    %117 = vector.shape_cast %17 : vector<54x1xi1> to vector<54x1xi1>
    %118 = vector.broadcast %117 : vector<54x1xi1> to vector<54x32xi1>
    %119 = vector.shape_cast %115 : vector<1x32xf32> to vector<1x32xf32>
    %120 = vector.broadcast %119 : vector<1x32xf32> to vector<54x32xf32>
    %121 = vector.shape_cast %116 : vector<1x32xf32> to vector<1x32xf32>
    %122 = vector.broadcast %121 : vector<1x32xf32> to vector<54x32xf32>
    %123 = arith.select %118, %120, %122 : vector<54x32xi1>, vector<54x32xf32>
    %c0_53 = arith.constant 0 : index
    %c0_54 = arith.constant 0 : index
    %124 = vector.load %arg7[%c0_53, %c0_54] : memref<32x32xf32, #tpu.memory_space<vmem>>, vector<32x32xf32>
    %125 = arith.truncf %124 : vector<32x32xf32> to vector<32x32xbf16>
    %cst_55 = arith.constant dense<0.000000e+00> : vector<54x32xf32>
    %126 = tpu.matmul %13, %125, %cst_55 {dimension_numbers = #tpu.dot_dimension_numbers<[1], [0], [0], [1], [0, 0, 1, 1], [], []>} : vector<54x32xbf16>, vector<32x32xbf16>, vector<54x32xf32> -> vector<54x32xf32>
    %127 = vector.broadcast %14 : vector<54x1xf32> to vector<54x32xf32>
    %128 = arith.mulf %127, %123 : vector<54x32xf32>
    %129 = arith.addf %126, %128 : vector<54x32xf32>
    %c9 = arith.constant 9 : index
    %c0_56 = arith.constant 0 : index
    %130 = vector.load %arg5[%c9, %c0_56] : memref<90x32xf32, #tpu.memory_space<vmem>>, vector<1x32xf32>
    %c10 = arith.constant 10 : index
    %c0_57 = arith.constant 0 : index
    %131 = vector.load %arg5[%c10, %c0_57] : memref<90x32xf32, #tpu.memory_space<vmem>>, vector<1x32xf32>
    %cst_58 = arith.constant dense<0.000000e+00> : vector<54xf32>
    %132 = vector.multi_reduction <add>, %129, %cst_58 [1] : vector<54x32xf32> to vector<54xf32>
    %133 = vector.shape_cast %132 : vector<54xf32> to vector<54x1xf32>
    %cst_59 = arith.constant 3.125000e-02 : f32
    %134 = vector.broadcast %cst_59 : f32 to vector<54x1xf32>
    %135 = arith.mulf %133, %134 : vector<54x1xf32>
    %136 = arith.mulf %129, %129 : vector<54x32xf32>
    %cst_60 = arith.constant dense<0.000000e+00> : vector<54xf32>
    %137 = vector.multi_reduction <add>, %136, %cst_60 [1] : vector<54x32xf32> to vector<54xf32>
    %138 = vector.shape_cast %137 : vector<54xf32> to vector<54x1xf32>
    %cst_61 = arith.constant 3.125000e-02 : f32
    %139 = vector.broadcast %cst_61 : f32 to vector<54x1xf32>
    %140 = arith.mulf %138, %139 : vector<54x1xf32>
    %141 = arith.mulf %135, %135 : vector<54x1xf32>
    %142 = arith.subf %140, %141 : vector<54x1xf32>
    %cst_62 = arith.constant 0.000000e+00 : f32
    %143 = vector.broadcast %cst_62 : f32 to vector<54x1xf32>
    %144 = arith.maximumf %142, %143 : vector<54x1xf32>
    %145 = vector.broadcast %135 : vector<54x1xf32> to vector<54x32xf32>
    %146 = arith.subf %129, %145 : vector<54x32xf32>
    %cst_63 = arith.constant 9.99999974E-6 : f32
    %147 = vector.broadcast %cst_63 : f32 to vector<54x1xf32>
    %148 = arith.addf %144, %147 : vector<54x1xf32>
    %149 = math.rsqrt %148 : vector<54x1xf32>
    %150 = vector.broadcast %149 : vector<54x1xf32> to vector<54x32xf32>
    %151 = arith.mulf %146, %150 : vector<54x32xf32>
    %152 = vector.broadcast %130 : vector<1x32xf32> to vector<54x32xf32>
    %153 = arith.mulf %151, %152 : vector<54x32xf32>
    %154 = vector.broadcast %131 : vector<1x32xf32> to vector<54x32xf32>
    %155 = arith.addf %153, %154 : vector<54x32xf32>
    %cst_64 = arith.constant 0.000000e+00 : f32
    %156 = vector.broadcast %cst_64 : f32 to vector<54x32xf32>
    %157 = arith.maximumf %155, %156 : vector<54x32xf32>
    %158 = arith.truncf %157 : vector<54x32xf32> to vector<54x32xbf16>
    %159 = vector.extract_strided_slice %1 {offsets = [256, 0], sizes = [32, 128], strides = [1, 1]} : vector<672x128xbf16> to vector<32x128xbf16>
    %cst_65 = arith.constant dense<0.000000e+00> : vector<54x128xf32>
    %160 = tpu.matmul %158, %159, %cst_65 {dimension_numbers = #tpu.dot_dimension_numbers<[1], [0], [0], [1], [0, 0, 1, 1], [], []>} : vector<54x32xbf16>, vector<32x128xbf16>, vector<54x128xf32> -> vector<54x128xf32>
    %161 = vector.extract_strided_slice %160 {offsets = [0, 0], sizes = [54, 32], strides = [1, 1]} : vector<54x128xf32> to vector<54x32xf32>
    %c11 = arith.constant 11 : index
    %c0_66 = arith.constant 0 : index
    %162 = vector.load %arg5[%c11, %c0_66] : memref<90x32xf32, #tpu.memory_space<vmem>>, vector<1x32xf32>
    %163 = vector.broadcast %162 : vector<1x32xf32> to vector<54x32xf32>
    %164 = arith.addf %161, %163 : vector<54x32xf32>
    %165 = arith.truncf %164 : vector<54x32xf32> to vector<54x32xbf16>
    %cst_67 = arith.constant dense<0.000000e+00> : vector<32x32xf32>
    %166 = tpu.matmul %13, %165, %cst_67 {dimension_numbers = #tpu.dot_dimension_numbers<[0], [0], [1], [1], [0, 1, 1, 1], [], []>} : vector<54x32xbf16>, vector<54x32xbf16>, vector<32x32xf32> -> vector<32x32xf32>
    %167 = vector.extract_strided_slice %166 {offsets = [0, 0], sizes = [8, 32], strides = [1, 1]} : vector<32x32xf32> to vector<8x32xf32>
    %c12 = arith.constant 12 : index
    %c0_68 = arith.constant 0 : index
    %168 = vector.load %arg5[%c12, %c0_68] : memref<90x32xf32, #tpu.memory_space<vmem>>, vector<1x32xf32>
    %c13 = arith.constant 13 : index
    %c0_69 = arith.constant 0 : index
    %169 = vector.load %arg5[%c13, %c0_69] : memref<90x32xf32, #tpu.memory_space<vmem>>, vector<1x32xf32>
    %cst_70 = arith.constant dense<0.000000e+00> : vector<8xf32>
    %170 = vector.multi_reduction <add>, %167, %cst_70 [1] : vector<8x32xf32> to vector<8xf32>
    %171 = vector.shape_cast %170 : vector<8xf32> to vector<8x1xf32>
    %cst_71 = arith.constant 3.125000e-02 : f32
    %172 = vector.broadcast %cst_71 : f32 to vector<8x1xf32>
    %173 = arith.mulf %171, %172 : vector<8x1xf32>
    %174 = arith.mulf %167, %167 : vector<8x32xf32>
    %cst_72 = arith.constant dense<0.000000e+00> : vector<8xf32>
    %175 = vector.multi_reduction <add>, %174, %cst_72 [1] : vector<8x32xf32> to vector<8xf32>
    %176 = vector.shape_cast %175 : vector<8xf32> to vector<8x1xf32>
    %cst_73 = arith.constant 3.125000e-02 : f32
    %177 = vector.broadcast %cst_73 : f32 to vector<8x1xf32>
    %178 = arith.mulf %176, %177 : vector<8x1xf32>
    %179 = arith.mulf %173, %173 : vector<8x1xf32>
    %180 = arith.subf %178, %179 : vector<8x1xf32>
    %cst_74 = arith.constant 0.000000e+00 : f32
    %181 = vector.broadcast %cst_74 : f32 to vector<8x1xf32>
    %182 = arith.maximumf %180, %181 : vector<8x1xf32>
    %183 = vector.broadcast %173 : vector<8x1xf32> to vector<8x32xf32>
    %184 = arith.subf %167, %183 : vector<8x32xf32>
    %cst_75 = arith.constant 9.99999974E-6 : f32
    %185 = vector.broadcast %cst_75 : f32 to vector<8x1xf32>
    %186 = arith.addf %182, %185 : vector<8x1xf32>
    %187 = math.rsqrt %186 : vector<8x1xf32>
    %188 = vector.broadcast %187 : vector<8x1xf32> to vector<8x32xf32>
    %189 = arith.mulf %184, %188 : vector<8x32xf32>
    %190 = vector.broadcast %168 : vector<1x32xf32> to vector<8x32xf32>
    %191 = arith.mulf %189, %190 : vector<8x32xf32>
    %192 = vector.broadcast %169 : vector<1x32xf32> to vector<8x32xf32>
    %193 = arith.addf %191, %192 : vector<8x32xf32>
    %194 = arith.truncf %193 : vector<8x32xf32> to vector<8x32xbf16>
    %195 = vector.extract_strided_slice %1 {offsets = [256, 0], sizes = [32, 128], strides = [1, 1]} : vector<672x128xbf16> to vector<32x128xbf16>
    %cst_76 = arith.constant dense<0.000000e+00> : vector<8x128xf32>
    %196 = tpu.matmul %194, %195, %cst_76 {dimension_numbers = #tpu.dot_dimension_numbers<[1], [0], [0], [1], [0, 0, 1, 1], [], []>} : vector<8x32xbf16>, vector<32x128xbf16>, vector<8x128xf32> -> vector<8x128xf32>
    %197 = vector.extract_strided_slice %196 {offsets = [0, 32], sizes = [8, 32], strides = [1, 1]} : vector<8x128xf32> to vector<8x32xf32>
    %198 = arith.addf %197, %90 : vector<8x32xf32>
    %c14 = arith.constant 14 : index
    %c0_77 = arith.constant 0 : index
    %199 = vector.load %arg5[%c14, %c0_77] : memref<90x32xf32, #tpu.memory_space<vmem>>, vector<1x32xf32>
    %200 = vector.broadcast %199 : vector<1x32xf32> to vector<8x32xf32>
    %201 = arith.addf %198, %200 : vector<8x32xf32>
    %cst_78 = arith.constant 0.000000e+00 : f32
    %202 = vector.broadcast %cst_78 : f32 to vector<8x32xf32>
    %203 = arith.maximumf %201, %202 : vector<8x32xf32>
    %204 = arith.truncf %203 : vector<8x32xf32> to vector<8x32xbf16>
    %205 = vector.extract_strided_slice %1 {offsets = [256, 0], sizes = [32, 128], strides = [1, 1]} : vector<672x128xbf16> to vector<32x128xbf16>
    %cst_79 = arith.constant dense<0.000000e+00> : vector<8x128xf32>
    %206 = tpu.matmul %204, %205, %cst_79 {dimension_numbers = #tpu.dot_dimension_numbers<[1], [0], [0], [1], [0, 0, 1, 1], [], []>} : vector<8x32xbf16>, vector<32x128xbf16>, vector<8x128xf32> -> vector<8x128xf32>
    %207 = vector.extract_strided_slice %206 {offsets = [0, 64], sizes = [8, 32], strides = [1, 1]} : vector<8x128xf32> to vector<8x32xf32>
    %c15 = arith.constant 15 : index
    %c0_80 = arith.constant 0 : index
    %208 = vector.load %arg5[%c15, %c0_80] : memref<90x32xf32, #tpu.memory_space<vmem>>, vector<1x32xf32>
    %209 = vector.broadcast %208 : vector<1x32xf32> to vector<8x32xf32>
    %210 = arith.addf %207, %209 : vector<8x32xf32>
    %211 = arith.truncf %210 : vector<8x32xf32> to vector<8x32xbf16>
    %212 = vector.extract_strided_slice %1 {offsets = [224, 0], sizes = [32, 128], strides = [1, 1]} : vector<672x128xbf16> to vector<32x128xbf16>
    %cst_81 = arith.constant dense<0.000000e+00> : vector<8x128xf32>
    %213 = tpu.matmul %211, %212, %cst_81 {dimension_numbers = #tpu.dot_dimension_numbers<[1], [0], [0], [1], [0, 0, 1, 1], [], []>} : vector<8x32xbf16>, vector<32x128xbf16>, vector<8x128xf32> -> vector<8x128xf32>
    %214 = vector.extract_strided_slice %213 {offsets = [0, 0], sizes = [8, 32], strides = [1, 1]} : vector<8x128xf32> to vector<8x32xf32>
    %215 = vector.extract_strided_slice %213 {offsets = [0, 32], sizes = [8, 32], strides = [1, 1]} : vector<8x128xf32> to vector<8x32xf32>
    %c8_82 = arith.constant 8 : index
    %c0_83 = arith.constant 0 : index
    %216 = vector.load %arg7[%c8_82, %c0_83] : memref<32x32xf32, #tpu.memory_space<vmem>>, vector<12x32xf32>
    tpu.vector_store %arg7[%c8_82, %c0_83], %102 {strides = array<i32>} : memref<32x32xf32, #tpu.memory_space<vmem>>, vector<12x32xf32>,
    %c20_84 = arith.constant 20 : index
    %c0_85 = arith.constant 0 : index
    %217 = vector.load %arg7[%c20_84, %c0_85] : memref<32x32xf32, #tpu.memory_space<vmem>>, vector<10x32xf32>
    tpu.vector_store %arg7[%c20_84, %c0_85], %111 {strides = array<i32>} : memref<32x32xf32, #tpu.memory_space<vmem>>, vector<10x32xf32>,
    %c0_86 = arith.constant 0 : index
    %c0_87 = arith.constant 0 : index
    %218 = vector.load %arg7[%c0_86, %c0_87] : memref<32x32xf32, #tpu.memory_space<vmem>>, vector<8x32xf32>
    tpu.vector_store %arg7[%c0_86, %c0_87], %214 {strides = array<i32>} : memref<32x32xf32, #tpu.memory_space<vmem>>, vector<8x32xf32>,
    %c34 = arith.constant 34 : index
    %c0_88 = arith.constant 0 : index
    %219 = vector.load %arg5[%c34, %c0_88] : memref<90x32xf32, #tpu.memory_space<vmem>>, vector<1x32xf32>
    %c0_89 = arith.constant 0 : index
    %c0_90 = arith.constant 0 : index
    %220 = vector.load %arg7[%c0_89, %c0_90] : memref<32x32xf32, #tpu.memory_space<vmem>>, vector<32x32xf32>
    %221 = arith.truncf %220 : vector<32x32xf32> to vector<32x32xbf16>
    %cst_91 = arith.constant dense<0.000000e+00> : vector<54x32xf32>
    %222 = tpu.matmul %13, %221, %cst_91 {dimension_numbers = #tpu.dot_dimension_numbers<[1], [0], [0], [1], [0, 0, 1, 1], [], []>} : vector<54x32xbf16>, vector<32x32xbf16>, vector<54x32xf32> -> vector<54x32xf32>
    %223 = vector.broadcast %14 : vector<54x1xf32> to vector<54x32xf32>
    %224 = vector.broadcast %219 : vector<1x32xf32> to vector<54x32xf32>
    %225 = arith.mulf %223, %224 : vector<54x32xf32>
    %226 = arith.addf %222, %225 : vector<54x32xf32>
    %c17 = arith.constant 17 : index
    %c0_92 = arith.constant 0 : index
    %227 = vector.load %arg5[%c17, %c0_92] : memref<90x32xf32, #tpu.memory_space<vmem>>, vector<1x32xf32>
    %c18 = arith.constant 18 : index
    %c0_93 = arith.constant 0 : index
    %228 = vector.load %arg5[%c18, %c0_93] : memref<90x32xf32, #tpu.memory_space<vmem>>, vector<1x32xf32>
    %cst_94 = arith.constant dense<0.000000e+00> : vector<54xf32>
    %229 = vector.multi_reduction <add>, %226, %cst_94 [1] : vector<54x32xf32> to vector<54xf32>
    %230 = vector.shape_cast %229 : vector<54xf32> to vector<54x1xf32>
    %cst_95 = arith.constant 3.125000e-02 : f32
    %231 = vector.broadcast %cst_95 : f32 to vector<54x1xf32>
    %232 = arith.mulf %230, %231 : vector<54x1xf32>
    %233 = arith.mulf %226, %226 : vector<54x32xf32>
    %cst_96 = arith.constant dense<0.000000e+00> : vector<54xf32>
    %234 = vector.multi_reduction <add>, %233, %cst_96 [1] : vector<54x32xf32> to vector<54xf32>
    %235 = vector.shape_cast %234 : vector<54xf32> to vector<54x1xf32>
    %cst_97 = arith.constant 3.125000e-02 : f32
    %236 = vector.broadcast %cst_97 : f32 to vector<54x1xf32>
    %237 = arith.mulf %235, %236 : vector<54x1xf32>
    %238 = arith.mulf %232, %232 : vector<54x1xf32>
    %239 = arith.subf %237, %238 : vector<54x1xf32>
    %cst_98 = arith.constant 0.000000e+00 : f32
    %240 = vector.broadcast %cst_98 : f32 to vector<54x1xf32>
    %241 = arith.maximumf %239, %240 : vector<54x1xf32>
    %242 = vector.broadcast %232 : vector<54x1xf32> to vector<54x32xf32>
    %243 = arith.subf %226, %242 : vector<54x32xf32>
    %cst_99 = arith.constant 9.99999974E-6 : f32
    %244 = vector.broadcast %cst_99 : f32 to vector<54x1xf32>
    %245 = arith.addf %241, %244 : vector<54x1xf32>
    %246 = math.rsqrt %245 : vector<54x1xf32>
    %247 = vector.broadcast %246 : vector<54x1xf32> to vector<54x32xf32>
    %248 = arith.mulf %243, %247 : vector<54x32xf32>
    %249 = vector.broadcast %227 : vector<1x32xf32> to vector<54x32xf32>
    %250 = arith.mulf %248, %249 : vector<54x32xf32>
    %251 = vector.broadcast %228 : vector<1x32xf32> to vector<54x32xf32>
    %252 = arith.addf %250, %251 : vector<54x32xf32>
    %cst_100 = arith.constant 0.000000e+00 : f32
    %253 = vector.broadcast %cst_100 : f32 to vector<54x32xf32>
    %254 = arith.maximumf %252, %253 : vector<54x32xf32>
    %255 = arith.truncf %254 : vector<54x32xf32> to vector<54x32xbf16>
    %256 = vector.extract_strided_slice %1 {offsets = [288, 0], sizes = [32, 128], strides = [1, 1]} : vector<672x128xbf16> to vector<32x128xbf16>
    %cst_101 = arith.constant dense<0.000000e+00> : vector<54x128xf32>
    %257 = tpu.matmul %255, %256, %cst_101 {dimension_numbers = #tpu.dot_dimension_numbers<[1], [0], [0], [1], [0, 0, 1, 1], [], []>} : vector<54x32xbf16>, vector<32x128xbf16>, vector<54x128xf32> -> vector<54x128xf32>
    %258 = vector.extract_strided_slice %257 {offsets = [0, 0], sizes = [54, 32], strides = [1, 1]} : vector<54x128xf32> to vector<54x32xf32>
    %c19 = arith.constant 19 : index
    %c0_102 = arith.constant 0 : index
    %259 = vector.load %arg5[%c19, %c0_102] : memref<90x32xf32, #tpu.memory_space<vmem>>, vector<1x32xf32>
    %260 = vector.broadcast %259 : vector<1x32xf32> to vector<54x32xf32>
    %261 = arith.addf %258, %260 : vector<54x32xf32>
    %262 = arith.truncf %261 : vector<54x32xf32> to vector<54x32xbf16>
    %cst_103 = arith.constant dense<0.000000e+00> : vector<32x32xf32>
    %263 = tpu.matmul %13, %262, %cst_103 {dimension_numbers = #tpu.dot_dimension_numbers<[0], [0], [1], [1], [0, 1, 1, 1], [], []>} : vector<54x32xbf16>, vector<54x32xbf16>, vector<32x32xf32> -> vector<32x32xf32>
    %c0_104 = arith.constant 0 : index
    %c0_105 = arith.constant 0 : index
    %264 = vector.load %arg7[%c0_104, %c0_105] : memref<32x32xf32, #tpu.memory_space<vmem>>, vector<8x32xf32>
    tpu.vector_store %arg7[%c0_104, %c0_105], %215 {strides = array<i32>} : memref<32x32xf32, #tpu.memory_space<vmem>>, vector<8x32xf32>,
    %c35 = arith.constant 35 : index
    %c0_106 = arith.constant 0 : index
    %265 = vector.load %arg5[%c35, %c0_106] : memref<90x32xf32, #tpu.memory_space<vmem>>, vector<1x32xf32>
    %c0_107 = arith.constant 0 : index
    %c0_108 = arith.constant 0 : index
    %266 = vector.load %arg7[%c0_107, %c0_108] : memref<32x32xf32, #tpu.memory_space<vmem>>, vector<32x32xf32>
    %267 = arith.truncf %266 : vector<32x32xf32> to vector<32x32xbf16>
    %cst_109 = arith.constant dense<0.000000e+00> : vector<54x32xf32>
    %268 = tpu.matmul %13, %267, %cst_109 {dimension_numbers = #tpu.dot_dimension_numbers<[1], [0], [0], [1], [0, 0, 1, 1], [], []>} : vector<54x32xbf16>, vector<32x32xbf16>, vector<54x32xf32> -> vector<54x32xf32>
    %269 = vector.broadcast %14 : vector<54x1xf32> to vector<54x32xf32>
    %270 = vector.broadcast %265 : vector<1x32xf32> to vector<54x32xf32>
    %271 = arith.mulf %269, %270 : vector<54x32xf32>
    %272 = arith.addf %268, %271 : vector<54x32xf32>
    %c25 = arith.constant 25 : index
    %c0_110 = arith.constant 0 : index
    %273 = vector.load %arg5[%c25, %c0_110] : memref<90x32xf32, #tpu.memory_space<vmem>>, vector<1x32xf32>
    %c26 = arith.constant 26 : index
    %c0_111 = arith.constant 0 : index
    %274 = vector.load %arg5[%c26, %c0_111] : memref<90x32xf32, #tpu.memory_space<vmem>>, vector<1x32xf32>
    %cst_112 = arith.constant dense<0.000000e+00> : vector<54xf32>
    %275 = vector.multi_reduction <add>, %272, %cst_112 [1] : vector<54x32xf32> to vector<54xf32>
    %276 = vector.shape_cast %275 : vector<54xf32> to vector<54x1xf32>
    %cst_113 = arith.constant 3.125000e-02 : f32
    %277 = vector.broadcast %cst_113 : f32 to vector<54x1xf32>
    %278 = arith.mulf %276, %277 : vector<54x1xf32>
    %279 = arith.mulf %272, %272 : vector<54x32xf32>
    %cst_114 = arith.constant dense<0.000000e+00> : vector<54xf32>
    %280 = vector.multi_reduction <add>, %279, %cst_114 [1] : vector<54x32xf32> to vector<54xf32>
    %281 = vector.shape_cast %280 : vector<54xf32> to vector<54x1xf32>
    %cst_115 = arith.constant 3.125000e-02 : f32
    %282 = vector.broadcast %cst_115 : f32 to vector<54x1xf32>
    %283 = arith.mulf %281, %282 : vector<54x1xf32>
    %284 = arith.mulf %278, %278 : vector<54x1xf32>
    %285 = arith.subf %283, %284 : vector<54x1xf32>
    %cst_116 = arith.constant 0.000000e+00 : f32
    %286 = vector.broadcast %cst_116 : f32 to vector<54x1xf32>
    %287 = arith.maximumf %285, %286 : vector<54x1xf32>
    %288 = vector.broadcast %278 : vector<54x1xf32> to vector<54x32xf32>
    %289 = arith.subf %272, %288 : vector<54x32xf32>
    %cst_117 = arith.constant 9.99999974E-6 : f32
    %290 = vector.broadcast %cst_117 : f32 to vector<54x1xf32>
    %291 = arith.addf %287, %290 : vector<54x1xf32>
    %292 = math.rsqrt %291 : vector<54x1xf32>
    %293 = vector.broadcast %292 : vector<54x1xf32> to vector<54x32xf32>
    %294 = arith.mulf %289, %293 : vector<54x32xf32>
    %295 = vector.broadcast %273 : vector<1x32xf32> to vector<54x32xf32>
    %296 = arith.mulf %294, %295 : vector<54x32xf32>
    %297 = vector.broadcast %274 : vector<1x32xf32> to vector<54x32xf32>
    %298 = arith.addf %296, %297 : vector<54x32xf32>
    %cst_118 = arith.constant 0.000000e+00 : f32
    %299 = vector.broadcast %cst_118 : f32 to vector<54x32xf32>
    %300 = arith.maximumf %298, %299 : vector<54x32xf32>
    %301 = arith.truncf %300 : vector<54x32xf32> to vector<54x32xbf16>
    %302 = vector.extract_strided_slice %1 {offsets = [320, 0], sizes = [32, 128], strides = [1, 1]} : vector<672x128xbf16> to vector<32x128xbf16>
    %cst_119 = arith.constant dense<0.000000e+00> : vector<54x128xf32>
    %303 = tpu.matmul %301, %302, %cst_119 {dimension_numbers = #tpu.dot_dimension_numbers<[1], [0], [0], [1], [0, 0, 1, 1], [], []>} : vector<54x32xbf16>, vector<32x128xbf16>, vector<54x128xf32> -> vector<54x128xf32>
    %304 = vector.extract_strided_slice %303 {offsets = [0, 0], sizes = [54, 32], strides = [1, 1]} : vector<54x128xf32> to vector<54x32xf32>
    %c27 = arith.constant 27 : index
    %c0_120 = arith.constant 0 : index
    %305 = vector.load %arg5[%c27, %c0_120] : memref<90x32xf32, #tpu.memory_space<vmem>>, vector<1x32xf32>
    %306 = vector.broadcast %305 : vector<1x32xf32> to vector<54x32xf32>
    %307 = arith.addf %304, %306 : vector<54x32xf32>
    %308 = arith.truncf %307 : vector<54x32xf32> to vector<54x32xbf16>
    %cst_121 = arith.constant dense<0.000000e+00> : vector<32x32xf32>
    %309 = tpu.matmul %13, %308, %cst_121 {dimension_numbers = #tpu.dot_dimension_numbers<[0], [0], [1], [1], [0, 1, 1, 1], [], []>} : vector<54x32xbf16>, vector<54x32xbf16>, vector<32x32xf32> -> vector<32x32xf32>
    %310 = vector.extract_strided_slice %263 {offsets = [8, 0], sizes = [12, 32], strides = [1, 1]} : vector<32x32xf32> to vector<12x32xf32>
    %c20_122 = arith.constant 20 : index
    %c0_123 = arith.constant 0 : index
    %311 = vector.load %arg5[%c20_122, %c0_123] : memref<90x32xf32, #tpu.memory_space<vmem>>, vector<1x32xf32>
    %c21 = arith.constant 21 : index
    %c0_124 = arith.constant 0 : index
    %312 = vector.load %arg5[%c21, %c0_124] : memref<90x32xf32, #tpu.memory_space<vmem>>, vector<1x32xf32>
    %cst_125 = arith.constant dense<0.000000e+00> : vector<12xf32>
    %313 = vector.multi_reduction <add>, %310, %cst_125 [1] : vector<12x32xf32> to vector<12xf32>
    %314 = vector.shape_cast %313 : vector<12xf32> to vector<12x1xf32>
    %cst_126 = arith.constant 3.125000e-02 : f32
    %315 = vector.broadcast %cst_126 : f32 to vector<12x1xf32>
    %316 = arith.mulf %314, %315 : vector<12x1xf32>
    %317 = arith.mulf %310, %310 : vector<12x32xf32>
    %cst_127 = arith.constant dense<0.000000e+00> : vector<12xf32>
    %318 = vector.multi_reduction <add>, %317, %cst_127 [1] : vector<12x32xf32> to vector<12xf32>
    %319 = vector.shape_cast %318 : vector<12xf32> to vector<12x1xf32>
    %cst_128 = arith.constant 3.125000e-02 : f32
    %320 = vector.broadcast %cst_128 : f32 to vector<12x1xf32>
    %321 = arith.mulf %319, %320 : vector<12x1xf32>
    %322 = arith.mulf %316, %316 : vector<12x1xf32>
    %323 = arith.subf %321, %322 : vector<12x1xf32>
    %cst_129 = arith.constant 0.000000e+00 : f32
    %324 = vector.broadcast %cst_129 : f32 to vector<12x1xf32>
    %325 = arith.maximumf %323, %324 : vector<12x1xf32>
    %326 = vector.broadcast %316 : vector<12x1xf32> to vector<12x32xf32>
    %327 = arith.subf %310, %326 : vector<12x32xf32>
    %cst_130 = arith.constant 9.99999974E-6 : f32
    %328 = vector.broadcast %cst_130 : f32 to vector<12x1xf32>
    %329 = arith.addf %325, %328 : vector<12x1xf32>
    %330 = math.rsqrt %329 : vector<12x1xf32>
    %331 = vector.broadcast %330 : vector<12x1xf32> to vector<12x32xf32>
    %332 = arith.mulf %327, %331 : vector<12x32xf32>
    %333 = vector.broadcast %311 : vector<1x32xf32> to vector<12x32xf32>
    %334 = arith.mulf %332, %333 : vector<12x32xf32>
    %335 = vector.broadcast %312 : vector<1x32xf32> to vector<12x32xf32>
    %336 = arith.addf %334, %335 : vector<12x32xf32>
    %337 = arith.truncf %336 : vector<12x32xf32> to vector<12x32xbf16>
    %338 = vector.extract_strided_slice %1 {offsets = [288, 0], sizes = [32, 128], strides = [1, 1]} : vector<672x128xbf16> to vector<32x128xbf16>
    %cst_131 = arith.constant dense<0.000000e+00> : vector<12x128xf32>
    %339 = tpu.matmul %337, %338, %cst_131 {dimension_numbers = #tpu.dot_dimension_numbers<[1], [0], [0], [1], [0, 0, 1, 1], [], []>} : vector<12x32xbf16>, vector<32x128xbf16>, vector<12x128xf32> -> vector<12x128xf32>
    %340 = vector.extract_strided_slice %339 {offsets = [0, 32], sizes = [12, 32], strides = [1, 1]} : vector<12x128xf32> to vector<12x32xf32>
    %341 = arith.addf %340, %99 : vector<12x32xf32>
    %c22 = arith.constant 22 : index
    %c0_132 = arith.constant 0 : index
    %342 = vector.load %arg5[%c22, %c0_132] : memref<90x32xf32, #tpu.memory_space<vmem>>, vector<1x32xf32>
    %343 = vector.broadcast %342 : vector<1x32xf32> to vector<12x32xf32>
    %344 = arith.addf %341, %343 : vector<12x32xf32>
    %cst_133 = arith.constant 0.000000e+00 : f32
    %345 = vector.broadcast %cst_133 : f32 to vector<12x32xf32>
    %346 = arith.maximumf %344, %345 : vector<12x32xf32>
    %347 = arith.truncf %346 : vector<12x32xf32> to vector<12x32xbf16>
    %348 = vector.extract_strided_slice %1 {offsets = [288, 0], sizes = [32, 128], strides = [1, 1]} : vector<672x128xbf16> to vector<32x128xbf16>
    %cst_134 = arith.constant dense<0.000000e+00> : vector<12x128xf32>
    %349 = tpu.matmul %347, %348, %cst_134 {dimension_numbers = #tpu.dot_dimension_numbers<[1], [0], [0], [1], [0, 0, 1, 1], [], []>} : vector<12x32xbf16>, vector<32x128xbf16>, vector<12x128xf32> -> vector<12x128xf32>
    %350 = vector.extract_strided_slice %349 {offsets = [0, 64], sizes = [12, 32], strides = [1, 1]} : vector<12x128xf32> to vector<12x32xf32>
    %c23 = arith.constant 23 : index
    %c0_135 = arith.constant 0 : index
    %351 = vector.load %arg5[%c23, %c0_135] : memref<90x32xf32, #tpu.memory_space<vmem>>, vector<1x32xf32>
    %352 = vector.broadcast %351 : vector<1x32xf32> to vector<12x32xf32>
    %353 = arith.addf %350, %352 : vector<12x32xf32>
    %354 = vector.extract_strided_slice %309 {offsets = [20, 0], sizes = [10, 32], strides = [1, 1]} : vector<32x32xf32> to vector<10x32xf32>
    %c28 = arith.constant 28 : index
    %c0_136 = arith.constant 0 : index
    %355 = vector.load %arg5[%c28, %c0_136] : memref<90x32xf32, #tpu.memory_space<vmem>>, vector<1x32xf32>
    %c29 = arith.constant 29 : index
    %c0_137 = arith.constant 0 : index
    %356 = vector.load %arg5[%c29, %c0_137] : memref<90x32xf32, #tpu.memory_space<vmem>>, vector<1x32xf32>
    %cst_138 = arith.constant dense<0.000000e+00> : vector<10xf32>
    %357 = vector.multi_reduction <add>, %354, %cst_138 [1] : vector<10x32xf32> to vector<10xf32>
    %358 = vector.shape_cast %357 : vector<10xf32> to vector<10x1xf32>
    %cst_139 = arith.constant 3.125000e-02 : f32
    %359 = vector.broadcast %cst_139 : f32 to vector<10x1xf32>
    %360 = arith.mulf %358, %359 : vector<10x1xf32>
    %361 = arith.mulf %354, %354 : vector<10x32xf32>
    %cst_140 = arith.constant dense<0.000000e+00> : vector<10xf32>
    %362 = vector.multi_reduction <add>, %361, %cst_140 [1] : vector<10x32xf32> to vector<10xf32>
    %363 = vector.shape_cast %362 : vector<10xf32> to vector<10x1xf32>
    %cst_141 = arith.constant 3.125000e-02 : f32
    %364 = vector.broadcast %cst_141 : f32 to vector<10x1xf32>
    %365 = arith.mulf %363, %364 : vector<10x1xf32>
    %366 = arith.mulf %360, %360 : vector<10x1xf32>
    %367 = arith.subf %365, %366 : vector<10x1xf32>
    %cst_142 = arith.constant 0.000000e+00 : f32
    %368 = vector.broadcast %cst_142 : f32 to vector<10x1xf32>
    %369 = arith.maximumf %367, %368 : vector<10x1xf32>
    %370 = vector.broadcast %360 : vector<10x1xf32> to vector<10x32xf32>
    %371 = arith.subf %354, %370 : vector<10x32xf32>
    %cst_143 = arith.constant 9.99999974E-6 : f32
    %372 = vector.broadcast %cst_143 : f32 to vector<10x1xf32>
    %373 = arith.addf %369, %372 : vector<10x1xf32>
    %374 = math.rsqrt %373 : vector<10x1xf32>
    %375 = vector.broadcast %374 : vector<10x1xf32> to vector<10x32xf32>
    %376 = arith.mulf %371, %375 : vector<10x32xf32>
    %377 = vector.broadcast %355 : vector<1x32xf32> to vector<10x32xf32>
    %378 = arith.mulf %376, %377 : vector<10x32xf32>
    %379 = vector.broadcast %356 : vector<1x32xf32> to vector<10x32xf32>
    %380 = arith.addf %378, %379 : vector<10x32xf32>
    %381 = arith.truncf %380 : vector<10x32xf32> to vector<10x32xbf16>
    %382 = vector.extract_strided_slice %1 {offsets = [320, 0], sizes = [32, 128], strides = [1, 1]} : vector<672x128xbf16> to vector<32x128xbf16>
    %cst_144 = arith.constant dense<0.000000e+00> : vector<10x128xf32>
    %383 = tpu.matmul %381, %382, %cst_144 {dimension_numbers = #tpu.dot_dimension_numbers<[1], [0], [0], [1], [0, 0, 1, 1], [], []>} : vector<10x32xbf16>, vector<32x128xbf16>, vector<10x128xf32> -> vector<10x128xf32>
    %384 = vector.extract_strided_slice %383 {offsets = [0, 32], sizes = [10, 32], strides = [1, 1]} : vector<10x128xf32> to vector<10x32xf32>
    %385 = arith.addf %384, %108 : vector<10x32xf32>
    %c30 = arith.constant 30 : index
    %c0_145 = arith.constant 0 : index
    %386 = vector.load %arg5[%c30, %c0_145] : memref<90x32xf32, #tpu.memory_space<vmem>>, vector<1x32xf32>
    %387 = vector.broadcast %386 : vector<1x32xf32> to vector<10x32xf32>
    %388 = arith.addf %385, %387 : vector<10x32xf32>
    %cst_146 = arith.constant 0.000000e+00 : f32
    %389 = vector.broadcast %cst_146 : f32 to vector<10x32xf32>
    %390 = arith.maximumf %388, %389 : vector<10x32xf32>
    %391 = arith.truncf %390 : vector<10x32xf32> to vector<10x32xbf16>
    %392 = vector.extract_strided_slice %1 {offsets = [320, 0], sizes = [32, 128], strides = [1, 1]} : vector<672x128xbf16> to vector<32x128xbf16>
    %cst_147 = arith.constant dense<0.000000e+00> : vector<10x128xf32>
    %393 = tpu.matmul %391, %392, %cst_147 {dimension_numbers = #tpu.dot_dimension_numbers<[1], [0], [0], [1], [0, 0, 1, 1], [], []>} : vector<10x32xbf16>, vector<32x128xbf16>, vector<10x128xf32> -> vector<10x128xf32>
    %394 = vector.extract_strided_slice %393 {offsets = [0, 64], sizes = [10, 32], strides = [1, 1]} : vector<10x128xf32> to vector<10x32xf32>
    %c31 = arith.constant 31 : index
    %c0_148 = arith.constant 0 : index
    %395 = vector.load %arg5[%c31, %c0_148] : memref<90x32xf32, #tpu.memory_space<vmem>>, vector<1x32xf32>
    %396 = vector.broadcast %395 : vector<1x32xf32> to vector<10x32xf32>
    %397 = arith.addf %394, %396 : vector<10x32xf32>
    %cst_149 = arith.constant 0.000000e+00 : f32
    %398 = vector.broadcast %cst_149 : f32 to vector<1x32xf32>
    %399 = arith.maximumf %85, %398 : vector<1x32xf32>
    %400 = arith.truncf %399 : vector<1x32xf32> to vector<1x32xbf16>
    %401 = vector.extract_strided_slice %1 {offsets = [352, 0], sizes = [32, 128], strides = [1, 1]} : vector<672x128xbf16> to vector<32x128xbf16>
    %cst_150 = arith.constant dense<0.000000e+00> : vector<1x128xf32>
    %402 = tpu.matmul %400, %401, %cst_150 {dimension_numbers = #tpu.dot_dimension_numbers<[1], [0], [0], [1], [0, 0, 1, 1], [], []>} : vector<1x32xbf16>, vector<32x128xbf16>, vector<1x128xf32> -> vector<1x128xf32>
    %403 = vector.extract_strided_slice %402 {offsets = [0, 0], sizes = [1, 32], strides = [1, 1]} : vector<1x128xf32> to vector<1x32xf32>
    %c36 = arith.constant 36 : index
    %c0_151 = arith.constant 0 : index
    %404 = vector.load %arg5[%c36, %c0_151] : memref<90x32xf32, #tpu.memory_space<vmem>>, vector<1x32xf32>
    %405 = arith.addf %403, %404 : vector<1x32xf32>
    %c37 = arith.constant 37 : index
    %c0_152 = arith.constant 0 : index
    %406 = vector.load %arg5[%c37, %c0_152] : memref<90x32xf32, #tpu.memory_space<vmem>>, vector<1x32xf32>
    %c38 = arith.constant 38 : index
    %c0_153 = arith.constant 0 : index
    %407 = vector.load %arg5[%c38, %c0_153] : memref<90x32xf32, #tpu.memory_space<vmem>>, vector<1x32xf32>
    %cst_154 = arith.constant dense<0.000000e+00> : vector<12xf32>
    %408 = vector.multi_reduction <add>, %353, %cst_154 [1] : vector<12x32xf32> to vector<12xf32>
    %409 = vector.shape_cast %408 : vector<12xf32> to vector<12x1xf32>
    %cst_155 = arith.constant 3.125000e-02 : f32
    %410 = vector.broadcast %cst_155 : f32 to vector<12x1xf32>
    %411 = arith.mulf %409, %410 : vector<12x1xf32>
    %412 = arith.mulf %353, %353 : vector<12x32xf32>
    %cst_156 = arith.constant dense<0.000000e+00> : vector<12xf32>
    %413 = vector.multi_reduction <add>, %412, %cst_156 [1] : vector<12x32xf32> to vector<12xf32>
    %414 = vector.shape_cast %413 : vector<12xf32> to vector<12x1xf32>
    %cst_157 = arith.constant 3.125000e-02 : f32
    %415 = vector.broadcast %cst_157 : f32 to vector<12x1xf32>
    %416 = arith.mulf %414, %415 : vector<12x1xf32>
    %417 = arith.mulf %411, %411 : vector<12x1xf32>
    %418 = arith.subf %416, %417 : vector<12x1xf32>
    %cst_158 = arith.constant 0.000000e+00 : f32
    %419 = vector.broadcast %cst_158 : f32 to vector<12x1xf32>
    %420 = arith.maximumf %418, %419 : vector<12x1xf32>
    %421 = vector.broadcast %411 : vector<12x1xf32> to vector<12x32xf32>
    %422 = arith.subf %353, %421 : vector<12x32xf32>
    %cst_159 = arith.constant 9.99999974E-6 : f32
    %423 = vector.broadcast %cst_159 : f32 to vector<12x1xf32>
    %424 = arith.addf %420, %423 : vector<12x1xf32>
    %425 = math.rsqrt %424 : vector<12x1xf32>
    %426 = vector.broadcast %425 : vector<12x1xf32> to vector<12x32xf32>
    %427 = arith.mulf %422, %426 : vector<12x32xf32>
    %428 = vector.broadcast %406 : vector<1x32xf32> to vector<12x32xf32>
    %429 = arith.mulf %427, %428 : vector<12x32xf32>
    %430 = vector.broadcast %407 : vector<1x32xf32> to vector<12x32xf32>
    %431 = arith.addf %429, %430 : vector<12x32xf32>
    %cst_160 = arith.constant 0.000000e+00 : f32
    %432 = vector.broadcast %cst_160 : f32 to vector<12x32xf32>
    %433 = arith.subf %432, %431 : vector<12x32xf32>
    %434 = math.exp %433 : vector<12x32xf32>
    %cst_161 = arith.constant 1.000000e+00 : f32
    %435 = vector.broadcast %cst_161 : f32 to vector<12x32xf32>
    %436 = arith.addf %435, %434 : vector<12x32xf32>
    %437 = tpu.reciprocal %436 {approx = true} : vector<12x32xf32> -> vector<12x32xf32>
    %438 = arith.mulf %431, %437 : vector<12x32xf32>
    %439 = arith.truncf %438 : vector<12x32xf32> to vector<12x32xbf16>
    %440 = vector.extract_strided_slice %1 {offsets = [352, 0], sizes = [32, 128], strides = [1, 1]} : vector<672x128xbf16> to vector<32x128xbf16>
    %cst_162 = arith.constant dense<0.000000e+00> : vector<12x128xf32>
    %441 = tpu.matmul %439, %440, %cst_162 {dimension_numbers = #tpu.dot_dimension_numbers<[1], [0], [0], [1], [0, 0, 1, 1], [], []>} : vector<12x32xbf16>, vector<32x128xbf16>, vector<12x128xf32> -> vector<12x128xf32>
    %442 = vector.extract_strided_slice %441 {offsets = [0, 32], sizes = [12, 32], strides = [1, 1]} : vector<12x128xf32> to vector<12x32xf32>
    %c39 = arith.constant 39 : index
    %c0_163 = arith.constant 0 : index
    %443 = vector.load %arg5[%c39, %c0_163] : memref<90x32xf32, #tpu.memory_space<vmem>>, vector<1x32xf32>
    %444 = vector.broadcast %443 : vector<1x32xf32> to vector<12x32xf32>
    %445 = arith.addf %442, %444 : vector<12x32xf32>
    %446 = vector.broadcast %405 : vector<1x32xf32> to vector<12x32xf32>
    %447 = arith.addf %445, %446 : vector<12x32xf32>
    %c40 = arith.constant 40 : index
    %c0_164 = arith.constant 0 : index
    %448 = vector.load %arg5[%c40, %c0_164] : memref<90x32xf32, #tpu.memory_space<vmem>>, vector<1x32xf32>
    %c41 = arith.constant 41 : index
    %c0_165 = arith.constant 0 : index
    %449 = vector.load %arg5[%c41, %c0_165] : memref<90x32xf32, #tpu.memory_space<vmem>>, vector<1x32xf32>
    %cst_166 = arith.constant dense<0.000000e+00> : vector<10xf32>
    %450 = vector.multi_reduction <add>, %397, %cst_166 [1] : vector<10x32xf32> to vector<10xf32>
    %451 = vector.shape_cast %450 : vector<10xf32> to vector<10x1xf32>
    %cst_167 = arith.constant 3.125000e-02 : f32
    %452 = vector.broadcast %cst_167 : f32 to vector<10x1xf32>
    %453 = arith.mulf %451, %452 : vector<10x1xf32>
    %454 = arith.mulf %397, %397 : vector<10x32xf32>
    %cst_168 = arith.constant dense<0.000000e+00> : vector<10xf32>
    %455 = vector.multi_reduction <add>, %454, %cst_168 [1] : vector<10x32xf32> to vector<10xf32>
    %456 = vector.shape_cast %455 : vector<10xf32> to vector<10x1xf32>
    %cst_169 = arith.constant 3.125000e-02 : f32
    %457 = vector.broadcast %cst_169 : f32 to vector<10x1xf32>
    %458 = arith.mulf %456, %457 : vector<10x1xf32>
    %459 = arith.mulf %453, %453 : vector<10x1xf32>
    %460 = arith.subf %458, %459 : vector<10x1xf32>
    %cst_170 = arith.constant 0.000000e+00 : f32
    %461 = vector.broadcast %cst_170 : f32 to vector<10x1xf32>
    %462 = arith.maximumf %460, %461 : vector<10x1xf32>
    %463 = vector.broadcast %453 : vector<10x1xf32> to vector<10x32xf32>
    %464 = arith.subf %397, %463 : vector<10x32xf32>
    %cst_171 = arith.constant 9.99999974E-6 : f32
    %465 = vector.broadcast %cst_171 : f32 to vector<10x1xf32>
    %466 = arith.addf %462, %465 : vector<10x1xf32>
    %467 = math.rsqrt %466 : vector<10x1xf32>
    %468 = vector.broadcast %467 : vector<10x1xf32> to vector<10x32xf32>
    %469 = arith.mulf %464, %468 : vector<10x32xf32>
    %470 = vector.broadcast %448 : vector<1x32xf32> to vector<10x32xf32>
    %471 = arith.mulf %469, %470 : vector<10x32xf32>
    %472 = vector.broadcast %449 : vector<1x32xf32> to vector<10x32xf32>
    %473 = arith.addf %471, %472 : vector<10x32xf32>
    %cst_172 = arith.constant 0.000000e+00 : f32
    %474 = vector.broadcast %cst_172 : f32 to vector<10x32xf32>
    %475 = arith.subf %474, %473 : vector<10x32xf32>
    %476 = math.exp %475 : vector<10x32xf32>
    %cst_173 = arith.constant 1.000000e+00 : f32
    %477 = vector.broadcast %cst_173 : f32 to vector<10x32xf32>
    %478 = arith.addf %477, %476 : vector<10x32xf32>
    %479 = tpu.reciprocal %478 {approx = true} : vector<10x32xf32> -> vector<10x32xf32>
    %480 = arith.mulf %473, %479 : vector<10x32xf32>
    %481 = arith.truncf %480 : vector<10x32xf32> to vector<10x32xbf16>
    %482 = vector.extract_strided_slice %1 {offsets = [352, 0], sizes = [32, 128], strides = [1, 1]} : vector<672x128xbf16> to vector<32x128xbf16>
    %cst_174 = arith.constant dense<0.000000e+00> : vector<10x128xf32>
    %483 = tpu.matmul %481, %482, %cst_174 {dimension_numbers = #tpu.dot_dimension_numbers<[1], [0], [0], [1], [0, 0, 1, 1], [], []>} : vector<10x32xbf16>, vector<32x128xbf16>, vector<10x128xf32> -> vector<10x128xf32>
    %484 = vector.extract_strided_slice %483 {offsets = [0, 64], sizes = [10, 32], strides = [1, 1]} : vector<10x128xf32> to vector<10x32xf32>
    %c42 = arith.constant 42 : index
    %c0_175 = arith.constant 0 : index
    %485 = vector.load %arg5[%c42, %c0_175] : memref<90x32xf32, #tpu.memory_space<vmem>>, vector<1x32xf32>
    %486 = vector.broadcast %485 : vector<1x32xf32> to vector<10x32xf32>
    %487 = arith.addf %484, %486 : vector<10x32xf32>
    %488 = vector.broadcast %405 : vector<1x32xf32> to vector<10x32xf32>
    %489 = arith.addf %487, %488 : vector<10x32xf32>
    %c43 = arith.constant 43 : index
    %c0_176 = arith.constant 0 : index
    %490 = vector.load %arg5[%c43, %c0_176] : memref<90x32xf32, #tpu.memory_space<vmem>>, vector<1x32xf32>
    %c44 = arith.constant 44 : index
    %c0_177 = arith.constant 0 : index
    %491 = vector.load %arg5[%c44, %c0_177] : memref<90x32xf32, #tpu.memory_space<vmem>>, vector<1x32xf32>
    %cst_178 = arith.constant dense<0.000000e+00> : vector<8xf32>
    %492 = vector.multi_reduction <add>, %210, %cst_178 [1] : vector<8x32xf32> to vector<8xf32>
    %493 = vector.shape_cast %492 : vector<8xf32> to vector<8x1xf32>
    %cst_179 = arith.constant 3.125000e-02 : f32
    %494 = vector.broadcast %cst_179 : f32 to vector<8x1xf32>
    %495 = arith.mulf %493, %494 : vector<8x1xf32>
    %496 = arith.mulf %210, %210 : vector<8x32xf32>
    %cst_180 = arith.constant dense<0.000000e+00> : vector<8xf32>
    %497 = vector.multi_reduction <add>, %496, %cst_180 [1] : vector<8x32xf32> to vector<8xf32>
    %498 = vector.shape_cast %497 : vector<8xf32> to vector<8x1xf32>
    %cst_181 = arith.constant 3.125000e-02 : f32
    %499 = vector.broadcast %cst_181 : f32 to vector<8x1xf32>
    %500 = arith.mulf %498, %499 : vector<8x1xf32>
    %501 = arith.mulf %495, %495 : vector<8x1xf32>
    %502 = arith.subf %500, %501 : vector<8x1xf32>
    %cst_182 = arith.constant 0.000000e+00 : f32
    %503 = vector.broadcast %cst_182 : f32 to vector<8x1xf32>
    %504 = arith.maximumf %502, %503 : vector<8x1xf32>
    %505 = vector.broadcast %495 : vector<8x1xf32> to vector<8x32xf32>
    %506 = arith.subf %210, %505 : vector<8x32xf32>
    %cst_183 = arith.constant 9.99999974E-6 : f32
    %507 = vector.broadcast %cst_183 : f32 to vector<8x1xf32>
    %508 = arith.addf %504, %507 : vector<8x1xf32>
    %509 = math.rsqrt %508 : vector<8x1xf32>
    %510 = vector.broadcast %509 : vector<8x1xf32> to vector<8x32xf32>
    %511 = arith.mulf %506, %510 : vector<8x32xf32>
    %512 = vector.broadcast %490 : vector<1x32xf32> to vector<8x32xf32>
    %513 = arith.mulf %511, %512 : vector<8x32xf32>
    %514 = vector.broadcast %491 : vector<1x32xf32> to vector<8x32xf32>
    %515 = arith.addf %513, %514 : vector<8x32xf32>
    %cst_184 = arith.constant 0.000000e+00 : f32
    %516 = vector.broadcast %cst_184 : f32 to vector<8x32xf32>
    %517 = arith.subf %516, %515 : vector<8x32xf32>
    %518 = math.exp %517 : vector<8x32xf32>
    %cst_185 = arith.constant 1.000000e+00 : f32
    %519 = vector.broadcast %cst_185 : f32 to vector<8x32xf32>
    %520 = arith.addf %519, %518 : vector<8x32xf32>
    %521 = tpu.reciprocal %520 {approx = true} : vector<8x32xf32> -> vector<8x32xf32>
    %522 = arith.mulf %515, %521 : vector<8x32xf32>
    %523 = arith.truncf %522 : vector<8x32xf32> to vector<8x32xbf16>
    %524 = vector.extract_strided_slice %1 {offsets = [352, 0], sizes = [32, 128], strides = [1, 1]} : vector<672x128xbf16> to vector<32x128xbf16>
    %cst_186 = arith.constant dense<0.000000e+00> : vector<8x128xf32>
    %525 = tpu.matmul %523, %524, %cst_186 {dimension_numbers = #tpu.dot_dimension_numbers<[1], [0], [0], [1], [0, 0, 1, 1], [], []>} : vector<8x32xbf16>, vector<32x128xbf16>, vector<8x128xf32> -> vector<8x128xf32>
    %526 = vector.extract_strided_slice %525 {offsets = [0, 96], sizes = [8, 32], strides = [1, 1]} : vector<8x128xf32> to vector<8x32xf32>
    %c45 = arith.constant 45 : index
    %c0_187 = arith.constant 0 : index
    %527 = vector.load %arg5[%c45, %c0_187] : memref<90x32xf32, #tpu.memory_space<vmem>>, vector<1x32xf32>
    %528 = vector.broadcast %527 : vector<1x32xf32> to vector<8x32xf32>
    %529 = arith.addf %526, %528 : vector<8x32xf32>
    %530 = arith.truncf %529 : vector<8x32xf32> to vector<8x32xbf16>
    %531 = vector.extract_strided_slice %1 {offsets = [384, 0], sizes = [32, 128], strides = [1, 1]} : vector<672x128xbf16> to vector<32x128xbf16>
    %cst_188 = arith.constant dense<0.000000e+00> : vector<8x128xf32>
    %532 = tpu.matmul %530, %531, %cst_188 {dimension_numbers = #tpu.dot_dimension_numbers<[1], [0], [0], [1], [0, 0, 1, 1], [], []>} : vector<8x32xbf16>, vector<32x128xbf16>, vector<8x128xf32> -> vector<8x128xf32>
    %533 = vector.extract_strided_slice %532 {offsets = [0, 0], sizes = [8, 32], strides = [1, 1]} : vector<8x128xf32> to vector<8x32xf32>
    %534 = vector.extract_strided_slice %532 {offsets = [0, 32], sizes = [8, 32], strides = [1, 1]} : vector<8x128xf32> to vector<8x32xf32>
    %c46 = arith.constant 46 : index
    %c0_189 = arith.constant 0 : index
    %535 = vector.load %arg5[%c46, %c0_189] : memref<90x32xf32, #tpu.memory_space<vmem>>, vector<1x32xf32>
    %536 = vector.broadcast %535 : vector<1x32xf32> to vector<8x32xf32>
    %537 = arith.addf %533, %536 : vector<8x32xf32>
    %538 = arith.truncf %447 : vector<12x32xf32> to vector<12x32xbf16>
    %539 = vector.extract_strided_slice %1 {offsets = [416, 0], sizes = [32, 128], strides = [1, 1]} : vector<672x128xbf16> to vector<32x128xbf16>
    %cst_190 = arith.constant dense<0.000000e+00> : vector<12x128xf32>
    %540 = tpu.matmul %538, %539, %cst_190 {dimension_numbers = #tpu.dot_dimension_numbers<[1], [0], [0], [1], [0, 0, 1, 1], [], []>} : vector<12x32xbf16>, vector<32x128xbf16>, vector<12x128xf32> -> vector<12x128xf32>
    %541 = vector.extract_strided_slice %540 {offsets = [0, 0], sizes = [12, 32], strides = [1, 1]} : vector<12x128xf32> to vector<12x32xf32>
    %542 = vector.extract_strided_slice %540 {offsets = [0, 32], sizes = [12, 32], strides = [1, 1]} : vector<12x128xf32> to vector<12x32xf32>
    %543 = vector.extract_strided_slice %540 {offsets = [0, 64], sizes = [12, 32], strides = [1, 1]} : vector<12x128xf32> to vector<12x32xf32>
    %c54 = arith.constant 54 : index
    %c0_191 = arith.constant 0 : index
    %544 = vector.load %arg5[%c54, %c0_191] : memref<90x32xf32, #tpu.memory_space<vmem>>, vector<1x32xf32>
    %545 = vector.broadcast %544 : vector<1x32xf32> to vector<12x32xf32>
    %546 = arith.addf %542, %545 : vector<12x32xf32>
    %547 = arith.truncf %489 : vector<10x32xf32> to vector<10x32xbf16>
    %548 = vector.extract_strided_slice %1 {offsets = [448, 0], sizes = [32, 128], strides = [1, 1]} : vector<672x128xbf16> to vector<32x128xbf16>
    %cst_192 = arith.constant dense<0.000000e+00> : vector<10x128xf32>
    %549 = tpu.matmul %547, %548, %cst_192 {dimension_numbers = #tpu.dot_dimension_numbers<[1], [0], [0], [1], [0, 0, 1, 1], [], []>} : vector<10x32xbf16>, vector<32x128xbf16>, vector<10x128xf32> -> vector<10x128xf32>
    %550 = vector.extract_strided_slice %549 {offsets = [0, 0], sizes = [10, 32], strides = [1, 1]} : vector<10x128xf32> to vector<10x32xf32>
    %551 = vector.extract_strided_slice %549 {offsets = [0, 32], sizes = [10, 32], strides = [1, 1]} : vector<10x128xf32> to vector<10x32xf32>
    %552 = vector.extract_strided_slice %549 {offsets = [0, 64], sizes = [10, 32], strides = [1, 1]} : vector<10x128xf32> to vector<10x32xf32>
    %c62 = arith.constant 62 : index
    %c0_193 = arith.constant 0 : index
    %553 = vector.load %arg5[%c62, %c0_193] : memref<90x32xf32, #tpu.memory_space<vmem>>, vector<1x32xf32>
    %554 = vector.broadcast %553 : vector<1x32xf32> to vector<10x32xf32>
    %555 = arith.addf %551, %554 : vector<10x32xf32>
    %c0_194 = arith.constant 0 : index
    %c0_195 = arith.constant 0 : index
    %556 = vector.load %arg7[%c0_194, %c0_195] : memref<32x32xf32, #tpu.memory_space<vmem>>, vector<8x32xf32>
    tpu.vector_store %arg7[%c0_194, %c0_195], %537 {strides = array<i32>} : memref<32x32xf32, #tpu.memory_space<vmem>>, vector<8x32xf32>,
    %c8_196 = arith.constant 8 : index
    %c0_197 = arith.constant 0 : index
    %557 = vector.load %arg7[%c8_196, %c0_197] : memref<32x32xf32, #tpu.memory_space<vmem>>, vector<12x32xf32>
    tpu.vector_store %arg7[%c8_196, %c0_197], %541 {strides = array<i32>} : memref<32x32xf32, #tpu.memory_space<vmem>>, vector<12x32xf32>,
    %c20_198 = arith.constant 20 : index
    %c0_199 = arith.constant 0 : index
    %558 = vector.load %arg7[%c20_198, %c0_199] : memref<32x32xf32, #tpu.memory_space<vmem>>, vector<10x32xf32>
    tpu.vector_store %arg7[%c20_198, %c0_199], %550 {strides = array<i32>} : memref<32x32xf32, #tpu.memory_space<vmem>>, vector<10x32xf32>,
    %c70 = arith.constant 70 : index
    %c0_200 = arith.constant 0 : index
    %559 = vector.load %arg5[%c70, %c0_200] : memref<90x32xf32, #tpu.memory_space<vmem>>, vector<1x32xf32>
    %c71 = arith.constant 71 : index
    %c0_201 = arith.constant 0 : index
    %560 = vector.load %arg5[%c71, %c0_201] : memref<90x32xf32, #tpu.memory_space<vmem>>, vector<1x32xf32>
    %561 = vector.shape_cast %17 : vector<54x1xi1> to vector<54x1xi1>
    %562 = vector.broadcast %561 : vector<54x1xi1> to vector<54x32xi1>
    %563 = vector.shape_cast %559 : vector<1x32xf32> to vector<1x32xf32>
    %564 = vector.broadcast %563 : vector<1x32xf32> to vector<54x32xf32>
    %565 = vector.shape_cast %560 : vector<1x32xf32> to vector<1x32xf32>
    %566 = vector.broadcast %565 : vector<1x32xf32> to vector<54x32xf32>
    %567 = arith.select %562, %564, %566 : vector<54x32xi1>, vector<54x32xf32>
    %c0_202 = arith.constant 0 : index
    %c0_203 = arith.constant 0 : index
    %568 = vector.load %arg7[%c0_202, %c0_203] : memref<32x32xf32, #tpu.memory_space<vmem>>, vector<32x32xf32>
    %569 = arith.truncf %568 : vector<32x32xf32> to vector<32x32xbf16>
    %cst_204 = arith.constant dense<0.000000e+00> : vector<54x32xf32>
    %570 = tpu.matmul %13, %569, %cst_204 {dimension_numbers = #tpu.dot_dimension_numbers<[1], [0], [0], [1], [0, 0, 1, 1], [], []>} : vector<54x32xbf16>, vector<32x32xbf16>, vector<54x32xf32> -> vector<54x32xf32>
    %571 = vector.broadcast %14 : vector<54x1xf32> to vector<54x32xf32>
    %572 = arith.mulf %571, %567 : vector<54x32xf32>
    %573 = arith.addf %570, %572 : vector<54x32xf32>
    %c47 = arith.constant 47 : index
    %c0_205 = arith.constant 0 : index
    %574 = vector.load %arg5[%c47, %c0_205] : memref<90x32xf32, #tpu.memory_space<vmem>>, vector<1x32xf32>
    %c48 = arith.constant 48 : index
    %c0_206 = arith.constant 0 : index
    %575 = vector.load %arg5[%c48, %c0_206] : memref<90x32xf32, #tpu.memory_space<vmem>>, vector<1x32xf32>
    %cst_207 = arith.constant dense<0.000000e+00> : vector<54xf32>
    %576 = vector.multi_reduction <add>, %573, %cst_207 [1] : vector<54x32xf32> to vector<54xf32>
    %577 = vector.shape_cast %576 : vector<54xf32> to vector<54x1xf32>
    %cst_208 = arith.constant 3.125000e-02 : f32
    %578 = vector.broadcast %cst_208 : f32 to vector<54x1xf32>
    %579 = arith.mulf %577, %578 : vector<54x1xf32>
    %580 = arith.mulf %573, %573 : vector<54x32xf32>
    %cst_209 = arith.constant dense<0.000000e+00> : vector<54xf32>
    %581 = vector.multi_reduction <add>, %580, %cst_209 [1] : vector<54x32xf32> to vector<54xf32>
    %582 = vector.shape_cast %581 : vector<54xf32> to vector<54x1xf32>
    %cst_210 = arith.constant 3.125000e-02 : f32
    %583 = vector.broadcast %cst_210 : f32 to vector<54x1xf32>
    %584 = arith.mulf %582, %583 : vector<54x1xf32>
    %585 = arith.mulf %579, %579 : vector<54x1xf32>
    %586 = arith.subf %584, %585 : vector<54x1xf32>
    %cst_211 = arith.constant 0.000000e+00 : f32
    %587 = vector.broadcast %cst_211 : f32 to vector<54x1xf32>
    %588 = arith.maximumf %586, %587 : vector<54x1xf32>
    %589 = vector.broadcast %579 : vector<54x1xf32> to vector<54x32xf32>
    %590 = arith.subf %573, %589 : vector<54x32xf32>
    %cst_212 = arith.constant 9.99999974E-6 : f32
    %591 = vector.broadcast %cst_212 : f32 to vector<54x1xf32>
    %592 = arith.addf %588, %591 : vector<54x1xf32>
    %593 = math.rsqrt %592 : vector<54x1xf32>
    %594 = vector.broadcast %593 : vector<54x1xf32> to vector<54x32xf32>
    %595 = arith.mulf %590, %594 : vector<54x32xf32>
    %596 = vector.broadcast %574 : vector<1x32xf32> to vector<54x32xf32>
    %597 = arith.mulf %595, %596 : vector<54x32xf32>
    %598 = vector.broadcast %575 : vector<1x32xf32> to vector<54x32xf32>
    %599 = arith.addf %597, %598 : vector<54x32xf32>
    %cst_213 = arith.constant 0.000000e+00 : f32
    %600 = vector.broadcast %cst_213 : f32 to vector<54x32xf32>
    %601 = arith.maximumf %599, %600 : vector<54x32xf32>
    %602 = arith.truncf %601 : vector<54x32xf32> to vector<54x32xbf16>
    %603 = vector.extract_strided_slice %1 {offsets = [512, 0], sizes = [32, 128], strides = [1, 1]} : vector<672x128xbf16> to vector<32x128xbf16>
    %cst_214 = arith.constant dense<0.000000e+00> : vector<54x128xf32>
    %604 = tpu.matmul %602, %603, %cst_214 {dimension_numbers = #tpu.dot_dimension_numbers<[1], [0], [0], [1], [0, 0, 1, 1], [], []>} : vector<54x32xbf16>, vector<32x128xbf16>, vector<54x128xf32> -> vector<54x128xf32>
    %605 = vector.extract_strided_slice %604 {offsets = [0, 0], sizes = [54, 32], strides = [1, 1]} : vector<54x128xf32> to vector<54x32xf32>
    %c49 = arith.constant 49 : index
    %c0_215 = arith.constant 0 : index
    %606 = vector.load %arg5[%c49, %c0_215] : memref<90x32xf32, #tpu.memory_space<vmem>>, vector<1x32xf32>
    %607 = vector.broadcast %606 : vector<1x32xf32> to vector<54x32xf32>
    %608 = arith.addf %605, %607 : vector<54x32xf32>
    %609 = arith.truncf %608 : vector<54x32xf32> to vector<54x32xbf16>
    %cst_216 = arith.constant dense<0.000000e+00> : vector<32x32xf32>
    %610 = tpu.matmul %13, %609, %cst_216 {dimension_numbers = #tpu.dot_dimension_numbers<[0], [0], [1], [1], [0, 1, 1, 1], [], []>} : vector<54x32xbf16>, vector<54x32xbf16>, vector<32x32xf32> -> vector<32x32xf32>
    %611 = vector.extract_strided_slice %610 {offsets = [0, 0], sizes = [8, 32], strides = [1, 1]} : vector<32x32xf32> to vector<8x32xf32>
    %c50 = arith.constant 50 : index
    %c0_217 = arith.constant 0 : index
    %612 = vector.load %arg5[%c50, %c0_217] : memref<90x32xf32, #tpu.memory_space<vmem>>, vector<1x32xf32>
    %c51 = arith.constant 51 : index
    %c0_218 = arith.constant 0 : index
    %613 = vector.load %arg5[%c51, %c0_218] : memref<90x32xf32, #tpu.memory_space<vmem>>, vector<1x32xf32>
    %cst_219 = arith.constant dense<0.000000e+00> : vector<8xf32>
    %614 = vector.multi_reduction <add>, %611, %cst_219 [1] : vector<8x32xf32> to vector<8xf32>
    %615 = vector.shape_cast %614 : vector<8xf32> to vector<8x1xf32>
    %cst_220 = arith.constant 3.125000e-02 : f32
    %616 = vector.broadcast %cst_220 : f32 to vector<8x1xf32>
    %617 = arith.mulf %615, %616 : vector<8x1xf32>
    %618 = arith.mulf %611, %611 : vector<8x32xf32>
    %cst_221 = arith.constant dense<0.000000e+00> : vector<8xf32>
    %619 = vector.multi_reduction <add>, %618, %cst_221 [1] : vector<8x32xf32> to vector<8xf32>
    %620 = vector.shape_cast %619 : vector<8xf32> to vector<8x1xf32>
    %cst_222 = arith.constant 3.125000e-02 : f32
    %621 = vector.broadcast %cst_222 : f32 to vector<8x1xf32>
    %622 = arith.mulf %620, %621 : vector<8x1xf32>
    %623 = arith.mulf %617, %617 : vector<8x1xf32>
    %624 = arith.subf %622, %623 : vector<8x1xf32>
    %cst_223 = arith.constant 0.000000e+00 : f32
    %625 = vector.broadcast %cst_223 : f32 to vector<8x1xf32>
    %626 = arith.maximumf %624, %625 : vector<8x1xf32>
    %627 = vector.broadcast %617 : vector<8x1xf32> to vector<8x32xf32>
    %628 = arith.subf %611, %627 : vector<8x32xf32>
    %cst_224 = arith.constant 9.99999974E-6 : f32
    %629 = vector.broadcast %cst_224 : f32 to vector<8x1xf32>
    %630 = arith.addf %626, %629 : vector<8x1xf32>
    %631 = math.rsqrt %630 : vector<8x1xf32>
    %632 = vector.broadcast %631 : vector<8x1xf32> to vector<8x32xf32>
    %633 = arith.mulf %628, %632 : vector<8x32xf32>
    %634 = vector.broadcast %612 : vector<1x32xf32> to vector<8x32xf32>
    %635 = arith.mulf %633, %634 : vector<8x32xf32>
    %636 = vector.broadcast %613 : vector<1x32xf32> to vector<8x32xf32>
    %637 = arith.addf %635, %636 : vector<8x32xf32>
    %638 = arith.truncf %637 : vector<8x32xf32> to vector<8x32xbf16>
    %639 = vector.extract_strided_slice %1 {offsets = [512, 0], sizes = [32, 128], strides = [1, 1]} : vector<672x128xbf16> to vector<32x128xbf16>
    %cst_225 = arith.constant dense<0.000000e+00> : vector<8x128xf32>
    %640 = tpu.matmul %638, %639, %cst_225 {dimension_numbers = #tpu.dot_dimension_numbers<[1], [0], [0], [1], [0, 0, 1, 1], [], []>} : vector<8x32xbf16>, vector<32x128xbf16>, vector<8x128xf32> -> vector<8x128xf32>
    %641 = vector.extract_strided_slice %640 {offsets = [0, 32], sizes = [8, 32], strides = [1, 1]} : vector<8x128xf32> to vector<8x32xf32>
    %642 = arith.addf %641, %534 : vector<8x32xf32>
    %c52 = arith.constant 52 : index
    %c0_226 = arith.constant 0 : index
    %643 = vector.load %arg5[%c52, %c0_226] : memref<90x32xf32, #tpu.memory_space<vmem>>, vector<1x32xf32>
    %644 = vector.broadcast %643 : vector<1x32xf32> to vector<8x32xf32>
    %645 = arith.addf %642, %644 : vector<8x32xf32>
    %cst_227 = arith.constant 0.000000e+00 : f32
    %646 = vector.broadcast %cst_227 : f32 to vector<8x32xf32>
    %647 = arith.maximumf %645, %646 : vector<8x32xf32>
    %648 = arith.truncf %647 : vector<8x32xf32> to vector<8x32xbf16>
    %649 = vector.extract_strided_slice %1 {offsets = [512, 0], sizes = [32, 128], strides = [1, 1]} : vector<672x128xbf16> to vector<32x128xbf16>
    %cst_228 = arith.constant dense<0.000000e+00> : vector<8x128xf32>
    %650 = tpu.matmul %648, %649, %cst_228 {dimension_numbers = #tpu.dot_dimension_numbers<[1], [0], [0], [1], [0, 0, 1, 1], [], []>} : vector<8x32xbf16>, vector<32x128xbf16>, vector<8x128xf32> -> vector<8x128xf32>
    %651 = vector.extract_strided_slice %650 {offsets = [0, 64], sizes = [8, 32], strides = [1, 1]} : vector<8x128xf32> to vector<8x32xf32>
    %c53 = arith.constant 53 : index
    %c0_229 = arith.constant 0 : index
    %652 = vector.load %arg5[%c53, %c0_229] : memref<90x32xf32, #tpu.memory_space<vmem>>, vector<1x32xf32>
    %653 = vector.broadcast %652 : vector<1x32xf32> to vector<8x32xf32>
    %654 = arith.addf %651, %653 : vector<8x32xf32>
    %655 = arith.truncf %654 : vector<8x32xf32> to vector<8x32xbf16>
    %656 = vector.extract_strided_slice %1 {offsets = [480, 0], sizes = [32, 128], strides = [1, 1]} : vector<672x128xbf16> to vector<32x128xbf16>
    %cst_230 = arith.constant dense<0.000000e+00> : vector<8x128xf32>
    %657 = tpu.matmul %655, %656, %cst_230 {dimension_numbers = #tpu.dot_dimension_numbers<[1], [0], [0], [1], [0, 0, 1, 1], [], []>} : vector<8x32xbf16>, vector<32x128xbf16>, vector<8x128xf32> -> vector<8x128xf32>
    %658 = vector.extract_strided_slice %657 {offsets = [0, 0], sizes = [8, 32], strides = [1, 1]} : vector<8x128xf32> to vector<8x32xf32>
    %659 = vector.extract_strided_slice %657 {offsets = [0, 32], sizes = [8, 32], strides = [1, 1]} : vector<8x128xf32> to vector<8x32xf32>
    %c8_231 = arith.constant 8 : index
    %c0_232 = arith.constant 0 : index
    %660 = vector.load %arg7[%c8_231, %c0_232] : memref<32x32xf32, #tpu.memory_space<vmem>>, vector<12x32xf32>
    tpu.vector_store %arg7[%c8_231, %c0_232], %546 {strides = array<i32>} : memref<32x32xf32, #tpu.memory_space<vmem>>, vector<12x32xf32>,
    %c20_233 = arith.constant 20 : index
    %c0_234 = arith.constant 0 : index
    %661 = vector.load %arg7[%c20_233, %c0_234] : memref<32x32xf32, #tpu.memory_space<vmem>>, vector<10x32xf32>
    tpu.vector_store %arg7[%c20_233, %c0_234], %555 {strides = array<i32>} : memref<32x32xf32, #tpu.memory_space<vmem>>, vector<10x32xf32>,
    %c0_235 = arith.constant 0 : index
    %c0_236 = arith.constant 0 : index
    %662 = vector.load %arg7[%c0_235, %c0_236] : memref<32x32xf32, #tpu.memory_space<vmem>>, vector<8x32xf32>
    tpu.vector_store %arg7[%c0_235, %c0_236], %658 {strides = array<i32>} : memref<32x32xf32, #tpu.memory_space<vmem>>, vector<8x32xf32>,
    %c72 = arith.constant 72 : index
    %c0_237 = arith.constant 0 : index
    %663 = vector.load %arg5[%c72, %c0_237] : memref<90x32xf32, #tpu.memory_space<vmem>>, vector<1x32xf32>
    %c0_238 = arith.constant 0 : index
    %c0_239 = arith.constant 0 : index
    %664 = vector.load %arg7[%c0_238, %c0_239] : memref<32x32xf32, #tpu.memory_space<vmem>>, vector<32x32xf32>
    %665 = arith.truncf %664 : vector<32x32xf32> to vector<32x32xbf16>
    %cst_240 = arith.constant dense<0.000000e+00> : vector<54x32xf32>
    %666 = tpu.matmul %13, %665, %cst_240 {dimension_numbers = #tpu.dot_dimension_numbers<[1], [0], [0], [1], [0, 0, 1, 1], [], []>} : vector<54x32xbf16>, vector<32x32xbf16>, vector<54x32xf32> -> vector<54x32xf32>
    %667 = vector.broadcast %14 : vector<54x1xf32> to vector<54x32xf32>
    %668 = vector.broadcast %663 : vector<1x32xf32> to vector<54x32xf32>
    %669 = arith.mulf %667, %668 : vector<54x32xf32>
    %670 = arith.addf %666, %669 : vector<54x32xf32>
    %c55 = arith.constant 55 : index
    %c0_241 = arith.constant 0 : index
    %671 = vector.load %arg5[%c55, %c0_241] : memref<90x32xf32, #tpu.memory_space<vmem>>, vector<1x32xf32>
    %c56 = arith.constant 56 : index
    %c0_242 = arith.constant 0 : index
    %672 = vector.load %arg5[%c56, %c0_242] : memref<90x32xf32, #tpu.memory_space<vmem>>, vector<1x32xf32>
    %cst_243 = arith.constant dense<0.000000e+00> : vector<54xf32>
    %673 = vector.multi_reduction <add>, %670, %cst_243 [1] : vector<54x32xf32> to vector<54xf32>
    %674 = vector.shape_cast %673 : vector<54xf32> to vector<54x1xf32>
    %cst_244 = arith.constant 3.125000e-02 : f32
    %675 = vector.broadcast %cst_244 : f32 to vector<54x1xf32>
    %676 = arith.mulf %674, %675 : vector<54x1xf32>
    %677 = arith.mulf %670, %670 : vector<54x32xf32>
    %cst_245 = arith.constant dense<0.000000e+00> : vector<54xf32>
    %678 = vector.multi_reduction <add>, %677, %cst_245 [1] : vector<54x32xf32> to vector<54xf32>
    %679 = vector.shape_cast %678 : vector<54xf32> to vector<54x1xf32>
    %cst_246 = arith.constant 3.125000e-02 : f32
    %680 = vector.broadcast %cst_246 : f32 to vector<54x1xf32>
    %681 = arith.mulf %679, %680 : vector<54x1xf32>
    %682 = arith.mulf %676, %676 : vector<54x1xf32>
    %683 = arith.subf %681, %682 : vector<54x1xf32>
    %cst_247 = arith.constant 0.000000e+00 : f32
    %684 = vector.broadcast %cst_247 : f32 to vector<54x1xf32>
    %685 = arith.maximumf %683, %684 : vector<54x1xf32>
    %686 = vector.broadcast %676 : vector<54x1xf32> to vector<54x32xf32>
    %687 = arith.subf %670, %686 : vector<54x32xf32>
    %cst_248 = arith.constant 9.99999974E-6 : f32
    %688 = vector.broadcast %cst_248 : f32 to vector<54x1xf32>
    %689 = arith.addf %685, %688 : vector<54x1xf32>
    %690 = math.rsqrt %689 : vector<54x1xf32>
    %691 = vector.broadcast %690 : vector<54x1xf32> to vector<54x32xf32>
    %692 = arith.mulf %687, %691 : vector<54x32xf32>
    %693 = vector.broadcast %671 : vector<1x32xf32> to vector<54x32xf32>
    %694 = arith.mulf %692, %693 : vector<54x32xf32>
    %695 = vector.broadcast %672 : vector<1x32xf32> to vector<54x32xf32>
    %696 = arith.addf %694, %695 : vector<54x32xf32>
    %cst_249 = arith.constant 0.000000e+00 : f32
    %697 = vector.broadcast %cst_249 : f32 to vector<54x32xf32>
    %698 = arith.maximumf %696, %697 : vector<54x32xf32>
    %699 = arith.truncf %698 : vector<54x32xf32> to vector<54x32xbf16>
    %700 = vector.extract_strided_slice %1 {offsets = [544, 0], sizes = [32, 128], strides = [1, 1]} : vector<672x128xbf16> to vector<32x128xbf16>
    %cst_250 = arith.constant dense<0.000000e+00> : vector<54x128xf32>
    %701 = tpu.matmul %699, %700, %cst_250 {dimension_numbers = #tpu.dot_dimension_numbers<[1], [0], [0], [1], [0, 0, 1, 1], [], []>} : vector<54x32xbf16>, vector<32x128xbf16>, vector<54x128xf32> -> vector<54x128xf32>
    %702 = vector.extract_strided_slice %701 {offsets = [0, 0], sizes = [54, 32], strides = [1, 1]} : vector<54x128xf32> to vector<54x32xf32>
    %c57 = arith.constant 57 : index
    %c0_251 = arith.constant 0 : index
    %703 = vector.load %arg5[%c57, %c0_251] : memref<90x32xf32, #tpu.memory_space<vmem>>, vector<1x32xf32>
    %704 = vector.broadcast %703 : vector<1x32xf32> to vector<54x32xf32>
    %705 = arith.addf %702, %704 : vector<54x32xf32>
    %706 = arith.truncf %705 : vector<54x32xf32> to vector<54x32xbf16>
    %cst_252 = arith.constant dense<0.000000e+00> : vector<32x32xf32>
    %707 = tpu.matmul %13, %706, %cst_252 {dimension_numbers = #tpu.dot_dimension_numbers<[0], [0], [1], [1], [0, 1, 1, 1], [], []>} : vector<54x32xbf16>, vector<54x32xbf16>, vector<32x32xf32> -> vector<32x32xf32>
    %c0_253 = arith.constant 0 : index
    %c0_254 = arith.constant 0 : index
    %708 = vector.load %arg7[%c0_253, %c0_254] : memref<32x32xf32, #tpu.memory_space<vmem>>, vector<8x32xf32>
    tpu.vector_store %arg7[%c0_253, %c0_254], %659 {strides = array<i32>} : memref<32x32xf32, #tpu.memory_space<vmem>>, vector<8x32xf32>,
    %c73 = arith.constant 73 : index
    %c0_255 = arith.constant 0 : index
    %709 = vector.load %arg5[%c73, %c0_255] : memref<90x32xf32, #tpu.memory_space<vmem>>, vector<1x32xf32>
    %c0_256 = arith.constant 0 : index
    %c0_257 = arith.constant 0 : index
    %710 = vector.load %arg7[%c0_256, %c0_257] : memref<32x32xf32, #tpu.memory_space<vmem>>, vector<32x32xf32>
    %711 = arith.truncf %710 : vector<32x32xf32> to vector<32x32xbf16>
    %cst_258 = arith.constant dense<0.000000e+00> : vector<54x32xf32>
    %712 = tpu.matmul %13, %711, %cst_258 {dimension_numbers = #tpu.dot_dimension_numbers<[1], [0], [0], [1], [0, 0, 1, 1], [], []>} : vector<54x32xbf16>, vector<32x32xbf16>, vector<54x32xf32> -> vector<54x32xf32>
    %713 = vector.broadcast %14 : vector<54x1xf32> to vector<54x32xf32>
    %714 = vector.broadcast %709 : vector<1x32xf32> to vector<54x32xf32>
    %715 = arith.mulf %713, %714 : vector<54x32xf32>
    %716 = arith.addf %712, %715 : vector<54x32xf32>
    %c63 = arith.constant 63 : index
    %c0_259 = arith.constant 0 : index
    %717 = vector.load %arg5[%c63, %c0_259] : memref<90x32xf32, #tpu.memory_space<vmem>>, vector<1x32xf32>
    %c64 = arith.constant 64 : index
    %c0_260 = arith.constant 0 : index
    %718 = vector.load %arg5[%c64, %c0_260] : memref<90x32xf32, #tpu.memory_space<vmem>>, vector<1x32xf32>
    %cst_261 = arith.constant dense<0.000000e+00> : vector<54xf32>
    %719 = vector.multi_reduction <add>, %716, %cst_261 [1] : vector<54x32xf32> to vector<54xf32>
    %720 = vector.shape_cast %719 : vector<54xf32> to vector<54x1xf32>
    %cst_262 = arith.constant 3.125000e-02 : f32
    %721 = vector.broadcast %cst_262 : f32 to vector<54x1xf32>
    %722 = arith.mulf %720, %721 : vector<54x1xf32>
    %723 = arith.mulf %716, %716 : vector<54x32xf32>
    %cst_263 = arith.constant dense<0.000000e+00> : vector<54xf32>
    %724 = vector.multi_reduction <add>, %723, %cst_263 [1] : vector<54x32xf32> to vector<54xf32>
    %725 = vector.shape_cast %724 : vector<54xf32> to vector<54x1xf32>
    %cst_264 = arith.constant 3.125000e-02 : f32
    %726 = vector.broadcast %cst_264 : f32 to vector<54x1xf32>
    %727 = arith.mulf %725, %726 : vector<54x1xf32>
    %728 = arith.mulf %722, %722 : vector<54x1xf32>
    %729 = arith.subf %727, %728 : vector<54x1xf32>
    %cst_265 = arith.constant 0.000000e+00 : f32
    %730 = vector.broadcast %cst_265 : f32 to vector<54x1xf32>
    %731 = arith.maximumf %729, %730 : vector<54x1xf32>
    %732 = vector.broadcast %722 : vector<54x1xf32> to vector<54x32xf32>
    %733 = arith.subf %716, %732 : vector<54x32xf32>
    %cst_266 = arith.constant 9.99999974E-6 : f32
    %734 = vector.broadcast %cst_266 : f32 to vector<54x1xf32>
    %735 = arith.addf %731, %734 : vector<54x1xf32>
    %736 = math.rsqrt %735 : vector<54x1xf32>
    %737 = vector.broadcast %736 : vector<54x1xf32> to vector<54x32xf32>
    %738 = arith.mulf %733, %737 : vector<54x32xf32>
    %739 = vector.broadcast %717 : vector<1x32xf32> to vector<54x32xf32>
    %740 = arith.mulf %738, %739 : vector<54x32xf32>
    %741 = vector.broadcast %718 : vector<1x32xf32> to vector<54x32xf32>
    %742 = arith.addf %740, %741 : vector<54x32xf32>
    %cst_267 = arith.constant 0.000000e+00 : f32
    %743 = vector.broadcast %cst_267 : f32 to vector<54x32xf32>
    %744 = arith.maximumf %742, %743 : vector<54x32xf32>
    %745 = arith.truncf %744 : vector<54x32xf32> to vector<54x32xbf16>
    %746 = vector.extract_strided_slice %1 {offsets = [576, 0], sizes = [32, 128], strides = [1, 1]} : vector<672x128xbf16> to vector<32x128xbf16>
    %cst_268 = arith.constant dense<0.000000e+00> : vector<54x128xf32>
    %747 = tpu.matmul %745, %746, %cst_268 {dimension_numbers = #tpu.dot_dimension_numbers<[1], [0], [0], [1], [0, 0, 1, 1], [], []>} : vector<54x32xbf16>, vector<32x128xbf16>, vector<54x128xf32> -> vector<54x128xf32>
    %748 = vector.extract_strided_slice %747 {offsets = [0, 0], sizes = [54, 32], strides = [1, 1]} : vector<54x128xf32> to vector<54x32xf32>
    %c65 = arith.constant 65 : index
    %c0_269 = arith.constant 0 : index
    %749 = vector.load %arg5[%c65, %c0_269] : memref<90x32xf32, #tpu.memory_space<vmem>>, vector<1x32xf32>
    %750 = vector.broadcast %749 : vector<1x32xf32> to vector<54x32xf32>
    %751 = arith.addf %748, %750 : vector<54x32xf32>
    %752 = arith.truncf %751 : vector<54x32xf32> to vector<54x32xbf16>
    %cst_270 = arith.constant dense<0.000000e+00> : vector<32x32xf32>
    %753 = tpu.matmul %13, %752, %cst_270 {dimension_numbers = #tpu.dot_dimension_numbers<[0], [0], [1], [1], [0, 1, 1, 1], [], []>} : vector<54x32xbf16>, vector<54x32xbf16>, vector<32x32xf32> -> vector<32x32xf32>
    %754 = vector.extract_strided_slice %707 {offsets = [8, 0], sizes = [12, 32], strides = [1, 1]} : vector<32x32xf32> to vector<12x32xf32>
    %c58 = arith.constant 58 : index
    %c0_271 = arith.constant 0 : index
    %755 = vector.load %arg5[%c58, %c0_271] : memref<90x32xf32, #tpu.memory_space<vmem>>, vector<1x32xf32>
    %c59 = arith.constant 59 : index
    %c0_272 = arith.constant 0 : index
    %756 = vector.load %arg5[%c59, %c0_272] : memref<90x32xf32, #tpu.memory_space<vmem>>, vector<1x32xf32>
    %cst_273 = arith.constant dense<0.000000e+00> : vector<12xf32>
    %757 = vector.multi_reduction <add>, %754, %cst_273 [1] : vector<12x32xf32> to vector<12xf32>
    %758 = vector.shape_cast %757 : vector<12xf32> to vector<12x1xf32>
    %cst_274 = arith.constant 3.125000e-02 : f32
    %759 = vector.broadcast %cst_274 : f32 to vector<12x1xf32>
    %760 = arith.mulf %758, %759 : vector<12x1xf32>
    %761 = arith.mulf %754, %754 : vector<12x32xf32>
    %cst_275 = arith.constant dense<0.000000e+00> : vector<12xf32>
    %762 = vector.multi_reduction <add>, %761, %cst_275 [1] : vector<12x32xf32> to vector<12xf32>
    %763 = vector.shape_cast %762 : vector<12xf32> to vector<12x1xf32>
    %cst_276 = arith.constant 3.125000e-02 : f32
    %764 = vector.broadcast %cst_276 : f32 to vector<12x1xf32>
    %765 = arith.mulf %763, %764 : vector<12x1xf32>
    %766 = arith.mulf %760, %760 : vector<12x1xf32>
    %767 = arith.subf %765, %766 : vector<12x1xf32>
    %cst_277 = arith.constant 0.000000e+00 : f32
    %768 = vector.broadcast %cst_277 : f32 to vector<12x1xf32>
    %769 = arith.maximumf %767, %768 : vector<12x1xf32>
    %770 = vector.broadcast %760 : vector<12x1xf32> to vector<12x32xf32>
    %771 = arith.subf %754, %770 : vector<12x32xf32>
    %cst_278 = arith.constant 9.99999974E-6 : f32
    %772 = vector.broadcast %cst_278 : f32 to vector<12x1xf32>
    %773 = arith.addf %769, %772 : vector<12x1xf32>
    %774 = math.rsqrt %773 : vector<12x1xf32>
    %775 = vector.broadcast %774 : vector<12x1xf32> to vector<12x32xf32>
    %776 = arith.mulf %771, %775 : vector<12x32xf32>
    %777 = vector.broadcast %755 : vector<1x32xf32> to vector<12x32xf32>
    %778 = arith.mulf %776, %777 : vector<12x32xf32>
    %779 = vector.broadcast %756 : vector<1x32xf32> to vector<12x32xf32>
    %780 = arith.addf %778, %779 : vector<12x32xf32>
    %781 = arith.truncf %780 : vector<12x32xf32> to vector<12x32xbf16>
    %782 = vector.extract_strided_slice %1 {offsets = [544, 0], sizes = [32, 128], strides = [1, 1]} : vector<672x128xbf16> to vector<32x128xbf16>
    %cst_279 = arith.constant dense<0.000000e+00> : vector<12x128xf32>
    %783 = tpu.matmul %781, %782, %cst_279 {dimension_numbers = #tpu.dot_dimension_numbers<[1], [0], [0], [1], [0, 0, 1, 1], [], []>} : vector<12x32xbf16>, vector<32x128xbf16>, vector<12x128xf32> -> vector<12x128xf32>
    %784 = vector.extract_strided_slice %783 {offsets = [0, 32], sizes = [12, 32], strides = [1, 1]} : vector<12x128xf32> to vector<12x32xf32>
    %785 = arith.addf %784, %543 : vector<12x32xf32>
    %c60 = arith.constant 60 : index
    %c0_280 = arith.constant 0 : index
    %786 = vector.load %arg5[%c60, %c0_280] : memref<90x32xf32, #tpu.memory_space<vmem>>, vector<1x32xf32>
    %787 = vector.broadcast %786 : vector<1x32xf32> to vector<12x32xf32>
    %788 = arith.addf %785, %787 : vector<12x32xf32>
    %cst_281 = arith.constant 0.000000e+00 : f32
    %789 = vector.broadcast %cst_281 : f32 to vector<12x32xf32>
    %790 = arith.maximumf %788, %789 : vector<12x32xf32>
    %791 = arith.truncf %790 : vector<12x32xf32> to vector<12x32xbf16>
    %792 = vector.extract_strided_slice %1 {offsets = [544, 0], sizes = [32, 128], strides = [1, 1]} : vector<672x128xbf16> to vector<32x128xbf16>
    %cst_282 = arith.constant dense<0.000000e+00> : vector<12x128xf32>
    %793 = tpu.matmul %791, %792, %cst_282 {dimension_numbers = #tpu.dot_dimension_numbers<[1], [0], [0], [1], [0, 0, 1, 1], [], []>} : vector<12x32xbf16>, vector<32x128xbf16>, vector<12x128xf32> -> vector<12x128xf32>
    %794 = vector.extract_strided_slice %793 {offsets = [0, 64], sizes = [12, 32], strides = [1, 1]} : vector<12x128xf32> to vector<12x32xf32>
    %c61 = arith.constant 61 : index
    %c0_283 = arith.constant 0 : index
    %795 = vector.load %arg5[%c61, %c0_283] : memref<90x32xf32, #tpu.memory_space<vmem>>, vector<1x32xf32>
    %796 = vector.broadcast %795 : vector<1x32xf32> to vector<12x32xf32>
    %797 = arith.addf %794, %796 : vector<12x32xf32>
    %798 = vector.extract_strided_slice %753 {offsets = [20, 0], sizes = [10, 32], strides = [1, 1]} : vector<32x32xf32> to vector<10x32xf32>
    %c66 = arith.constant 66 : index
    %c0_284 = arith.constant 0 : index
    %799 = vector.load %arg5[%c66, %c0_284] : memref<90x32xf32, #tpu.memory_space<vmem>>, vector<1x32xf32>
    %c67 = arith.constant 67 : index
    %c0_285 = arith.constant 0 : index
    %800 = vector.load %arg5[%c67, %c0_285] : memref<90x32xf32, #tpu.memory_space<vmem>>, vector<1x32xf32>
    %cst_286 = arith.constant dense<0.000000e+00> : vector<10xf32>
    %801 = vector.multi_reduction <add>, %798, %cst_286 [1] : vector<10x32xf32> to vector<10xf32>
    %802 = vector.shape_cast %801 : vector<10xf32> to vector<10x1xf32>
    %cst_287 = arith.constant 3.125000e-02 : f32
    %803 = vector.broadcast %cst_287 : f32 to vector<10x1xf32>
    %804 = arith.mulf %802, %803 : vector<10x1xf32>
    %805 = arith.mulf %798, %798 : vector<10x32xf32>
    %cst_288 = arith.constant dense<0.000000e+00> : vector<10xf32>
    %806 = vector.multi_reduction <add>, %805, %cst_288 [1] : vector<10x32xf32> to vector<10xf32>
    %807 = vector.shape_cast %806 : vector<10xf32> to vector<10x1xf32>
    %cst_289 = arith.constant 3.125000e-02 : f32
    %808 = vector.broadcast %cst_289 : f32 to vector<10x1xf32>
    %809 = arith.mulf %807, %808 : vector<10x1xf32>
    %810 = arith.mulf %804, %804 : vector<10x1xf32>
    %811 = arith.subf %809, %810 : vector<10x1xf32>
    %cst_290 = arith.constant 0.000000e+00 : f32
    %812 = vector.broadcast %cst_290 : f32 to vector<10x1xf32>
    %813 = arith.maximumf %811, %812 : vector<10x1xf32>
    %814 = vector.broadcast %804 : vector<10x1xf32> to vector<10x32xf32>
    %815 = arith.subf %798, %814 : vector<10x32xf32>
    %cst_291 = arith.constant 9.99999974E-6 : f32
    %816 = vector.broadcast %cst_291 : f32 to vector<10x1xf32>
    %817 = arith.addf %813, %816 : vector<10x1xf32>
    %818 = math.rsqrt %817 : vector<10x1xf32>
    %819 = vector.broadcast %818 : vector<10x1xf32> to vector<10x32xf32>
    %820 = arith.mulf %815, %819 : vector<10x32xf32>
    %821 = vector.broadcast %799 : vector<1x32xf32> to vector<10x32xf32>
    %822 = arith.mulf %820, %821 : vector<10x32xf32>
    %823 = vector.broadcast %800 : vector<1x32xf32> to vector<10x32xf32>
    %824 = arith.addf %822, %823 : vector<10x32xf32>
    %825 = arith.truncf %824 : vector<10x32xf32> to vector<10x32xbf16>
    %826 = vector.extract_strided_slice %1 {offsets = [576, 0], sizes = [32, 128], strides = [1, 1]} : vector<672x128xbf16> to vector<32x128xbf16>
    %cst_292 = arith.constant dense<0.000000e+00> : vector<10x128xf32>
    %827 = tpu.matmul %825, %826, %cst_292 {dimension_numbers = #tpu.dot_dimension_numbers<[1], [0], [0], [1], [0, 0, 1, 1], [], []>} : vector<10x32xbf16>, vector<32x128xbf16>, vector<10x128xf32> -> vector<10x128xf32>
    %828 = vector.extract_strided_slice %827 {offsets = [0, 32], sizes = [10, 32], strides = [1, 1]} : vector<10x128xf32> to vector<10x32xf32>
    %829 = arith.addf %828, %552 : vector<10x32xf32>
    %c68 = arith.constant 68 : index
    %c0_293 = arith.constant 0 : index
    %830 = vector.load %arg5[%c68, %c0_293] : memref<90x32xf32, #tpu.memory_space<vmem>>, vector<1x32xf32>
    %831 = vector.broadcast %830 : vector<1x32xf32> to vector<10x32xf32>
    %832 = arith.addf %829, %831 : vector<10x32xf32>
    %cst_294 = arith.constant 0.000000e+00 : f32
    %833 = vector.broadcast %cst_294 : f32 to vector<10x32xf32>
    %834 = arith.maximumf %832, %833 : vector<10x32xf32>
    %835 = arith.truncf %834 : vector<10x32xf32> to vector<10x32xbf16>
    %836 = vector.extract_strided_slice %1 {offsets = [576, 0], sizes = [32, 128], strides = [1, 1]} : vector<672x128xbf16> to vector<32x128xbf16>
    %cst_295 = arith.constant dense<0.000000e+00> : vector<10x128xf32>
    %837 = tpu.matmul %835, %836, %cst_295 {dimension_numbers = #tpu.dot_dimension_numbers<[1], [0], [0], [1], [0, 0, 1, 1], [], []>} : vector<10x32xbf16>, vector<32x128xbf16>, vector<10x128xf32> -> vector<10x128xf32>
    %838 = vector.extract_strided_slice %837 {offsets = [0, 64], sizes = [10, 32], strides = [1, 1]} : vector<10x128xf32> to vector<10x32xf32>
    %c69 = arith.constant 69 : index
    %c0_296 = arith.constant 0 : index
    %839 = vector.load %arg5[%c69, %c0_296] : memref<90x32xf32, #tpu.memory_space<vmem>>, vector<1x32xf32>
    %840 = vector.broadcast %839 : vector<1x32xf32> to vector<10x32xf32>
    %841 = arith.addf %838, %840 : vector<10x32xf32>
    %cst_297 = arith.constant 0.000000e+00 : f32
    %842 = vector.broadcast %cst_297 : f32 to vector<1x32xf32>
    %843 = arith.maximumf %85, %842 : vector<1x32xf32>
    %844 = arith.truncf %843 : vector<1x32xf32> to vector<1x32xbf16>
    %845 = vector.extract_strided_slice %1 {offsets = [608, 0], sizes = [32, 128], strides = [1, 1]} : vector<672x128xbf16> to vector<32x128xbf16>
    %cst_298 = arith.constant dense<0.000000e+00> : vector<1x128xf32>
    %846 = tpu.matmul %844, %845, %cst_298 {dimension_numbers = #tpu.dot_dimension_numbers<[1], [0], [0], [1], [0, 0, 1, 1], [], []>} : vector<1x32xbf16>, vector<32x128xbf16>, vector<1x128xf32> -> vector<1x128xf32>
    %847 = vector.extract_strided_slice %846 {offsets = [0, 0], sizes = [1, 32], strides = [1, 1]} : vector<1x128xf32> to vector<1x32xf32>
    %c74 = arith.constant 74 : index
    %c0_299 = arith.constant 0 : index
    %848 = vector.load %arg5[%c74, %c0_299] : memref<90x32xf32, #tpu.memory_space<vmem>>, vector<1x32xf32>
    %849 = arith.addf %847, %848 : vector<1x32xf32>
    %c75 = arith.constant 75 : index
    %c0_300 = arith.constant 0 : index
    %850 = vector.load %arg5[%c75, %c0_300] : memref<90x32xf32, #tpu.memory_space<vmem>>, vector<1x32xf32>
    %c76 = arith.constant 76 : index
    %c0_301 = arith.constant 0 : index
    %851 = vector.load %arg5[%c76, %c0_301] : memref<90x32xf32, #tpu.memory_space<vmem>>, vector<1x32xf32>
    %cst_302 = arith.constant dense<0.000000e+00> : vector<12xf32>
    %852 = vector.multi_reduction <add>, %797, %cst_302 [1] : vector<12x32xf32> to vector<12xf32>
    %853 = vector.shape_cast %852 : vector<12xf32> to vector<12x1xf32>
    %cst_303 = arith.constant 3.125000e-02 : f32
    %854 = vector.broadcast %cst_303 : f32 to vector<12x1xf32>
    %855 = arith.mulf %853, %854 : vector<12x1xf32>
    %856 = arith.mulf %797, %797 : vector<12x32xf32>
    %cst_304 = arith.constant dense<0.000000e+00> : vector<12xf32>
    %857 = vector.multi_reduction <add>, %856, %cst_304 [1] : vector<12x32xf32> to vector<12xf32>
    %858 = vector.shape_cast %857 : vector<12xf32> to vector<12x1xf32>
    %cst_305 = arith.constant 3.125000e-02 : f32
    %859 = vector.broadcast %cst_305 : f32 to vector<12x1xf32>
    %860 = arith.mulf %858, %859 : vector<12x1xf32>
    %861 = arith.mulf %855, %855 : vector<12x1xf32>
    %862 = arith.subf %860, %861 : vector<12x1xf32>
    %cst_306 = arith.constant 0.000000e+00 : f32
    %863 = vector.broadcast %cst_306 : f32 to vector<12x1xf32>
    %864 = arith.maximumf %862, %863 : vector<12x1xf32>
    %865 = vector.broadcast %855 : vector<12x1xf32> to vector<12x32xf32>
    %866 = arith.subf %797, %865 : vector<12x32xf32>
    %cst_307 = arith.constant 9.99999974E-6 : f32
    %867 = vector.broadcast %cst_307 : f32 to vector<12x1xf32>
    %868 = arith.addf %864, %867 : vector<12x1xf32>
    %869 = math.rsqrt %868 : vector<12x1xf32>
    %870 = vector.broadcast %869 : vector<12x1xf32> to vector<12x32xf32>
    %871 = arith.mulf %866, %870 : vector<12x32xf32>
    %872 = vector.broadcast %850 : vector<1x32xf32> to vector<12x32xf32>
    %873 = arith.mulf %871, %872 : vector<12x32xf32>
    %874 = vector.broadcast %851 : vector<1x32xf32> to vector<12x32xf32>
    %875 = arith.addf %873, %874 : vector<12x32xf32>
    %cst_308 = arith.constant 0.000000e+00 : f32
    %876 = vector.broadcast %cst_308 : f32 to vector<12x32xf32>
    %877 = arith.subf %876, %875 : vector<12x32xf32>
    %878 = math.exp %877 : vector<12x32xf32>
    %cst_309 = arith.constant 1.000000e+00 : f32
    %879 = vector.broadcast %cst_309 : f32 to vector<12x32xf32>
    %880 = arith.addf %879, %878 : vector<12x32xf32>
    %881 = tpu.reciprocal %880 {approx = true} : vector<12x32xf32> -> vector<12x32xf32>
    %882 = arith.mulf %875, %881 : vector<12x32xf32>
    %883 = arith.truncf %882 : vector<12x32xf32> to vector<12x32xbf16>
    %884 = vector.extract_strided_slice %1 {offsets = [608, 0], sizes = [32, 128], strides = [1, 1]} : vector<672x128xbf16> to vector<32x128xbf16>
    %cst_310 = arith.constant dense<0.000000e+00> : vector<12x128xf32>
    %885 = tpu.matmul %883, %884, %cst_310 {dimension_numbers = #tpu.dot_dimension_numbers<[1], [0], [0], [1], [0, 0, 1, 1], [], []>} : vector<12x32xbf16>, vector<32x128xbf16>, vector<12x128xf32> -> vector<12x128xf32>
    %886 = vector.extract_strided_slice %885 {offsets = [0, 32], sizes = [12, 32], strides = [1, 1]} : vector<12x128xf32> to vector<12x32xf32>
    %c77 = arith.constant 77 : index
    %c0_311 = arith.constant 0 : index
    %887 = vector.load %arg5[%c77, %c0_311] : memref<90x32xf32, #tpu.memory_space<vmem>>, vector<1x32xf32>
    %888 = vector.broadcast %887 : vector<1x32xf32> to vector<12x32xf32>
    %889 = arith.addf %886, %888 : vector<12x32xf32>
    %890 = vector.broadcast %849 : vector<1x32xf32> to vector<12x32xf32>
    %891 = arith.addf %889, %890 : vector<12x32xf32>
    %c78 = arith.constant 78 : index
    %c0_312 = arith.constant 0 : index
    %892 = vector.load %arg5[%c78, %c0_312] : memref<90x32xf32, #tpu.memory_space<vmem>>, vector<1x32xf32>
    %c79 = arith.constant 79 : index
    %c0_313 = arith.constant 0 : index
    %893 = vector.load %arg5[%c79, %c0_313] : memref<90x32xf32, #tpu.memory_space<vmem>>, vector<1x32xf32>
    %cst_314 = arith.constant dense<0.000000e+00> : vector<10xf32>
    %894 = vector.multi_reduction <add>, %841, %cst_314 [1] : vector<10x32xf32> to vector<10xf32>
    %895 = vector.shape_cast %894 : vector<10xf32> to vector<10x1xf32>
    %cst_315 = arith.constant 3.125000e-02 : f32
    %896 = vector.broadcast %cst_315 : f32 to vector<10x1xf32>
    %897 = arith.mulf %895, %896 : vector<10x1xf32>
    %898 = arith.mulf %841, %841 : vector<10x32xf32>
    %cst_316 = arith.constant dense<0.000000e+00> : vector<10xf32>
    %899 = vector.multi_reduction <add>, %898, %cst_316 [1] : vector<10x32xf32> to vector<10xf32>
    %900 = vector.shape_cast %899 : vector<10xf32> to vector<10x1xf32>
    %cst_317 = arith.constant 3.125000e-02 : f32
    %901 = vector.broadcast %cst_317 : f32 to vector<10x1xf32>
    %902 = arith.mulf %900, %901 : vector<10x1xf32>
    %903 = arith.mulf %897, %897 : vector<10x1xf32>
    %904 = arith.subf %902, %903 : vector<10x1xf32>
    %cst_318 = arith.constant 0.000000e+00 : f32
    %905 = vector.broadcast %cst_318 : f32 to vector<10x1xf32>
    %906 = arith.maximumf %904, %905 : vector<10x1xf32>
    %907 = vector.broadcast %897 : vector<10x1xf32> to vector<10x32xf32>
    %908 = arith.subf %841, %907 : vector<10x32xf32>
    %cst_319 = arith.constant 9.99999974E-6 : f32
    %909 = vector.broadcast %cst_319 : f32 to vector<10x1xf32>
    %910 = arith.addf %906, %909 : vector<10x1xf32>
    %911 = math.rsqrt %910 : vector<10x1xf32>
    %912 = vector.broadcast %911 : vector<10x1xf32> to vector<10x32xf32>
    %913 = arith.mulf %908, %912 : vector<10x32xf32>
    %914 = vector.broadcast %892 : vector<1x32xf32> to vector<10x32xf32>
    %915 = arith.mulf %913, %914 : vector<10x32xf32>
    %916 = vector.broadcast %893 : vector<1x32xf32> to vector<10x32xf32>
    %917 = arith.addf %915, %916 : vector<10x32xf32>
    %cst_320 = arith.constant 0.000000e+00 : f32
    %918 = vector.broadcast %cst_320 : f32 to vector<10x32xf32>
    %919 = arith.subf %918, %917 : vector<10x32xf32>
    %920 = math.exp %919 : vector<10x32xf32>
    %cst_321 = arith.constant 1.000000e+00 : f32
    %921 = vector.broadcast %cst_321 : f32 to vector<10x32xf32>
    %922 = arith.addf %921, %920 : vector<10x32xf32>
    %923 = tpu.reciprocal %922 {approx = true} : vector<10x32xf32> -> vector<10x32xf32>
    %924 = arith.mulf %917, %923 : vector<10x32xf32>
    %925 = arith.truncf %924 : vector<10x32xf32> to vector<10x32xbf16>
    %926 = vector.extract_strided_slice %1 {offsets = [608, 0], sizes = [32, 128], strides = [1, 1]} : vector<672x128xbf16> to vector<32x128xbf16>
    %cst_322 = arith.constant dense<0.000000e+00> : vector<10x128xf32>
    %927 = tpu.matmul %925, %926, %cst_322 {dimension_numbers = #tpu.dot_dimension_numbers<[1], [0], [0], [1], [0, 0, 1, 1], [], []>} : vector<10x32xbf16>, vector<32x128xbf16>, vector<10x128xf32> -> vector<10x128xf32>
    %928 = vector.extract_strided_slice %927 {offsets = [0, 64], sizes = [10, 32], strides = [1, 1]} : vector<10x128xf32> to vector<10x32xf32>
    %c80 = arith.constant 80 : index
    %c0_323 = arith.constant 0 : index
    %929 = vector.load %arg5[%c80, %c0_323] : memref<90x32xf32, #tpu.memory_space<vmem>>, vector<1x32xf32>
    %930 = vector.broadcast %929 : vector<1x32xf32> to vector<10x32xf32>
    %931 = arith.addf %928, %930 : vector<10x32xf32>
    %932 = vector.broadcast %849 : vector<1x32xf32> to vector<10x32xf32>
    %933 = arith.addf %931, %932 : vector<10x32xf32>
    %cst_324 = arith.constant dense<0.000000e+00> : vector<32xf32>
    %934 = vector.multi_reduction <add>, %891, %cst_324 [0] : vector<12x32xf32> to vector<32xf32>
    %935 = vector.shape_cast %934 : vector<32xf32> to vector<1x32xf32>
    %cst_325 = arith.constant 0.0833333358 : f32
    %936 = vector.broadcast %cst_325 : f32 to vector<1x32xf32>
    %937 = arith.mulf %935, %936 : vector<1x32xf32>
    %938 = arith.mulf %891, %891 : vector<12x32xf32>
    %cst_326 = arith.constant dense<0.000000e+00> : vector<32xf32>
    %939 = vector.multi_reduction <add>, %938, %cst_326 [0] : vector<12x32xf32> to vector<32xf32>
    %940 = vector.shape_cast %939 : vector<32xf32> to vector<1x32xf32>
    %cst_327 = arith.constant 0.0833333358 : f32
    %941 = vector.broadcast %cst_327 : f32 to vector<1x32xf32>
    %942 = arith.mulf %940, %941 : vector<1x32xf32>
    %943 = arith.mulf %937, %937 : vector<1x32xf32>
    %944 = arith.subf %942, %943 : vector<1x32xf32>
    %cst_328 = arith.constant 0.000000e+00 : f32
    %945 = vector.broadcast %cst_328 : f32 to vector<1x32xf32>
    %946 = arith.maximumf %944, %945 : vector<1x32xf32>
    %947 = vector.broadcast %937 : vector<1x32xf32> to vector<12x32xf32>
    %948 = arith.subf %891, %947 : vector<12x32xf32>
    %cst_329 = arith.constant 9.99999974E-6 : f32
    %949 = vector.broadcast %cst_329 : f32 to vector<1x32xf32>
    %950 = arith.addf %946, %949 : vector<1x32xf32>
    %951 = math.rsqrt %950 : vector<1x32xf32>
    %952 = vector.broadcast %951 : vector<1x32xf32> to vector<12x32xf32>
    %953 = arith.mulf %948, %952 : vector<12x32xf32>
    %c84 = arith.constant 84 : index
    %c0_330 = arith.constant 0 : index
    %954 = vector.load %arg5[%c84, %c0_330] : memref<90x32xf32, #tpu.memory_space<vmem>>, vector<1x32xf32>
    %955 = vector.broadcast %954 : vector<1x32xf32> to vector<12x32xf32>
    %956 = arith.mulf %953, %955 : vector<12x32xf32>
    %c85 = arith.constant 85 : index
    %c0_331 = arith.constant 0 : index
    %957 = vector.load %arg5[%c85, %c0_331] : memref<90x32xf32, #tpu.memory_space<vmem>>, vector<1x32xf32>
    %958 = vector.broadcast %957 : vector<1x32xf32> to vector<12x32xf32>
    %959 = arith.addf %956, %958 : vector<12x32xf32>
    %cst_332 = arith.constant 0.000000e+00 : f32
    %960 = vector.broadcast %cst_332 : f32 to vector<12x32xf32>
    %961 = arith.maximumf %959, %960 : vector<12x32xf32>
    %962 = arith.truncf %961 : vector<12x32xf32> to vector<12x32xbf16>
    %963 = vector.extract_strided_slice %1 {offsets = [640, 0], sizes = [32, 128], strides = [1, 1]} : vector<672x128xbf16> to vector<32x128xbf16>
    %cst_333 = arith.constant dense<0.000000e+00> : vector<12x128xf32>
    %964 = tpu.matmul %962, %963, %cst_333 {dimension_numbers = #tpu.dot_dimension_numbers<[1], [0], [0], [1], [0, 0, 1, 1], [], []>} : vector<12x32xbf16>, vector<32x128xbf16>, vector<12x128xf32> -> vector<12x128xf32>
    %965 = vector.extract_strided_slice %964 {offsets = [0, 0], sizes = [12, 32], strides = [1, 1]} : vector<12x128xf32> to vector<12x32xf32>
    %c86 = arith.constant 86 : index
    %c0_334 = arith.constant 0 : index
    %966 = vector.load %arg5[%c86, %c0_334] : memref<90x32xf32, #tpu.memory_space<vmem>>, vector<1x32xf32>
    %967 = vector.broadcast %966 : vector<1x32xf32> to vector<12x32xf32>
    %968 = arith.addf %965, %967 : vector<12x32xf32>
    %c0_335 = arith.constant 0 : index
    %c0_336 = arith.constant 0 : index
    %969 = vector.load %arg6[%c0_335, %c0_336] : memref<22x32xf32, #tpu.memory_space<vmem>>, vector<12x32xf32>
    tpu.vector_store %arg6[%c0_335, %c0_336], %968 {strides = array<i32>} : memref<22x32xf32, #tpu.memory_space<vmem>>, vector<12x32xf32>,
    %cst_337 = arith.constant dense<0.000000e+00> : vector<32xf32>
    %970 = vector.multi_reduction <add>, %933, %cst_337 [0] : vector<10x32xf32> to vector<32xf32>
    %971 = vector.shape_cast %970 : vector<32xf32> to vector<1x32xf32>
    %cst_338 = arith.constant 1.000000e-01 : f32
    %972 = vector.broadcast %cst_338 : f32 to vector<1x32xf32>
    %973 = arith.mulf %971, %972 : vector<1x32xf32>
    %974 = arith.mulf %933, %933 : vector<10x32xf32>
    %cst_339 = arith.constant dense<0.000000e+00> : vector<32xf32>
    %975 = vector.multi_reduction <add>, %974, %cst_339 [0] : vector<10x32xf32> to vector<32xf32>
    %976 = vector.shape_cast %975 : vector<32xf32> to vector<1x32xf32>
    %cst_340 = arith.constant 1.000000e-01 : f32
    %977 = vector.broadcast %cst_340 : f32 to vector<1x32xf32>
    %978 = arith.mulf %976, %977 : vector<1x32xf32>
    %979 = arith.mulf %973, %973 : vector<1x32xf32>
    %980 = arith.subf %978, %979 : vector<1x32xf32>
    %cst_341 = arith.constant 0.000000e+00 : f32
    %981 = vector.broadcast %cst_341 : f32 to vector<1x32xf32>
    %982 = arith.maximumf %980, %981 : vector<1x32xf32>
    %983 = vector.broadcast %973 : vector<1x32xf32> to vector<10x32xf32>
    %984 = arith.subf %933, %983 : vector<10x32xf32>
    %cst_342 = arith.constant 9.99999974E-6 : f32
    %985 = vector.broadcast %cst_342 : f32 to vector<1x32xf32>
    %986 = arith.addf %982, %985 : vector<1x32xf32>
    %987 = math.rsqrt %986 : vector<1x32xf32>
    %988 = vector.broadcast %987 : vector<1x32xf32> to vector<10x32xf32>
    %989 = arith.mulf %984, %988 : vector<10x32xf32>
    %c87 = arith.constant 87 : index
    %c0_343 = arith.constant 0 : index
    %990 = vector.load %arg5[%c87, %c0_343] : memref<90x32xf32, #tpu.memory_space<vmem>>, vector<1x32xf32>
    %991 = vector.broadcast %990 : vector<1x32xf32> to vector<10x32xf32>
    %992 = arith.mulf %989, %991 : vector<10x32xf32>
    %c88 = arith.constant 88 : index
    %c0_344 = arith.constant 0 : index
    %993 = vector.load %arg5[%c88, %c0_344] : memref<90x32xf32, #tpu.memory_space<vmem>>, vector<1x32xf32>
    %994 = vector.broadcast %993 : vector<1x32xf32> to vector<10x32xf32>
    %995 = arith.addf %992, %994 : vector<10x32xf32>
    %cst_345 = arith.constant 0.000000e+00 : f32
    %996 = vector.broadcast %cst_345 : f32 to vector<10x32xf32>
    %997 = arith.maximumf %995, %996 : vector<10x32xf32>
    %998 = arith.truncf %997 : vector<10x32xf32> to vector<10x32xbf16>
    %999 = vector.extract_strided_slice %1 {offsets = [640, 0], sizes = [32, 128], strides = [1, 1]} : vector<672x128xbf16> to vector<32x128xbf16>
    %cst_346 = arith.constant dense<0.000000e+00> : vector<10x128xf32>
    %1000 = tpu.matmul %998, %999, %cst_346 {dimension_numbers = #tpu.dot_dimension_numbers<[1], [0], [0], [1], [0, 0, 1, 1], [], []>} : vector<10x32xbf16>, vector<32x128xbf16>, vector<10x128xf32> -> vector<10x128xf32>
    %1001 = vector.extract_strided_slice %1000 {offsets = [0, 32], sizes = [10, 32], strides = [1, 1]} : vector<10x128xf32> to vector<10x32xf32>
    %c89 = arith.constant 89 : index
    %c0_347 = arith.constant 0 : index
    %1002 = vector.load %arg5[%c89, %c0_347] : memref<90x32xf32, #tpu.memory_space<vmem>>, vector<1x32xf32>
    %1003 = vector.broadcast %1002 : vector<1x32xf32> to vector<10x32xf32>
    %1004 = arith.addf %1001, %1003 : vector<10x32xf32>
    %c12_348 = arith.constant 12 : index
    %c0_349 = arith.constant 0 : index
    %1005 = vector.load %arg6[%c12_348, %c0_349] : memref<22x32xf32, #tpu.memory_space<vmem>>, vector<10x32xf32>
    tpu.vector_store %arg6[%c12_348, %c0_349], %1004 {strides = array<i32>} : memref<22x32xf32, #tpu.memory_space<vmem>>, vector<10x32xf32>,
    return
  }
}

</mosaic_0001>

<bundles_post_ra>
// kernel: milp_gcn_forward.1
= control target key start
LH: loop header
LB: loop body
LE: loop exit
PB: predicated region body
PF: predicated region fallthrough
CT: control target
= control target key end

     0   :  { %11 = vsyncpa [#allocation4], 0  ;;  %s6679_s21 = smov [#allocation3]   ;;  %s8298_s0 = inlined_call_operand.vmem [shape: f32[30,8], index: 0, kind: input, shape index: {}]   ;;  %s8299_s1 = inlined_call_operand.vmem [shape: f32[54,1], index: 1, kind: input, shape index: {}]   ;;  %s8300_s2 = inlined_call_operand.vmem [shape: s32[54,2], index: 2, kind: input, shape index: {}]   ;;  %s8301_s3 = inlined_call_operand.vmem [shape: f32[1,32], index: 3, kind: input, shape index: {}]   ;;  %s8302_s4 = inlined_call_operand.hbm [shape: f32[672,128], index: 4, kind: input, shape index: {}]   ;;  %s8303_s5 = inlined_call_operand.vmem [shape: f32[90,32], index: 5, kind: input, shape index: {}]   ;;  %s8304_s6 = inlined_call_operand.vmem [shape: f32[22,32], index: 6, kind: output, shape index: {}]  }
   0x1   :  { %s25_s22 = sshll.u32 %s6679_s21, 4  ;;  %s26_s22 = int_to_ptr.vmem [resolvable:$true] %s25_s22 }
   0x2   :  { %s6665_s23 = scalar_lea.vmem %s26_s22, 10752  ;;  %p6670_p1 = scmp.lt.s32.totalorder %s26_s22, %s26_s22 }
   0x3   :  { %p6666_p0 = scmp.ne.s32.totalorder %s26_s22, %s6665_s23  ;;  %p6671_p2 = scmp.lt.s32.totalorder %s6665_s23, %s6665_s23 }
   0x5   :  { %p6672_p3 = por %p6671_p2, %p6670_p1 }
   0x7   :  { %p6673_p4 = pnand %p6672_p3, %p6666_p0 }
   0x9   :  { %6676 = shalt.err (!%p6673_p4)
}
   0xa   :  { %s6680_s24 = smov 128   ;;  %s6681_s25 = smov 8  }
   0xb   :  { %31 = dma.hbm_to_vmem [thread:$0]  %s8302_s4, 10752, %s26_s22, [#allocation4], %s6680_s24, %s6680_s24, %s6681_s25  }
   0xc   :  { %6677 = dma.done.wait [#allocation4], 10752  }
   0xd   :  { %6678 = vsyncadd [#allocation4], 4294956544  ;;  %v6682_v0 = vmov 0.0   ;;  %vm6683_vm0 = vmmov 0   ;;  %v38_v1 = vld [vmem:[#allocation3] sm:$0xff]  ;;  %v39_v2 = vld [vmem:[#allocation3 + $0x8] sm:$0xff] }
   0xe   :  { %5960 = vmatprep.subr.bf16.mxu0 %v6682_v0  ;;  %5962 = vmatprep.mubr.msk.bf16.mxu0 %vm6683_vm0, %v6682_v0  ;;  %vm280_vm1 = vcmask 1043456   ;;  %v274_v3 = vld [vmem:[%s8298_s0] sm:$0xff]  ;;  %v122_v4 = vpack.c.bf16 %v39_v2, %v38_v1  ;;  %v43_v6 = vld [vmem:[#allocation3 + $0x28] sm:$0xff]  ;;  %vm276_vm2 = vcmask 64512   ;;  %v386_v14 = vld [vmem:[%s8298_s0 + $0x10] sm:$0xf] }
   0xf   :  { %5966 = vmatprep.subr.bf16.mxu1 %v6682_v0  ;;  %5970 = vmatprep.mubr.msk.bf16.mxu1 %vm6683_vm0, %v6682_v0  ;;  %v42_v5 = vld [vmem:[#allocation3 + $0x20] sm:$0xff]  ;;  %v275_v9 = vpack.c.bf16 %v274_v3, %v274_v3  ;;  %v47_v12 = vld [vmem:[#allocation3 + $0x48] sm:$0xff]  ;;  %v500_v18 = vld [vmem:[%s8298_s0 + $0x14] sm:$0xff]  ;;  %vm269_vm3 = vcmask 261120   ;;  %s6684_s14 = smov 32   ;;  %s6685_s28 = smov 96  }
  0x10   :  { %v6736_v7 = vpack.c.bf16 %v43_v6, %v42_v5  ;;  %v282_v8 = vsel %vm280_vm1, %v122_v4, 0  ;;  %v46_v11 = vld [vmem:[#allocation3 + $0x40] sm:$0xff]  ;;  %v385_v13 = vld [vmem:[%s8298_s0 + $0x8] sm:$0xff]  ;;  %v501_v19 = vld [vmem:[%s8298_s0 + $0x1c] sm:$0x3]  ;;  %270 = vst.msk [vmem:[#allocation2] sm:$0xff] %vm269_vm3, %v6682_v0 }
  0x11   :  { %5961 = vmatpush3.bf16.msra.mxu0 %v282_v8  ;;  %v6752_v15 = vpack.c.bf16 %v47_v12, %v46_v11  ;;  %v387_v16 = vpack.c.bf16 %v386_v14, %v385_v13  ;;  %v502_v20 = vpack.c.bf16 %v501_v19, %v500_v18  ;;  %v40_v21 = vld [vmem:[#allocation3 + $0x10] sm:$0xff]  ;;  %v41_v22 = vld [vmem:[#allocation3 + $0x18] sm:$0xff]  ;;  %271 = vst.msk [vmem:[#allocation2 + $0x8] sm:$0xff] %vm269_vm3, %v6682_v0  ;;  %272 = vst.msk [vmem:[#allocation2 + $0x10] sm:$0xff] %vm269_vm3, %v6682_v0  ;;  %vm886_vm10 = vcmask 257024   ;;  %s6688_s23 = smov 64  }
  0x12   :  { %5974 = vmatprep.subr.bf16.mxu0 %v6682_v0  ;;  %v392_v10 = vsel %vm280_vm1, %v6736_v7, 0  ;;  %v123_v23 = vpack.c.bf16 %v41_v22, %v40_v21  ;;  %273 = vst.msk [vmem:[#allocation2 + $0x18] sm:$0xff] %vm269_vm3, %v6682_v0  ;;  %v5567_v24 = vld [vmem:[%s8303_s5 + $0x1] ss:$0 sm:$0xff]  ;;  %v52_v25 = vld [vmem:[#allocation3 + $0x70] sm:$0xff]  ;;  %v53_v27 = vld [vmem:[#allocation3 + $0x78] sm:$0xff] }
  0x13   :  { %v507_v17 = vsel %vm280_vm1, %v6752_v15, 0  ;;  %381 = vrot.lane.b32.xlu0 %v5567_v24, %s6684_s14  ;;  %v5575_v26 = vld [vmem:[%s8303_s5 + $0x5] ss:$0 sm:$0xff]  ;;  %v5571_v29 = vld [vmem:[%s8303_s5 + $0x3] ss:$0 sm:$0xff]  ;;  %v129_v30 = vpack.c.bf16 %v53_v27, %v52_v25  ;;  %v51_v31 = vld [vmem:[#allocation3 + $0x68] sm:$0xff] }
  0x14   :  { %5963 = vmatmul.mubr.msk.bf16.vlgmr.msra.gmra.mxu0 %vm276_vm2, %v275_v9  ;;  %5967 = vmatpush3.bf16.msra.mxu1 %v123_v23  ;;  %v50_v28 = vld [vmem:[#allocation3 + $0x60] sm:$0xff]  ;;  %v44_v38 = vld [vmem:[#allocation3 + $0x30] sm:$0xff]  ;;  %v45_v39 = vld [vmem:[#allocation3 + $0x38] sm:$0xff]  ;;  %vm889_vm11 = vcmask 254976  }
  0x15   :  { %5975 = vmatpush3.bf16.msra.mxu0 %v392_v10  ;;  %5976 = vmatprep.mubr.msk.bf16.mxu0 %vm6683_vm0, %v6682_v0  ;;  %v128_v32 = vpack.c.bf16 %v51_v31, %v50_v28  ;;  %v615_v33 = vld [vmem:[%s8301_s3] sm:$0x1]  ;;  %v125_v43 = vpack.c.bf16 %v45_v39, %v44_v38  ;;  %v5569_v47 = vld [vmem:[%s8303_s5 + $0x2] ss:$0 sm:$0xff]  ;;  %v48_v52 = vld [vmem:[#allocation3 + $0x50] sm:$0xff]  ;;  %v6686_v39 = vmov 1  }
  0x16   :  { %5988 = vmatprep.subr.bf16.mxu0 %v6682_v0  ;;  %5968 = vmatprep.subr.bf16.mxu1 %v6682_v0  ;;  %v616_v34 = vpack.c.bf16 %v615_v33, %v615_v33  ;;  %v5565_v35 = vld [vmem:[%s8303_s5] ss:$0 sm:$0xff]  ;;  %v49_v53 = vld [vmem:[#allocation3 + $0x58] sm:$0xff]  ;;  %v5573_v58 = vld [vmem:[%s8303_s5 + $0x4] ss:$0 sm:$0xff] }
  0x17   :  { %610 = vrot.lane.b32.xlu1 %v5575_v26, %s6684_s14  ;;  %495 = vrot.lane.b32.xlu0 %v5571_v29, %s6684_s14  ;;  %v127_v59 = vpack.c.bf16 %v49_v53, %v48_v52  ;;  %v56_v6 = vld [vmem:[#allocation3 + $0x90] sm:$0xff]  ;;  %v54_v8 = vld [vmem:[#allocation3 + $0x80] sm:$0xff]  ;;  %v55_v10 = vld [vmem:[#allocation3 + $0x88] sm:$0xff] }
  0x18   :  { %5969 = vmatpush3.bf16.msra.mxu1 %v122_v4  ;;  %v130_v11 = vpack.c.bf16 %v55_v10, %v54_v8  ;;  %v660_v13 = vld [vmem:[%s8303_s5 + $0x6] sm:$0x1]  ;;  %v59_v23 = vld [vmem:[#allocation3 + $0xa8] sm:$0xff]  ;;  %6484 = vset.pattern.permute.xlu0 %v6686_v39 }
  0x19   :  { %5980 = vmatprep.subr.bf16.mxu1 %v6682_v0  ;;  %v58_v22 = vld [vmem:[#allocation3 + $0xa0] sm:$0xff] }
  0x1a   :  { %v132_v27 = vpack.c.bf16 %v59_v23, %v58_v22  ;;  %v166_v53 = vld [vmem:[%s8300_s2] sm:$0xff]  ;;  %v252_v23 = vld [vmem:[%s8299_s1 + $0x28] sm:$0xff] }
  0x1b   :  { %v251_v22 = vld [vmem:[%s8299_s1 + $0x20] sm:$0xff] }
  0x1c   :  { %5977 = vmatmul.mubr.msk.bf16.vlgmr.msra.gmra.mxu0 %vm276_vm2, %v387_v16  ;;  %v61_v16 = vld [vmem:[#allocation3 + $0xb8] sm:$0xff] }
  0x1d   :  { %5989 = vmatpush3.bf16.msra.mxu0 %v507_v17  ;;  %5990 = vmatprep.mubr.msk.bf16.mxu0 %vm6683_vm0, %v6682_v0 }
  0x1e   :  { %6002 = vmatprep.subr.bf16.mxu0 %v6682_v0 }
  0x24   :  { %5991 = vmatmul.mubr.msk.bf16.vlgmr.msra.gmra.mxu0 %vm276_vm2, %v502_v20 }
  0x25   :  { %6006 = vmatprep.mubr.msk.bf16.mxu0 %vm6683_vm0, %v6682_v0  ;;  %6003 = vmatpush3.bf16.msra.mxu0 %v129_v30 }
  0x26   :  { %6004 = vmatprep.subr.bf16.mxu0 %v6682_v0 }
  0x29   :  { %6005 = vmatpush3.bf16.msra.mxu0 %v128_v32 }
  0x2a   :  { %6018 = vmatprep.subr.bf16.mxu0 %v6682_v0 }
  0x2c   :  { %6007 = vmatmul.mubr.msk.bf16.vlgmr.msra.gmra.mxu0 %vm269_vm3, %v616_v34 }
  0x2d   :  { %6022 = vmatprep.mubr.msk.bf16.mxu0 %vm6683_vm0, %v6682_v0 }
  0x85   :  { %v382_v24 = vpop.permute.xlu0 %381 }
  0x89   :  { %v496_v34 = vpop.permute.xlu0 %495 }
  0xd4   :  { %v318_v36 = vpop.f32.mrf.mxu0 }
  0xd5   :  { %v329_v37 = vadd.f32 %v5565_v35, %v318_v36 }
  0xd6   :  { %v5964_v40 = vpop.f32.mrf.mxu0 }
  0xd7   :  { %v330_v41 = vmax.f32 %v329_v37, 0.0  ;;  %v6687_v40 = vmov 0  }
  0xd8   :  { %v321_v42 = vpop.f32.mrf.mxu0  ;;  %6482 = vset.pattern.permute.xlu1 %v6687_v40 }
  0xd9   :  { %v331_v44 = vpack.c.bf16 %v330_v41, %v330_v41 }
  0xda   :  { %v5965_v45 = vpop.f32.mrf.mxu0 }
  0xdb   :  { %5971 = vmatmul.mubr.msk.bf16.vlgmr.msra.gmra.mxu1 %vm269_vm3, %v331_v44  ;;  %v611_v44 = vpop.permute.xlu1 %610 }
  0xdc   :  { %v428_v46 = vpop.f32.mrf.mxu0  ;;  %5981 = vmatpush3.bf16.msra.mxu1 %v125_v43  ;;  %5984 = vmatprep.mubr.msk.bf16.mxu1 %vm6683_vm0, %v6682_v0 }
  0xdd   :  { %5982 = vmatprep.subr.bf16.mxu1 %v6682_v0  ;;  %v440_v49 = vadd.f32 %v5569_v47, %v428_v46  ;;  %v167_v46 = vld [vmem:[%s8300_s2 + $0x8] sm:$0xff] }
  0xde   :  { %v5978_v48 = vpop.f32.mrf.mxu0 }
  0xdf   :  { %v442_v55 = vmax.f32 %v440_v49, 0.0 }
  0xe0   :  { %v431_v50 = vpop.f32.mrf.mxu0  ;;  %5983 = vmatpush3.bf16.msra.mxu1 %v6736_v7  ;;  %v57_v7 = vld [vmem:[#allocation3 + $0x98] sm:$0xff] }
  0xe1   :  { %v441_v51 = vadd.f32 %v5569_v47, %v431_v50  ;;  %5994 = vmatprep.subr.bf16.mxu1 %v6682_v0  ;;  %v131_v9 = vpack.c.bf16 %v57_v7, %v56_v6 }
  0xe2   :  { %v5979_v54 = vpop.f32.mrf.mxu0 }
  0xe3   :  { %v443_v56 = vmax.f32 %v441_v51, 0.0  ;;  %6019 = vmatpush3.bf16.msra.mxu0 %v131_v9  ;;  %v168_v51 = vld [vmem:[%s8300_s2 + $0x10] sm:$0xff]  ;;  %v170_v54 = vld [vmem:[%s8300_s2 + $0x20] sm:$0xff] }
  0xe4   :  { %v543_v57 = vpop.f32.mrf.mxu0  ;;  %6020 = vmatprep.subr.bf16.mxu0 %v6682_v0 }
  0xe5   :  { %v444_v60 = vpack.c.bf16 %v443_v56, %v442_v55  ;;  %v555_v62 = vadd.f32 %v5573_v58, %v543_v57  ;;  %v171_v55 = vld [vmem:[%s8300_s2 + $0x28] sm:$0xff]  ;;  %v169_v56 = vld [vmem:[%s8300_s2 + $0x18] sm:$0xff]  ;;  %v172_v57 = vld [vmem:[%s8300_s2 + $0x30] sm:$0x3f] }
  0xe6   :  { %v5992_v61 = vpop.f32.mrf.mxu0 }
  0xe7   :  { %5985 = vmatmul.mubr.msk.bf16.vlgmr.msra.gmra.mxu1 %vm269_vm3, %v444_v60  ;;  %v557_v3 = vmax.f32 %v555_v62, 0.0  ;;  %6021 = vmatpush3.bf16.msra.mxu0 %v130_v11  ;;  %v62_v61 = vld [vmem:[#allocation3 + $0xc0] sm:$0xff]  ;;  %v63_v62 = vld [vmem:[#allocation3 + $0xc8] sm:$0xff] }
  0xe8   :  { %v546_v63 = vpop.f32.mrf.mxu0  ;;  %5995 = vmatpush3.bf16.msra.mxu1 %v127_v59  ;;  %5998 = vmatprep.mubr.msk.bf16.mxu1 %vm6683_vm0, %v6682_v0  ;;  %v65_v59 = vld [vmem:[#allocation3 + $0xd8] sm:$0xff] }
  0xe9   :  { %v556_v1 = vadd.f32 %v5573_v58, %v546_v63  ;;  %5996 = vmatprep.subr.bf16.mxu1 %v6682_v0  ;;  %6034 = vmatprep.subr.bf16.mxu0 %v6682_v0  ;;  %v64_v58 = vld [vmem:[#allocation3 + $0xd0] sm:$0xff] }
  0xea   :  { %v5993_v2 = vpop.f32.mrf.mxu0  ;;  %v135_v60 = vpack.c.bf16 %v65_v59, %v64_v58 }
  0xeb   :  { %v558_v4 = vmax.f32 %v556_v1, 0.0  ;;  %v134_v1 = vpack.c.bf16 %v63_v62, %v62_v61 }
  0xec   :  { %5997 = vmatpush3.bf16.msra.mxu1 %v6752_v15  ;;  %v654_v12 = vpop.f32.mrf.mxu0  ;;  %v60_v15 = vld [vmem:[#allocation3 + $0xb0] sm:$0xff] }
  0xed   :  { %v559_v5 = vpack.c.bf16 %v558_v4, %v557_v3  ;;  %6010 = vmatprep.subr.bf16.mxu1 %v6682_v0  ;;  %v661_v14 = vadd.f32 %v660_v13, %v654_v12  ;;  %v133_v20 = vpack.c.bf16 %v61_v16, %v60_v15  ;;  %v164_v4 = vlaneseq }
  0xee   :  { %v6008_v17 = vpop.f32.mrf.mxu0 }
  0xef   :  { %5999 = vmatmul.mubr.msk.bf16.vlgmr.msra.gmra.mxu1 %vm269_vm3, %v559_v5  ;;  %v662_v18 = vmax.f32 %v661_v14, 0.0  ;;  %v6867_v7 = vand.u32 127, %v164_v4  ;;  %v6954_v62 = vshrl.u32 %v164_v4, 7 }
  0xf0   :  { %6011 = vmatpush3.bf16.msra.mxu1 %v129_v30  ;;  %6014 = vmatprep.mubr.msk.bf16.mxu1 %vm6683_vm0, %v6682_v0  ;;  %v657_v19 = vpop.f32.mrf.mxu0 }
  0xf1   :  { %6012 = vmatprep.subr.bf16.mxu1 %v6682_v0  ;;  %v663_v21 = vpack.c.bf16 %v662_v18, %v662_v18  ;;  %v248_v18 = vld [vmem:[%s8299_s1 + $0x8] sm:$0xff]  ;;  %v247_v19 = vld [vmem:[%s8299_s1] sm:$0xff] }
  0xf2   :  { %v6009_v25 = vpop.f32.mrf.mxu0 }
  0xf3   :  { %v5579_v25 = vld [vmem:[%s8303_s5 + $0x8] ss:$0 sm:$0xff] }
  0xf4   :  { %6013 = vmatpush3.bf16.msra.mxu1 %v128_v32 }
  0xf5   :  { %6026 = vmatprep.subr.bf16.mxu1 %v6682_v0 }
  0xf7   :  { %6015 = vmatmul.mubr.msk.bf16.vlgmr.msra.gmra.mxu1 %vm269_vm3, %v663_v21  ;;  %v250_v21 = vld [vmem:[%s8299_s1 + $0x18] sm:$0xff] }
  0xf8   :  { %6027 = vmatpush3.bf16.msra.mxu1 %v133_v20  ;;  %6030 = vmatprep.mubr.msk.bf16.mxu1 %vm6683_vm0, %v6682_v0  ;;  %v249_v20 = vld [vmem:[%s8299_s1 + $0x10] sm:$0xff] }
  0xf9   :  { %6028 = vmatprep.subr.bf16.mxu1 %v6682_v0 }
  0xfc   :  { %6029 = vmatpush3.bf16.msra.mxu1 %v132_v27 }
 0x19b   :  { %v369_v26 = vpop.f32.mrf.mxu1 }
 0x19c   :  { %v384_v28 = vadd.f32 %v382_v24, %v369_v26  ;;  %v253_v24 = vld [vmem:[%s8299_s1 + $0x30] sm:$0x3f] }
 0x19d   :  { %v5972_v29 = vpop.f32.mrf.mxu1 }
 0x19e   :  { %v713_v30 = vpack.c.bf16 %v384_v28, %v384_v28 }
 0x19f   :  { %v372_v31 = vpop.f32.mrf.mxu1 }
 0x1a0   :  { %715 = vrot.lane.b32.xlu1 %v713_v30, %s6685_s28 }
 0x1a1   :  { %v5973_v32 = vpop.f32.mrf.mxu1 }
 0x1a7   :  { %v482_v33 = vpop.f32.mrf.mxu1 }
 0x1a8   :  { %v498_v37 = vadd.f32 %v496_v34, %v482_v33 }
 0x1a9   :  { %v5986_v35 = vpop.f32.mrf.mxu1 }
 0x1ab   :  { %v485_v36 = vpop.f32.mrf.mxu1 }
 0x1ac   :  { %v499_v38 = vadd.f32 %v496_v34, %v485_v36 }
 0x1ad   :  { %v5987_v41 = vpop.f32.mrf.mxu1 }
 0x1ae   :  { %v766_v42 = vpack.c.bf16 %v499_v38, %v498_v37 }
 0x1af   :  { %v597_v43 = vpop.f32.mrf.mxu1 }
 0x1b0   :  { %768 = vrot.lane.b32.xlu0 %v766_v42, %s6685_s28  ;;  %v613_v48 = vadd.f32 %v611_v44, %v597_v43 }
 0x1b1   :  { %v6000_v45 = vpop.f32.mrf.mxu1 }
 0x1b3   :  { %v600_v47 = vpop.f32.mrf.mxu1 }
 0x1b4   :  { %v614_v49 = vadd.f32 %v611_v44, %v600_v47  ;;  %205 = vperm.xlu0 %6484, %v167_v46  }
 0x1b5   :  { %v6001_v50 = vpop.f32.mrf.mxu1 }
 0x1b6   :  { %v825_v52 = vpack.c.bf16 %v614_v49, %v613_v48 }
 0x1b7   :  { %v6864_v6 = vpop.f32.mrf.mxu1 }
 0x1b8   :  { %827 = vrot.lane.b32.xlu1 %v825_v52, %s6685_s28  ;;  %208 = vperm.xlu0 %6484, %v168_v51  }
 0x1b9   :  { %v6016_v8 = vpop.f32.mrf.mxu1 }
 0x1ba   :  { %v5585_v8 = vld [vmem:[%s8303_s5 + $0x21] ss:$0 sm:$0xff] }
 0x1bb   :  { %v704_v10 = vpop.f32.mrf.mxu1 }
 0x1bc   :  { %177 = vperm.xlu1 %6482, %v167_v46   ;;  %6486 = vset.pattern.permute.xlu0 %v6687_v40 }
 0x1bd   :  { %174 = vperm.xlu0 %6486, %v166_v53   ;;  %v6017_v12 = vpop.f32.mrf.mxu1 }
 0x1c0   :  { %6483 = vset.pattern.permute.xlu1 %v6686_v39 }
 0x1c1   :  { %202 = vperm.xlu1 %6483, %v166_v53   ;;  %186 = vperm.xlu0 %6486, %v170_v54  }
 0x1c5   :  { %6485 = vset.pattern.permute.xlu1 %v6687_v40  ;;  %6490 = vset.pattern.permute.xlu0 %v6686_v39 }
 0x1c6   :  { %180 = vperm.xlu1 %6485, %v168_v51   ;;  %217 = vperm.xlu0 %6490, %v171_v55  }
 0x1ca   :  { %183 = vperm.xlu1 %6485, %v169_v56   ;;  %6493 = vset.pattern.permute.xlu0 %v6687_v40 }
 0x1cb   :  { %930 = vperm.xlu0 %6493, %v247_v19  }
 0x1ce   :  { %6487 = vset.pattern.permute.xlu1 %v6686_v39 }
 0x1cf   :  { %211 = vperm.xlu1 %6487, %v169_v56   ;;  %945 = vperm.xlu0 %6493, %v250_v21  }
 0x1d3   :  { %6488 = vset.pattern.permute.xlu1 %v6687_v40  ;;  %955 = vperm.xlu0 %6493, %v252_v23  }
 0x1d4   :  { %189 = vperm.xlu1 %6488, %v171_v55  }
 0x1d8   :  { %6489 = vset.pattern.permute.xlu1 %v6686_v39 }
 0x1d9   :  { %214 = vperm.xlu1 %6489, %v170_v54  }
 0x1dd   :  { %6491 = vset.pattern.permute.xlu1 %v6687_v40 }
 0x1de   :  { %192 = vperm.xlu1 %6491, %v172_v57  }
 0x1e2   :  { %6492 = vset.pattern.permute.xlu1 %v6686_v39 }
 0x1e3   :  { %220 = vperm.xlu1 %6492, %v172_v57  }
 0x1e7   :  { %6494 = vset.pattern.permute.xlu1 %v6687_v40 }
 0x1e8   :  { %935 = vperm.xlu1 %6494, %v248_v18  }
 0x1ec   :  { %940 = vperm.xlu1 %6494, %v249_v20  }
 0x1f0   :  { %950 = vperm.xlu1 %6494, %v251_v22  }
 0x1f4   :  { %960 = vperm.xlu1 %6494, %v253_v24  }
 0x212   :  { %v716_v63 = vpop.permute.xlu1 %715 }
 0x213   :  { %6023 = vmatmul.mubr.msk.bf16.vlgmr.msra.gmra.mxu0 %vm269_vm3, %v716_v63 }
 0x214   :  { %6035 = vmatpush3.bf16.msra.mxu0 %v135_v60  ;;  %6038 = vmatprep.mubr.msk.bf16.mxu0 %vm6683_vm0, %v6682_v0 }
 0x215   :  { %6036 = vmatprep.subr.bf16.mxu0 %v6682_v0 }
 0x218   :  { %6037 = vmatpush3.bf16.msra.mxu0 %v134_v1  ;;  %v6959_v1 = vadd.s32 24, %v6954_v62 }
 0x222   :  { %v769_v2 = vpop.permute.xlu0 %768 }
 0x223   :  { %6031 = vmatmul.mubr.msk.bf16.vlgmr.msra.gmra.mxu1 %vm269_vm3, %v769_v2 }
 0x22a   :  { %v828_v3 = vpop.permute.xlu1 %827 }
 0x22b   :  { %6039 = vmatmul.mubr.msk.bf16.vlgmr.msra.gmra.mxu0 %vm269_vm3, %v828_v3 }
 0x22f   :  { %v206_v5 = vpop.permute.xlu0 %205 }
 0x230   :  { %vm223_vm4 = vcmp.eq.s32.totalorder %v6867_v7, %v206_v5  ;;  %v5584_v5 = vld [vmem:[%s8303_s5 + $0x20] ss:$0 sm:$0xff] }
 0x233   :  { %v6869_v11 = vpop.permute.xlu0 %208 }
 0x234   :  { %vm224_vm12 = vcmp.eq.s32.totalorder %v6867_v7, %v6869_v11 }
 0x237   :  { %v178_v9 = vpop.permute.xlu1 %177 }
 0x238   :  { %vm195_vm5 = vcmp.eq.s32.totalorder %v6867_v7, %v178_v9  ;;  %v175_v14 = vpop.permute.xlu0 %174 }
 0x239   :  { %vm230_vm6 = vmor %vm195_vm5, %vm223_vm4  ;;  %vm194_vm8 = vcmp.eq.s32.totalorder %v6867_v7, %v175_v14 }
 0x23a   :  { %v237_v15 = vsel %vm230_vm6, 1.0, %v6682_v0 }
 0x23c   :  { %v203_v13 = vpop.permute.xlu1 %202  ;;  %v187_v41 = vpop.permute.xlu0 %186 }
 0x23d   :  { %vm222_vm7 = vcmp.eq.s32.totalorder %v6867_v7, %v203_v13  ;;  %vm198_vm5 = vcmp.eq.s32.totalorder %v6867_v7, %v187_v41 }
 0x23e   :  { %vm229_vm9 = vmor %vm194_vm8, %vm222_vm7 }
 0x23f   :  { %v236_v16 = vsel %vm229_vm9, 1.0, %v6682_v0 }
 0x240   :  { %v6877_v17 = vpack.c.bf16 %v237_v15, %v236_v16 }
 0x241   :  { %v181_v30 = vpop.permute.xlu1 %180  ;;  %v218_v45 = vpop.permute.xlu0 %217 }
 0x242   :  { %6046 = vmatprep.mubr.msk.bf16.mxu1 %vm269_vm3, %v6877_v17  ;;  %vm196_vm13 = vcmp.eq.s32.totalorder %v6867_v7, %v181_v30  ;;  %vm227_vm2 = vcmp.eq.s32.totalorder %v6867_v7, %v218_v45 }
 0x243   :  { %vm231_vm4 = vmor %vm196_vm13, %vm224_vm12 }
 0x244   :  { %v238_v54 = vsel %vm231_vm4, 1.0, %v6682_v0  ;;  %vm1309_vm4 = vcmask 1042432  }
 0x245   :  { %v184_v32 = vpop.permute.xlu1 %183 }
 0x246   :  { %vm197_vm14 = vcmp.eq.s32.totalorder %v6867_v7, %v184_v32  ;;  %v6961_v2 = vpop.permute.xlu0 %930 }
 0x247   :  { %v963_v4 = vmul.f32 %v5584_v5, %v6961_v2 }
 0x24a   :  { %v212_v34 = vpop.permute.xlu1 %211  ;;  %v6976_v11 = vpop.permute.xlu0 %945 }
 0x24b   :  { %vm225_vm15 = vcmp.eq.s32.totalorder %v6867_v7, %v212_v34 }
 0x24c   :  { %vm232_vm7 = vmor %vm197_vm14, %vm225_vm15  ;;  %vm265_vm15 = vcmp.lt.s32.totalorder %v6959_v1, 30 }
 0x24d   :  { %v239_v55 = vsel %vm232_vm7, 1.0, %v6682_v0  ;;  %v918_v10 = vsel %vm265_vm15, %v5584_v5, %v5585_v8  ;;  %vm5319_vm7 = vcmask 523520  }
 0x24e   :  { %v6940_v58 = vpack.c.bf16 %v239_v55, %v238_v54  ;;  %v966_v18 = vmul.f32 %v6976_v11, %v918_v10  ;;  %v70_v10 = vld [vmem:[#allocation3 + $0x100] sm:$0xff] }
 0x24f   :  { %v190_v37 = vpop.permute.xlu1 %189 }
 0x250   :  { %vm199_vm1 = vcmp.eq.s32.totalorder %v6867_v7, %v190_v37 }
 0x251   :  { %vm234_vm8 = vmor %vm199_vm1, %vm227_vm2  ;;  %vm1066_vm1 = vcmask 259072   ;;  %vm1302_vm2 = vcmask 441344  }
 0x252   :  { %v241_v56 = vsel %vm234_vm8, 1.0, %v6682_v0  ;;  %vm5321_vm8 = vcmask 519424  }
 0x254   :  { %v215_v42 = vpop.permute.xlu1 %214 }
 0x255   :  { %vm226_vm6 = vcmp.eq.s32.totalorder %v6867_v7, %v215_v42 }
 0x256   :  { %vm233_vm9 = vmor %vm198_vm5, %vm226_vm6  ;;  %vm2490_vm5 = vcmask 261124   ;;  %vm5435_vm6 = vcmask 779776  }
 0x257   :  { %v240_v57 = vsel %vm233_vm9, 1.0, %v6682_v0 }
 0x258   :  { %v6942_v59 = vpack.c.bf16 %v241_v56, %v240_v57 }
 0x259   :  { %v193_v46 = vpop.permute.xlu1 %192 }
 0x25a   :  { %vm200_vm12 = vcmp.eq.s32.totalorder %v6867_v7, %v193_v46 }
 0x25e   :  { %v221_v53 = vpop.permute.xlu1 %220 }
 0x25f   :  { %vm228_vm13 = vcmp.eq.s32.totalorder %v6867_v7, %v221_v53 }
 0x260   :  { %vm235_vm14 = vmor %vm200_vm12, %vm228_vm13 }
 0x261   :  { %v242_v60 = vsel %vm235_vm14, 1.0, %v6682_v0 }
 0x262   :  { %v6949_v61 = vpack.c.bf16 %v242_v60, %v242_v60 }
 0x263   :  { %v6956_v63 = vpop.permute.xlu1 %935 }
 0x267   :  { %v6963_v3 = vpop.permute.xlu1 %940 }
 0x268   :  { %v965_v7 = vmul.f32 %v5584_v5, %v6963_v3 }
 0x26b   :  { %v6980_v13 = vpop.permute.xlu1 %950 }
 0x26c   :  { %v967_v42 = vmul.f32 %v5585_v8, %v6980_v13 }
 0x2d3   :  { %v6905_v26 = vpop.f32.mrf.mxu0 }
 0x2d4   :  { %v765_v27 = vadd.f32 %v5579_v25, %v6905_v26  ;;  %v964_v25 = vmul.f32 %v5584_v5, %v6956_v63 }
 0x2d5   :  { %v6024_v28 = vpop.f32.mrf.mxu0 }
 0x2d6   :  { %884 = vst.msk [vmem:[#allocation2] sm:$0xff] %vm269_vm3, %v765_v27  ;;  %v6997_v28 = vpop.permute.xlu1 %960 }
 0x2d7   :  { %v757_v29 = vpop.f32.mrf.mxu0  ;;  %v969_v34 = vmul.f32 %v5585_v8, %v6997_v28 }
 0x2d9   :  { %v6025_v31 = vpop.f32.mrf.mxu0 }
 0x2dd   :  { %v922_v51 = vld [vmem:[#allocation2] sm:$0xff] }
 0x2e3   :  { %v6909_v33 = vpop.f32.mrf.mxu1 }
 0x2e4   :  { %885 = vst.msk [vmem:[#allocation2 + $0x8] sm:$0xff] %vm269_vm3, %v6909_v33 }
 0x2e5   :  { %v6032_v35 = vpop.f32.mrf.mxu1 }
 0x2e7   :  { %v6913_v36 = vpop.f32.mrf.mxu1 }
 0x2e8   :  { %887 = vst.msk [vmem:[#allocation2 + $0x10] sm:$0xf] %vm886_vm10, %v6913_v36 }
 0x2e9   :  { %v6033_v38 = vpop.f32.mrf.mxu1 }
 0x2ea   :  { %v7007_v38 = vpop.permute.xlu0 %955 }
 0x2eb   :  { %v6917_v39 = vpop.f32.mrf.mxu0  ;;  %v923_v49 = vld [vmem:[#allocation2 + $0x8] sm:$0xff] }
 0x2ec   :  { %888 = vst.msk [vmem:[#allocation2 + $0x14] sm:$0xff] %vm269_vm3, %v6917_v39  ;;  %v926_v52 = vpack.c.bf16 %v923_v49, %v922_v51 }
 0x2ed   :  { %v6040_v40 = vpop.f32.mrf.mxu0 }
 0x2ef   :  { %v6921_v43 = vpop.f32.mrf.mxu0 }
 0x2f0   :  { %890 = vst.msk [vmem:[#allocation2 + $0x1c] sm:$0x3] %vm889_vm11, %v6921_v43 }
 0x2f1   :  { %v6041_v44 = vpop.f32.mrf.mxu0 }
 0x2f3   :  { %v924_v47 = vld [vmem:[#allocation2 + $0x10] sm:$0xff] }
 0x2f7   :  { %v925_v48 = vld [vmem:[#allocation2 + $0x18] sm:$0xff] }
 0x2f8   :  { %v927_v50 = vpack.c.bf16 %v925_v48, %v924_v47  ;;  %v968_v47 = vmul.f32 %v5585_v8, %v7007_v38  ;;  %v73_v8 = vld [vmem:[#allocation3 + $0x118] sm:$0xff] }
 0x2fa   :  { %6042 = vmatprep.subr.bf16.mxu1 %v927_v50 }
 0x2fb   :  { %6043 = vmatpush3.bf16.msra.mxu1 %v927_v50 }
 0x2fc   :  { %6044 = vmatprep.subr.bf16.mxu1 %v926_v52 }
 0x2ff   :  { %6045 = vmatpush3.bf16.msra.mxu1 %v926_v52 }
 0x302   :  { %6047 = vmatmul.mubr.msk.bf16.vlgmr.msra.gmra.mxu1 %vm269_vm3, %v6940_v58 }
 0x303   :  { %6050 = vmatprep.mubr.msk.bf16.mxu1 %vm269_vm3, %v6942_v59 }
 0x30a   :  { %6051 = vmatmul.mubr.msk.bf16.gmra.mxu1 %vm269_vm3, %v6949_v61 }
 0x3c2   :  { %v6048_v9 = vpop.f32.mrf.mxu1 }
 0x3c3   :  { %v6978_v12 = vadd.f32 %v6048_v9, %v965_v7 }
 0x3c4   :  { %v1016_v14 = vpop.f32.mrf.mxu1 }
 0x3c5   :  { %v6982_v15 = vadd.f32 %v1016_v14, %v963_v4  ;;  %v1054_v16 = vsel %vm269_vm3, %v6978_v12, 0.0  ;;  %v1079_v19 = vmul.f32 %v6978_v12, %v6978_v12  ;;  %v72_v4 = vld [vmem:[#allocation3 + $0x110] sm:$0xff]  ;;  %v71_v14 = vld [vmem:[#allocation3 + $0x108] sm:$0xff] }
 0x3c6   :  { %1055 = vadd.xlane.f32.xlu0 %v1054_v16  ;;  %v6049_v20 = vpop.f32.mrf.mxu1  ;;  %v7038_v9 = vpack.c.bf16 %v73_v8, %v72_v4  ;;  %v7042_v16 = vpack.c.bf16 %v71_v14, %v70_v10 }
 0x3c7   :  { %v1090_v21 = vsel %vm269_vm3, %v1079_v19, 0.0  ;;  %v1077_v22 = vmul.f32 %v6982_v15, %v6982_v15  ;;  %v6992_v24 = vadd.f32 %v6049_v20, %v966_v18  ;;  %v1048_v27 = vsel %vm269_vm3, %v6982_v15, 0.0 }
 0x3c8   :  { %1091 = vadd.xlane.f32.xlu1 %v1090_v21  ;;  %v1019_v23 = vpop.f32.mrf.mxu1  ;;  %6054 = vmatprep.subr.bf16.mxu0 %v7038_v9 }
 0x3c9   :  { %v6999_v30 = vadd.f32 %v1019_v23, %v964_v25  ;;  %v1084_v31 = vsel %vm269_vm3, %v1077_v22, 0.0  ;;  %v1057_v35 = vsel %vm269_vm3, %v6992_v24, 0.0  ;;  %v1080_v37 = vmul.f32 %v6992_v24, %v6992_v24  ;;  %6055 = vmatpush3.bf16.msra.mxu0 %v7038_v9 }
 0x3ca   :  { %v6052_v29 = vpop.f32.mrf.mxu1  ;;  %1049 = vadd.xlane.f32.xlu0 %v1048_v27  ;;  %6056 = vmatprep.subr.bf16.mxu0 %v7042_v16 }
 0x3cb   :  { %v7009_v41 = vadd.f32 %v6052_v29, %v969_v34  ;;  %v1051_v44 = vsel %vm269_vm3, %v6999_v30, 0.0  ;;  %v1093_v48 = vsel %vm269_vm3, %v1080_v37, 0.0  ;;  %v1078_v49 = vmul.f32 %v6999_v30, %v6999_v30 }
 0x3cc   :  { %v1032_v32 = vpop.f32.mrf.mxu1  ;;  %1085 = vadd.xlane.f32.xlu1 %v1084_v31 }
 0x3cd   :  { %v7014_v46 = vadd.f32 %v1032_v32, %v967_v42  ;;  %v1067_v51 = vsel %vm1066_vm1, %v7009_v41, 0.0  ;;  %v1087_v52 = vsel %vm269_vm3, %v1078_v49, 0.0  ;;  %v1083_v5 = vmul.f32 %v7009_v41, %v7009_v41  ;;  %6057 = vmatpush3.bf16.msra.mxu0 %v7042_v16 }
 0x3ce   :  { %v6053_v40 = vpop.f32.mrf.mxu1  ;;  %1058 = vadd.xlane.f32.xlu0 %v1057_v35  ;;  %6078 = vmatprep.subr.bf16.mxu0 %v6682_v0 }
 0x3cf   :  { %v1081_v53 = vmul.f32 %v7014_v46, %v7014_v46  ;;  %v1060_v54 = vsel %vm269_vm3, %v7014_v46, 0.0  ;;  %v1102_v7 = vsel %vm1066_vm1, %v1083_v5, 0.0 }
 0x3d0   :  { %v1035_v45 = vpop.f32.mrf.mxu1  ;;  %1052 = vadd.xlane.f32.xlu1 %v1051_v44 }
 0x3d1   :  { %v7020_v50 = vadd.f32 %v1035_v45, %v968_v47  ;;  %v1096_v56 = vsel %vm269_vm3, %v1081_v53, 0.0 }
 0x3d2   :  { %1094 = vadd.xlane.f32.xlu0 %v1093_v48 }
 0x3d3   :  { %v1082_v55 = vmul.f32 %v7020_v50, %v7020_v50  ;;  %v1063_v60 = vsel %vm269_vm3, %v7020_v50, 0.0 }
 0x3d4   :  { %1068 = vadd.xlane.f32.xlu1 %v1067_v51 }
 0x3d5   :  { %v1099_v57 = vsel %vm269_vm3, %v1082_v55, 0.0 }
 0x3d6   :  { %1088 = vadd.xlane.f32.xlu0 %v1087_v52 }
 0x3d8   :  { %1061 = vadd.xlane.f32.xlu1 %v1060_v54 }
 0x3da   :  { %1097 = vadd.xlane.f32.xlu0 %v1096_v56 }
 0x3dc   :  { %1100 = vadd.xlane.f32.xlu1 %v1099_v57 }
 0x3de   :  { %1064 = vadd.xlane.f32.xlu0 %v1063_v60 }
 0x3e2   :  { %1103 = vadd.xlane.f32.xlu0 %v1102_v7 }
 0x409   :  { %1286 = vxpose.xlu1.c.b16.start [1/4] (short) (narrow) %v6877_v17, 32 }
 0x40d   :  { %1287 = vxpose.xlu1.c.b16.cont [2/4] (short) (narrow) %v6940_v58, 32 }
 0x411   :  { %1288 = vxpose.xlu1.c.b16.cont [3/4] (short) (narrow) %v6942_v59, 32 }
 0x415   :  { %1289 = vxpose.xlu1.c.b16.end [4/4] (short) (narrow) %v6949_v61, 32 }
 0x44f   :  { %v1056_v18 = vpop.xlane.xlu0 %1055 }
 0x450   :  { %v7051_v19 = vmul.f32 0.03125, %v1056_v18 }
 0x451   :  { %v1092_v20 = vpop.xlane.xlu1 %1091 }
 0x452   :  { %v1114_v21 = vmul.f32 %v7051_v19, %v7051_v19  ;;  %v1107_v22 = vmul.f32 0.03125, %v1092_v20 }
 0x453   :  { %v1050_v23 = vpop.xlane.xlu0 %1049 }
 0x454   :  { %v1070_v25 = vmul.f32 0.03125, %v1050_v23  ;;  %v1121_v27 = vsub.f32 %v1107_v22, %v1114_v21 }
 0x455   :  { %v1086_v29 = vpop.xlane.xlu1 %1085 }
 0x456   :  { %v1112_v31 = vmul.f32 %v1070_v25, %v1070_v25  ;;  %v1105_v32 = vmul.f32 0.03125, %v1086_v29  ;;  %v1128_v40 = vmax.f32 %v1121_v27, 0.0 }
 0x457   :  { %v1059_v34 = vpop.xlane.xlu0 %1058 }
 0x458   :  { %v1119_v35 = vsub.f32 %v1105_v32, %v1112_v31  ;;  %v1073_v37 = vmul.f32 0.03125, %v1059_v34  ;;  %v1142_v52 = vadd.f32 1e-05, %v1128_v40 }
 0x459   :  { %v1053_v42 = vpop.xlane.xlu1 %1052 }
 0x45a   :  { %v1126_v44 = vmax.f32 %v1119_v35, 0.0  ;;  %v1115_v48 = vmul.f32 %v1073_v37, %v1073_v37  ;;  %v1071_v49 = vmul.f32 0.03125, %v1053_v42 }
 0x45b   :  { %v1095_v45 = vpop.xlane.xlu0 %1094 }
 0x45c   :  { %v1140_v47 = vadd.f32 1e-05, %v1126_v44  ;;  %v1108_v51 = vmul.f32 0.03125, %v1095_v45  ;;  %v1113_v56 = vmul.f32 %v1071_v49, %v1071_v49 }
 0x45d   :  { %v1069_v53 = vpop.xlane.xlu1 %1068 }
 0x45e   :  { %v1122_v54 = vsub.f32 %v1108_v51, %v1115_v48  ;;  %6495 = vrsqrt.f32 %v1140_v47  ;;  %v1076_v29 = vmul.f32 0.03125, %v1069_v53  ;;  %v1135_v53 = vsub.f32 %v6978_v12, %v7051_v19 }
 0x45f   :  { %v1089_v55 = vpop.xlane.xlu0 %1088  ;;  %6497 = vrsqrt.f32 %v1142_v52  ;;  %v1133_v52 = vsub.f32 %v6982_v15, %v1070_v25  ;;  %v1134_v15 = vsub.f32 %v6999_v30, %v1071_v49 }
 0x460   :  { %v1129_v57 = vmax.f32 %v1122_v54, 0.0  ;;  %v1106_v60 = vmul.f32 0.03125, %v1089_v55  ;;  %v1118_v44 = vmul.f32 %v1076_v29, %v1076_v29 }
 0x461   :  { %v1062_v5 = vpop.xlane.xlu1 %1061 }
 0x462   :  { %v1143_v7 = vadd.f32 1e-05, %v1129_v57  ;;  %v1120_v4 = vsub.f32 %v1106_v60, %v1113_v56  ;;  %v1074_v8 = vmul.f32 0.03125, %v1062_v5  ;;  %v1136_v56 = vsub.f32 %v6992_v24, %v1073_v37  ;;  %v5591_v24 = vld [vmem:[%s8303_s5 + $0xa] ss:$0 sm:$0xff] }
 0x463   :  { %v1098_v10 = vpop.xlane.xlu0 %1097 }
 0x464   :  { %6499 = vrsqrt.f32 %v1143_v7  ;;  %v1127_v14 = vmax.f32 %v1120_v4, 0.0  ;;  %v1116_v18 = vmul.f32 %v1074_v8, %v1074_v8  ;;  %v1109_v20 = vmul.f32 0.03125, %v1098_v10  ;;  %v5590_v10 = vld [vmem:[%s8303_s5 + $0x9] ss:$0 sm:$0xff] }
 0x465   :  { %v1101_v23 = vpop.xlane.xlu1 %1100 }
 0x466   :  { %v1141_v21 = vadd.f32 1e-05, %v1127_v14  ;;  %v1123_v22 = vsub.f32 %v1109_v20, %v1116_v18  ;;  %v1110_v34 = vmul.f32 0.03125, %v1101_v23 }
 0x467   :  { %v1065_v27 = vpop.xlane.xlu0 %1064 }
 0x468   :  { %6501 = vrsqrt.f32 %v1141_v21  ;;  %v1075_v31 = vmul.f32 0.03125, %v1065_v27  ;;  %v1130_v32 = vmax.f32 %v1123_v22, 0.0  ;;  %v1137_v27 = vsub.f32 %v7014_v46, %v1074_v8 }
 0x46a   :  { %v1117_v35 = vmul.f32 %v1075_v31, %v1075_v31  ;;  %v1144_v40 = vadd.f32 1e-05, %v1130_v32 }
 0x46b   :  { %v1104_v42 = vpop.xlane.xlu0 %1103  ;;  %v6496_v48 = vpop.eup %6495 }
 0x46c   :  { %v1124_v45 = vsub.f32 %v1110_v34, %v1117_v35  ;;  %v1111_v47 = vmul.f32 0.03125, %v1104_v42  ;;  %6503 = vrsqrt.f32 %v1144_v40  ;;  %v6498_v51 = vpop.eup %6497  ;;  %v1154_v5 = vmul.f32 %v6496_v48, %v1133_v52 }
 0x46d   :  { %v1156_v4 = vmul.f32 %v6498_v51, %v1135_v53 }
 0x46e   :  { %v1131_v54 = vmax.f32 %v1124_v45, 0.0  ;;  %v1125_v55 = vsub.f32 %v1111_v47, %v1118_v44  ;;  %v1165_v25 = vmul.f32 %v5590_v10, %v1154_v5  ;;  %v1138_v45 = vsub.f32 %v7020_v50, %v1075_v31 }
 0x46f   :  { %v1167_v19 = vmul.f32 %v5590_v10, %v1156_v4  ;;  %v7079_v4 = vpop.trf.xlu1 }
 0x470   :  { %v1145_v57 = vadd.f32 1e-05, %v1131_v54  ;;  %v1132_v60 = vmax.f32 %v1125_v55, 0.0  ;;  %v1176_v23 = vadd.f32 %v5591_v24, %v1165_v25  ;;  %v1139_v54 = vsub.f32 %v7009_v41, %v1076_v29  ;;  %6074 = vmatprep.mubr.msk.bf16.mxu1 %vm1302_vm2, %v7079_v4  ;;  %v5596_v25 = vld [vmem:[%s8303_s5 + $0xb] ss:$0 sm:$0xff] }
 0x471   :  { %v6500_v7 = vpop.eup %6499  ;;  %v1178_v32 = vadd.f32 %v5591_v24, %v1167_v19 }
 0x472   :  { %6505 = vrsqrt.f32 %v1145_v57  ;;  %v1146_v14 = vadd.f32 1e-05, %v1132_v60  ;;  %v1157_v18 = vmul.f32 %v6500_v7, %v1136_v56  ;;  %v1183_v49 = vmax.f32 %v1176_v23, 0.0 }
 0x473   :  { %v1185_v44 = vmax.f32 %v1178_v32, 0.0 }
 0x474   :  { %6507 = vrsqrt.f32 %v1146_v14  ;;  %v1168_v20 = vmul.f32 %v5590_v10, %v1157_v18 }
 0x475   :  { %v6502_v12 = vpop.eup %6501 }
 0x476   :  { %v1155_v37 = vmul.f32 %v6502_v12, %v1134_v15  ;;  %v1179_v21 = vadd.f32 %v5591_v24, %v1168_v20 }
 0x478   :  { %v1166_v22 = vmul.f32 %v5590_v10, %v1155_v37  ;;  %v1186_v40 = vmax.f32 %v1179_v21, 0.0 }
 0x479   :  { %v6504_v34 = vpop.eup %6503 }
 0x47a   :  { %v1177_v35 = vadd.f32 %v5591_v24, %v1166_v22  ;;  %v1158_v30 = vmul.f32 %v6504_v34, %v1137_v27  ;;  %v1191_v52 = vpack.c.bf16 %v1186_v40, %v1185_v44  ;;  %v7088_v44 = vpop.trf.xlu1 }
 0x47c   :  { %v1184_v42 = vmax.f32 %v1177_v35, 0.0  ;;  %v1169_v48 = vmul.f32 %v5590_v10, %v1158_v30 }
 0x47e   :  { %v1190_v47 = vpack.c.bf16 %v1184_v42, %v1183_v49  ;;  %v1180_v53 = vadd.f32 %v5591_v24, %v1169_v48 }
 0x47f   :  { %v6506_v51 = vpop.eup %6505 }
 0x480   :  { %v1159_v55 = vmul.f32 %v6506_v51, %v1138_v45  ;;  %6058 = vmatprep.mubr.msk.bf16.mxu0 %vm269_vm3, %v1190_v47  ;;  %v1187_v57 = vmax.f32 %v1180_v53, 0.0 }
 0x481   :  { %v6508_v46 = vpop.eup %6507  ;;  %6059 = vmatmul.mubr.msk.bf16.vlgmr.msra.gmra.mxu0 %vm269_vm3, %v1191_v52 }
 0x482   :  { %v1170_v8 = vmul.f32 %v5590_v10, %v1159_v55  ;;  %v1160_v56 = vmul.f32 %v6508_v46, %v1139_v54  ;;  %6079 = vmatpush3.bf16.msra.mxu0 %v7038_v9 }
 0x483   :  { %6080 = vmatprep.subr.bf16.mxu0 %v6682_v0 }
 0x484   :  { %v1181_v50 = vadd.f32 %v5591_v24, %v1170_v8  ;;  %v1171_v31 = vmul.f32 %v5590_v10, %v1160_v56 }
 0x486   :  { %v1188_v60 = vmax.f32 %v1181_v50, 0.0  ;;  %v1182_v5 = vadd.f32 %v5591_v24, %v1171_v31  ;;  %6081 = vmatpush3.bf16.msra.mxu0 %v7042_v16 }
 0x487   :  { %6094 = vmatprep.subr.bf16.mxu0 %v6682_v0 }
 0x488   :  { %v1192_v41 = vpack.c.bf16 %v1188_v60, %v1187_v57  ;;  %v1189_v29 = vmax.f32 %v1182_v5, 0.0 }
 0x48a   :  { %6062 = vmatprep.mubr.msk.bf16.mxu0 %vm269_vm3, %v1192_v41  ;;  %v1193_v7 = vpack.c.bf16 %v1189_v29, %v1189_v29  ;;  %v5599_v41 = vld [vmem:[%s8303_s5 + $0xc] ss:$0 sm:$0xff] }
 0x48c   :  { %6063 = vmatmul.mubr.msk.bf16.gmra.mxu0 %vm269_vm3, %v1193_v7  ;;  %v5600_v7 = vld [vmem:[%s8303_s5 + $0xd] ss:$0 sm:$0xff] }
 0x48d   :  { %6082 = vmatprep.mubr.msk.bf16.mxu0 %vm6683_vm0, %v6682_v0 }
 0x541   :  { %v6060_v10 = vpop.f32.mrf.mxu0 }
 0x542   :  { %v1277_v34 = vadd.f32 %v6060_v10, %v5596_v25 }
 0x543   :  { %v1240_v14 = vpop.f32.mrf.mxu0 }
 0x544   :  { %v1275_v49 = vadd.f32 %v5596_v25, %v1240_v14 }
 0x545   :  { %v6061_v18 = vpop.f32.mrf.mxu0 }
 0x546   :  { %v1278_v23 = vadd.f32 %v6061_v18, %v5596_v25 }
 0x547   :  { %v1243_v15 = vpop.f32.mrf.mxu0 }
 0x548   :  { %v1283_v40 = vpack.c.bf16 %v1278_v23, %v1277_v34  ;;  %v1276_v30 = vadd.f32 %v5596_v25, %v1243_v15  ;;  %v5604_v23 = vld [vmem:[%s8303_s5 + $0xf] ss:$0 sm:$0xff]  ;;  %v66_v34 = vld [vmem:[#allocation3 + $0xe0] sm:$0xff] }
 0x54a   :  { %v1282_v42 = vpack.c.bf16 %v1276_v30, %v1275_v49 }
 0x54c   :  { %v6064_v20 = vpop.f32.mrf.mxu0 }
 0x54d   :  { %v1281_v12 = vadd.f32 %v6064_v20, %v5596_v25 }
 0x54e   :  { %v1256_v19 = vpop.f32.mrf.mxu0 }
 0x54f   :  { %v1285_v24 = vpack.c.bf16 %v1281_v12, %v1281_v12  ;;  %v1279_v27 = vadd.f32 %v5596_v25, %v1256_v19 }
 0x550   :  { %v6065_v37 = vpop.f32.mrf.mxu0 }
 0x551   :  { %v1311_v21 = vsel %vm1309_vm4, %v1285_v24, 0  ;;  %6466 = vmatprep.subr.msk.bf16.mxu1 %vm1309_vm4, %v1285_v24 }
 0x552   :  { %v1259_v22 = vpop.f32.mrf.mxu0  ;;  %6067 = vmatpush3.bf16.msra.mxu1 %v1311_v21 }
 0x553   :  { %v1280_v32 = vadd.f32 %v5596_v25, %v1259_v22 }
 0x555   :  { %v1284_v35 = vpack.c.bf16 %v1280_v32, %v1279_v27  ;;  %v69_v32 = vld [vmem:[#allocation3 + $0xf8] sm:$0xff] }
 0x557   :  { %6068 = vmatprep.subr.bf16.mxu1 %v1284_v35 }
 0x558   :  { %6069 = vmatpush3.bf16.msra.mxu1 %v1284_v35 }
 0x559   :  { %6070 = vmatprep.subr.bf16.mxu1 %v1283_v40 }
 0x55c   :  { %6071 = vmatpush3.bf16.msra.mxu1 %v1283_v40  ;;  %v67_v40 = vld [vmem:[#allocation3 + $0xe8] sm:$0xff] }
 0x55d   :  { %6072 = vmatprep.subr.bf16.mxu1 %v1282_v42  ;;  %v136_v30 = vpack.c.bf16 %v67_v40, %v66_v34 }
 0x560   :  { %6073 = vmatpush3.bf16.msra.mxu1 %v1282_v42 }
 0x561   :  { %6086 = vmatprep.subr.bf16.mxu1 %v6682_v0 }
 0x563   :  { %6075 = vmatmul.mubr.msk.bf16.vlgmr.msra.gmra.mxu1 %vm1302_vm2, %v7088_v44 }
 0x564   :  { %6087 = vmatpush3.bf16.msra.mxu1 %v7038_v9  ;;  %6090 = vmatprep.mubr.msk.bf16.mxu1 %vm6683_vm0, %v6682_v0  ;;  %v5602_v9 = vld [vmem:[%s8303_s5 + $0xe] ss:$0 sm:$0xff] }
 0x565   :  { %6088 = vmatprep.subr.bf16.mxu1 %v6682_v0 }
 0x568   :  { %6089 = vmatpush3.bf16.msra.mxu1 %v7042_v16 }
 0x623   :  { %v6076_v45 = vpop.f32.mrf.mxu1 }
 0x625   :  { %v1347_v47 = vpop.f32.mrf.mxu1 }
 0x626   :  { %v1361_v48 = vsel %vm269_vm3, %v1347_v47, 0.0  ;;  %v1365_v51 = vmul.f32 %v1347_v47, %v1347_v47 }
 0x627   :  { %1362 = vadd.xlane.f32.xlu0 %v1361_v48  ;;  %v6077_v52 = vpop.f32.mrf.mxu1 }
 0x628   :  { %v1366_v55 = vsel %vm269_vm3, %v1365_v51, 0.0 }
 0x629   :  { %v1350_v54 = vpop.f32.mrf.mxu1 }
 0x62a   :  { %v5581_v54 = vld [vmem:[%s8303_s5 + $0x10] ss:$0 sm:$0xff] }
 0x62b   :  { %1367 = vadd.xlane.f32.xlu0 %v1366_v55  ;;  %v5583_v55 = vld [vmem:[%s8303_s5 + $0x18] ss:$0 sm:$0xff] }
 0x641   :  { %1438 = vrot.lane.b32.xlu0 %v5602_v9, %s6684_s14 }
 0x6b0   :  { %v1363_v46 = vpop.xlane.xlu0 %1362 }
 0x6b1   :  { %v1364_v8 = vmul.f32 0.03125, %v1363_v46  ;;  %v76_v46 = vld [vmem:[#allocation3 + $0x130] sm:$0xff] }
 0x6b3   :  { %v1370_v53 = vmul.f32 %v1364_v8, %v1364_v8  ;;  %v1373_v60 = vsub.f32 %v1347_v47, %v1364_v8  ;;  %v77_v8 = vld [vmem:[#allocation3 + $0x138] sm:$0xff] }
 0x6b4   :  { %v1368_v16 = vpop.xlane.xlu0 %1367 }
 0x6b5   :  { %v1369_v56 = vmul.f32 0.03125, %v1368_v16  ;;  %v7137_v16 = vpack.c.bf16 %v77_v8, %v76_v46 }
 0x6b7   :  { %v1371_v50 = vsub.f32 %v1369_v56, %v1370_v53  ;;  %v74_v53 = vld [vmem:[#allocation3 + $0x120] sm:$0xff]  ;;  %v75_v56 = vld [vmem:[#allocation3 + $0x128] sm:$0xff] }
 0x6b8   :  { %v1439_v25 = vpop.permute.xlu0 %1438 }
 0x6b9   :  { %v1372_v31 = vmax.f32 %v1371_v50, 0.0  ;;  %v7140_v50 = vpack.c.bf16 %v75_v56, %v74_v53 }
 0x6bb   :  { %v1374_v57 = vadd.f32 1e-05, %v1372_v31 }
 0x6bd   :  { %6509 = vrsqrt.f32 %v1374_v57 }
 0x6ca   :  { %v6510_v5 = vpop.eup %6509 }
 0x6cb   :  { %v1376_v29 = vmul.f32 %v6510_v5, %v1373_v60 }
 0x6cd   :  { %v1381_v10 = vmul.f32 %v5599_v41, %v1376_v29 }
 0x6cf   :  { %v1386_v14 = vadd.f32 %v5600_v7, %v1381_v10 }
 0x6d1   :  { %v1387_v18 = vpack.c.bf16 %v1386_v14, %v1386_v14 }
 0x6d3   :  { %6083 = vmatmul.mubr.msk.bf16.vlgmr.msra.gmra.mxu0 %vm269_vm3, %v1387_v18 }
 0x6d4   :  { %6098 = vmatprep.mubr.msk.bf16.mxu0 %vm6683_vm0, %v6682_v0 }
 0x793   :  { %v1425_v15 = vpop.f32.mrf.mxu0 }
 0x794   :  { %v1431_v20 = vadd.f32 %v1425_v15, %v6905_v26  ;;  %v68_v26 = vld [vmem:[#allocation3 + $0xf0] sm:$0xff] }
 0x795   :  { %v6084_v12 = vpop.f32.mrf.mxu0  ;;  %v137_v35 = vpack.c.bf16 %v69_v32, %v68_v26 }
 0x796   :  { %v1441_v19 = vadd.f32 %v1439_v25, %v1431_v20 }
 0x797   :  { %v1428_v24 = vpop.f32.mrf.mxu0  ;;  %6095 = vmatpush3.bf16.msra.mxu0 %v137_v35 }
 0x798   :  { %v1442_v37 = vmax.f32 %v1441_v19, 0.0  ;;  %6096 = vmatprep.subr.bf16.mxu0 %v6682_v0 }
 0x799   :  { %v6085_v21 = vpop.f32.mrf.mxu0 }
 0x79a   :  { %v1443_v22 = vpack.c.bf16 %v1442_v37, %v1442_v37 }
 0x79b   :  { %6097 = vmatpush3.bf16.msra.mxu0 %v136_v30 }
 0x79c   :  { %1445 = vrot.lane.b32.xlu0 %v1443_v22, %s6685_s28  ;;  %6114 = vmatprep.subr.bf16.mxu0 %v7137_v16 }
 0x7a0   :  { %1496 = vrot.lane.b32.xlu0 %v5604_v23, %s6688_s23 }
 0x80e   :  { %v1446_v27 = vpop.permute.xlu0 %1445 }
 0x80f   :  { %6091 = vmatmul.mubr.msk.bf16.vlgmr.msra.gmra.mxu1 %vm269_vm3, %v1446_v27  ;;  %v5606_v27 = vld [vmem:[%s8303_s5 + $0x22] ss:$0 sm:$0xff] }
 0x810   :  { %6106 = vmatprep.mubr.msk.bf16.mxu1 %vm269_vm3, %v6877_v17  ;;  %v1581_v26 = vmul.f32 %v5606_v27, %v6963_v3  ;;  %v1579_v35 = vmul.f32 %v5606_v27, %v6961_v2 }
 0x812   :  { %v1497_v49 = vpop.permute.xlu0 %1496 }
 0x8cf   :  { %v1484_v42 = vpop.f32.mrf.mxu1 }
 0x8d0   :  { %v7123_v45 = vadd.f32 %v1497_v49, %v1484_v42  ;;  %v1582_v42 = vmul.f32 %v5606_v27, %v6976_v11 }
 0x8d1   :  { %v6092_v47 = vpop.f32.mrf.mxu1 }
 0x8d2   :  { %v1500_v48 = vpack.c.bf16 %v7123_v45, %v7123_v45 }
 0x8d3   :  { %v1487_v51 = vpop.f32.mrf.mxu1 }
 0x8d4   :  { %1502 = vrot.lane.b32.xlu0 %v1500_v48, %s6688_s23 }
 0x8d5   :  { %v6093_v52 = vpop.f32.mrf.mxu1 }
 0x8d8   :  { %820 = vrot.lane.b32.xlu0 %v5581_v54, %s6684_s14 }
 0x8dc   :  { %879 = vrot.lane.b32.xlu0 %v5583_v55, %s6684_s14  ;;  %v1580_v55 = vmul.f32 %v5606_v27, %v6956_v63 }
 0x946   :  { %v1503_v9 = vpop.permute.xlu0 %1502 }
 0x947   :  { %6099 = vmatmul.mubr.msk.bf16.vlgmr.msra.gmra.mxu0 %vm269_vm3, %v1503_v9 }
 0x948   :  { %6115 = vmatpush3.bf16.msra.mxu0 %v7137_v16 }
 0x949   :  { %6116 = vmatprep.subr.bf16.mxu0 %v7140_v50 }
 0x94a   :  { %v821_v31 = vpop.permute.xlu0 %820 }
 0x94b   :  { %v824_v57 = vadd.f32 %v821_v31, %v6913_v36  ;;  %v823_v29 = vadd.f32 %v821_v31, %v6909_v33 }
 0x94c   :  { %6117 = vmatpush3.bf16.msra.mxu0 %v7140_v50 }
 0x94d   :  { %1551 = vrot.lane.b32.xlu0 %v824_v57, %s6685_s28 }
 0x94e   :  { %v880_v60 = vpop.permute.xlu0 %879 }
 0x94f   :  { %v882_v5 = vadd.f32 %v880_v60, %v6917_v39  ;;  %v883_v41 = vadd.f32 %v880_v60, %v6921_v43  ;;  %v1583_v60 = vmul.f32 %v5606_v27, %v6980_v13 }
 0x951   :  { %1561 = vrot.lane.b32.xlu1 %v883_v41, %s6685_s28  ;;  %1559 = vrot.lane.b32.xlu0 %v882_v5, %s6685_s28 }
 0x955   :  { %1549 = vrot.lane.b32.xlu0 %v823_v29, %s6685_s28  ;;  %v1585_v29 = vmul.f32 %v5606_v27, %v6997_v28 }
 0x9bf   :  { %v1552_v7 = vpop.permute.xlu0 %1551 }
 0x9c0   :  { %1556 = vst.msk [vmem:[#allocation2 + $0x10] sm:$0xf] %vm886_vm10, %v1552_v7 }
 0x9c3   :  { %v1562_v10 = vpop.permute.xlu1 %1561  ;;  %v1560_v14 = vpop.permute.xlu0 %1559 }
 0x9c4   :  { %1566 = vst.msk [vmem:[#allocation2 + $0x1c] sm:$0x3] %vm889_vm11, %v1562_v10 }
 0x9c5   :  { %1565 = vst.msk [vmem:[#allocation2 + $0x14] sm:$0xff] %vm269_vm3, %v1560_v14 }
 0x9c7   :  { %v1550_v18 = vpop.permute.xlu0 %1549 }
 0x9c8   :  { %1555 = vst.msk [vmem:[#allocation2 + $0x8] sm:$0xff] %vm269_vm3, %v1550_v18 }
 0x9cc   :  { %v1571_v15 = vld [vmem:[#allocation2 + $0x10] sm:$0xff]  ;;  %v1572_v25 = vld [vmem:[#allocation2 + $0x18] sm:$0xff] }
 0x9cd   :  { %v7157_v20 = vpack.c.bf16 %v1572_v25, %v1571_v15 }
 0x9cf   :  { %6102 = vmatprep.subr.bf16.mxu1 %v7157_v20  ;;  %6138 = vmatprep.subr.bf16.mxu0 %v7157_v20  ;;  %v7166_v22 = vld [vmem:[#allocation2 + $0x8] sm:$0xff] }
 0x9d0   :  { %6103 = vmatpush3.bf16.msra.mxu1 %v7157_v20 }
 0xa07   :  { %v7162_v12 = vpop.f32.mrf.mxu0 }
 0xa08   :  { %1567 = vst.msk [vmem:[#allocation2] sm:$0xff] %vm269_vm3, %v7162_v12 }
 0xa09   :  { %v6100_v19 = vpop.f32.mrf.mxu0 }
 0xa0a   :  { %v1584_v19 = vmul.f32 %v5606_v27, %v7007_v38 }
 0xa0b   :  { %v1544_v24 = vpop.f32.mrf.mxu0 }
 0xa0d   :  { %v6101_v37 = vpop.f32.mrf.mxu0 }
 0xa0f   :  { %v1569_v21 = vld [vmem:[#allocation2] sm:$0xff] }
 0xa10   :  { %v1573_v23 = vpack.c.bf16 %v7166_v22, %v1569_v21 }
 0xa12   :  { %6104 = vmatprep.subr.bf16.mxu1 %v1573_v23 }
 0xa13   :  { %6105 = vmatpush3.bf16.msra.mxu1 %v1573_v23 }
 0xa16   :  { %6107 = vmatmul.mubr.msk.bf16.vlgmr.msra.gmra.mxu1 %vm269_vm3, %v6940_v58 }
 0xa17   :  { %6110 = vmatprep.mubr.msk.bf16.mxu1 %vm269_vm3, %v6942_v59 }
 0xa1e   :  { %6111 = vmatmul.mubr.msk.bf16.gmra.mxu1 %vm269_vm3, %v6949_v61 }
 0xa1f   :  { %6134 = vmatprep.mubr.msk.bf16.mxu1 %vm1302_vm2, %v7079_v4 }
 0xad6   :  { %v6108_v32 = vpop.f32.mrf.mxu1 }
 0xad7   :  { %v7181_v34 = vadd.f32 %v6108_v32, %v1581_v26 }
 0xad8   :  { %v1620_v40 = vpop.f32.mrf.mxu1 }
 0xad9   :  { %v7184_v30 = vadd.f32 %v1620_v40, %v1579_v35  ;;  %v1658_v49 = vsel %vm269_vm3, %v7181_v34, 0.0  ;;  %v1682_v47 = vmul.f32 %v7181_v34, %v7181_v34 }
 0xada   :  { %1659 = vadd.xlane.f32.xlu0 %v1658_v49  ;;  %v6109_v48 = vpop.f32.mrf.mxu1 }
 0xadb   :  { %v7191_v51 = vadd.f32 %v6109_v48, %v1582_v42  ;;  %v1652_v52 = vsel %vm269_vm3, %v7184_v30, 0.0  ;;  %v1693_v9 = vsel %vm269_vm3, %v1682_v47, 0.0  ;;  %v1680_v46 = vmul.f32 %v7184_v30, %v7184_v30 }
 0xadc   :  { %v1623_v54 = vpop.f32.mrf.mxu1  ;;  %1653 = vadd.xlane.f32.xlu1 %v1652_v52 }
 0xadd   :  { %v7199_v53 = vadd.f32 %v1623_v54, %v1580_v55  ;;  %v1661_v56 = vsel %vm269_vm3, %v7191_v51, 0.0  ;;  %v1683_v31 = vmul.f32 %v7191_v51, %v7191_v51  ;;  %v1687_v5 = vsel %vm269_vm3, %v1680_v46, 0.0 }
 0xade   :  { %1694 = vadd.xlane.f32.xlu0 %v1693_v9  ;;  %v6112_v8 = vpop.f32.mrf.mxu1 }
 0xadf   :  { %v1696_v10 = vsel %vm269_vm3, %v1683_v31, 0.0  ;;  %v1681_v14 = vmul.f32 %v7199_v53, %v7199_v53  ;;  %v7213_v18 = vadd.f32 %v6112_v8, %v1585_v29  ;;  %v1655_v15 = vsel %vm269_vm3, %v7199_v53, 0.0 }
 0xae0   :  { %v1636_v57 = vpop.f32.mrf.mxu1  ;;  %1662 = vadd.xlane.f32.xlu1 %v1661_v56 }
 0xae1   :  { %v7208_v7 = vadd.f32 %v1636_v57, %v1583_v60  ;;  %v1690_v24 = vsel %vm269_vm3, %v1681_v14, 0.0  ;;  %v1670_v23 = vsel %vm1066_vm1, %v7213_v18, 0.0  ;;  %v1686_v40 = vmul.f32 %v7213_v18, %v7213_v18 }
 0xae2   :  { %v6113_v41 = vpop.f32.mrf.mxu1  ;;  %1688 = vadd.xlane.f32.xlu0 %v1687_v5 }
 0xae3   :  { %v1684_v37 = vmul.f32 %v7208_v7, %v7208_v7  ;;  %v1664_v32 = vsel %vm269_vm3, %v7208_v7, 0.0  ;;  %v1705_v42 = vsel %vm1066_vm1, %v1686_v40, 0.0 }
 0xae4   :  { %1697 = vadd.xlane.f32.xlu1 %v1696_v10  ;;  %v1639_v25 = vpop.f32.mrf.mxu1 }
 0xae5   :  { %v7221_v21 = vadd.f32 %v1639_v25, %v1584_v19  ;;  %v1699_v26 = vsel %vm269_vm3, %v1684_v37, 0.0 }
 0xae6   :  { %1656 = vadd.xlane.f32.xlu0 %v1655_v15 }
 0xae7   :  { %v1685_v27 = vmul.f32 %v7221_v21, %v7221_v21  ;;  %v1667_v35 = vsel %vm269_vm3, %v7221_v21, 0.0 }
 0xae8   :  { %1691 = vadd.xlane.f32.xlu1 %v1690_v24 }
 0xae9   :  { %v1702_v49 = vsel %vm269_vm3, %v1685_v27, 0.0 }
 0xaea   :  { %1671 = vadd.xlane.f32.xlu0 %v1670_v23 }
 0xaec   :  { %1700 = vadd.xlane.f32.xlu1 %v1699_v26 }
 0xaee   :  { %1665 = vadd.xlane.f32.xlu0 %v1664_v32 }
 0xaf0   :  { %1668 = vadd.xlane.f32.xlu1 %v1667_v35 }
 0xaf2   :  { %1703 = vadd.xlane.f32.xlu0 %v1702_v49 }
 0xaf4   :  { %1706 = vadd.xlane.f32.xlu1 %v1705_v42 }
 0xb08   :  { %1940 = vrot.lane.b32.xlu0 %v7162_v12, %s6685_s28 }
 0xb63   :  { %v1660_v47 = vpop.xlane.xlu0 %1659 }
 0xb64   :  { %v7238_v48 = vmul.f32 0.03125, %v1660_v47 }
 0xb65   :  { %v1654_v52 = vpop.xlane.xlu1 %1653 }
 0xb66   :  { %v1717_v55 = vmul.f32 %v7238_v48, %v7238_v48  ;;  %v7242_v9 = vmul.f32 0.03125, %v1654_v52 }
 0xb67   :  { %v1695_v54 = vpop.xlane.xlu0 %1694 }
 0xb68   :  { %v1710_v46 = vmul.f32 0.03125, %v1695_v54  ;;  %v1715_v60 = vmul.f32 %v7242_v9, %v7242_v9 }
 0xb69   :  { %v1663_v8 = vpop.xlane.xlu1 %1662 }
 0xb6a   :  { %v1724_v56 = vsub.f32 %v1710_v46, %v1717_v55  ;;  %v7244_v31 = vmul.f32 0.03125, %v1663_v8 }
 0xb6b   :  { %v1689_v57 = vpop.xlane.xlu0 %1688 }
 0xb6c   :  { %v1731_v12 = vmax.f32 %v1724_v56, 0.0  ;;  %v1708_v5 = vmul.f32 0.03125, %v1689_v57  ;;  %v1718_v29 = vmul.f32 %v7244_v31, %v7244_v31 }
 0xb6d   :  { %v1698_v41 = vpop.xlane.xlu1 %1697 }
 0xb6e   :  { %v1722_v10 = vsub.f32 %v1708_v5, %v1715_v60  ;;  %v1711_v14 = vmul.f32 0.03125, %v1698_v41  ;;  %v1745_v15 = vadd.f32 1e-05, %v1731_v12 }
 0xb6f   :  { %v1657_v25 = vpop.xlane.xlu0 %1656 }
 0xb70   :  { %v1729_v19 = vmax.f32 %v1722_v10, 0.0  ;;  %v1725_v24 = vsub.f32 %v1711_v14, %v1718_v29  ;;  %v1674_v37 = vmul.f32 0.03125, %v1657_v25  ;;  %6511 = vrsqrt.f32 %v1745_v15 }
 0xb71   :  { %v1692_v23 = vpop.xlane.xlu1 %1691 }
 0xb72   :  { %v1743_v26 = vadd.f32 1e-05, %v1729_v19  ;;  %v1732_v32 = vmax.f32 %v1725_v24, 0.0  ;;  %v1716_v27 = vmul.f32 %v1674_v37, %v1674_v37  ;;  %v1709_v35 = vmul.f32 0.03125, %v1692_v23 }
 0xb73   :  { %v1672_v40 = vpop.xlane.xlu0 %1671 }
 0xb74   :  { %6513 = vrsqrt.f32 %v1743_v26  ;;  %v1746_v49 = vadd.f32 1e-05, %v1732_v32  ;;  %v1723_v42 = vsub.f32 %v1709_v35, %v1716_v27  ;;  %v7250_v56 = vmul.f32 0.03125, %v1672_v40 }
 0xb75   :  { %v1701_v47 = vpop.xlane.xlu1 %1700 }
 0xb76   :  { %6515 = vrsqrt.f32 %v1746_v49  ;;  %v1730_v52 = vmax.f32 %v1723_v42, 0.0  ;;  %v1712_v57 = vmul.f32 0.03125, %v1701_v47  ;;  %v1721_v15 = vmul.f32 %v7250_v56, %v7250_v56 }
 0xb77   :  { %v1666_v54 = vpop.xlane.xlu0 %1665  ;;  %v1738_v49 = vsub.f32 %v7181_v34, %v7238_v48  ;;  %v1736_v42 = vsub.f32 %v7184_v30, %v7242_v9  ;;  %v1739_v47 = vsub.f32 %v7191_v51, %v7244_v31  ;;  %v1737_v30 = vsub.f32 %v7199_v53, %v1674_v37  ;;  %v5612_v31 = vld [vmem:[%s8303_s5 + $0x12] ss:$0 sm:$0xff] }
 0xb78   :  { %v1677_v55 = vmul.f32 0.03125, %v1666_v54  ;;  %v1744_v46 = vadd.f32 1e-05, %v1730_v52 }
 0xb79   :  { %v1669_v8 = vpop.xlane.xlu1 %1668 }
 0xb7a   :  { %v1719_v60 = vmul.f32 %v1677_v55, %v1677_v55  ;;  %v1678_v12 = vmul.f32 0.03125, %v1669_v8  ;;  %6517 = vrsqrt.f32 %v1744_v46 }
 0xb7b   :  { %v1704_v5 = vpop.xlane.xlu0 %1703 }
 0xb7c   :  { %v1726_v41 = vsub.f32 %v1712_v57, %v1719_v60  ;;  %v1720_v29 = vmul.f32 %v1678_v12, %v1678_v12  ;;  %v1713_v10 = vmul.f32 0.03125, %v1704_v5  ;;  %v1741_v37 = vsub.f32 %v7221_v21, %v1678_v12 }
 0xb7d   :  { %v1707_v14 = vpop.xlane.xlu1 %1706  ;;  %v6512_v26 = vpop.eup %6511 }
 0xb7e   :  { %v1733_v25 = vmax.f32 %v1726_v41, 0.0  ;;  %v1727_v19 = vsub.f32 %v1713_v10, %v1720_v29  ;;  %v1714_v24 = vmul.f32 0.03125, %v1707_v14  ;;  %v1759_v60 = vmul.f32 %v6512_v26, %v1738_v49  ;;  %v5611_v41 = vld [vmem:[%s8303_s5 + $0x11] ss:$0 sm:$0xff] }
 0xb7f   :  { %v1941_v23 = vpop.permute.xlu0 %1940 }
 0xb80   :  { %v1747_v32 = vadd.f32 1e-05, %v1733_v25  ;;  %v1734_v27 = vmax.f32 %v1727_v19, 0.0  ;;  %v1728_v35 = vsub.f32 %v1714_v24, %v1721_v15  ;;  %1943 = vst.msk [vmem:[#allocation2] sm:$0xff] %vm269_vm3, %v1941_v23  ;;  %v1770_v51 = vmul.f32 %v5611_v41, %v1759_v60 }
 0xb81   :  { %v6514_v40 = vpop.eup %6513  ;;  %v1740_v24 = vsub.f32 %v7208_v7, %v1677_v55 }
 0xb82   :  { %6519 = vrsqrt.f32 %v1747_v32  ;;  %v1748_v52 = vadd.f32 1e-05, %v1734_v27  ;;  %v1735_v54 = vmax.f32 %v1728_v35, 0.0  ;;  %v1757_v8 = vmul.f32 %v6514_v40, %v1736_v42 }
 0xb83   :  { %v6516_v46 = vpop.eup %6515  ;;  %v1781_v25 = vadd.f32 %v5612_v31, %v1770_v51  ;;  %v5617_v51 = vld [vmem:[%s8303_s5 + $0x13] ss:$0 sm:$0xff] }
 0xb84   :  { %6521 = vrsqrt.f32 %v1748_v52  ;;  %v1749_v57 = vadd.f32 1e-05, %v1735_v54  ;;  %v1760_v5 = vmul.f32 %v6516_v46, %v1739_v47  ;;  %v1768_v48 = vmul.f32 %v5611_v41, %v1757_v8 }
 0xb85   :  { %v1788_v35 = vmax.f32 %v1781_v25, 0.0  ;;  %v1742_v47 = vsub.f32 %v7213_v18, %v7250_v56  ;;  %v7294_v25 = vld [vmem:[%s8303_s5 + $0x23] ss:$0 sm:$0xff] }
 0xb86   :  { %6523 = vrsqrt.f32 %v1749_v57  ;;  %v1771_v34 = vmul.f32 %v5611_v41, %v1760_v5  ;;  %v1779_v15 = vadd.f32 %v5612_v31, %v1768_v48 }
 0xb87   :  { %v6518_v9 = vpop.eup %6517  ;;  %v1945_v42 = vld [vmem:[#allocation2] sm:$0xff] }
 0xb88   :  { %v1758_v29 = vmul.f32 %v6518_v9, %v1737_v30  ;;  %v1782_v10 = vadd.f32 %v5612_v31, %v1771_v34  ;;  %v1786_v32 = vmax.f32 %v1779_v15, 0.0  ;;  %v1949_v55 = vpack.c.bf16 %v7166_v22, %v1945_v42 }
 0xb8a   :  { %v1769_v14 = vmul.f32 %v5611_v41, %v1758_v29  ;;  %v1789_v23 = vmax.f32 %v1782_v10, 0.0 }
 0xb8c   :  { %v1780_v19 = vadd.f32 %v5612_v31, %v1769_v14  ;;  %v1794_v54 = vpack.c.bf16 %v1789_v23, %v1788_v35 }
 0xb8e   :  { %v1787_v27 = vmax.f32 %v1780_v19, 0.0 }
 0xb8f   :  { %v6520_v26 = vpop.eup %6519 }
 0xb90   :  { %v1761_v53 = vmul.f32 %v6520_v26, %v1740_v24  ;;  %v1793_v49 = vpack.c.bf16 %v1787_v27, %v1786_v32  ;;  %v1957_v27 = vmul.f32 %v7294_v25, %v6963_v3 }
 0xb91   :  { %v6522_v40 = vpop.eup %6521 }
 0xb92   :  { %v1772_v52 = vmul.f32 %v5611_v41, %v1761_v53  ;;  %v1762_v46 = vmul.f32 %v6522_v40, %v1741_v37  ;;  %6118 = vmatprep.mubr.msk.bf16.mxu0 %vm269_vm3, %v1793_v49  ;;  %v1955_v49 = vmul.f32 %v7294_v25, %v6961_v2 }
 0xb93   :  { %v6524_v8 = vpop.eup %6523  ;;  %6119 = vmatmul.mubr.msk.bf16.vlgmr.msra.gmra.mxu0 %vm269_vm3, %v1794_v54 }
 0xb94   :  { %v1783_v7 = vadd.f32 %v5612_v31, %v1772_v52  ;;  %v1773_v57 = vmul.f32 %v5611_v41, %v1762_v46  ;;  %v1763_v21 = vmul.f32 %v6524_v8, %v1742_v47  ;;  %6139 = vmatpush3.bf16.msra.mxu0 %v7157_v20 }
 0xb95   :  { %6140 = vmatprep.subr.bf16.mxu0 %v1949_v55 }
 0xb96   :  { %v1784_v12 = vadd.f32 %v5612_v31, %v1773_v57  ;;  %v1774_v60 = vmul.f32 %v5611_v41, %v1763_v21  ;;  %v1790_v5 = vmax.f32 %v1783_v7, 0.0  ;;  %v1958_v57 = vmul.f32 %v7294_v25, %v6976_v11 }
 0xb98   :  { %v1791_v18 = vmax.f32 %v1784_v12, 0.0  ;;  %v1785_v56 = vadd.f32 %v5612_v31, %v1774_v60  ;;  %6141 = vmatpush3.bf16.msra.mxu0 %v1949_v55 }
 0xb9a   :  { %v1795_v34 = vpack.c.bf16 %v1791_v18, %v1790_v5  ;;  %v1792_v30 = vmax.f32 %v1785_v56, 0.0 }
 0xb9c   :  { %6122 = vmatprep.mubr.msk.bf16.mxu0 %vm269_vm3, %v1795_v34  ;;  %v1796_v48 = vpack.c.bf16 %v1792_v30, %v1792_v30 }
 0xb9e   :  { %6123 = vmatmul.mubr.msk.bf16.gmra.mxu0 %vm269_vm3, %v1796_v48 }
 0xb9f   :  { %6142 = vmatprep.mubr.msk.bf16.mxu0 %vm269_vm3, %v6877_v17 }
 0xba6   :  { %6143 = vmatmul.mubr.msk.bf16.vlgmr.msra.gmra.mxu0 %vm269_vm3, %v6940_v58 }
 0xba7   :  { %6146 = vmatprep.mubr.msk.bf16.mxu0 %vm269_vm3, %v6942_v59 }
 0xbae   :  { %6147 = vmatmul.mubr.msk.bf16.gmra.mxu0 %vm269_vm3, %v6949_v61 }
 0xbaf   :  { %6170 = vmatprep.mubr.msk.bf16.mxu0 %vm1302_vm2, %v7079_v4 }
 0xc53   :  { %v6120_v20 = vpop.f32.mrf.mxu0 }
 0xc54   :  { %v1880_v53 = vadd.f32 %v6120_v20, %v5617_v51 }
 0xc55   :  { %v1843_v22 = vpop.f32.mrf.mxu0 }
 0xc56   :  { %v1878_v55 = vadd.f32 %v5617_v51, %v1843_v22  ;;  %v1956_v22 = vmul.f32 %v7294_v25, %v6956_v63 }
 0xc57   :  { %v6121_v41 = vpop.f32.mrf.mxu0 }
 0xc58   :  { %v1881_v24 = vadd.f32 %v6121_v41, %v5617_v51 }
 0xc59   :  { %v1846_v9 = vpop.f32.mrf.mxu0 }
 0xc5a   :  { %v1886_v42 = vpack.c.bf16 %v1881_v24, %v1880_v53  ;;  %v1879_v52 = vadd.f32 %v5617_v51, %v1846_v9  ;;  %v1959_v24 = vmul.f32 %v7294_v25, %v6980_v13 }
 0xc5c   :  { %v1885_v60 = vpack.c.bf16 %v1879_v52, %v1878_v55 }
 0xc5e   :  { %v6124_v31 = vpop.f32.mrf.mxu0 }
 0xc5f   :  { %v1884_v29 = vadd.f32 %v6124_v31, %v5617_v51 }
 0xc60   :  { %v1859_v10 = vpop.f32.mrf.mxu0 }
 0xc61   :  { %v1888_v14 = vpack.c.bf16 %v1884_v29, %v1884_v29  ;;  %v1882_v26 = vadd.f32 %v5617_v51, %v1859_v10 }
 0xc62   :  { %v6125_v15 = vpop.f32.mrf.mxu0 }
 0xc63   :  { %v1890_v19 = vsel %vm1309_vm4, %v1888_v14, 0  ;;  %6467 = vmatprep.subr.msk.bf16.mxu1 %vm1309_vm4, %v1888_v14  ;;  %v1961_v14 = vmul.f32 %v7294_v25, %v6997_v28 }
 0xc64   :  { %v1862_v23 = vpop.f32.mrf.mxu0  ;;  %6127 = vmatpush3.bf16.msra.mxu1 %v1890_v19 }
 0xc65   :  { %v1883_v32 = vadd.f32 %v5617_v51, %v1862_v23 }
 0xc66   :  { %v6144_v37 = vpop.f32.mrf.mxu0 }
 0xc67   :  { %v1887_v35 = vpack.c.bf16 %v1883_v32, %v1882_v26  ;;  %v7300_v40 = vadd.f32 %v6144_v37, %v1957_v27  ;;  %v1960_v37 = vmul.f32 %v7294_v25, %v7007_v38 }
 0xc68   :  { %v1996_v47 = vpop.f32.mrf.mxu0 }
 0xc69   :  { %v7304_v54 = vadd.f32 %v1996_v47, %v1955_v49  ;;  %6128 = vmatprep.subr.bf16.mxu1 %v1887_v35  ;;  %v2034_v46 = vsel %vm269_vm3, %v7300_v40, 0.0  ;;  %v2058_v8 = vmul.f32 %v7300_v40, %v7300_v40 }
 0xc6a   :  { %2035 = vadd.xlane.f32.xlu1 %v2034_v46  ;;  %6129 = vmatpush3.bf16.msra.mxu1 %v1887_v35  ;;  %v6145_v7 = vpop.f32.mrf.mxu0 }
 0xc6b   :  { %6130 = vmatprep.subr.bf16.mxu1 %v1886_v42  ;;  %v2069_v21 = vsel %vm269_vm3, %v2058_v8, 0.0  ;;  %v7313_v5 = vadd.f32 %v6145_v7, %v1958_v57  ;;  %v2028_v18 = vsel %vm269_vm3, %v7304_v54, 0.0  ;;  %v2056_v48 = vmul.f32 %v7304_v54, %v7304_v54  ;;  %v80_v8 = vld [vmem:[#allocation3 + $0x150] sm:$0xff]  ;;  %v81_v7 = vld [vmem:[#allocation3 + $0x158] sm:$0xff]  ;;  %v78_v57 = vld [vmem:[#allocation3 + $0x140] sm:$0xff] }
 0xc6c   :  { %2070 = vadd.xlane.f32.xlu0 %v2069_v21  ;;  %v1999_v12 = vpop.f32.mrf.mxu0  ;;  %v7363_v55 = vpack.c.bf16 %v81_v7, %v80_v8  ;;  %v79_v21 = vld [vmem:[#allocation3 + $0x148] sm:$0xff] }
 0xc6d   :  { %v2037_v30 = vsel %vm269_vm3, %v7313_v5, 0.0  ;;  %v7323_v41 = vadd.f32 %v1999_v12, %v1956_v22  ;;  %v2063_v9 = vsel %vm269_vm3, %v2056_v48, 0.0  ;;  %v2059_v31 = vmul.f32 %v7313_v5, %v7313_v5 }
 0xc6e   :  { %v6148_v56 = vpop.f32.mrf.mxu0  ;;  %2029 = vadd.xlane.f32.xlu1 %v2028_v18  ;;  %6131 = vmatpush3.bf16.msra.mxu1 %v1886_v42  ;;  %v7367_v12 = vpack.c.bf16 %v79_v21, %v78_v57 }
 0xc6f   :  { %6132 = vmatprep.subr.bf16.mxu1 %v1885_v60  ;;  %v2031_v51 = vsel %vm269_vm3, %v7323_v41, 0.0  ;;  %v2072_v29 = vsel %vm269_vm3, %v2059_v31, 0.0  ;;  %v2057_v10 = vmul.f32 %v7323_v41, %v7323_v41  ;;  %v7337_v15 = vadd.f32 %v6148_v56, %v1961_v14 }
 0xc70   :  { %v2012_v34 = vpop.f32.mrf.mxu0 }
 0xc71   :  { %v2066_v19 = vsel %vm269_vm3, %v2057_v10, 0.0  ;;  %v7342_v23 = vadd.f32 %v2012_v34, %v1959_v24  ;;  %v2046_v26 = vsel %vm1066_vm1, %v7337_v15, 0.0  ;;  %v2062_v46 = vmul.f32 %v7337_v15, %v7337_v15 }
 0xc72   :  { %v6149_v20 = vpop.f32.mrf.mxu0  ;;  %2038 = vadd.xlane.f32.xlu1 %v2037_v30  ;;  %6133 = vmatpush3.bf16.msra.mxu1 %v1885_v60 }
 0xc73   :  { %v2040_v32 = vsel %vm269_vm3, %v7342_v23, 0.0  ;;  %v2060_v27 = vmul.f32 %v7342_v23, %v7342_v23  ;;  %v2081_v25 = vsel %vm1066_vm1, %v2062_v46, 0.0  ;;  %6150 = vmatprep.subr.bf16.mxu1 %v7363_v55 }
 0xc74   :  { %v2015_v53 = vpop.f32.mrf.mxu0 }
 0xc75   :  { %6135 = vmatmul.mubr.msk.bf16.vlgmr.msra.gmra.mxu1 %vm1302_vm2, %v7088_v44  ;;  %v7352_v35 = vadd.f32 %v2015_v53, %v1960_v37  ;;  %v2075_v49 = vsel %vm269_vm3, %v2060_v27, 0.0 }
 0xc76   :  { %2064 = vadd.xlane.f32.xlu1 %v2063_v9  ;;  %6151 = vmatpush3.bf16.msra.mxu1 %v7363_v55 }
 0xc77   :  { %v2043_v42 = vsel %vm269_vm3, %v7352_v35, 0.0  ;;  %v2061_v47 = vmul.f32 %v7352_v35, %v7352_v35  ;;  %6152 = vmatprep.subr.bf16.mxu1 %v7367_v12 }
 0xc79   :  { %v2078_v52 = vsel %vm269_vm3, %v2061_v47, 0.0 }
 0xc7a   :  { %2032 = vadd.xlane.f32.xlu1 %v2031_v51  ;;  %6153 = vmatpush3.bf16.msra.mxu1 %v7367_v12 }
 0xc7b   :  { %6174 = vmatprep.subr.bf16.mxu1 %v6682_v0 }
 0xc7e   :  { %2073 = vadd.xlane.f32.xlu1 %v2072_v29 }
 0xc82   :  { %2067 = vadd.xlane.f32.xlu1 %v2066_v19 }
 0xc86   :  { %2047 = vadd.xlane.f32.xlu1 %v2046_v26 }
 0xc8a   :  { %2041 = vadd.xlane.f32.xlu1 %v2040_v32 }
 0xc8e   :  { %2076 = vadd.xlane.f32.xlu1 %v2075_v49 }
 0xc92   :  { %2044 = vadd.xlane.f32.xlu1 %v2043_v42 }
 0xc96   :  { %2079 = vadd.xlane.f32.xlu1 %v2078_v52 }
 0xc9a   :  { %2082 = vadd.xlane.f32.xlu1 %v2081_v25 }
 0xcf3   :  { %v2036_v60 = vpop.xlane.xlu1 %2035 }
 0xcf4   :  { %v2051_v56 = vmul.f32 0.03125, %v2036_v60 }
 0xcf5   :  { %v2071_v34 = vpop.xlane.xlu0 %2070 }
 0xcf6   :  { %v2093_v20 = vmul.f32 %v2051_v56, %v2051_v56  ;;  %v2086_v22 = vmul.f32 0.03125, %v2071_v34 }
 0xcf7   :  { %v2030_v18 = vpop.xlane.xlu1 %2029 }
 0xcf8   :  { %v2049_v48 = vmul.f32 0.03125, %v2030_v18  ;;  %v2100_v29 = vsub.f32 %v2086_v22, %v2093_v20 }
 0xcfa   :  { %v2091_v51 = vmul.f32 %v2049_v48, %v2049_v48  ;;  %v2107_v26 = vmax.f32 %v2100_v29, 0.0 }
 0xcfb   :  { %v2039_v30 = vpop.xlane.xlu1 %2038 }
 0xcfc   :  { %v2052_v19 = vmul.f32 0.03125, %v2039_v30  ;;  %v2121_v42 = vadd.f32 1e-05, %v2107_v26 }
 0xcfe   :  { %v2094_v53 = vmul.f32 %v2052_v19, %v2052_v19 }
 0xcff   :  { %v2065_v9 = vpop.xlane.xlu1 %2064 }
 0xd00   :  { %v2084_v31 = vmul.f32 0.03125, %v2065_v9 }
 0xd02   :  { %v2098_v10 = vsub.f32 %v2084_v31, %v2091_v51  ;;  %v2112_v31 = vsub.f32 %v7304_v54, %v2049_v48 }
 0xd03   :  { %v2033_v14 = vpop.xlane.xlu1 %2032 }
 0xd04   :  { %v2105_v24 = vmax.f32 %v2098_v10, 0.0  ;;  %v2050_v37 = vmul.f32 0.03125, %v2033_v14  ;;  %v2114_v14 = vsub.f32 %v7300_v40, %v2051_v56 }
 0xd06   :  { %v2119_v32 = vadd.f32 1e-05, %v2105_v24  ;;  %v2092_v46 = vmul.f32 %v2050_v37, %v2050_v37  ;;  %v2113_v54 = vsub.f32 %v7323_v41, %v2050_v37 }
 0xd07   :  { %v2074_v27 = vpop.xlane.xlu1 %2073 }
 0xd08   :  { %v2087_v49 = vmul.f32 0.03125, %v2074_v27  ;;  %6525 = vrsqrt.f32 %v2119_v32  ;;  %v2115_v32 = vsub.f32 %v7313_v5, %v2052_v19 }
 0xd09   :  { %6527 = vrsqrt.f32 %v2121_v42 }
 0xd0a   :  { %v2101_v47 = vsub.f32 %v2087_v49, %v2094_v53 }
 0xd0b   :  { %v2068_v52 = vpop.xlane.xlu1 %2067 }
 0xd0c   :  { %v2108_v25 = vmax.f32 %v2101_v47, 0.0  ;;  %v2085_v8 = vmul.f32 0.03125, %v2068_v52  ;;  %v7378_v52 = vld [vmem:[%s8303_s5 + $0x19] ss:$0 sm:$0xff] }
 0xd0e   :  { %v2122_v7 = vadd.f32 1e-05, %v2108_v25  ;;  %v2099_v57 = vsub.f32 %v2085_v8, %v2092_v46 }
 0xd0f   :  { %v2048_v21 = vpop.xlane.xlu1 %2047 }
 0xd10   :  { %6529 = vrsqrt.f32 %v2122_v7  ;;  %v2106_v60 = vmax.f32 %v2099_v57, 0.0  ;;  %v2055_v48 = vmul.f32 0.03125, %v2048_v21 }
 0xd12   :  { %v2120_v18 = vadd.f32 1e-05, %v2106_v60  ;;  %v5626_v60 = vld [vmem:[%s8303_s5 + $0x1a] ss:$0 sm:$0xff] }
 0xd13   :  { %v2042_v34 = vpop.xlane.xlu1 %2041 }
 0xd14   :  { %6531 = vrsqrt.f32 %v2120_v18  ;;  %v2053_v30 = vmul.f32 0.03125, %v2042_v34  ;;  %v2097_v34 = vmul.f32 %v2055_v48, %v2055_v48 }
 0xd15   :  { %v6526_v22 = vpop.eup %6525 }
 0xd16   :  { %v2095_v9 = vmul.f32 %v2053_v30, %v2053_v30  ;;  %v6528_v29 = vpop.eup %6527  ;;  %v2133_v26 = vmul.f32 %v6526_v22, %v2112_v31 }
 0xd17   :  { %v2077_v20 = vpop.xlane.xlu1 %2076  ;;  %v2135_v42 = vmul.f32 %v6528_v29, %v2114_v14 }
 0xd18   :  { %v2088_v51 = vmul.f32 0.03125, %v2077_v20  ;;  %v2144_v40 = vmul.f32 %v7378_v52, %v2133_v26 }
 0xd19   :  { %v2146_v7 = vmul.f32 %v7378_v52, %v2135_v42 }
 0xd1a   :  { %v2102_v10 = vsub.f32 %v2088_v51, %v2095_v9  ;;  %v2155_v9 = vadd.f32 %v5626_v60, %v2144_v40 }
 0xd1b   :  { %v2045_v24 = vpop.xlane.xlu1 %2044  ;;  %v2157_v51 = vadd.f32 %v5626_v60, %v2146_v7 }
 0xd1c   :  { %v2109_v27 = vmax.f32 %v2102_v10, 0.0  ;;  %v2054_v53 = vmul.f32 0.03125, %v2045_v24  ;;  %v2162_v26 = vmax.f32 %v2155_v9, 0.0 }
 0xd1d   :  { %v6530_v49 = vpop.eup %6529 }
 0xd1e   :  { %v2123_v47 = vadd.f32 1e-05, %v2109_v27  ;;  %v2136_v46 = vmul.f32 %v6530_v49, %v2115_v32  ;;  %v2096_v56 = vmul.f32 %v2054_v53, %v2054_v53  ;;  %v2164_v27 = vmax.f32 %v2157_v51, 0.0 }
 0xd1f   :  { %v2080_v25 = vpop.xlane.xlu1 %2079 }
 0xd20   :  { %6533 = vrsqrt.f32 %v2123_v47  ;;  %v2089_v5 = vmul.f32 0.03125, %v2080_v25  ;;  %v2147_v19 = vmul.f32 %v7378_v52, %v2136_v46 }
 0xd21   :  { %v6532_v8 = vpop.eup %6531 }
 0xd22   :  { %v2103_v57 = vsub.f32 %v2089_v5, %v2096_v56  ;;  %v2134_v18 = vmul.f32 %v6532_v8, %v2113_v54  ;;  %v2158_v37 = vadd.f32 %v5626_v60, %v2147_v19  ;;  %v2116_v54 = vsub.f32 %v7342_v23, %v2053_v30 }
 0xd23   :  { %v2083_v41 = vpop.xlane.xlu1 %2082  ;;  %v2117_v56 = vsub.f32 %v7352_v35, %v2054_v53 }
 0xd24   :  { %v2110_v21 = vmax.f32 %v2103_v57, 0.0  ;;  %v2090_v20 = vmul.f32 0.03125, %v2083_v41  ;;  %v2145_v22 = vmul.f32 %v7378_v52, %v2134_v18  ;;  %v2165_v14 = vmax.f32 %v2158_v37, 0.0 }
 0xd25   :  { %v2118_v18 = vsub.f32 %v7337_v15, %v2055_v48 }
 0xd26   :  { %v2124_v31 = vadd.f32 1e-05, %v2110_v21  ;;  %v2104_v29 = vsub.f32 %v2090_v20, %v2097_v34  ;;  %v2156_v10 = vadd.f32 %v5626_v60, %v2145_v22  ;;  %v2170_v47 = vpack.c.bf16 %v2165_v14, %v2164_v27 }
 0xd28   :  { %6535 = vrsqrt.f32 %v2124_v31  ;;  %v2111_v24 = vmax.f32 %v2104_v29, 0.0  ;;  %v2163_v32 = vmax.f32 %v2156_v10, 0.0 }
 0xd2a   :  { %v2125_v49 = vadd.f32 1e-05, %v2111_v24  ;;  %v2169_v42 = vpack.c.bf16 %v2163_v32, %v2162_v26 }
 0xd2c   :  { %6537 = vrsqrt.f32 %v2125_v49  ;;  %6154 = vmatprep.mubr.msk.bf16.mxu1 %vm269_vm3, %v2169_v42 }
 0xd2d   :  { %v6534_v46 = vpop.eup %6533  ;;  %6155 = vmatmul.mubr.msk.bf16.vlgmr.msra.gmra.mxu1 %vm269_vm3, %v2170_v47 }
 0xd2e   :  { %6175 = vmatpush3.bf16.msra.mxu1 %v7137_v16  ;;  %v2137_v25 = vmul.f32 %v6534_v46, %v2116_v54 }
 0xd2f   :  { %6176 = vmatprep.subr.bf16.mxu1 %v6682_v0 }
 0xd30   :  { %v2148_v40 = vmul.f32 %v7378_v52, %v2137_v25 }
 0xd32   :  { %6177 = vmatpush3.bf16.msra.mxu1 %v7140_v50  ;;  %v2159_v57 = vadd.f32 %v5626_v60, %v2148_v40 }
 0xd33   :  { %6190 = vmatprep.subr.bf16.mxu1 %v6682_v0 }
 0xd34   :  { %v2166_v53 = vmax.f32 %v2159_v57, 0.0 }
 0xd35   :  { %v6536_v5 = vpop.eup %6535  ;;  %v6136_v19 = vpop.f32.mrf.mxu1 }
 0xd36   :  { %v2320_v8 = vsel %vm886_vm10, %v6136_v19, 0.0  ;;  %v2326_v23 = vmul.f32 %v6136_v19, %v6136_v19  ;;  %v2138_v30 = vmul.f32 %v6536_v5, %v2117_v56 }
 0xd37   :  { %2321 = vadd.xlane.f32.xlu1 %v2320_v8  ;;  %v1926_v7 = vpop.f32.mrf.mxu1 }
 0xd38   :  { %v2149_v34 = vmul.f32 %v7378_v52, %v2138_v30  ;;  %v2330_v21 = vsel %vm886_vm10, %v2326_v23, 0.0 }
 0xd39   :  { %v6538_v41 = vpop.eup %6537  ;;  %v6137_v37 = vpop.f32.mrf.mxu1 }
 0xd3a   :  { %v2160_v20 = vadd.f32 %v5626_v60, %v2149_v34  ;;  %v2139_v22 = vmul.f32 %v6538_v41, %v2118_v18  ;;  %v5634_v18 = vld [vmem:[%s8303_s5 + $0x14] ss:$0 sm:$0xff] }
 0xd3b   :  { %2331 = vadd.xlane.f32.xlu1 %v2330_v21  ;;  %v1928_v35 = vpop.f32.mrf.mxu1 }
 0xd3c   :  { %v2317_v9 = vsel %vm269_vm3, %v1928_v35, 0.0  ;;  %v2167_v51 = vmax.f32 %v2160_v20, 0.0  ;;  %v2325_v31 = vmul.f32 %v1928_v35, %v1928_v35  ;;  %v2150_v29 = vmul.f32 %v7378_v52, %v2139_v22  ;;  %v5635_v20 = vld [vmem:[%s8303_s5 + $0x15] ss:$0 sm:$0xff] }
 0xd3d   :  { %2318 = vadd.xlane.f32.xlu0 %v2317_v9 }
 0xd3e   :  { %v2171_v10 = vpack.c.bf16 %v2167_v51, %v2166_v53  ;;  %v2161_v15 = vadd.f32 %v5626_v60, %v2150_v29  ;;  %v2327_v48 = vsel %vm269_vm3, %v2325_v31, 0.0 }
 0xd40   :  { %6158 = vmatprep.mubr.msk.bf16.mxu1 %vm269_vm3, %v2171_v10  ;;  %v2168_v14 = vmax.f32 %v2161_v15, 0.0  ;;  %v5631_v10 = vld [vmem:[%s8303_s5 + $0x1b] ss:$0 sm:$0xff] }
 0xd41   :  { %2328 = vadd.xlane.f32.xlu0 %v2327_v48 }
 0xd42   :  { %v2172_v24 = vpack.c.bf16 %v2168_v14, %v2168_v14 }
 0xd44   :  { %6159 = vmatmul.mubr.msk.bf16.gmra.mxu1 %vm269_vm3, %v2172_v24 }
 0xd45   :  { %6178 = vmatprep.mubr.msk.bf16.mxu1 %vm6683_vm0, %v6682_v0 }
 0xdc0   :  { %v2322_v26 = vpop.xlane.xlu1 %2321 }
 0xdc1   :  { %v2324_v32 = vmul.f32 0.03125, %v2322_v26 }
 0xdc3   :  { %v2336_v49 = vmul.f32 %v2324_v32, %v2324_v32  ;;  %v2342_v7 = vsub.f32 %v6136_v19, %v2324_v32 }
 0xdc4   :  { %v2332_v27 = vpop.xlane.xlu1 %2331 }
 0xdc5   :  { %v2334_v52 = vmul.f32 0.03125, %v2332_v27 }
 0xdc6   :  { %v2319_v42 = vpop.xlane.xlu0 %2318 }
 0xdc7   :  { %v2338_v47 = vsub.f32 %v2334_v52, %v2336_v49  ;;  %v2323_v60 = vmul.f32 0.03125, %v2319_v42 }
 0xdc9   :  { %v2340_v46 = vmax.f32 %v2338_v47, 0.0  ;;  %v2335_v40 = vmul.f32 %v2323_v60, %v2323_v60  ;;  %v2341_v34 = vsub.f32 %v1928_v35, %v2323_v60 }
 0xdca   :  { %v2329_v54 = vpop.xlane.xlu0 %2328 }
 0xdcb   :  { %v2344_v25 = vadd.f32 1e-05, %v2340_v46  ;;  %v2333_v56 = vmul.f32 0.03125, %v2329_v54 }
 0xdcd   :  { %6539 = vrsqrt.f32 %v2344_v25  ;;  %v2337_v5 = vsub.f32 %v2333_v56, %v2335_v40 }
 0xdcf   :  { %v2339_v8 = vmax.f32 %v2337_v5, 0.0 }
 0xdd1   :  { %v2343_v23 = vadd.f32 1e-05, %v2339_v8 }
 0xdd3   :  { %6541 = vrsqrt.f32 %v2343_v23 }
 0xdda   :  { %v6540_v30 = vpop.eup %6539 }
 0xddb   :  { %v2348_v57 = vmul.f32 %v6540_v30, %v2342_v7 }
 0xddd   :  { %v2354_v37 = vmul.f32 %v5634_v18, %v2348_v57 }
 0xddf   :  { %v2360_v9 = vadd.f32 %v5635_v20, %v2354_v37 }
 0xde0   :  { %v6542_v41 = vpop.eup %6541 }
 0xde1   :  { %v2347_v21 = vmul.f32 %v6542_v41, %v2341_v34 }
 0xde3   :  { %v2353_v22 = vmul.f32 %v5634_v18, %v2347_v21 }
 0xde5   :  { %v2359_v53 = vadd.f32 %v5635_v20, %v2353_v22  ;;  %v5637_v20 = vld [vmem:[%s8303_s5 + $0x16] ss:$0 sm:$0xff]  ;;  %v5643_v22 = vld [vmem:[%s8303_s5 + $0x1e] ss:$0 sm:$0xff] }
 0xde7   :  { %v2361_v51 = vpack.c.bf16 %v2360_v9, %v2359_v53 }
 0xde9   :  { %6179 = vmatmul.mubr.msk.bf16.vlgmr.msra.gmra.mxu1 %vm269_vm3, %v2361_v51 }
 0xdea   :  { %6191 = vmatpush3.bf16.msra.mxu1 %v7363_v55  ;;  %6194 = vmatprep.mubr.msk.bf16.mxu1 %vm6683_vm0, %v6682_v0 }
 0xdeb   :  { %6192 = vmatprep.subr.bf16.mxu1 %v6682_v0 }
 0xded   :  { %v6156_v19 = vpop.f32.mrf.mxu1 }
 0xdee   :  { %6193 = vmatpush3.bf16.msra.mxu1 %v7367_v12  ;;  %v2256_v47 = vadd.f32 %v6156_v19, %v5631_v10 }
 0xdef   :  { %6206 = vmatprep.subr.bf16.mxu1 %v6682_v0  ;;  %v2219_v35 = vpop.f32.mrf.mxu1 }
 0xdf0   :  { %v2254_v25 = vadd.f32 %v5631_v10, %v2219_v35 }
 0xdf1   :  { %v6157_v31 = vpop.f32.mrf.mxu1 }
 0xdf2   :  { %v2257_v49 = vadd.f32 %v6157_v31, %v5631_v10 }
 0xdf3   :  { %v2222_v29 = vpop.f32.mrf.mxu1 }
 0xdf4   :  { %v2262_v46 = vpack.c.bf16 %v2257_v49, %v2256_v47  ;;  %v2255_v54 = vadd.f32 %v5631_v10, %v2222_v29 }
 0xdf6   :  { %v2261_v40 = vpack.c.bf16 %v2255_v54, %v2254_v25  ;;  %v5639_v25 = vld [vmem:[%s8303_s5 + $0x17] ss:$0 sm:$0xff] }
 0xe04   :  { %v6160_v15 = vpop.f32.mrf.mxu1 }
 0xe05   :  { %v2260_v48 = vadd.f32 %v6160_v15, %v5631_v10 }
 0xe06   :  { %v2235_v14 = vpop.f32.mrf.mxu1 }
 0xe07   :  { %v2264_v24 = vpack.c.bf16 %v2260_v48, %v2260_v48  ;;  %v2258_v52 = vadd.f32 %v5631_v10, %v2235_v14 }
 0xe08   :  { %v6161_v26 = vpop.f32.mrf.mxu1 }
 0xe09   :  { %v2266_v32 = vsel %vm1309_vm4, %v2264_v24, 0  ;;  %6468 = vmatprep.subr.msk.bf16.mxu0 %vm1309_vm4, %v2264_v24 }
 0xe0a   :  { %v2238_v27 = vpop.f32.mrf.mxu1  ;;  %6163 = vmatpush3.bf16.msra.mxu0 %v2266_v32 }
 0xe0b   :  { %v2259_v42 = vadd.f32 %v5631_v10, %v2238_v27 }
 0xe0d   :  { %v2263_v60 = vpack.c.bf16 %v2259_v42, %v2258_v52 }
 0xe0f   :  { %6164 = vmatprep.subr.bf16.mxu0 %v2263_v60 }
 0xe10   :  { %6165 = vmatpush3.bf16.msra.mxu0 %v2263_v60 }
 0xe11   :  { %6166 = vmatprep.subr.bf16.mxu0 %v2262_v46 }
 0xe14   :  { %6167 = vmatpush3.bf16.msra.mxu0 %v2262_v46 }
 0xe15   :  { %6168 = vmatprep.subr.bf16.mxu0 %v2261_v40 }
 0xe18   :  { %6169 = vmatpush3.bf16.msra.mxu0 %v2261_v40 }
 0xe19   :  { %6182 = vmatprep.subr.bf16.mxu0 %v6682_v0 }
 0xe1b   :  { %6171 = vmatmul.mubr.msk.bf16.vlgmr.msra.gmra.mxu0 %vm1302_vm2, %v7088_v44 }
 0xe1c   :  { %6183 = vmatpush3.bf16.msra.mxu0 %v7137_v16  ;;  %6186 = vmatprep.mubr.msk.bf16.mxu0 %vm6683_vm0, %v6682_v0 }
 0xe1d   :  { %6184 = vmatprep.subr.bf16.mxu0 %v6682_v0 }
 0xe20   :  { %6185 = vmatpush3.bf16.msra.mxu0 %v7140_v50 }
 0xe21   :  { %6198 = vmatprep.subr.bf16.mxu0 %v6682_v0 }
 0xea9   :  { %v2399_v56 = vpop.f32.mrf.mxu1 }
 0xeab   :  { %v6180_v5 = vpop.f32.mrf.mxu1 }
 0xead   :  { %v2402_v8 = vpop.f32.mrf.mxu1 }
 0xeaf   :  { %v6181_v23 = vpop.f32.mrf.mxu1 }
 0xedb   :  { %v6172_v30 = vpop.f32.mrf.mxu0 }
 0xedc   :  { %v2491_v7 = vsel %vm2490_vm5, %v6172_v30, 0.0  ;;  %v2499_v57 = vmul.f32 %v6172_v30, %v6172_v30 }
 0xedd   :  { %2492 = vadd.xlane.f32.xlu0 %v2491_v7  ;;  %v2302_v16 = vpop.f32.mrf.mxu0 }
 0xede   :  { %v2501_v34 = vsel %vm2490_vm5, %v2499_v57, 0.0 }
 0xedf   :  { %v6173_v18 = vpop.f32.mrf.mxu0 }
 0xee0   :  { %v2494_v41 = vsel %vm1066_vm1, %v6173_v18, 0.0  ;;  %v2500_v37 = vmul.f32 %v6173_v18, %v6173_v18 }
 0xee1   :  { %2502 = vadd.xlane.f32.xlu0 %v2501_v34  ;;  %2495 = vadd.xlane.f32.xlu1 %v2494_v41  ;;  %v2304_v50 = vpop.f32.mrf.mxu0  ;;  %v5641_v34 = vld [vmem:[%s8303_s5 + $0x1d] ss:$0 sm:$0xff] }
 0xee2   :  { %v2504_v21 = vsel %vm1066_vm1, %v2500_v37, 0.0 }
 0xee5   :  { %2505 = vadd.xlane.f32.xlu1 %v2504_v21 }
 0xef6   :  { %2410 = vrot.lane.b32.xlu1 %v6913_v36, %s6685_s28 }
 0xef7   :  { %2408 = vrot.lane.b32.xlu0 %v6909_v33, %s6685_s28 }
 0xefa   :  { %2422 = vrot.lane.b32.xlu1 %v5637_v20, %s6684_s14 }
 0xefb   :  { %2586 = vrot.lane.b32.xlu0 %v6921_v43, %s6685_s28 }
 0xefe   :  { %2584 = vrot.lane.b32.xlu1 %v6917_v39, %s6685_s28 }
 0xf02   :  { %2598 = vrot.lane.b32.xlu1 %v5643_v22, %s6684_s14 }
 0xf66   :  { %v2493_v36 = vpop.xlane.xlu0 %2492 }
 0xf67   :  { %v2497_v33 = vmul.f32 0.03125, %v2493_v36 }
 0xf69   :  { %v2509_v51 = vmul.f32 %v2497_v33, %v2497_v33  ;;  %v2515_v40 = vsub.f32 %v6172_v30, %v2497_v33 }
 0xf6a   :  { %v2503_v53 = vpop.xlane.xlu0 %2502  ;;  %v2496_v9 = vpop.xlane.xlu1 %2495 }
 0xf6b   :  { %v2507_v19 = vmul.f32 0.03125, %v2503_v53  ;;  %v2498_v35 = vmul.f32 0.03125, %v2496_v9 }
 0xf6d   :  { %v2511_v31 = vsub.f32 %v2507_v19, %v2509_v51  ;;  %v2510_v43 = vmul.f32 %v2498_v35, %v2498_v35 }
 0xf6e   :  { %v2506_v29 = vpop.xlane.xlu1 %2505  ;;  %v2409_v14 = vpop.permute.xlu0 %2408 }
 0xf6f   :  { %v2513_v10 = vmax.f32 %v2511_v31, 0.0  ;;  %v2508_v15 = vmul.f32 0.03125, %v2506_v29  ;;  %v2414_v32 = vadd.f32 %v2409_v14, %v2399_v56  ;;  %v5640_v56 = vld [vmem:[%s8303_s5 + $0x1c] ss:$0 sm:$0xff] }
 0xf71   :  { %v2517_v48 = vadd.f32 1e-05, %v2513_v10  ;;  %v2512_v39 = vsub.f32 %v2508_v15, %v2510_v43 }
 0xf72   :  { %v2411_v24 = vpop.permute.xlu1 %2410  ;;  %v2587_v20 = vpop.permute.xlu0 %2586 }
 0xf73   :  { %6543 = vrsqrt.f32 %v2517_v48  ;;  %v2514_v26 = vmax.f32 %v2512_v39, 0.0  ;;  %v2415_v49 = vadd.f32 %v2411_v24, %v2402_v8  ;;  %v2516_v8 = vsub.f32 %v6173_v18, %v2498_v35 }
 0xf75   :  { %v2518_v27 = vadd.f32 1e-05, %v2514_v26 }
 0xf76   :  { %v2423_v52 = vpop.permute.xlu1 %2422 }
 0xf77   :  { %6545 = vrsqrt.f32 %v2518_v27  ;;  %v2425_v42 = vadd.f32 %v2423_v52, %v2414_v32  ;;  %v2426_v47 = vadd.f32 %v2423_v52, %v2415_v49  ;;  %v3021_v52 = vmul.f32 %v7123_v45, %v7123_v45 }
 0xf79   :  { %v2427_v60 = vmax.f32 %v2425_v42, 0.0  ;;  %v2428_v46 = vmax.f32 %v2426_v47, 0.0 }
 0xf7a   :  { %v2585_v18 = vpop.permute.xlu1 %2584 }
 0xf7b   :  { %v2429_v54 = vpack.c.bf16 %v2428_v46, %v2427_v60 }
 0xf7d   :  { %2431 = vrot.lane.b32.xlu0 %v2429_v54, %s6685_s28 }
 0xf7e   :  { %v2599_v9 = vpop.permute.xlu1 %2598 }
 0xf80   :  { %v6544_v5 = vpop.eup %6543 }
 0xf81   :  { %v2521_v23 = vmul.f32 %v6544_v5, %v2515_v40  ;;  %2483 = vrot.lane.b32.xlu0 %v5639_v25, %s6688_s23 }
 0xf83   :  { %v2527_v16 = vmul.f32 %v5640_v56, %v2521_v23 }
 0xf84   :  { %v6546_v7 = vpop.eup %6545 }
 0xf85   :  { %v2522_v57 = vmul.f32 %v6546_v7, %v2516_v8  ;;  %v2533_v37 = vadd.f32 %v5641_v34, %v2527_v16 }
 0xf87   :  { %v2528_v41 = vmul.f32 %v5640_v56, %v2522_v57 }
 0xf89   :  { %v2534_v50 = vadd.f32 %v5641_v34, %v2528_v41 }
 0xf8b   :  { %v2535_v30 = vpack.c.bf16 %v2534_v50, %v2533_v37 }
 0xf8d   :  { %v2537_v21 = vrot.slane %v2535_v30, 2 }
 0xf8f   :  { %6195 = vmatmul.mubr.msk.bf16.vlgmr.msra.gmra.mxu1 %vm269_vm3, %v2537_v21 }
 0xf90   :  { %6210 = vmatprep.mubr.msk.bf16.mxu1 %vm6683_vm0, %v6682_v0 }
 0xfef   :  { %v2432_v22 = vpop.permute.xlu0 %2431 }
 0xff0   :  { %6187 = vmatmul.mubr.msk.bf16.vlgmr.msra.gmra.mxu0 %vm269_vm3, %v2432_v22 }
 0xff1   :  { %6199 = vmatpush3.bf16.msra.mxu0 %v7363_v55  ;;  %6202 = vmatprep.mubr.msk.bf16.mxu0 %vm6683_vm0, %v6682_v0 }
 0xff2   :  { %6200 = vmatprep.subr.bf16.mxu0 %v6682_v0 }
 0xff3   :  { %v2484_v15 = vpop.permute.xlu0 %2483 }
 0xff5   :  { %6201 = vmatpush3.bf16.msra.mxu0 %v7367_v12  ;;  %v5645_v12 = vld [vmem:[%s8303_s5 + $0x1f] ss:$0 sm:$0xff] }
 0xff6   :  { %6214 = vmatprep.subr.bf16.mxu0 %v6682_v0 }
0x104f   :  { %v2575_v36 = vpop.f32.mrf.mxu1 }
0x1050   :  { %v2590_v33 = vadd.f32 %v2585_v18, %v2575_v36 }
0x1051   :  { %v6196_v53 = vpop.f32.mrf.mxu1 }
0x1052   :  { %v2601_v19 = vadd.f32 %v2599_v9, %v2590_v33 }
0x1053   :  { %v2578_v51 = vpop.f32.mrf.mxu1 }
0x1054   :  { %v2591_v35 = vadd.f32 %v2587_v20, %v2578_v51  ;;  %v2603_v55 = vmax.f32 %v2601_v19, 0.0  ;;  %v5647_v19 = vld [vmem:[%s8303_s5 + $0x25] ss:$0 sm:$0xff] }
0x1055   :  { %v6197_v31 = vpop.f32.mrf.mxu1 }
0x1056   :  { %v2602_v29 = vadd.f32 %v2599_v9, %v2591_v35  ;;  %v5648_v35 = vld [vmem:[%s8303_s5 + $0x26] ss:$0 sm:$0xff]  ;;  %v5655_v31 = vld [vmem:[%s8303_s5 + $0x2b] ss:$0 sm:$0xff] }
0x1058   :  { %v2604_v10 = vmax.f32 %v2602_v29, 0.0  ;;  %v707_v29 = vld [vmem:[%s8303_s5 + $0x7] sm:$0x1] }
0x105a   :  { %v2605_v43 = vpack.c.bf16 %v2604_v10, %v2603_v55  ;;  %v5651_v55 = vld [vmem:[%s8303_s5 + $0x28] ss:$0 sm:$0xff]  ;;  %v5652_v10 = vld [vmem:[%s8303_s5 + $0x29] ss:$0 sm:$0xff] }
0x105c   :  { %2607 = vrot.lane.b32.xlu1 %v2605_v43, %s6685_s28 }
0x1060   :  { %2659 = vrot.lane.b32.xlu1 %v5645_v12, %s6688_s23 }
0x10b0   :  { %v2470_v48 = vpop.f32.mrf.mxu0 }
0x10b1   :  { %v7481_v39 = vadd.f32 %v2484_v15, %v2470_v48 }
0x10b2   :  { %v6188_v14 = vpop.f32.mrf.mxu0 }
0x10b3   :  { %2718 = vrot.lane.b32.xlu0 %v7481_v39, %s6688_s23  ;;  %v2732_v32 = vmul.f32 %v7481_v39, %v7481_v39  ;;  %v5656_v14 = vld [vmem:[%s8303_s5 + $0x2c] ss:$0 sm:$0xff] }
0x10b4   :  { %v2473_v24 = vpop.f32.mrf.mxu0 }
0x10b5   :  { %v7485_v26 = vadd.f32 %v2484_v15, %v2473_v24 }
0x10b6   :  { %v6189_v27 = vpop.f32.mrf.mxu0 }
0x10b7   :  { %2736 = vrot.lane.b32.xlu0 %v2732_v32, %s6688_s23  ;;  %2720 = vrot.lane.b32.xlu1 %v7485_v26, %s6688_s23  ;;  %v2733_v49 = vmul.f32 %v7485_v26, %v7485_v26 }
0x10bb   :  { %3014 = vrot.lane.b32.xlu0 %v7123_v45, %s6688_s23  ;;  %2738 = vrot.lane.b32.xlu1 %v2733_v49, %s6688_s23 }
0x10bf   :  { %3023 = vrot.lane.b32.xlu1 %v3021_v52, %s6688_s23 }
0x10ce   :  { %v2608_v42 = vpop.permute.xlu1 %2607 }
0x10cf   :  { %6203 = vmatmul.mubr.msk.bf16.vlgmr.msra.gmra.mxu0 %vm269_vm3, %v2608_v42 }
0x10d0   :  { %6218 = vmatprep.mubr.msk.bf16.mxu0 %vm6683_vm0, %v6682_v0 }
0x10d2   :  { %v2660_v47 = vpop.permute.xlu1 %2659 }
0x1125   :  { %v2719_v7 = vpop.permute.xlu0 %2718 }
0x1126   :  { %v2724_v34 = vsel %vm269_vm3, %v2719_v7, 0.0  ;;  %v84_v7 = vld [vmem:[#allocation3 + $0x170] sm:$0xff] }
0x1129   :  { %v2721_v56 = vpop.permute.xlu1 %2720  ;;  %v2737_v41 = vpop.permute.xlu0 %2736 }
0x112a   :  { %v2727_v57 = vsel %vm886_vm10, %v2721_v56, 0.0  ;;  %v2742_v50 = vsel %vm269_vm3, %v2737_v41, 0.0 }
0x112d   :  { %v2739_v8 = vpop.permute.xlu1 %2738  ;;  %v3015_v21 = vpop.permute.xlu0 %3014 }
0x112e   :  { %v2745_v30 = vsel %vm886_vm10, %v2739_v8, 0.0  ;;  %v3017_v20 = vsel %vm269_vm3, %v3015_v21, 0.0 }
0x1131   :  { %v3024_v16 = vpop.permute.xlu1 %3023 }
0x1132   :  { %v3026_v37 = vsel %vm269_vm3, %v3024_v16, 0.0 }
0x118f   :  { %v2646_v60 = vpop.f32.mrf.mxu0 }
0x1190   :  { %v7503_v46 = vadd.f32 %v2660_v47, %v2646_v60 }
0x1191   :  { %v6204_v54 = vpop.f32.mrf.mxu0 }
0x1192   :  { %2869 = vrot.lane.b32.xlu1 %v7503_v46, %s6688_s23  ;;  %v2883_v23 = vmul.f32 %v7503_v46, %v7503_v46 }
0x1193   :  { %v2649_v25 = vpop.f32.mrf.mxu0 }
0x1194   :  { %v7507_v40 = vadd.f32 %v2660_v47, %v2649_v25 }
0x1195   :  { %v6205_v5 = vpop.f32.mrf.mxu0 }
0x1196   :  { %2871 = vrot.lane.b32.xlu0 %v7507_v40, %s6688_s23  ;;  %v2884_v22 = vmul.f32 %v7507_v40, %v7507_v40 }
0x119a   :  { %2887 = vrot.lane.b32.xlu0 %v2883_v23, %s6688_s23 }
0x11b6   :  { %2728 = vadd.xlane.f32.xlu1 %v2727_v57  ;;  %v85_v57 = vld [vmem:[#allocation3 + $0x178] sm:$0xff] }
0x11b9   :  { %2725 = vadd.xlane.f32.xlu0 %v2724_v34  ;;  %v7557_v34 = vpack.c.bf16 %v85_v57, %v84_v7 }
0x11ba   :  { %3027 = vadd.xlane.f32.xlu1 %v3026_v37 }
0x11bb   :  { %6207 = vmatpush3.bf16.msra.mxu1 %v7557_v34  ;;  %6215 = vmatpush3.bf16.msra.mxu0 %v7557_v34 }
0x11bc   :  { %6208 = vmatprep.subr.bf16.mxu1 %v6682_v0  ;;  %6216 = vmatprep.subr.bf16.mxu0 %v6682_v0 }
0x11bd   :  { %2743 = vadd.xlane.f32.xlu0 %v2742_v50 }
0x11c1   :  { %2746 = vadd.xlane.f32.xlu0 %v2745_v30 }
0x11c5   :  { %3018 = vadd.xlane.f32.xlu0 %v3017_v20 }
0x11cb   :  { %2889 = vrot.lane.b32.xlu1 %v2884_v22, %s6688_s23 }
0x1204   :  { %v2870_v18 = vpop.permute.xlu1 %2869 }
0x1205   :  { %v2875_v36 = vsel %vm269_vm3, %v2870_v18, 0.0 }
0x1206   :  { %2876 = vadd.xlane.f32.xlu1 %v2875_v36 }
0x1208   :  { %v2872_v33 = vpop.permute.xlu0 %2871 }
0x1209   :  { %v2878_v51 = vsel %vm889_vm11, %v2872_v33, 0.0  ;;  %v82_v33 = vld [vmem:[#allocation3 + $0x160] sm:$0xff] }
0x120c   :  { %v2888_v53 = vpop.permute.xlu0 %2887 }
0x120d   :  { %v2893_v9 = vsel %vm269_vm3, %v2888_v53, 0.0  ;;  %v83_v53 = vld [vmem:[#allocation3 + $0x168] sm:$0xff] }
0x120e   :  { %2894 = vadd.xlane.f32.xlu0 %v2893_v9 }
0x1212   :  { %2879 = vadd.xlane.f32.xlu0 %v2878_v51 }
0x1217   :  { %2769 = vrot.lane.b32.xlu1 %v5647_v19, %s6688_s23  ;;  %v7565_v19 = vpack.c.bf16 %v83_v53, %v82_v33 }
0x1219   :  { %6209 = vmatpush3.bf16.msra.mxu1 %v7565_v19  ;;  %6217 = vmatpush3.bf16.msra.mxu0 %v7565_v19 }
0x121a   :  { %6230 = vmatprep.subr.bf16.mxu0 %v6682_v0  ;;  %6222 = vmatprep.subr.bf16.mxu1 %v6682_v0 }
0x121b   :  { %2779 = vrot.lane.b32.xlu1 %v5648_v35, %s6688_s23 }
0x121f   :  { %3042 = vrot.lane.b32.xlu1 %v5655_v31, %s6688_s23 }
0x1228   :  { %709 = vrot.lane.b32.xlu0 %v707_v29, %s6684_s14 }
0x122c   :  { %2920 = vrot.lane.b32.xlu0 %v5651_v55, %s6688_s23 }
0x1230   :  { %2930 = vrot.lane.b32.xlu0 %v5652_v10, %s6688_s23 }
0x123f   :  { %v2729_v43 = vpop.xlane.xlu1 %2728 }
0x1240   :  { %v2731_v52 = vmul.f32 0.03125, %v2729_v43 }
0x1242   :  { %v2726_v24 = vpop.xlane.xlu0 %2725  ;;  %v2751_v54 = vmul.f32 %v2731_v52, %v2731_v52  ;;  %v2757_v30 = vsub.f32 %v7485_v26, %v2731_v52 }
0x1243   :  { %v7550_v12 = vpop.xlane.xlu1 %3027  ;;  %v2730_v27 = vmul.f32 0.03125, %v2726_v24 }
0x1245   :  { %v2750_v60 = vmul.f32 %v2730_v27, %v2730_v27  ;;  %v2756_v21 = vsub.f32 %v7481_v39, %v2730_v27 }
0x1246   :  { %v2744_v32 = vpop.xlane.xlu0 %2743 }
0x1247   :  { %v2890_v15 = vpop.permute.xlu1 %2889  ;;  %v2748_v42 = vmul.f32 0.03125, %v2744_v32 }
0x1248   :  { %v2896_v48 = vsel %vm889_vm11, %v2890_v15, 0.0 }
0x1249   :  { %2897 = vadd.xlane.f32.xlu1 %v2896_v48  ;;  %v2752_v25 = vsub.f32 %v2748_v42, %v2750_v60 }
0x124a   :  { %v2747_v49 = vpop.xlane.xlu0 %2746 }
0x124b   :  { %v2749_v47 = vmul.f32 0.03125, %v2747_v49  ;;  %v2754_v23 = vmax.f32 %v2752_v25, 0.0 }
0x124d   :  { %v2753_v5 = vsub.f32 %v2749_v47, %v2751_v54  ;;  %v2758_v8 = vadd.f32 1e-05, %v2754_v23  ;;  %v3029_v54 = vmul.f32 0.03125, %v7550_v12 }
0x124e   :  { %v3019_v20 = vpop.xlane.xlu0 %3018 }
0x124f   :  { %v2755_v56 = vmax.f32 %v2753_v5, 0.0  ;;  %6547 = vrsqrt.f32 %v2758_v8  ;;  %v3020_v47 = vmul.f32 0.03125, %v3019_v20 }
0x1251   :  { %v2759_v16 = vadd.f32 1e-05, %v2755_v56  ;;  %v3030_v60 = vmul.f32 %v3020_v47, %v3020_v47 }
0x1253   :  { %6549 = vrsqrt.f32 %v2759_v16  ;;  %v3031_v5 = vsub.f32 %v3029_v54, %v3030_v60 }
0x125a   :  { %3051 = vrot.lane.b32.xlu1 %v5656_v14, %s6688_s23 }
0x125c   :  { %v6548_v37 = vpop.eup %6547 }
0x125d   :  { %v2762_v18 = vmul.f32 %v6548_v37, %v2756_v21 }
0x1260   :  { %v6550_v50 = vpop.eup %6549 }
0x1261   :  { %v2763_v36 = vmul.f32 %v6550_v50, %v2757_v30 }
0x128f   :  { %v2877_v41 = vpop.xlane.xlu1 %2876 }
0x1290   :  { %v2881_v25 = vmul.f32 0.03125, %v2877_v41 }
0x1292   :  { %v2901_v56 = vmul.f32 %v2881_v25, %v2881_v25 }
0x1293   :  { %v2770_v22 = vpop.permute.xlu1 %2769 }
0x1294   :  { %v2772_v9 = vmul.f32 %v2770_v22, %v2762_v18  ;;  %v2773_v51 = vmul.f32 %v2770_v22, %v2763_v36  ;;  %v3033_v18 = vsub.f32 %v7123_v45, %v3020_v47 }
0x1297   :  { %v2895_v35 = vpop.xlane.xlu0 %2894  ;;  %v2780_v31 = vpop.permute.xlu1 %2779 }
0x1298   :  { %v2782_v29 = vadd.f32 %v2780_v31, %v2772_v9  ;;  %v2783_v55 = vadd.f32 %v2780_v31, %v2773_v51  ;;  %v2899_v23 = vmul.f32 0.03125, %v2895_v35 }
0x129a   :  { %v2784_v39 = vsub.f32 0.0, %v2782_v29  ;;  %v2785_v26 = vsub.f32 0.0, %v2783_v55  ;;  %v2903_v57 = vsub.f32 %v2899_v23, %v2901_v56 }
0x129b   :  { %v2880_v10 = vpop.xlane.xlu0 %2879  ;;  %v3043_v22 = vpop.permute.xlu1 %3042 }
0x129c   :  { %v2786_v43 = vmul.f32 1.442695, %v2784_v39  ;;  %v2788_v15 = vmul.f32 1.442695, %v2785_v26  ;;  %v2905_v21 = vmax.f32 %v2903_v57, 0.0  ;;  %v2882_v12 = vmul.f32 0.03125, %v2880_v10 }
0x129e   :  { %6551 = vpow2.f32 %v2786_v43  ;;  %v2909_v20 = vadd.f32 1e-05, %v2905_v21  ;;  %v2902_v33 = vmul.f32 %v2882_v12, %v2882_v12 }
0x129f   :  { %6553 = vpow2.f32 %v2788_v15  ;;  %v710_v48 = vpop.permute.xlu0 %709 }
0x12a0   :  { %v712_v14 = vadd.f32 %v710_v48, %v6864_v6  ;;  %v3032_v6 = vmax.f32 %v3031_v5, 0.0 }
0x12a2   :  { %v2664_v24 = vmax.f32 %v712_v14, 0.0  ;;  %v3034_v50 = vadd.f32 1e-05, %v3032_v6 }
0x12a3   :  { %v2921_v39 = vpop.permute.xlu0 %2920 }
0x12a4   :  { %v2665_v32 = vpack.c.bf16 %v2664_v24, %v2664_v24 }
0x12a6   :  { %2667 = vrot.lane.b32.xlu1 %v2665_v32, %s6685_s28 }
0x12a7   :  { %v2931_v45 = vpop.permute.xlu0 %2930 }
0x12ab   :  { %v6552_v27 = vpop.eup %6551 }
0x12ac   :  { %v6554_v49 = vpop.eup %6553  ;;  %v2790_v52 = vadd.f32 1.0, %v6552_v27 }
0x12ad   :  { %v2791_v42 = vadd.f32 1.0, %v6554_v49  ;;  %v2908_v49 = vsub.f32 %v7507_v40, %v2882_v12 }
0x12ae   :  { %6555 = vrcp.f32 %v2790_v52 }
0x12af   :  { %6557 = vrcp.f32 %v2791_v42 }
0x12b0   :  { %6559 = vrsqrt.f32 %v3034_v50  ;;  %v5654_v50 = vld [vmem:[%s8303_s5 + $0x2a] ss:$0 sm:$0xff] }
0x12b1   :  { %6561 = vrsqrt.f32 %v2909_v20 }
0x12bb   :  { %v6556_v8 = vpop.eup %6555 }
0x12bc   :  { %v6558_v7 = vpop.eup %6557  ;;  %v2794_v16 = vmul.f32 %v6556_v8, %v2782_v29  ;;  %v2907_v29 = vsub.f32 %v7503_v46, %v2881_v25 }
0x12bd   :  { %v2795_v37 = vmul.f32 %v6558_v7, %v2783_v55  ;;  %v6560_v41 = vpop.eup %6559 }
0x12be   :  { %v3036_v53 = vmul.f32 %v6560_v41, %v3033_v18  ;;  %v6562_v51 = vpop.eup %6561  ;;  %v5650_v41 = vld [vmem:[%s8303_s5 + $0x27] ss:$0 sm:$0xff] }
0x12bf   :  { %v2796_v30 = vpack.c.bf16 %v2795_v37, %v2794_v16  ;;  %v2913_v15 = vmul.f32 %v6562_v51, %v2907_v29  ;;  %v5658_v37 = vld [vmem:[%s8303_s5 + $0x2d] ss:$0 sm:$0xff]  ;;  %v86_v51 = vld [vmem:[#allocation3 + $0x180] sm:$0xff]  ;;  %v2857_v29 = vsub.s32 0, %v6954_v62  ;;  %v5736_v62 = vld [vmem:[%s8303_s5 + $0x54] ss:$0 sm:$0xff] }
0x12c0   :  { %v3045_v35 = vmul.f32 %v3043_v22, %v3036_v53 }
0x12c1   :  { %2798 = vrot.lane.b32.xlu0 %v2796_v30, %s6688_s23  ;;  %v2923_v24 = vmul.f32 %v2921_v39, %v2913_v15 }
0x12c3   :  { %v2933_v32 = vadd.f32 %v2931_v45, %v2923_v24 }
0x12c5   :  { %v2935_v27 = vsub.f32 0.0, %v2933_v32 }
0x12c7   :  { %v2937_v42 = vmul.f32 1.442695, %v2935_v27  ;;  %v92_v27 = vld [vmem:[#allocation3 + $0x1b0] sm:$0xff] }
0x12d2   :  { %v2898_v36 = vpop.xlane.xlu1 %2897 }
0x12d3   :  { %v2900_v9 = vmul.f32 0.03125, %v2898_v36 }
0x12d5   :  { %v2904_v31 = vsub.f32 %v2900_v9, %v2902_v33  ;;  %v89_v9 = vld [vmem:[#allocation3 + $0x198] sm:$0xff] }
0x12d6   :  { %v3052_v55 = vpop.permute.xlu1 %3051 }
0x12d7   :  { %v2906_v26 = vmax.f32 %v2904_v31, 0.0  ;;  %v3054_v43 = vadd.f32 %v3052_v55, %v3045_v35  ;;  %v87_v31 = vld [vmem:[#allocation3 + $0x188] sm:$0xff] }
0x12d8   :  { %v146_v55 = vpack.c.bf16 %v87_v31, %v86_v51  ;;  %v96_v51 = vld [vmem:[#allocation3 + $0x1d0] sm:$0xff] }
0x12d9   :  { %v2910_v48 = vadd.f32 1e-05, %v2906_v26  ;;  %v3055_v14 = vsub.f32 0.0, %v3054_v43 }
0x12db   :  { %6563 = vrsqrt.f32 %v2910_v48  ;;  %v3056_v10 = vmul.f32 1.442695, %v3055_v14 }
0x12dd   :  { %6565 = vpow2.f32 %v3056_v10 }
0x12de   :  { %6567 = vpow2.f32 %v2937_v42  ;;  %v90_v42 = vld [vmem:[#allocation3 + $0x1a0] sm:$0xff] }
0x12e8   :  { %v6564_v52 = vpop.eup %6563 }
0x12e9   :  { %v2914_v47 = vmul.f32 %v6564_v52, %v2908_v49  ;;  %v93_v49 = vld [vmem:[#allocation3 + $0x1b8] sm:$0xff] }
0x12ea   :  { %v6566_v46 = vpop.eup %6565  ;;  %v149_v52 = vpack.c.bf16 %v93_v49, %v92_v27 }
0x12eb   :  { %v3058_v60 = vadd.f32 1.0, %v6566_v46  ;;  %v2924_v54 = vmul.f32 %v2921_v39, %v2914_v47  ;;  %v6568_v56 = vpop.eup %6567  ;;  %v91_v47 = vld [vmem:[#allocation3 + $0x1a8] sm:$0xff] }
0x12ec   :  { %v2941_v7 = vadd.f32 1.0, %v6568_v56  ;;  %v148_v46 = vpack.c.bf16 %v91_v47, %v90_v42 }
0x12ed   :  { %6569 = vrcp.f32 %v3058_v60  ;;  %v2934_v25 = vadd.f32 %v2931_v45, %v2924_v54 }
0x12ef   :  { %v2936_v5 = vsub.f32 0.0, %v2934_v25 }
0x12f1   :  { %v2939_v23 = vmul.f32 1.442695, %v2936_v5 }
0x12f3   :  { %6571 = vpow2.f32 %v2939_v23 }
0x12f4   :  { %6573 = vrcp.f32 %v2941_v7 }
0x12fa   :  { %v6570_v8 = vpop.eup %6569 }
0x12fb   :  { %v3060_v6 = vmul.f32 %v6570_v8, %v3054_v43 }
0x12fd   :  { %v3061_v57 = vpack.c.bf16 %v3060_v6, %v3060_v6 }
0x12ff   :  { %3063 = vrot.lane.b32.xlu1 %v3061_v57, %s6688_s23 }
0x1300   :  { %v6572_v40 = vpop.eup %6571 }
0x1301   :  { %v2942_v16 = vadd.f32 1.0, %v6572_v40  ;;  %v6574_v30 = vpop.eup %6573 }
0x1302   :  { %v2945_v20 = vmul.f32 %v6574_v30, %v2933_v32 }
0x1303   :  { %6575 = vrcp.f32 %v2942_v16  ;;  %3114 = vrot.lane.b32.xlu1 %v5658_v37, %s6685_s28 }
0x1307   :  { %3001 = vrot.lane.b32.xlu1 %v5654_v50, %s6688_s23 }
0x1310   :  { %v6576_v21 = vpop.eup %6575 }
0x1311   :  { %v2946_v22 = vmul.f32 %v6576_v21, %v2934_v25 }
0x1313   :  { %v2947_v12 = vpack.c.bf16 %v2946_v22, %v2945_v20 }
0x1315   :  { %2949 = vrot.lane.b32.xlu0 %v2947_v12, %s6688_s23 }
0x1318   :  { %v7591_v18 = vpop.permute.xlu1 %2667 }
0x1319   :  { %6211 = vmatmul.mubr.msk.bf16.vlgmr.msra.gmra.mxu1 %vm269_vm3, %v7591_v18  ;;  %2850 = vrot.lane.b32.xlu0 %v5650_v41, %s6684_s14 }
0x131a   :  { %6223 = vmatpush3.bf16.msra.mxu1 %v7557_v34  ;;  %6226 = vmatprep.mubr.msk.bf16.mxu1 %vm6683_vm0, %v6682_v0 }
0x131b   :  { %6224 = vmatprep.subr.bf16.mxu1 %v6682_v0 }
0x131e   :  { %6225 = vmatpush3.bf16.msra.mxu1 %v7565_v19 }
0x131f   :  { %6238 = vmatprep.subr.bf16.mxu1 %v6682_v0 }
0x1333   :  { %v2799_v36 = vpop.permute.xlu0 %2798 }
0x1334   :  { %6219 = vmatmul.mubr.msk.bf16.vlgmr.msra.gmra.mxu0 %vm269_vm3, %v2799_v36 }
0x1335   :  { %6231 = vmatpush3.bf16.msra.mxu0 %v7557_v34  ;;  %6234 = vmatprep.mubr.msk.bf16.mxu0 %vm6683_vm0, %v6682_v0  ;;  %v88_v34 = vld [vmem:[#allocation3 + $0x190] sm:$0xff] }
0x1336   :  { %6232 = vmatprep.subr.bf16.mxu0 %v6682_v0  ;;  %v147_v35 = vpack.c.bf16 %v89_v9, %v88_v34 }
0x1339   :  { %6233 = vmatpush3.bf16.msra.mxu0 %v7565_v19  ;;  %v2712_v19 = vld [vmem:[%s8303_s5 + $0x24] sm:$0x1] }
0x133a   :  { %6246 = vmatprep.subr.bf16.mxu0 %v6682_v0 }
0x1371   :  { %v3064_v33 = vpop.permute.xlu1 %3063 }
0x1372   :  { %6235 = vmatmul.mubr.msk.bf16.vlgmr.msra.gmra.mxu0 %vm269_vm3, %v3064_v33 }
0x1373   :  { %6250 = vmatprep.mubr.msk.bf16.mxu0 %vm6683_vm0, %v6682_v0  ;;  %6247 = vmatpush3.bf16.msra.mxu0 %v149_v52 }
0x1374   :  { %6248 = vmatprep.subr.bf16.mxu0 %v6682_v0 }
0x1375   :  { %v3115_v60 = vpop.permute.xlu1 %3114 }
0x1377   :  { %6249 = vmatpush3.bf16.msra.mxu0 %v148_v46 }
0x1379   :  { %v3002_v40 = vpop.permute.xlu1 %3001 }
0x1387   :  { %v2950_v53 = vpop.permute.xlu0 %2949 }
0x1388   :  { %6227 = vmatmul.mubr.msk.bf16.vlgmr.msra.gmra.mxu1 %vm269_vm3, %v2950_v53 }
0x1389   :  { %6242 = vmatprep.mubr.msk.bf16.mxu1 %vm6683_vm0, %v6682_v0  ;;  %6239 = vmatpush3.bf16.msra.mxu1 %v147_v35  ;;  %v97_v35 = vld [vmem:[#allocation3 + $0x1d8] sm:$0xff] }
0x138a   :  { %6240 = vmatprep.subr.bf16.mxu1 %v6682_v0  ;;  %v151_v31 = vpack.c.bf16 %v97_v35, %v96_v51 }
0x138b   :  { %v2851_v57 = vpop.permute.xlu0 %2850 }
0x138d   :  { %6241 = vmatpush3.bf16.msra.mxu1 %v146_v55  ;;  %v95_v55 = vld [vmem:[#allocation3 + $0x1c8] sm:$0xff] }
0x138e   :  { %6254 = vmatprep.subr.bf16.mxu1 %v6682_v0 }
0x13d9   :  { %v2706_v39 = vpop.f32.mrf.mxu1 }
0x13da   :  { %v2713_v26 = vadd.f32 %v2712_v19, %v2706_v39  ;;  %v94_v19 = vld [vmem:[#allocation3 + $0x1c0] sm:$0xff] }
0x13db   :  { %v6212_v43 = vpop.f32.mrf.mxu1 }
0x13dc   :  { %v2858_v15 = vrot.slane %v2713_v26, %v2857_v29  ;;  %v150_v26 = vpack.c.bf16 %v95_v55, %v94_v19 }
0x13dd   :  { %v2709_v48 = vpop.f32.mrf.mxu1 }
0x13de   :  { %3006 = vrot.lane.b32.xlu1 %v2858_v15, %s6688_s23  ;;  %2860 = vrot.lane.b32.xlu0 %v2858_v15, %s6684_s14  ;;  %v5660_v48 = vld [vmem:[%s8303_s5 + $0x2e] ss:$0 sm:$0xff] }
0x13df   :  { %v6213_v14 = vpop.f32.mrf.mxu1 }
0x13f4   :  { %v2837_v10 = vpop.f32.mrf.mxu0 }
0x13f5   :  { %v2853_v50 = vadd.f32 %v2851_v57, %v2837_v10 }
0x13f6   :  { %v6220_v24 = vpop.f32.mrf.mxu0 }
0x13f8   :  { %v2840_v45 = vpop.f32.mrf.mxu0 }
0x13f9   :  { %v2854_v30 = vadd.f32 %v2851_v57, %v2840_v45 }
0x13fa   :  { %v6221_v32 = vpop.f32.mrf.mxu0 }
0x1432   :  { %v3102_v54 = vpop.f32.mrf.mxu0 }
0x1433   :  { %v3117_v25 = vadd.f32 %v3115_v60, %v3102_v54 }
0x1434   :  { %v6236_v5 = vpop.f32.mrf.mxu0 }
0x1435   :  { %v3118_v23 = vpack.c.bf16 %v3117_v25, %v3117_v25 }
0x1436   :  { %v3105_v56 = vpop.f32.mrf.mxu0 }
0x1437   :  { %3120 = vrot.lane.b32.xlu0 %v3118_v23, %s6684_s14 }
0x1438   :  { %v6237_v8 = vpop.f32.mrf.mxu0 }
0x1448   :  { %v2988_v6 = vpop.f32.mrf.mxu1 }
0x1449   :  { %v3004_v21 = vadd.f32 %v3002_v40, %v2988_v6 }
0x144a   :  { %v6228_v7 = vpop.f32.mrf.mxu1 }
0x144b   :  { %v5665_v7 = vld [vmem:[%s8303_s5 + $0x46] ss:$0 sm:$0xff] }
0x144c   :  { %v2991_v16 = vpop.f32.mrf.mxu1  ;;  %v3319_v57 = vmul.f32 %v5665_v7, %v6963_v3 }
0x144d   :  { %v3005_v20 = vadd.f32 %v3002_v40, %v2991_v16  ;;  %v5666_v40 = vld [vmem:[%s8303_s5 + $0x47] ss:$0 sm:$0xff] }
0x144e   :  { %v6229_v37 = vpop.f32.mrf.mxu1 }
0x144f   :  { %v3307_v37 = vsel %vm265_vm15, %v5665_v7, %v5666_v40 }
0x1450   :  { %v2861_v22 = vpop.permute.xlu0 %2860  ;;  %v3007_v12 = vpop.permute.xlu1 %3006 }
0x1451   :  { %v2863_v41 = vadd.f32 %v2861_v22, %v2853_v50  ;;  %v2864_v36 = vadd.f32 %v2861_v22, %v2854_v30  ;;  %v3009_v33 = vadd.f32 %v3007_v12, %v3004_v21  ;;  %v3010_v53 = vadd.f32 %v3007_v12, %v3005_v20 }
0x1452   :  { %v3317_v30 = vmul.f32 %v5665_v7, %v6961_v2  ;;  %v3320_v12 = vmul.f32 %v3307_v37, %v6976_v11  ;;  %v104_v37 = vld [vmem:[#allocation3 + $0x210] sm:$0xff] }
0x1453   :  { %v3171_v34 = vpack.c.bf16 %v2864_v36, %v2863_v41  ;;  %v3230_v9 = vpack.c.bf16 %v3010_v53, %v3009_v33  ;;  %v3318_v33 = vmul.f32 %v5665_v7, %v6956_v63 }
0x1455   :  { %3173 = vrot.lane.b32.xlu1 %v3171_v34, %s6685_s28  ;;  %3232 = vrot.lane.b32.xlu0 %v3230_v9, %s6688_s23 }
0x14a9   :  { %v3121_v39 = vpop.permute.xlu0 %3120 }
0x14aa   :  { %6243 = vmatmul.mubr.msk.bf16.vlgmr.msra.gmra.mxu1 %vm269_vm3, %v3121_v39  ;;  %v3323_v39 = vmul.f32 %v5666_v40, %v6997_v28 }
0x14ab   :  { %6255 = vmatpush3.bf16.msra.mxu1 %v151_v31  ;;  %6258 = vmatprep.mubr.msk.bf16.mxu1 %vm6683_vm0, %v6682_v0 }
0x14ac   :  { %6256 = vmatprep.subr.bf16.mxu1 %v6682_v0 }
0x14af   :  { %6257 = vmatpush3.bf16.msra.mxu1 %v150_v26 }
0x14c7   :  { %v3174_v43 = vpop.permute.xlu1 %3173  ;;  %v3233_v15 = vpop.permute.xlu0 %3232 }
0x14c8   :  { %6251 = vmatmul.mubr.msk.bf16.vlgmr.msra.gmra.mxu0 %vm269_vm3, %v3174_v43  ;;  %6259 = vmatmul.mubr.msk.bf16.vlgmr.msra.gmra.mxu1 %vm269_vm3, %v3233_v15 }
0x14c9   :  { %6266 = vmatprep.mubr.msk.bf16.mxu0 %vm269_vm3, %v6877_v17 }
0x156a   :  { %v7640_v14 = vpop.f32.mrf.mxu1 }
0x156b   :  { %v3170_v10 = vadd.f32 %v5660_v48, %v7640_v14 }
0x156c   :  { %v6244_v24 = vpop.f32.mrf.mxu1 }
0x156d   :  { %3289 = vst.msk [vmem:[#allocation2] sm:$0xff] %vm269_vm3, %v3170_v10  ;;  %v3321_v10 = vmul.f32 %v5666_v40, %v6980_v13 }
0x156e   :  { %v3162_v45 = vpop.f32.mrf.mxu1 }
0x1570   :  { %v6245_v32 = vpop.f32.mrf.mxu1 }
0x1574   :  { %v3311_v8 = vld [vmem:[#allocation2] sm:$0xff] }
0x1588   :  { %v7644_v27 = vpop.f32.mrf.mxu0  ;;  %v7646_v49 = vpop.f32.mrf.mxu1 }
0x1589   :  { %3290 = vst.msk [vmem:[#allocation2 + $0x8] sm:$0xff] %vm269_vm3, %v7644_v27  ;;  %3292 = vst.msk [vmem:[#allocation2 + $0x14] sm:$0xff] %vm269_vm3, %v7646_v49 }
0x158a   :  { %v6252_v52 = vpop.f32.mrf.mxu0  ;;  %v6260_v42 = vpop.f32.mrf.mxu1 }
0x158b   :  { %v3322_v52 = vmul.f32 %v5666_v40, %v7007_v38 }
0x158c   :  { %v7652_v47 = vpop.f32.mrf.mxu0  ;;  %v7654_v46 = vpop.f32.mrf.mxu1 }
0x158d   :  { %3291 = vst.msk [vmem:[#allocation2 + $0x10] sm:$0xf] %vm886_vm10, %v7652_v47 }
0x158e   :  { %3293 = vst.msk [vmem:[#allocation2 + $0x1c] sm:$0x3] %vm889_vm11, %v7654_v46  ;;  %v6253_v60 = vpop.f32.mrf.mxu0  ;;  %v6261_v54 = vpop.f32.mrf.mxu1 }
0x1590   :  { %v3312_v23 = vld [vmem:[#allocation2 + $0x8] sm:$0xff] }
0x1591   :  { %v3315_v6 = vpack.c.bf16 %v3312_v23, %v3311_v8 }
0x1594   :  { %v3313_v25 = vld [vmem:[#allocation2 + $0x10] sm:$0xff] }
0x1595   :  { %v3314_v5 = vld [vmem:[#allocation2 + $0x18] sm:$0xff] }
0x1596   :  { %v3316_v56 = vpack.c.bf16 %v3314_v5, %v3313_v25 }
0x1598   :  { %6262 = vmatprep.subr.bf16.mxu0 %v3316_v56 }
0x1599   :  { %6263 = vmatpush3.bf16.msra.mxu0 %v3316_v56 }
0x159a   :  { %6264 = vmatprep.subr.bf16.mxu0 %v3315_v6 }
0x159d   :  { %6265 = vmatpush3.bf16.msra.mxu0 %v3315_v6 }
0x15a0   :  { %6267 = vmatmul.mubr.msk.bf16.vlgmr.msra.gmra.mxu0 %vm269_vm3, %v6940_v58 }
0x15a1   :  { %6270 = vmatprep.mubr.msk.bf16.mxu0 %vm269_vm3, %v6942_v59 }
0x15a8   :  { %6271 = vmatmul.mubr.msk.bf16.gmra.mxu0 %vm269_vm3, %v6949_v61 }
0x15a9   :  { %6294 = vmatprep.mubr.msk.bf16.mxu0 %vm1302_vm2, %v7079_v4 }
0x1660   :  { %v6268_v16 = vpop.f32.mrf.mxu0 }
0x1661   :  { %v7677_v50 = vadd.f32 %v6268_v16, %v3319_v57 }
0x1662   :  { %v3358_v21 = vpop.f32.mrf.mxu0 }
0x1663   :  { %v7680_v20 = vadd.f32 %v3358_v21, %v3317_v30  ;;  %v3396_v22 = vsel %vm269_vm3, %v7677_v50, 0.0  ;;  %v3420_v53 = vmul.f32 %v7677_v50, %v7677_v50  ;;  %v105_v30 = vld [vmem:[#allocation3 + $0x218] sm:$0xff] }
0x1664   :  { %3397 = vadd.xlane.f32.xlu0 %v3396_v22  ;;  %v6269_v41 = vpop.f32.mrf.mxu0  ;;  %v7732_v21 = vpack.c.bf16 %v105_v30, %v104_v37  ;;  %v102_v22 = vld [vmem:[#allocation3 + $0x200] sm:$0xff] }
0x1665   :  { %v7685_v36 = vadd.f32 %v6269_v41, %v3320_v12  ;;  %v3390_v1 = vsel %vm269_vm3, %v7680_v20, 0.0  ;;  %v3431_v31 = vsel %vm269_vm3, %v3420_v53, 0.0  ;;  %v3418_v19 = vmul.f32 %v7680_v20, %v7680_v20  ;;  %v103_v12 = vld [vmem:[#allocation3 + $0x208] sm:$0xff] }
0x1666   :  { %v3361_v34 = vpop.f32.mrf.mxu0  ;;  %3391 = vadd.xlane.f32.xlu1 %v3390_v1  ;;  %6274 = vmatprep.subr.bf16.mxu1 %v7732_v21  ;;  %v7736_v41 = vpack.c.bf16 %v103_v12, %v102_v22 }
0x1667   :  { %v7692_v9 = vadd.f32 %v3361_v34, %v3318_v33  ;;  %v3399_v51 = vsel %vm269_vm3, %v7685_v36, 0.0  ;;  %v3421_v43 = vmul.f32 %v7685_v36, %v7685_v36  ;;  %v3425_v24 = vsel %vm269_vm3, %v3418_v19, 0.0  ;;  %6275 = vmatpush3.bf16.msra.mxu1 %v7732_v21 }
0x1668   :  { %3400 = vadd.xlane.f32.xlu0 %v3399_v51  ;;  %v6272_v35 = vpop.f32.mrf.mxu0  ;;  %6276 = vmatprep.subr.bf16.mxu1 %v7736_v41 }
0x1669   :  { %v3393_v26 = vsel %vm269_vm3, %v7692_v9, 0.0  ;;  %v7704_v48 = vadd.f32 %v6272_v35, %v3323_v39  ;;  %v3434_v42 = vsel %vm269_vm3, %v3421_v43, 0.0  ;;  %v3419_v60 = vmul.f32 %v7692_v9, %v7692_v9 }
0x166a   :  { %v3374_v55 = vpop.f32.mrf.mxu0  ;;  %3432 = vadd.xlane.f32.xlu1 %v3431_v31 }
0x166b   :  { %v7708_v32 = vadd.f32 %v3374_v55, %v3321_v10  ;;  %v3408_v25 = vsel %vm1066_vm1, %v7704_v48, 0.0  ;;  %v3428_v5 = vsel %vm269_vm3, %v3419_v60, 0.0  ;;  %v3424_v40 = vmul.f32 %v7704_v48, %v7704_v48  ;;  %6277 = vmatpush3.bf16.msra.mxu1 %v7736_v41 }
0x166c   :  { %v6273_v15 = vpop.f32.mrf.mxu0  ;;  %3394 = vadd.xlane.f32.xlu0 %v3393_v26  ;;  %6298 = vmatprep.subr.bf16.mxu1 %v6682_v0 }
0x166d   :  { %v3422_v23 = vmul.f32 %v7708_v32, %v7708_v32  ;;  %v3402_v56 = vsel %vm269_vm3, %v7708_v32, 0.0  ;;  %v3443_v16 = vsel %vm1066_vm1, %v3424_v40, 0.0 }
0x166e   :  { %v3377_v45 = vpop.f32.mrf.mxu0  ;;  %3426 = vadd.xlane.f32.xlu1 %v3425_v24 }
0x166f   :  { %v7714_v54 = vadd.f32 %v3377_v45, %v3322_v52  ;;  %v3437_v6 = vsel %vm269_vm3, %v3422_v23, 0.0 }
0x1670   :  { %3435 = vadd.xlane.f32.xlu0 %v3434_v42 }
0x1671   :  { %v3423_v8 = vmul.f32 %v7714_v54, %v7714_v54  ;;  %v3405_v57 = vsel %vm269_vm3, %v7714_v54, 0.0 }
0x1672   :  { %3409 = vadd.xlane.f32.xlu1 %v3408_v25 }
0x1673   :  { %v3440_v7 = vsel %vm269_vm3, %v3423_v8, 0.0 }
0x1674   :  { %3429 = vadd.xlane.f32.xlu0 %v3428_v5 }
0x1676   :  { %3403 = vadd.xlane.f32.xlu1 %v3402_v56 }
0x1678   :  { %3438 = vadd.xlane.f32.xlu0 %v3437_v6 }
0x167a   :  { %3441 = vadd.xlane.f32.xlu1 %v3440_v7 }
0x167c   :  { %3406 = vadd.xlane.f32.xlu0 %v3405_v57 }
0x1680   :  { %3444 = vadd.xlane.f32.xlu0 %v3443_v16 }
0x16ed   :  { %v3398_v33 = vpop.xlane.xlu0 %3397 }
0x16ee   :  { %v7741_v53 = vmul.f32 0.03125, %v3398_v33 }
0x16ef   :  { %v3392_v1 = vpop.xlane.xlu1 %3391 }
0x16f0   :  { %v3455_v35 = vmul.f32 %v7741_v53, %v7741_v53  ;;  %v3411_v31 = vmul.f32 0.03125, %v3392_v1 }
0x16f1   :  { %v3401_v34 = vpop.xlane.xlu0 %3400 }
0x16f2   :  { %v3414_v39 = vmul.f32 0.03125, %v3401_v34  ;;  %v3453_v15 = vmul.f32 %v3411_v31, %v3411_v31 }
0x16f3   :  { %v3433_v51 = vpop.xlane.xlu1 %3432 }
0x16f4   :  { %v3448_v19 = vmul.f32 0.03125, %v3433_v51  ;;  %v3456_v52 = vmul.f32 %v3414_v39, %v3414_v39 }
0x16f5   :  { %v3395_v55 = vpop.xlane.xlu0 %3394 }
0x16f6   :  { %v3462_v26 = vsub.f32 %v3448_v19, %v3455_v35  ;;  %v3412_v5 = vmul.f32 0.03125, %v3395_v55 }
0x16f7   :  { %v3427_v43 = vpop.xlane.xlu1 %3426 }
0x16f8   :  { %v3469_v10 = vmax.f32 %v3462_v26, 0.0  ;;  %v3446_v24 = vmul.f32 0.03125, %v3427_v43  ;;  %v3454_v40 = vmul.f32 %v3412_v5, %v3412_v5 }
0x16f9   :  { %v3436_v45 = vpop.xlane.xlu0 %3435 }
0x16fa   :  { %v3460_v42 = vsub.f32 %v3446_v24, %v3453_v15  ;;  %v3449_v60 = vmul.f32 0.03125, %v3436_v45  ;;  %v3483_v25 = vadd.f32 1e-05, %v3469_v10 }
0x16fb   :  { %v3410_v23 = vpop.xlane.xlu1 %3409 }
0x16fc   :  { %v3467_v56 = vmax.f32 %v3460_v42, 0.0  ;;  %v3463_v8 = vsub.f32 %v3449_v60, %v3456_v52  ;;  %6577 = vrsqrt.f32 %v3483_v25  ;;  %v3417_v43 = vmul.f32 0.03125, %v3410_v23 }
0x16fd   :  { %v3430_v6 = vpop.xlane.xlu0 %3429  ;;  %v3476_v23 = vsub.f32 %v7677_v50, %v7741_v53 }
0x16fe   :  { %v3481_v7 = vadd.f32 1e-05, %v3467_v56  ;;  %v3470_v57 = vmax.f32 %v3463_v8, 0.0  ;;  %v3447_v16 = vmul.f32 0.03125, %v3430_v6  ;;  %v3459_v60 = vmul.f32 %v3417_v43, %v3417_v43 }
0x16ff   :  { %v3404_v37 = vpop.xlane.xlu1 %3403 }
0x1700   :  { %6579 = vrsqrt.f32 %v3481_v7  ;;  %v3484_v30 = vadd.f32 1e-05, %v3470_v57  ;;  %v3415_v22 = vmul.f32 0.03125, %v3404_v37  ;;  %v3461_v12 = vsub.f32 %v3447_v16, %v3454_v40 }
0x1701   :  { %v3439_v33 = vpop.xlane.xlu0 %3438  ;;  %v3474_v40 = vsub.f32 %v7680_v20, %v3411_v31  ;;  %v3477_v16 = vsub.f32 %v7685_v36, %v3414_v39  ;;  %v3475_v20 = vsub.f32 %v7692_v9, %v3412_v5  ;;  %v5672_v36 = vld [vmem:[%s8303_s5 + $0x30] ss:$0 sm:$0xff] }
0x1702   :  { %6581 = vrsqrt.f32 %v3484_v30  ;;  %v3457_v1 = vmul.f32 %v3415_v22, %v3415_v22  ;;  %v3450_v34 = vmul.f32 0.03125, %v3439_v33  ;;  %v3468_v51 = vmax.f32 %v3461_v12, 0.0 }
0x1703   :  { %v3442_v55 = vpop.xlane.xlu1 %3441 }
0x1704   :  { %v3464_v35 = vsub.f32 %v3450_v34, %v3457_v1  ;;  %v3482_v19 = vadd.f32 1e-05, %v3468_v51  ;;  %v3451_v45 = vmul.f32 0.03125, %v3442_v55  ;;  %v3478_v55 = vsub.f32 %v7708_v32, %v3415_v22 }
0x1705   :  { %v3407_v26 = vpop.xlane.xlu0 %3406 }
0x1706   :  { %v3471_v15 = vmax.f32 %v3464_v35, 0.0  ;;  %v3416_v10 = vmul.f32 0.03125, %v3407_v26  ;;  %6583 = vrsqrt.f32 %v3482_v19  ;;  %v5671_v35 = vld [vmem:[%s8303_s5 + $0x2f] ss:$0 sm:$0xff] }
0x1708   :  { %v3485_v24 = vadd.f32 1e-05, %v3471_v15  ;;  %v3458_v52 = vmul.f32 %v3416_v10, %v3416_v10  ;;  %v3479_v5 = vsub.f32 %v7714_v54, %v3416_v10 }
0x1709   :  { %v3445_v42 = vpop.xlane.xlu0 %3444  ;;  %v6578_v8 = vpop.eup %6577 }
0x170a   :  { %6585 = vrsqrt.f32 %v3485_v24  ;;  %v3465_v25 = vsub.f32 %v3451_v45, %v3458_v52  ;;  %v3452_v56 = vmul.f32 0.03125, %v3445_v42  ;;  %v3497_v1 = vmul.f32 %v6578_v8, %v3476_v23 }
0x170c   :  { %v3472_v6 = vmax.f32 %v3465_v25, 0.0  ;;  %v3466_v7 = vsub.f32 %v3452_v56, %v3459_v60  ;;  %v3508_v53 = vmul.f32 %v5671_v35, %v3497_v1 }
0x170d   :  { %v6580_v57 = vpop.eup %6579 }
0x170e   :  { %v3486_v37 = vadd.f32 1e-05, %v3472_v6  ;;  %v3473_v30 = vmax.f32 %v3466_v7, 0.0  ;;  %v3495_v33 = vmul.f32 %v6580_v57, %v3474_v40  ;;  %v3519_v52 = vadd.f32 %v5672_v36, %v3508_v53 }
0x170f   :  { %v6582_v12 = vpop.eup %6581  ;;  %v3480_v40 = vsub.f32 %v7704_v48, %v3417_v43 }
0x1710   :  { %6587 = vrsqrt.f32 %v3486_v37  ;;  %v3487_v34 = vadd.f32 1e-05, %v3473_v30  ;;  %v3498_v51 = vmul.f32 %v6582_v12, %v3477_v16  ;;  %v3506_v31 = vmul.f32 %v5671_v35, %v3495_v33 }
0x1711   :  { %v3526_v8 = vmax.f32 %v3519_v52, 0.0 }
0x1712   :  { %6589 = vrsqrt.f32 %v3487_v34  ;;  %v3509_v19 = vmul.f32 %v5671_v35, %v3498_v51  ;;  %v3517_v45 = vadd.f32 %v5672_v36, %v3506_v31  ;;  %v5677_v31 = vld [vmem:[%s8303_s5 + $0x31] ss:$0 sm:$0xff] }
0x1713   :  { %v6584_v50 = vpop.eup %6583 }
0x1714   :  { %v3496_v39 = vmul.f32 %v6584_v50, %v3475_v20  ;;  %v3520_v26 = vadd.f32 %v5672_v36, %v3509_v19  ;;  %v3524_v56 = vmax.f32 %v3517_v45, 0.0 }
0x1716   :  { %v3507_v24 = vmul.f32 %v5671_v35, %v3496_v39  ;;  %v3527_v25 = vmax.f32 %v3520_v26, 0.0 }
0x1717   :  { %v6586_v15 = vpop.eup %6585 }
0x1718   :  { %v3499_v42 = vmul.f32 %v6586_v15, %v3478_v55  ;;  %v3518_v60 = vadd.f32 %v5672_v36, %v3507_v24  ;;  %v3532_v32 = vpack.c.bf16 %v3527_v25, %v3526_v8 }
0x171a   :  { %v3525_v9 = vmax.f32 %v3518_v60, 0.0  ;;  %v3510_v6 = vmul.f32 %v5671_v35, %v3499_v42 }
0x171c   :  { %v3531_v57 = vpack.c.bf16 %v3525_v9, %v3524_v56  ;;  %v3521_v37 = vadd.f32 %v5672_v36, %v3510_v6 }
0x171d   :  { %v6588_v7 = vpop.eup %6587 }
0x171e   :  { %v3500_v23 = vmul.f32 %v6588_v7, %v3479_v5  ;;  %6278 = vmatprep.mubr.msk.bf16.mxu1 %vm269_vm3, %v3531_v57  ;;  %v3528_v10 = vmax.f32 %v3521_v37, 0.0 }
0x171f   :  { %v6590_v22 = vpop.eup %6589  ;;  %6279 = vmatmul.mubr.msk.bf16.vlgmr.msra.gmra.mxu1 %vm269_vm3, %v3532_v32 }
0x1720   :  { %v3511_v16 = vmul.f32 %v5671_v35, %v3500_v23  ;;  %v3501_v30 = vmul.f32 %v6590_v22, %v3480_v40  ;;  %6299 = vmatpush3.bf16.msra.mxu1 %v7732_v21 }
0x1721   :  { %6300 = vmatprep.subr.bf16.mxu1 %v6682_v0 }
0x1722   :  { %v3522_v12 = vadd.f32 %v5672_v36, %v3511_v16  ;;  %v3512_v54 = vmul.f32 %v5671_v35, %v3501_v30 }
0x1724   :  { %v3529_v33 = vmax.f32 %v3522_v12, 0.0  ;;  %v3523_v1 = vadd.f32 %v5672_v36, %v3512_v54  ;;  %6301 = vmatpush3.bf16.msra.mxu1 %v7736_v41 }
0x1725   :  { %6314 = vmatprep.subr.bf16.mxu1 %v6682_v0 }
0x1726   :  { %v3533_v48 = vpack.c.bf16 %v3529_v33, %v3528_v10  ;;  %v3530_v43 = vmax.f32 %v3523_v1, 0.0 }
0x1728   :  { %6282 = vmatprep.mubr.msk.bf16.mxu1 %vm269_vm3, %v3533_v48  ;;  %v3534_v34 = vpack.c.bf16 %v3530_v43, %v3530_v43  ;;  %v5680_v48 = vld [vmem:[%s8303_s5 + $0x32] ss:$0 sm:$0xff] }
0x172a   :  { %6283 = vmatmul.mubr.msk.bf16.gmra.mxu1 %vm269_vm3, %v3534_v34  ;;  %v5681_v34 = vld [vmem:[%s8303_s5 + $0x33] ss:$0 sm:$0xff] }
0x172b   :  { %6302 = vmatprep.mubr.msk.bf16.mxu1 %vm6683_vm0, %v6682_v0 }
0x17df   :  { %v6280_v51 = vpop.f32.mrf.mxu1 }
0x17e0   :  { %v3618_v42 = vadd.f32 %v6280_v51, %v5677_v31 }
0x17e1   :  { %v3581_v35 = vpop.f32.mrf.mxu1 }
0x17e2   :  { %v3616_v9 = vadd.f32 %v5677_v31, %v3581_v35 }
0x17e3   :  { %v6281_v19 = vpop.f32.mrf.mxu1 }
0x17e4   :  { %v3619_v24 = vadd.f32 %v6281_v19, %v5677_v31 }
0x17e5   :  { %v3584_v20 = vpop.f32.mrf.mxu1 }
0x17e6   :  { %v3624_v25 = vpack.c.bf16 %v3619_v24, %v3618_v42  ;;  %v3617_v56 = vadd.f32 %v5677_v31, %v3584_v20 }
0x17e8   :  { %v3623_v5 = vpack.c.bf16 %v3617_v56, %v3616_v9  ;;  %v98_v56 = vld [vmem:[#allocation3 + $0x1e0] sm:$0xff] }
0x17ea   :  { %v6284_v50 = vpop.f32.mrf.mxu1 }
0x17eb   :  { %v3622_v53 = vadd.f32 %v6284_v50, %v5677_v31 }
0x17ec   :  { %v3597_v36 = vpop.f32.mrf.mxu1 }
0x17ed   :  { %v3626_v39 = vpack.c.bf16 %v3622_v53, %v3622_v53  ;;  %v3620_v45 = vadd.f32 %v5677_v31, %v3597_v36  ;;  %v5685_v36 = vld [vmem:[%s8303_s5 + $0x35] ss:$0 sm:$0xff] }
0x17ee   :  { %v6285_v55 = vpop.f32.mrf.mxu1 }
0x17ef   :  { %v3628_v26 = vsel %vm1309_vm4, %v3626_v39, 0  ;;  %6469 = vmatprep.subr.msk.bf16.mxu0 %vm1309_vm4, %v3626_v39 }
0x17f0   :  { %v3600_v15 = vpop.f32.mrf.mxu1  ;;  %6287 = vmatpush3.bf16.msra.mxu0 %v3628_v26 }
0x17f1   :  { %v3621_v52 = vadd.f32 %v5677_v31, %v3600_v15 }
0x17f3   :  { %v3625_v60 = vpack.c.bf16 %v3621_v52, %v3620_v45  ;;  %v5664_v45 = vld [vmem:[%s8303_s5 + $0x3e] ss:$0 sm:$0xff] }
0x17f5   :  { %6288 = vmatprep.subr.bf16.mxu0 %v3625_v60 }
0x17f6   :  { %6289 = vmatpush3.bf16.msra.mxu0 %v3625_v60  ;;  %v100_v60 = vld [vmem:[#allocation3 + $0x1f0] sm:$0xff] }
0x17f7   :  { %6290 = vmatprep.subr.bf16.mxu0 %v3624_v25 }
0x17fa   :  { %6291 = vmatpush3.bf16.msra.mxu0 %v3624_v25  ;;  %v101_v25 = vld [vmem:[#allocation3 + $0x1f8] sm:$0xff] }
0x17fb   :  { %6292 = vmatprep.subr.bf16.mxu0 %v3623_v5  ;;  %v153_v9 = vpack.c.bf16 %v101_v25, %v100_v60 }
0x17fe   :  { %6293 = vmatpush3.bf16.msra.mxu0 %v3623_v5  ;;  %v99_v5 = vld [vmem:[#allocation3 + $0x1e8] sm:$0xff] }
0x17ff   :  { %6306 = vmatprep.subr.bf16.mxu0 %v6682_v0 }
0x1801   :  { %6295 = vmatmul.mubr.msk.bf16.vlgmr.msra.gmra.mxu0 %vm1302_vm2, %v7088_v44 }
0x1802   :  { %6307 = vmatpush3.bf16.msra.mxu0 %v7732_v21  ;;  %6310 = vmatprep.mubr.msk.bf16.mxu0 %vm6683_vm0, %v6682_v0  ;;  %v5683_v21 = vld [vmem:[%s8303_s5 + $0x34] ss:$0 sm:$0xff] }
0x1803   :  { %6308 = vmatprep.subr.bf16.mxu0 %v6682_v0 }
0x1806   :  { %6309 = vmatpush3.bf16.msra.mxu0 %v7736_v41 }
0x18c1   :  { %v6296_v8 = vpop.f32.mrf.mxu0 }
0x18c2   :  { %v152_v8 = vpack.c.bf16 %v99_v5, %v98_v56 }
0x18c3   :  { %v3664_v6 = vpop.f32.mrf.mxu0 }
0x18c4   :  { %v3682_v7 = vmul.f32 %v3664_v6, %v3664_v6  ;;  %v3678_v57 = vsel %vm269_vm3, %v3664_v6, 0.0 }
0x18c5   :  { %3679 = vadd.xlane.f32.xlu1 %v3678_v57  ;;  %v6297_v40 = vpop.f32.mrf.mxu0 }
0x18c6   :  { %v3683_v23 = vsel %vm269_vm3, %v3682_v7, 0.0 }
0x18c7   :  { %3684 = vadd.xlane.f32.xlu0 %v3683_v23  ;;  %v3667_v32 = vpop.f32.mrf.mxu0 }
0x18d6   :  { %3755 = vrot.lane.b32.xlu1 %v5683_v21, %s6684_s14 }
0x18da   :  { %3813 = vrot.lane.b32.xlu1 %v5685_v36, %s6688_s23 }
0x194e   :  { %v3680_v22 = vpop.xlane.xlu1 %3679 }
0x194f   :  { %v3681_v16 = vmul.f32 0.03125, %v3680_v22 }
0x1950   :  { %v3685_v41 = vpop.xlane.xlu0 %3684 }
0x1951   :  { %v3687_v37 = vmul.f32 %v3681_v16, %v3681_v16  ;;  %v3686_v30 = vmul.f32 0.03125, %v3685_v41  ;;  %v3690_v33 = vsub.f32 %v3664_v6, %v3681_v16  ;;  %v5662_v16 = vld [vmem:[%s8303_s5 + $0x36] ss:$0 sm:$0xff] }
0x1952   :  { %v3756_v31 = vpop.permute.xlu1 %3755  ;;  %v108_v41 = vld [vmem:[#allocation3 + $0x230] sm:$0xff] }
0x1953   :  { %v3688_v12 = vsub.f32 %v3686_v30, %v3687_v37  ;;  %v109_v37 = vld [vmem:[#allocation3 + $0x238] sm:$0xff]  ;;  %v106_v30 = vld [vmem:[#allocation3 + $0x220] sm:$0xff] }
0x1955   :  { %v3689_v54 = vmax.f32 %v3688_v12, 0.0  ;;  %v7819_v12 = vpack.c.bf16 %v109_v37, %v108_v41 }
0x1956   :  { %v3814_v7 = vpop.permute.xlu1 %3813 }
0x1957   :  { %v3691_v10 = vadd.f32 1e-05, %v3689_v54  ;;  %v107_v54 = vld [vmem:[#allocation3 + $0x228] sm:$0xff] }
0x1959   :  { %6591 = vrsqrt.f32 %v3691_v10 }
0x1966   :  { %v6592_v1 = vpop.eup %6591 }
0x1967   :  { %v3693_v43 = vmul.f32 %v6592_v1, %v3690_v33  ;;  %v7821_v33 = vpack.c.bf16 %v107_v54, %v106_v30 }
0x1969   :  { %v3698_v51 = vmul.f32 %v5680_v48, %v3693_v43 }
0x196b   :  { %v3703_v35 = vadd.f32 %v5681_v34, %v3698_v51 }
0x196d   :  { %v3704_v19 = vpack.c.bf16 %v3703_v35, %v3703_v35 }
0x196f   :  { %6303 = vmatmul.mubr.msk.bf16.vlgmr.msra.gmra.mxu1 %vm269_vm3, %v3704_v19 }
0x1970   :  { %6318 = vmatprep.mubr.msk.bf16.mxu1 %vm6683_vm0, %v6682_v0  ;;  %6315 = vmatpush3.bf16.msra.mxu1 %v153_v9 }
0x1971   :  { %6316 = vmatprep.subr.bf16.mxu1 %v6682_v0 }
0x1974   :  { %6317 = vmatpush3.bf16.msra.mxu1 %v152_v8 }
0x1975   :  { %6334 = vmatprep.subr.bf16.mxu1 %v7819_v12 }
0x1a2f   :  { %v3742_v20 = vpop.f32.mrf.mxu1 }
0x1a30   :  { %v3748_v50 = vadd.f32 %v3742_v20, %v7640_v14 }
0x1a31   :  { %v6304_v53 = vpop.f32.mrf.mxu1 }
0x1a32   :  { %v3758_v39 = vadd.f32 %v3756_v31, %v3748_v50 }
0x1a33   :  { %v3745_v55 = vpop.f32.mrf.mxu1 }
0x1a34   :  { %v3759_v26 = vmax.f32 %v3758_v39, 0.0 }
0x1a35   :  { %v6305_v15 = vpop.f32.mrf.mxu1 }
0x1a36   :  { %v3760_v24 = vpack.c.bf16 %v3759_v26, %v3759_v26 }
0x1a38   :  { %3762 = vrot.lane.b32.xlu0 %v3760_v24, %s6685_s28 }
0x1a3c   :  { %3284 = vrot.lane.b32.xlu0 %v5664_v45, %s6684_s14  ;;  %v5687_v45 = vld [vmem:[%s8303_s5 + $0x48] ss:$0 sm:$0xff] }
0x1a3d   :  { %v3896_v60 = vmul.f32 %v5687_v45, %v6961_v2  ;;  %v3899_v5 = vmul.f32 %v5687_v45, %v6976_v11  ;;  %v3902_v30 = vmul.f32 %v5687_v45, %v6997_v28 }
0x1aaa   :  { %v3763_v14 = vpop.permute.xlu0 %3762 }
0x1aab   :  { %6311 = vmatmul.mubr.msk.bf16.vlgmr.msra.gmra.mxu0 %vm269_vm3, %v3763_v14  ;;  %v3898_v14 = vmul.f32 %v5687_v45, %v6963_v3 }
0x1aac   :  { %6326 = vmatprep.mubr.msk.bf16.mxu0 %vm269_vm3, %v6877_v17 }
0x1aae   :  { %v3285_v52 = vpop.permute.xlu0 %3284 }
0x1aaf   :  { %v3287_v42 = vadd.f32 %v3285_v52, %v7646_v49  ;;  %v3288_v34 = vadd.f32 %v3285_v52, %v7654_v46 }
0x1ab1   :  { %3876 = vrot.lane.b32.xlu0 %v3287_v42, %s6685_s28 }
0x1b23   :  { %v3877_v6 = vpop.permute.xlu0 %3876 }
0x1b24   :  { %3882 = vst.msk [vmem:[#allocation2 + $0x14] sm:$0xff] %vm269_vm3, %v3877_v6 }
0x1b6b   :  { %v3801_v57 = vpop.f32.mrf.mxu0 }
0x1b6c   :  { %v3816_v40 = vadd.f32 %v3814_v7, %v3801_v57  ;;  %v3897_v7 = vmul.f32 %v5687_v45, %v6956_v63 }
0x1b6d   :  { %v6312_v23 = vpop.f32.mrf.mxu0 }
0x1b6e   :  { %v3817_v32 = vpack.c.bf16 %v3816_v40, %v3816_v40 }
0x1b6f   :  { %v3804_v21 = vpop.f32.mrf.mxu0 }
0x1b70   :  { %3819 = vrot.lane.b32.xlu1 %v3817_v32, %s6688_s23 }
0x1b71   :  { %v6313_v22 = vpop.f32.mrf.mxu0 }
0x1b74   :  { %3225 = vrot.lane.b32.xlu1 %v5662_v16, %s6684_s14 }
0x1be2   :  { %v3820_v10 = vpop.permute.xlu1 %3819 }
0x1be3   :  { %6319 = vmatmul.mubr.msk.bf16.vlgmr.msra.gmra.mxu1 %vm269_vm3, %v3820_v10 }
0x1be4   :  { %6335 = vmatpush3.bf16.msra.mxu1 %v7819_v12 }
0x1be5   :  { %6336 = vmatprep.subr.bf16.mxu1 %v7821_v33 }
0x1be6   :  { %v3226_v1 = vpop.permute.xlu1 %3225 }
0x1be7   :  { %v3228_v48 = vadd.f32 %v3226_v1, %v7644_v27  ;;  %v3229_v43 = vadd.f32 %v3226_v1, %v7652_v47 }
0x1be8   :  { %6337 = vmatpush3.bf16.msra.mxu1 %v7821_v33 }
0x1be9   :  { %3868 = vrot.lane.b32.xlu1 %v3229_v43, %s6685_s28  ;;  %3866 = vrot.lane.b32.xlu0 %v3228_v48, %s6685_s28  ;;  %v3900_v43 = vmul.f32 %v5687_v45, %v6980_v13 }
0x1bed   :  { %3878 = vrot.lane.b32.xlu1 %v3288_v34, %s6685_s28 }
0x1c5b   :  { %v3869_v51 = vpop.permute.xlu1 %3868  ;;  %v3867_v35 = vpop.permute.xlu0 %3866 }
0x1c5c   :  { %3873 = vst.msk [vmem:[#allocation2 + $0x10] sm:$0xf] %vm886_vm10, %v3869_v51 }
0x1c5d   :  { %3872 = vst.msk [vmem:[#allocation2 + $0x8] sm:$0xff] %vm269_vm3, %v3867_v35 }
0x1c5f   :  { %v3879_v19 = vpop.permute.xlu1 %3878 }
0x1c60   :  { %3883 = vst.msk [vmem:[#allocation2 + $0x1c] sm:$0x3] %vm889_vm11, %v3879_v19  ;;  %v3901_v19 = vmul.f32 %v5687_v45, %v7007_v38 }
0x1c63   :  { %v3888_v20 = vld [vmem:[#allocation2 + $0x10] sm:$0xff] }
0x1c64   :  { %v7846_v15 = vld [vmem:[#allocation2 + $0x8] sm:$0xff] }
0x1c67   :  { %v3889_v31 = vld [vmem:[#allocation2 + $0x18] sm:$0xff] }
0x1c68   :  { %v7837_v50 = vpack.c.bf16 %v3889_v31, %v3888_v20 }
0x1c6a   :  { %6322 = vmatprep.subr.bf16.mxu0 %v7837_v50  ;;  %6358 = vmatprep.subr.bf16.mxu1 %v7837_v50 }
0x1c6b   :  { %6323 = vmatpush3.bf16.msra.mxu0 %v7837_v50 }
0x1ca3   :  { %v7842_v53 = vpop.f32.mrf.mxu1 }
0x1ca4   :  { %3884 = vst.msk [vmem:[#allocation2] sm:$0xff] %vm269_vm3, %v7842_v53 }
0x1ca5   :  { %v6320_v36 = vpop.f32.mrf.mxu1 }
0x1ca7   :  { %v3861_v39 = vpop.f32.mrf.mxu1 }
0x1ca9   :  { %v6321_v55 = vpop.f32.mrf.mxu1 }
0x1cab   :  { %v3886_v26 = vld [vmem:[#allocation2] sm:$0xff] }
0x1cac   :  { %v3890_v24 = vpack.c.bf16 %v7846_v15, %v3886_v26 }
0x1cae   :  { %6324 = vmatprep.subr.bf16.mxu0 %v3890_v24 }
0x1caf   :  { %6325 = vmatpush3.bf16.msra.mxu0 %v3890_v24 }
0x1cb2   :  { %6327 = vmatmul.mubr.msk.bf16.vlgmr.msra.gmra.mxu0 %vm269_vm3, %v6940_v58 }
0x1cb3   :  { %6330 = vmatprep.mubr.msk.bf16.mxu0 %vm269_vm3, %v6942_v59 }
0x1cba   :  { %6331 = vmatmul.mubr.msk.bf16.gmra.mxu0 %vm269_vm3, %v6949_v61 }
0x1cbb   :  { %6354 = vmatprep.mubr.msk.bf16.mxu0 %vm1302_vm2, %v7079_v4 }
0x1d72   :  { %v6328_v52 = vpop.f32.mrf.mxu0 }
0x1d73   :  { %v7861_v42 = vadd.f32 %v6328_v52, %v3898_v14 }
0x1d74   :  { %v3937_v25 = vpop.f32.mrf.mxu0 }
0x1d75   :  { %v7864_v56 = vadd.f32 %v3937_v25, %v3896_v60  ;;  %v3975_v9 = vsel %vm269_vm3, %v7861_v42, 0.0  ;;  %v3999_v40 = vmul.f32 %v7861_v42, %v7861_v42 }
0x1d76   :  { %3976 = vadd.xlane.f32.xlu0 %v3975_v9  ;;  %v6329_v8 = vpop.f32.mrf.mxu0 }
0x1d77   :  { %v7869_v6 = vadd.f32 %v6329_v8, %v3899_v5  ;;  %v3969_v57 = vsel %vm269_vm3, %v7864_v56, 0.0  ;;  %v4010_v16 = vsel %vm269_vm3, %v3999_v40, 0.0  ;;  %v3997_v41 = vmul.f32 %v7864_v56, %v7864_v56 }
0x1d78   :  { %v3940_v23 = vpop.f32.mrf.mxu0  ;;  %3970 = vadd.xlane.f32.xlu1 %v3969_v57 }
0x1d79   :  { %v7876_v32 = vadd.f32 %v3940_v23, %v3897_v7  ;;  %v3978_v21 = vsel %vm269_vm3, %v7869_v6, 0.0  ;;  %v4000_v10 = vmul.f32 %v7869_v6, %v7869_v6  ;;  %v4004_v34 = vsel %vm269_vm3, %v3997_v41, 0.0 }
0x1d7a   :  { %3979 = vadd.xlane.f32.xlu0 %v3978_v21  ;;  %v6332_v22 = vpop.f32.mrf.mxu0 }
0x1d7b   :  { %v3972_v54 = vsel %vm269_vm3, %v7876_v32, 0.0  ;;  %v7888_v48 = vadd.f32 %v6332_v22, %v3902_v30  ;;  %v4013_v20 = vsel %vm269_vm3, %v4000_v10, 0.0  ;;  %v3998_v31 = vmul.f32 %v7876_v32, %v7876_v32 }
0x1d7c   :  { %v3953_v37 = vpop.f32.mrf.mxu0  ;;  %4011 = vadd.xlane.f32.xlu1 %v4010_v16 }
0x1d7d   :  { %v7892_v35 = vadd.f32 %v3953_v37, %v3900_v43  ;;  %v3987_v39 = vsel %vm1066_vm1, %v7888_v48, 0.0  ;;  %v4007_v55 = vsel %vm269_vm3, %v3998_v31, 0.0  ;;  %v4003_v25 = vmul.f32 %v7888_v48, %v7888_v48 }
0x1d7e   :  { %v6333_v1 = vpop.f32.mrf.mxu0  ;;  %3973 = vadd.xlane.f32.xlu0 %v3972_v54 }
0x1d7f   :  { %v4001_v26 = vmul.f32 %v7892_v35, %v7892_v35  ;;  %v3981_v24 = vsel %vm269_vm3, %v7892_v35, 0.0  ;;  %v4022_v9 = vsel %vm1066_vm1, %v4003_v25, 0.0 }
0x1d80   :  { %v3956_v51 = vpop.f32.mrf.mxu0  ;;  %4005 = vadd.xlane.f32.xlu1 %v4004_v34 }
0x1d81   :  { %v7898_v36 = vadd.f32 %v3956_v51, %v3901_v19  ;;  %v4016_v14 = vsel %vm269_vm3, %v4001_v26, 0.0 }
0x1d82   :  { %4014 = vadd.xlane.f32.xlu0 %v4013_v20 }
0x1d83   :  { %v4002_v45 = vmul.f32 %v7898_v36, %v7898_v36  ;;  %v3984_v60 = vsel %vm269_vm3, %v7898_v36, 0.0 }
0x1d84   :  { %3988 = vadd.xlane.f32.xlu1 %v3987_v39 }
0x1d85   :  { %v4019_v52 = vsel %vm269_vm3, %v4002_v45, 0.0 }
0x1d86   :  { %4008 = vadd.xlane.f32.xlu0 %v4007_v55 }
0x1d88   :  { %3982 = vadd.xlane.f32.xlu1 %v3981_v24 }
0x1d8a   :  { %4017 = vadd.xlane.f32.xlu0 %v4016_v14 }
0x1d8c   :  { %4020 = vadd.xlane.f32.xlu1 %v4019_v52 }
0x1d8e   :  { %3985 = vadd.xlane.f32.xlu0 %v3984_v60 }
0x1d92   :  { %4023 = vadd.xlane.f32.xlu0 %v4022_v9 }
0x1d9d   :  { %4257 = vrot.lane.b32.xlu1 %v7842_v53, %s6685_s28 }
0x1dff   :  { %v3977_v5 = vpop.xlane.xlu0 %3976 }
0x1e00   :  { %v7918_v7 = vmul.f32 0.03125, %v3977_v5 }
0x1e01   :  { %v3971_v8 = vpop.xlane.xlu1 %3970 }
0x1e02   :  { %v4034_v23 = vmul.f32 %v7918_v7, %v7918_v7  ;;  %v7922_v21 = vmul.f32 0.03125, %v3971_v8 }
0x1e03   :  { %v3980_v57 = vpop.xlane.xlu0 %3979 }
0x1e04   :  { %v3993_v41 = vmul.f32 0.03125, %v3980_v57  ;;  %v4032_v54 = vmul.f32 %v7922_v21, %v7922_v21 }
0x1e05   :  { %v4012_v40 = vpop.xlane.xlu1 %4011 }
0x1e06   :  { %v4027_v22 = vmul.f32 0.03125, %v4012_v40  ;;  %v4035_v43 = vmul.f32 %v3993_v41, %v3993_v41 }
0x1e07   :  { %v3974_v16 = vpop.xlane.xlu0 %3973 }
0x1e08   :  { %v4041_v37 = vsub.f32 %v4027_v22, %v4034_v23  ;;  %v3991_v20 = vmul.f32 0.03125, %v3974_v16 }
0x1e09   :  { %v4006_v30 = vpop.xlane.xlu1 %4005 }
0x1e0a   :  { %v4048_v53 = vmax.f32 %v4041_v37, 0.0  ;;  %v4025_v10 = vmul.f32 0.03125, %v4006_v30  ;;  %v4033_v14 = vmul.f32 %v3991_v20, %v3991_v20 }
0x1e0b   :  { %v4015_v1 = vpop.xlane.xlu0 %4014 }
0x1e0c   :  { %v4039_v34 = vsub.f32 %v4025_v10, %v4032_v54  ;;  %v4028_v51 = vmul.f32 0.03125, %v4015_v1  ;;  %v4062_v19 = vadd.f32 1e-05, %v4048_v53 }
0x1e0d   :  { %v3989_v31 = vpop.xlane.xlu1 %3988 }
0x1e0e   :  { %v4046_v39 = vmax.f32 %v4039_v34, 0.0  ;;  %v4042_v55 = vsub.f32 %v4028_v51, %v4035_v43  ;;  %6593 = vrsqrt.f32 %v4062_v19  ;;  %v7926_v54 = vmul.f32 0.03125, %v3989_v31 }
0x1e0f   :  { %v4009_v26 = vpop.xlane.xlu0 %4008 }
0x1e10   :  { %v4060_v24 = vadd.f32 1e-05, %v4046_v39  ;;  %v4049_v45 = vmax.f32 %v4042_v55, 0.0  ;;  %v4026_v52 = vmul.f32 0.03125, %v4009_v26  ;;  %v4038_v39 = vmul.f32 %v7926_v54, %v7926_v54 }
0x1e11   :  { %v3983_v60 = vpop.xlane.xlu1 %3982 }
0x1e12   :  { %6595 = vrsqrt.f32 %v4060_v24  ;;  %v4063_v25 = vadd.f32 1e-05, %v4049_v45  ;;  %v3994_v9 = vmul.f32 0.03125, %v3983_v60  ;;  %v4040_v5 = vsub.f32 %v4026_v52, %v4033_v14 }
0x1e13   :  { %v4018_v8 = vpop.xlane.xlu0 %4017  ;;  %v4053_v52 = vsub.f32 %v7864_v56, %v7922_v21  ;;  %v4055_v60 = vsub.f32 %v7861_v42, %v7918_v7  ;;  %v4054_v56 = vsub.f32 %v7876_v32, %v3991_v20 }
0x1e14   :  { %6597 = vrsqrt.f32 %v4063_v25  ;;  %v4036_v57 = vmul.f32 %v3994_v9, %v3994_v9  ;;  %v4029_v40 = vmul.f32 0.03125, %v4018_v8  ;;  %v4047_v23 = vmax.f32 %v4040_v5, 0.0 }
0x1e15   :  { %v4021_v22 = vpop.xlane.xlu1 %4020  ;;  %v4056_v25 = vsub.f32 %v7869_v6, %v3993_v41  ;;  %v5693_v6 = vld [vmem:[%s8303_s5 + $0x38] ss:$0 sm:$0xff] }
0x1e16   :  { %v4043_v16 = vsub.f32 %v4029_v40, %v4036_v57  ;;  %v4061_v37 = vadd.f32 1e-05, %v4047_v23  ;;  %v4030_v34 = vmul.f32 0.03125, %v4021_v22 }
0x1e17   :  { %v3986_v30 = vpop.xlane.xlu0 %3985 }
0x1e18   :  { %v4050_v53 = vmax.f32 %v4043_v16, 0.0  ;;  %v3995_v10 = vmul.f32 0.03125, %v3986_v30  ;;  %6599 = vrsqrt.f32 %v4061_v37  ;;  %v5692_v37 = vld [vmem:[%s8303_s5 + $0x37] ss:$0 sm:$0xff] }
0x1e19   :  { %v4258_v1 = vpop.permute.xlu1 %4257 }
0x1e1a   :  { %v4064_v43 = vadd.f32 1e-05, %v4050_v53  ;;  %v4037_v51 = vmul.f32 %v3995_v10, %v3995_v10  ;;  %4260 = vst.msk [vmem:[#allocation2] sm:$0xff] %vm269_vm3, %v4258_v1  ;;  %v4057_v53 = vsub.f32 %v7892_v35, %v3994_v9  ;;  %v4058_v20 = vsub.f32 %v7898_v36, %v3995_v10 }
0x1e1b   :  { %v4024_v19 = vpop.xlane.xlu0 %4023  ;;  %v6594_v24 = vpop.eup %6593  ;;  %v4059_v35 = vsub.f32 %v7888_v48, %v7926_v54 }
0x1e1c   :  { %6601 = vrsqrt.f32 %v4064_v43  ;;  %v4044_v55 = vsub.f32 %v4030_v34, %v4037_v51  ;;  %v4031_v26 = vmul.f32 0.03125, %v4024_v19  ;;  %v4076_v23 = vmul.f32 %v6594_v24, %v4055_v60 }
0x1e1e   :  { %v4051_v45 = vmax.f32 %v4044_v55, 0.0  ;;  %v4045_v31 = vsub.f32 %v4031_v26, %v4038_v39  ;;  %v4087_v7 = vmul.f32 %v5692_v37, %v4076_v23 }
0x1e1f   :  { %v6596_v14 = vpop.eup %6595 }
0x1e20   :  { %v4065_v5 = vadd.f32 1e-05, %v4051_v45  ;;  %v4052_v8 = vmax.f32 %v4045_v31, 0.0  ;;  %v4074_v40 = vmul.f32 %v6596_v14, %v4053_v52  ;;  %v4098_v19 = vadd.f32 %v5693_v6, %v4087_v7 }
0x1e21   :  { %v6598_v57 = vpop.eup %6597  ;;  %v4262_v60 = vld [vmem:[#allocation2] sm:$0xff] }
0x1e22   :  { %v4077_v22 = vmul.f32 %v6598_v57, %v4056_v25  ;;  %6603 = vrsqrt.f32 %v4065_v5  ;;  %v4066_v16 = vadd.f32 1e-05, %v4052_v8  ;;  %v4085_v21 = vmul.f32 %v5692_v37, %v4074_v40 }
0x1e23   :  { %v4105_v45 = vmax.f32 %v4098_v19, 0.0  ;;  %v4266_v57 = vpack.c.bf16 %v7846_v15, %v4262_v60 }
0x1e24   :  { %6605 = vrsqrt.f32 %v4066_v16  ;;  %v4088_v30 = vmul.f32 %v5692_v37, %v4077_v22  ;;  %v4096_v51 = vadd.f32 %v5693_v6, %v4085_v21 }
0x1e25   :  { %v6600_v42 = vpop.eup %6599 }
0x1e26   :  { %v4075_v41 = vmul.f32 %v6600_v42, %v4054_v56  ;;  %v4099_v1 = vadd.f32 %v5693_v6, %v4088_v30  ;;  %v4103_v24 = vmax.f32 %v4096_v51, 0.0 }
0x1e28   :  { %v4086_v34 = vmul.f32 %v5692_v37, %v4075_v41  ;;  %v4106_v26 = vmax.f32 %v4099_v1, 0.0 }
0x1e29   :  { %v6602_v43 = vpop.eup %6601 }
0x1e2a   :  { %v4078_v39 = vmul.f32 %v6602_v43, %v4057_v53  ;;  %v4097_v55 = vadd.f32 %v5693_v6, %v4086_v34  ;;  %v4111_v25 = vpack.c.bf16 %v4106_v26, %v4105_v45 }
0x1e2c   :  { %v4104_v32 = vmax.f32 %v4097_v55, 0.0  ;;  %v4089_v31 = vmul.f32 %v5692_v37, %v4078_v39 }
0x1e2e   :  { %v4110_v52 = vpack.c.bf16 %v4104_v32, %v4103_v24  ;;  %v4100_v40 = vadd.f32 %v5693_v6, %v4089_v31 }
0x1e2f   :  { %v6604_v14 = vpop.eup %6603 }
0x1e30   :  { %v4079_v9 = vmul.f32 %v6604_v14, %v4058_v20  ;;  %6338 = vmatprep.mubr.msk.bf16.mxu1 %vm269_vm3, %v4110_v52  ;;  %v4107_v16 = vmax.f32 %v4100_v40, 0.0 }
0x1e31   :  { %v6606_v5 = vpop.eup %6605  ;;  %6339 = vmatmul.mubr.msk.bf16.vlgmr.msra.gmra.mxu1 %vm269_vm3, %v4111_v25 }
0x1e32   :  { %v4090_v8 = vmul.f32 %v5692_v37, %v4079_v9  ;;  %v4080_v36 = vmul.f32 %v6606_v5, %v4059_v35  ;;  %6359 = vmatpush3.bf16.msra.mxu1 %v7837_v50 }
0x1e33   :  { %6360 = vmatprep.subr.bf16.mxu1 %v4266_v57 }
0x1e34   :  { %v4101_v10 = vadd.f32 %v5693_v6, %v4090_v8  ;;  %v4091_v23 = vmul.f32 %v5692_v37, %v4080_v36 }
0x1e36   :  { %v4108_v22 = vmax.f32 %v4101_v10, 0.0  ;;  %v4102_v48 = vadd.f32 %v5693_v6, %v4091_v23  ;;  %6361 = vmatpush3.bf16.msra.mxu1 %v4266_v57 }
0x1e38   :  { %v4112_v54 = vpack.c.bf16 %v4108_v22, %v4107_v16  ;;  %v4109_v30 = vmax.f32 %v4102_v48, 0.0 }
0x1e3a   :  { %6342 = vmatprep.mubr.msk.bf16.mxu1 %vm269_vm3, %v4112_v54  ;;  %v4113_v56 = vpack.c.bf16 %v4109_v30, %v4109_v30 }
0x1e3c   :  { %6343 = vmatmul.mubr.msk.bf16.gmra.mxu1 %vm269_vm3, %v4113_v56 }
0x1e3d   :  { %6362 = vmatprep.mubr.msk.bf16.mxu1 %vm269_vm3, %v6877_v17  ;;  %v5698_v17 = vld [vmem:[%s8303_s5 + $0x39] ss:$0 sm:$0xff] }
0x1e44   :  { %6363 = vmatmul.mubr.msk.bf16.vlgmr.msra.gmra.mxu1 %vm269_vm3, %v6940_v58 }
0x1e45   :  { %6366 = vmatprep.mubr.msk.bf16.mxu1 %vm269_vm3, %v6942_v59  ;;  %v7969_v59 = vld [vmem:[%s8303_s5 + $0x49] ss:$0 sm:$0xff] }
0x1e46   :  { %v4274_v34 = vmul.f32 %v7969_v59, %v6963_v3  ;;  %v4272_v26 = vmul.f32 %v7969_v59, %v6961_v2  ;;  %v4275_v2 = vmul.f32 %v7969_v59, %v6976_v11  ;;  %v4273_v10 = vmul.f32 %v7969_v59, %v6956_v63 }
0x1e47   :  { %v4278_v30 = vmul.f32 %v7969_v59, %v6997_v28 }
0x1e4c   :  { %6367 = vmatmul.mubr.msk.bf16.gmra.mxu1 %vm269_vm3, %v6949_v61 }
0x1e4d   :  { %6390 = vmatprep.mubr.msk.bf16.mxu1 %vm1302_vm2, %v7079_v4 }
0x1ef1   :  { %v6340_v50 = vpop.f32.mrf.mxu1 }
0x1ef2   :  { %v4197_v19 = vadd.f32 %v6340_v50, %v5698_v17 }
0x1ef3   :  { %v4160_v15 = vpop.f32.mrf.mxu1 }
0x1ef4   :  { %v4195_v14 = vadd.f32 %v5698_v17, %v4160_v15  ;;  %v4276_v15 = vmul.f32 %v7969_v59, %v6980_v13 }
0x1ef5   :  { %v6341_v37 = vpop.f32.mrf.mxu1 }
0x1ef6   :  { %v4198_v53 = vadd.f32 %v6341_v37, %v5698_v17 }
0x1ef7   :  { %v4163_v21 = vpop.f32.mrf.mxu1 }
0x1ef8   :  { %v4203_v32 = vpack.c.bf16 %v4198_v53, %v4197_v19  ;;  %v4196_v20 = vadd.f32 %v5698_v17, %v4163_v21  ;;  %v113_v53 = vld [vmem:[#allocation3 + $0x258] sm:$0xff] }
0x1efa   :  { %v4202_v35 = vpack.c.bf16 %v4196_v20, %v4195_v14 }
0x1efc   :  { %v6344_v42 = vpop.f32.mrf.mxu1 }
0x1efd   :  { %v4201_v7 = vadd.f32 %v6344_v42, %v5698_v17 }
0x1efe   :  { %v4176_v58 = vpop.f32.mrf.mxu1 }
0x1eff   :  { %v4205_v6 = vpack.c.bf16 %v4201_v7, %v4201_v7  ;;  %v4199_v1 = vadd.f32 %v5698_v17, %v4176_v58  ;;  %v4277_v7 = vmul.f32 %v7969_v59, %v7007_v38  ;;  %v112_v59 = vld [vmem:[#allocation3 + $0x250] sm:$0xff] }
0x1f00   :  { %v6345_v41 = vpop.f32.mrf.mxu1 }
0x1f01   :  { %v4207_v61 = vsel %vm1309_vm4, %v4205_v6, 0  ;;  %6470 = vmatprep.subr.msk.bf16.mxu0 %vm1309_vm4, %v4205_v6 }
0x1f02   :  { %v4179_v4 = vpop.f32.mrf.mxu1  ;;  %6347 = vmatpush3.bf16.msra.mxu0 %v4207_v61 }
0x1f03   :  { %v4200_v43 = vadd.f32 %v5698_v17, %v4179_v4 }
0x1f04   :  { %v6364_v51 = vpop.f32.mrf.mxu1 }
0x1f05   :  { %v4204_v39 = vpack.c.bf16 %v4200_v43, %v4199_v1  ;;  %v7975_v55 = vadd.f32 %v6364_v51, %v4274_v34  ;;  %v8038_v1 = vpack.c.bf16 %v113_v53, %v112_v59  ;;  %v110_v43 = vld [vmem:[#allocation3 + $0x240] sm:$0xff]  ;;  %v111_v34 = vld [vmem:[#allocation3 + $0x248] sm:$0xff] }
0x1f06   :  { %v4313_v24 = vpop.f32.mrf.mxu1  ;;  %v8042_v51 = vpack.c.bf16 %v111_v34, %v110_v43 }
0x1f07   :  { %v7979_v45 = vadd.f32 %v4313_v24, %v4272_v26  ;;  %6348 = vmatprep.subr.bf16.mxu0 %v4204_v39  ;;  %v4351_v31 = vsel %vm269_vm3, %v7975_v55, 0.0  ;;  %v4375_v36 = vmul.f32 %v7975_v55, %v7975_v55 }
0x1f08   :  { %6349 = vmatpush3.bf16.msra.mxu0 %v4204_v39  ;;  %4352 = vadd.xlane.f32.xlu0 %v4351_v31  ;;  %v6365_v3 = vpop.f32.mrf.mxu1 }
0x1f09   :  { %6350 = vmatprep.subr.bf16.mxu0 %v4203_v32  ;;  %v4373_v52 = vmul.f32 %v7979_v45, %v7979_v45  ;;  %v7988_v25 = vadd.f32 %v6365_v3, %v4275_v2  ;;  %v4345_v8 = vsel %vm269_vm3, %v7979_v45, 0.0  ;;  %v4386_v22 = vsel %vm269_vm3, %v4375_v36, 0.0 }
0x1f0a   :  { %v4316_v60 = vpop.f32.mrf.mxu1 }
0x1f0b   :  { %v4380_v9 = vsel %vm269_vm3, %v4373_v52, 0.0  ;;  %v4354_v11 = vsel %vm269_vm3, %v7988_v25, 0.0  ;;  %v8000_v23 = vadd.f32 %v4316_v60, %v4273_v10  ;;  %v4376_v48 = vmul.f32 %v7988_v25, %v7988_v25 }
0x1f0c   :  { %6351 = vmatpush3.bf16.msra.mxu0 %v4203_v32  ;;  %v6368_v5 = vpop.f32.mrf.mxu1  ;;  %4381 = vadd.xlane.f32.xlu1 %v4380_v9 }
0x1f0d   :  { %4346 = vadd.xlane.f32.xlu0 %v4345_v8  ;;  %6352 = vmatprep.subr.bf16.mxu0 %v4202_v35  ;;  %v4348_v16 = vsel %vm269_vm3, %v8000_v23, 0.0  ;;  %v4389_v54 = vsel %vm269_vm3, %v4376_v48, 0.0  ;;  %v4374_v63 = vmul.f32 %v8000_v23, %v8000_v23  ;;  %v8012_v56 = vadd.f32 %v6368_v5, %v4278_v30 }
0x1f0e   :  { %v4329_v57 = vpop.f32.mrf.mxu1 }
0x1f0f   :  { %v4383_v50 = vsel %vm269_vm3, %v4374_v63, 0.0  ;;  %v8017_v37 = vadd.f32 %v4329_v57, %v4276_v15  ;;  %v4363_v21 = vsel %vm1066_vm1, %v8012_v56, 0.0  ;;  %v4379_v4 = vmul.f32 %v8012_v56, %v8012_v56 }
0x1f10   :  { %6353 = vmatpush3.bf16.msra.mxu0 %v4202_v35  ;;  %v6369_v40 = vpop.f32.mrf.mxu1 }
0x1f11   :  { %4355 = vadd.xlane.f32.xlu0 %v4354_v11  ;;  %v4357_v17 = vsel %vm269_vm3, %v8017_v37, 0.0  ;;  %v4377_v28 = vmul.f32 %v8017_v37, %v8017_v37  ;;  %v4398_v38 = vsel %vm1066_vm1, %v4379_v4, 0.0  ;;  %6370 = vmatprep.subr.bf16.mxu0 %v8038_v1 }
0x1f12   :  { %v4332_v42 = vpop.f32.mrf.mxu1 }
0x1f13   :  { %6355 = vmatmul.mubr.msk.bf16.vlgmr.msra.gmra.mxu0 %vm1302_vm2, %v7088_v44  ;;  %v8027_v58 = vadd.f32 %v4332_v42, %v4277_v7  ;;  %v4392_v13 = vsel %vm269_vm3, %v4377_v28, 0.0 }
0x1f14   :  { %6371 = vmatpush3.bf16.msra.mxu0 %v8038_v1 }
0x1f15   :  { %4387 = vadd.xlane.f32.xlu0 %v4386_v22  ;;  %v4360_v6 = vsel %vm269_vm3, %v8027_v58, 0.0  ;;  %v4378_v41 = vmul.f32 %v8027_v58, %v8027_v58  ;;  %6372 = vmatprep.subr.bf16.mxu0 %v8042_v51 }
0x1f17   :  { %v4395_v61 = vsel %vm269_vm3, %v4378_v41, 0.0 }
0x1f18   :  { %6373 = vmatpush3.bf16.msra.mxu0 %v8042_v51 }
0x1f19   :  { %4349 = vadd.xlane.f32.xlu0 %v4348_v16  ;;  %6394 = vmatprep.subr.bf16.mxu0 %v6682_v0 }
0x1f1d   :  { %4390 = vadd.xlane.f32.xlu0 %v4389_v54 }
0x1f21   :  { %4384 = vadd.xlane.f32.xlu0 %v4383_v50 }
0x1f25   :  { %4364 = vadd.xlane.f32.xlu0 %v4363_v21 }
0x1f29   :  { %4358 = vadd.xlane.f32.xlu0 %v4357_v17 }
0x1f2d   :  { %4393 = vadd.xlane.f32.xlu0 %v4392_v13 }
0x1f31   :  { %4361 = vadd.xlane.f32.xlu0 %v4360_v6 }
0x1f35   :  { %4396 = vadd.xlane.f32.xlu0 %v4395_v61 }
0x1f39   :  { %4399 = vadd.xlane.f32.xlu0 %v4398_v38 }
0x1f91   :  { %v4353_v19 = vpop.xlane.xlu0 %4352 }
0x1f92   :  { %v4368_v31 = vmul.f32 0.03125, %v4353_v19 }
0x1f94   :  { %v4410_v2 = vmul.f32 %v4368_v31, %v4368_v31  ;;  %v4431_v43 = vsub.f32 %v7975_v55, %v4368_v31 }
0x1f95   :  { %v4382_v24 = vpop.xlane.xlu1 %4381 }
0x1f96   :  { %v4347_v39 = vpop.xlane.xlu0 %4346  ;;  %v4401_v3 = vmul.f32 0.03125, %v4382_v24 }
0x1f97   :  { %v4366_v26 = vmul.f32 0.03125, %v4347_v39  ;;  %v8052_v39 = vld [vmem:[%s8303_s5 + $0x3f] ss:$0 sm:$0xff] }
0x1f99   :  { %v4408_v32 = vmul.f32 %v4366_v26, %v4366_v26  ;;  %v4429_v38 = vsub.f32 %v7979_v45, %v4366_v26 }
0x1f9a   :  { %v4356_v20 = vpop.xlane.xlu0 %4355 }
0x1f9b   :  { %v4415_v14 = vsub.f32 %v4401_v3, %v4408_v32  ;;  %v4369_v8 = vmul.f32 0.03125, %v4356_v20 }
0x1f9d   :  { %v4422_v9 = vmax.f32 %v4415_v14, 0.0  ;;  %v4411_v36 = vmul.f32 %v4369_v8, %v4369_v8  ;;  %v4432_v24 = vsub.f32 %v7988_v25, %v4369_v8  ;;  %v5707_v25 = vld [vmem:[%s8303_s5 + $0x40] ss:$0 sm:$0xff] }
0x1f9e   :  { %v4388_v52 = vpop.xlane.xlu0 %4387 }
0x1f9f   :  { %v4403_v60 = vmul.f32 0.03125, %v4388_v52  ;;  %v4436_v40 = vadd.f32 1e-05, %v4422_v9 }
0x1fa1   :  { %v4417_v35 = vsub.f32 %v4403_v60, %v4410_v2  ;;  %6607 = vrsqrt.f32 %v4436_v40 }
0x1fa2   :  { %v4350_v5 = vpop.xlane.xlu0 %4349 }
0x1fa3   :  { %v4424_v57 = vmax.f32 %v4417_v35, 0.0  ;;  %v4367_v10 = vmul.f32 0.03125, %v4350_v5 }
0x1fa5   :  { %v4438_v16 = vadd.f32 1e-05, %v4424_v57  ;;  %v4409_v63 = vmul.f32 %v4367_v10, %v4367_v10  ;;  %v4430_v26 = vsub.f32 %v8000_v23, %v4367_v10 }
0x1fa6   :  { %v4391_v11 = vpop.xlane.xlu0 %4390 }
0x1fa7   :  { %v4404_v22 = vmul.f32 0.03125, %v4391_v11  ;;  %6609 = vrsqrt.f32 %v4438_v16 }
0x1fa9   :  { %v4418_v48 = vsub.f32 %v4404_v22, %v4411_v36 }
0x1faa   :  { %v4385_v54 = vpop.xlane.xlu0 %4384 }
0x1fab   :  { %v4425_v30 = vmax.f32 %v4418_v48, 0.0  ;;  %v4402_v50 = vmul.f32 0.03125, %v4385_v54 }
0x1fad   :  { %v4439_v15 = vadd.f32 1e-05, %v4425_v30  ;;  %v4416_v21 = vsub.f32 %v4402_v50, %v4409_v63 }
0x1fae   :  { %v4365_v17 = vpop.xlane.xlu0 %4364  ;;  %v6608_v41 = vpop.eup %6607 }
0x1faf   :  { %6611 = vrsqrt.f32 %v4439_v15  ;;  %v4423_v28 = vmax.f32 %v4416_v21, 0.0  ;;  %v4450_v34 = vmul.f32 %v6608_v41, %v4429_v38  ;;  %v4372_v55 = vmul.f32 0.03125, %v4365_v17 }
0x1fb1   :  { %v4437_v42 = vadd.f32 1e-05, %v4423_v28  ;;  %v4461_v45 = vmul.f32 %v8052_v39, %v4450_v34  ;;  %v4414_v11 = vmul.f32 %v4372_v55, %v4372_v55 }
0x1fb2   :  { %v4359_v7 = vpop.xlane.xlu0 %4358 }
0x1fb3   :  { %6613 = vrsqrt.f32 %v4437_v42  ;;  %v4370_v13 = vmul.f32 0.03125, %v4359_v7  ;;  %v4472_v23 = vadd.f32 %v5707_v25, %v4461_v45 }
0x1fb4   :  { %v6610_v59 = vpop.eup %6609 }
0x1fb5   :  { %v4412_v61 = vmul.f32 %v4370_v13, %v4370_v13  ;;  %v4452_v14 = vmul.f32 %v6610_v59, %v4431_v43  ;;  %v4479_v21 = vmax.f32 %v4472_v23, 0.0 }
0x1fb6   :  { %v4394_v6 = vpop.xlane.xlu0 %4393 }
0x1fb7   :  { %v4405_v4 = vmul.f32 0.03125, %v4394_v6  ;;  %v4463_v8 = vmul.f32 %v8052_v39, %v4452_v14 }
0x1fb9   :  { %v4419_v53 = vsub.f32 %v4405_v4, %v4412_v61  ;;  %v4474_v54 = vadd.f32 %v5707_v25, %v4463_v8  ;;  %v4433_v4 = vsub.f32 %v8017_v37, %v4370_v13  ;;  %v4435_v13 = vsub.f32 %v8012_v56, %v4372_v55 }
0x1fba   :  { %v4362_v19 = vpop.xlane.xlu0 %4361 }
0x1fbb   :  { %v4426_v32 = vmax.f32 %v4419_v53, 0.0  ;;  %v4371_v20 = vmul.f32 0.03125, %v4362_v19  ;;  %v4481_v42 = vmax.f32 %v4474_v54, 0.0 }
0x1fbc   :  { %v6612_v3 = vpop.eup %6611 }
0x1fbd   :  { %v4453_v52 = vmul.f32 %v6612_v3, %v4432_v24  ;;  %v4440_v2 = vadd.f32 1e-05, %v4426_v32  ;;  %v4413_v60 = vmul.f32 %v4371_v20, %v4371_v20  ;;  %v4434_v59 = vsub.f32 %v8027_v58, %v4371_v20 }
0x1fbe   :  { %v4397_v31 = vpop.xlane.xlu0 %4396 }
0x1fbf   :  { %6615 = vrsqrt.f32 %v4440_v2  ;;  %v4406_v35 = vmul.f32 0.03125, %v4397_v31  ;;  %v4464_v9 = vmul.f32 %v8052_v39, %v4453_v52 }
0x1fc0   :  { %v6614_v5 = vpop.eup %6613 }
0x1fc1   :  { %v4420_v57 = vsub.f32 %v4406_v35, %v4413_v60  ;;  %v4451_v40 = vmul.f32 %v6614_v5, %v4430_v26  ;;  %v4475_v22 = vadd.f32 %v5707_v25, %v4464_v9 }
0x1fc2   :  { %v4400_v36 = vpop.xlane.xlu0 %4399 }
0x1fc3   :  { %v4427_v10 = vmax.f32 %v4420_v57, 0.0  ;;  %v4407_v16 = vmul.f32 0.03125, %v4400_v36  ;;  %v4462_v48 = vmul.f32 %v8052_v39, %v4451_v40  ;;  %v4482_v15 = vmax.f32 %v4475_v22, 0.0 }
0x1fc5   :  { %v4441_v63 = vadd.f32 1e-05, %v4427_v10  ;;  %v4421_v30 = vsub.f32 %v4407_v16, %v4414_v11  ;;  %v4473_v50 = vadd.f32 %v5707_v25, %v4462_v48  ;;  %v4487_v41 = vpack.c.bf16 %v4482_v15, %v4481_v42 }
0x1fc7   :  { %6617 = vrsqrt.f32 %v4441_v63  ;;  %v4428_v17 = vmax.f32 %v4421_v30, 0.0  ;;  %v4480_v28 = vmax.f32 %v4473_v50, 0.0 }
0x1fc9   :  { %v4442_v7 = vadd.f32 1e-05, %v4428_v17  ;;  %v4486_v6 = vpack.c.bf16 %v4480_v28, %v4479_v21 }
0x1fcb   :  { %6619 = vrsqrt.f32 %v4442_v7  ;;  %6374 = vmatprep.mubr.msk.bf16.mxu0 %vm269_vm3, %v4486_v6  ;;  %v5715_v6 = vld [vmem:[%s8303_s5 + $0x3a] ss:$0 sm:$0xff] }
0x1fcc   :  { %v6616_v61 = vpop.eup %6615  ;;  %6375 = vmatmul.mubr.msk.bf16.vlgmr.msra.gmra.mxu0 %vm269_vm3, %v4487_v41 }
0x1fcd   :  { %6395 = vmatpush3.bf16.msra.mxu0 %v7819_v12  ;;  %v4454_v38 = vmul.f32 %v6616_v61, %v4433_v4 }
0x1fce   :  { %6396 = vmatprep.subr.bf16.mxu0 %v6682_v0 }
0x1fcf   :  { %v4465_v43 = vmul.f32 %v8052_v39, %v4454_v38 }
0x1fd1   :  { %6397 = vmatpush3.bf16.msra.mxu0 %v7821_v33  ;;  %v4476_v52 = vadd.f32 %v5707_v25, %v4465_v43 }
0x1fd2   :  { %6410 = vmatprep.subr.bf16.mxu0 %v6682_v0 }
0x1fd3   :  { %v6356_v53 = vpop.f32.mrf.mxu0  ;;  %v4483_v35 = vmax.f32 %v4476_v52, 0.0 }
0x1fd4   :  { %v6618_v34 = vpop.eup %6617  ;;  %v4643_v19 = vmul.f32 %v6356_v53, %v6356_v53  ;;  %v4637_v24 = vsel %vm886_vm10, %v6356_v53, 0.0 }
0x1fd5   :  { %v4243_v32 = vpop.f32.mrf.mxu0  ;;  %4638 = vadd.xlane.f32.xlu0 %v4637_v24  ;;  %v4455_v37 = vmul.f32 %v6618_v34, %v4434_v59  ;;  %v5716_v59 = vld [vmem:[%s8303_s5 + $0x3b] ss:$0 sm:$0xff] }
0x1fd6   :  { %v4647_v45 = vsel %vm886_vm10, %v4643_v19, 0.0 }
0x1fd7   :  { %v6357_v3 = vpop.f32.mrf.mxu0  ;;  %v4466_v14 = vmul.f32 %v8052_v39, %v4455_v37 }
0x1fd8   :  { %v6620_v2 = vpop.eup %6619  ;;  %v5712_v3 = vld [vmem:[%s8303_s5 + $0x41] ss:$0 sm:$0xff] }
0x1fd9   :  { %v4245_v58 = vpop.f32.mrf.mxu0  ;;  %4648 = vadd.xlane.f32.xlu0 %v4647_v45  ;;  %v4477_v20 = vadd.f32 %v5707_v25, %v4466_v14  ;;  %v4456_v26 = vmul.f32 %v6620_v2, %v4435_v13 }
0x1fda   :  { %v4642_v31 = vmul.f32 %v4245_v58, %v4245_v58  ;;  %v4634_v60 = vsel %vm269_vm3, %v4245_v58, 0.0 }
0x1fdb   :  { %4635 = vadd.xlane.f32.xlu1 %v4634_v60  ;;  %v4484_v9 = vmax.f32 %v4477_v20, 0.0  ;;  %v4467_v5 = vmul.f32 %v8052_v39, %v4456_v26 }
0x1fdc   :  { %v4644_v8 = vsel %vm269_vm3, %v4642_v31, 0.0 }
0x1fdd   :  { %v4488_v56 = vpack.c.bf16 %v4484_v9, %v4483_v35  ;;  %v4478_v55 = vadd.f32 %v5707_v25, %v4467_v5 }
0x1fdf   :  { %6378 = vmatprep.mubr.msk.bf16.mxu0 %vm269_vm3, %v4488_v56  ;;  %4645 = vadd.xlane.f32.xlu1 %v4644_v8  ;;  %v4485_v57 = vmax.f32 %v4478_v55, 0.0 }
0x1fe1   :  { %v4489_v40 = vpack.c.bf16 %v4485_v57, %v4485_v57 }
0x1fe3   :  { %6379 = vmatmul.mubr.msk.bf16.gmra.mxu0 %vm269_vm3, %v4489_v40 }
0x1fe4   :  { %6398 = vmatprep.mubr.msk.bf16.mxu0 %vm6683_vm0, %v6682_v0 }
0x205e   :  { %v4639_v11 = vpop.xlane.xlu0 %4638 }
0x205f   :  { %v4641_v36 = vmul.f32 0.03125, %v4639_v11 }
0x2061   :  { %v4653_v23 = vmul.f32 %v4641_v36, %v4641_v36  ;;  %v4659_v42 = vsub.f32 %v6356_v53, %v4641_v36 }
0x2062   :  { %v4649_v22 = vpop.xlane.xlu0 %4648 }
0x2063   :  { %v4651_v10 = vmul.f32 0.03125, %v4649_v22 }
0x2064   :  { %v4636_v39 = vpop.xlane.xlu1 %4635 }
0x2065   :  { %v4655_v16 = vsub.f32 %v4651_v10, %v4653_v23  ;;  %v4640_v25 = vmul.f32 0.03125, %v4636_v39 }
0x2067   :  { %v4657_v48 = vmax.f32 %v4655_v16, 0.0  ;;  %v4652_v30 = vmul.f32 %v4640_v25, %v4640_v25  ;;  %v4658_v41 = vsub.f32 %v4245_v58, %v4640_v25 }
0x2068   :  { %v4646_v54 = vpop.xlane.xlu1 %4645 }
0x2069   :  { %v4661_v63 = vadd.f32 1e-05, %v4657_v48  ;;  %v4650_v50 = vmul.f32 0.03125, %v4646_v54 }
0x206b   :  { %6621 = vrsqrt.f32 %v4661_v63  ;;  %v4654_v15 = vsub.f32 %v4650_v50, %v4652_v30  ;;  %v5718_v63 = vld [vmem:[%s8303_s5 + $0x3c] ss:$0 sm:$0xff]  ;;  %v5724_v30 = vld [vmem:[%s8303_s5 + $0x44] ss:$0 sm:$0xff] }
0x206d   :  { %v4656_v21 = vmax.f32 %v4654_v15, 0.0 }
0x206f   :  { %v4660_v17 = vadd.f32 1e-05, %v4656_v21 }
0x2071   :  { %6623 = vrsqrt.f32 %v4660_v17 }
0x2078   :  { %v6622_v28 = vpop.eup %6621 }
0x2079   :  { %v4665_v7 = vmul.f32 %v6622_v28, %v4659_v42 }
0x207b   :  { %v4671_v4 = vmul.f32 %v5715_v6, %v4665_v7 }
0x207d   :  { %v4677_v34 = vadd.f32 %v5716_v59, %v4671_v4 }
0x207e   :  { %v6624_v61 = vpop.eup %6623 }
0x207f   :  { %v4664_v38 = vmul.f32 %v6624_v61, %v4658_v41 }
0x2081   :  { %v4670_v43 = vmul.f32 %v5715_v6, %v4664_v38 }
0x2083   :  { %v4676_v19 = vadd.f32 %v5716_v59, %v4670_v43 }
0x2085   :  { %v4678_v24 = vpack.c.bf16 %v4677_v34, %v4676_v19 }
0x2087   :  { %6399 = vmatmul.mubr.msk.bf16.vlgmr.msra.gmra.mxu0 %vm269_vm3, %v4678_v24 }
0x2088   :  { %6411 = vmatpush3.bf16.msra.mxu0 %v8038_v1  ;;  %6414 = vmatprep.mubr.msk.bf16.mxu0 %vm6683_vm0, %v6682_v0 }
0x2089   :  { %6412 = vmatprep.subr.bf16.mxu0 %v6682_v0 }
0x208c   :  { %6413 = vmatpush3.bf16.msra.mxu0 %v8042_v51  ;;  %v6376_v53 = vpop.f32.mrf.mxu0 }
0x208d   :  { %6426 = vmatprep.subr.bf16.mxu0 %v6682_v0  ;;  %v4573_v9 = vadd.f32 %v6376_v53, %v5712_v3 }
0x208e   :  { %v4536_v32 = vpop.f32.mrf.mxu0 }
0x208f   :  { %v4571_v8 = vadd.f32 %v5712_v3, %v4536_v32 }
0x2090   :  { %v6377_v37 = vpop.f32.mrf.mxu0 }
0x2091   :  { %v4574_v31 = vadd.f32 %v6377_v37, %v5712_v3 }
0x2092   :  { %v4539_v13 = vpop.f32.mrf.mxu0 }
0x2093   :  { %v4579_v56 = vpack.c.bf16 %v4574_v31, %v4573_v9  ;;  %v4572_v55 = vadd.f32 %v5712_v3, %v4539_v13 }
0x2095   :  { %v4578_v57 = vpack.c.bf16 %v4572_v55, %v4571_v8  ;;  %v117_v55 = vld [vmem:[#allocation3 + $0x278] sm:$0xff] }
0x20a3   :  { %v6380_v14 = vpop.f32.mrf.mxu0 }
0x20a4   :  { %v4577_v52 = vadd.f32 %v6380_v14, %v5712_v3 }
0x20a5   :  { %v4552_v2 = vpop.f32.mrf.mxu0 }
0x20a6   :  { %v4581_v45 = vpack.c.bf16 %v4577_v52, %v4577_v52  ;;  %v4575_v60 = vadd.f32 %v5712_v3, %v4552_v2 }
0x20a7   :  { %v6381_v58 = vpop.f32.mrf.mxu0 }
0x20a8   :  { %v4583_v20 = vsel %vm1309_vm4, %v4581_v45, 0  ;;  %6471 = vmatprep.subr.msk.bf16.mxu1 %vm1309_vm4, %v4581_v45  ;;  %v5721_v45 = vld [vmem:[%s8303_s5 + $0x42] ss:$0 sm:$0xff] }
0x20a9   :  { %v4555_v26 = vpop.f32.mrf.mxu0  ;;  %6383 = vmatpush3.bf16.msra.mxu1 %v4583_v20 }
0x20aa   :  { %v4576_v35 = vadd.f32 %v5712_v3, %v4555_v26 }
0x20ac   :  { %v4580_v5 = vpack.c.bf16 %v4576_v35, %v4575_v60  ;;  %v5722_v60 = vld [vmem:[%s8303_s5 + $0x43] ss:$0 sm:$0xff] }
0x20ae   :  { %6384 = vmatprep.subr.bf16.mxu1 %v4580_v5 }
0x20af   :  { %6385 = vmatpush3.bf16.msra.mxu1 %v4580_v5 }
0x20b0   :  { %6386 = vmatprep.subr.bf16.mxu1 %v4579_v56 }
0x20b3   :  { %6387 = vmatpush3.bf16.msra.mxu1 %v4579_v56  ;;  %v116_v56 = vld [vmem:[#allocation3 + $0x270] sm:$0xff] }
0x20b4   :  { %6388 = vmatprep.subr.bf16.mxu1 %v4578_v57 }
0x20b7   :  { %6389 = vmatpush3.bf16.msra.mxu1 %v4578_v57  ;;  %v161_v57 = vpack.c.bf16 %v117_v55, %v116_v56 }
0x20b8   :  { %6402 = vmatprep.subr.bf16.mxu1 %v6682_v0 }
0x20ba   :  { %6391 = vmatmul.mubr.msk.bf16.vlgmr.msra.gmra.mxu1 %vm1302_vm2, %v7088_v44 }
0x20bb   :  { %6403 = vmatpush3.bf16.msra.mxu1 %v7819_v12  ;;  %6406 = vmatprep.mubr.msk.bf16.mxu1 %vm6683_vm0, %v6682_v0 }
0x20bc   :  { %6404 = vmatprep.subr.bf16.mxu1 %v6682_v0 }
0x20bf   :  { %6405 = vmatpush3.bf16.msra.mxu1 %v7821_v33 }
0x20c0   :  { %6418 = vmatprep.subr.bf16.mxu1 %v6682_v0 }
0x2147   :  { %v4716_v40 = vpop.f32.mrf.mxu0 }
0x2149   :  { %v6400_v11 = vpop.f32.mrf.mxu0 }
0x214a   :  { %v114_v11 = vld [vmem:[#allocation3 + $0x260] sm:$0xff] }
0x214b   :  { %v4719_v36 = vpop.f32.mrf.mxu0 }
0x214d   :  { %v6401_v22 = vpop.f32.mrf.mxu0 }
0x217a   :  { %v6392_v23 = vpop.f32.mrf.mxu1 }
0x217b   :  { %v4815_v10 = vmul.f32 %v6392_v23, %v6392_v23  ;;  %v4807_v39 = vsel %vm2490_vm5, %v6392_v23, 0.0 }
0x217c   :  { %4808 = vadd.xlane.f32.xlu1 %v4807_v39  ;;  %v4619_v44 = vpop.f32.mrf.mxu1 }
0x217d   :  { %v4817_v25 = vsel %vm2490_vm5, %v4815_v10, 0.0 }
0x217e   :  { %v6393_v12 = vpop.f32.mrf.mxu1 }
0x217f   :  { %v4816_v16 = vmul.f32 %v6393_v12, %v6393_v12  ;;  %v4810_v48 = vsel %vm1066_vm1, %v6393_v12, 0.0 }
0x2180   :  { %4818 = vadd.xlane.f32.xlu1 %v4817_v25  ;;  %4811 = vadd.xlane.f32.xlu0 %v4810_v48  ;;  %v4621_v33 = vpop.f32.mrf.mxu1 }
0x2181   :  { %v4820_v54 = vsel %vm1066_vm1, %v4816_v16, 0.0 }
0x2184   :  { %4821 = vadd.xlane.f32.xlu0 %v4820_v54 }
0x2191   :  { %4725 = vrot.lane.b32.xlu1 %v7644_v27, %s6685_s28 }
0x2195   :  { %4739 = vrot.lane.b32.xlu1 %v5718_v63, %s6684_s14 }
0x2199   :  { %4900 = vrot.lane.b32.xlu1 %v7646_v49, %s6685_s28 }
0x219a   :  { %4727 = vrot.lane.b32.xlu0 %v7652_v47, %s6685_s28 }
0x219d   :  { %4914 = vrot.lane.b32.xlu1 %v5724_v30, %s6684_s14 }
0x219e   :  { %4902 = vrot.lane.b32.xlu0 %v7654_v46, %s6685_s28 }
0x2205   :  { %v4809_v27 = vpop.xlane.xlu1 %4808 }
0x2206   :  { %v4813_v50 = vmul.f32 0.03125, %v4809_v27 }
0x2208   :  { %v4825_v17 = vmul.f32 %v4813_v50, %v4813_v50  ;;  %v4831_v14 = vsub.f32 %v6392_v23, %v4813_v50 }
0x2209   :  { %v4819_v15 = vpop.xlane.xlu1 %4818  ;;  %v4812_v21 = vpop.xlane.xlu0 %4811 }
0x220a   :  { %v4823_v28 = vmul.f32 0.03125, %v4819_v15  ;;  %v4814_v42 = vmul.f32 0.03125, %v4812_v21 }
0x220c   :  { %v4827_v49 = vsub.f32 %v4823_v28, %v4825_v17  ;;  %v4826_v41 = vmul.f32 %v4814_v42, %v4814_v42  ;;  %v4832_v58 = vsub.f32 %v6393_v12, %v4814_v42  ;;  %v5720_v28 = vld [vmem:[%s8303_s5 + $0x3d] ss:$0 sm:$0xff] }
0x220d   :  { %v4726_v7 = vpop.permute.xlu1 %4725  ;;  %v4822_v6 = vpop.xlane.xlu0 %4821 }
0x220e   :  { %v4829_v47 = vmax.f32 %v4827_v49, 0.0  ;;  %v4824_v61 = vmul.f32 0.03125, %v4822_v6  ;;  %v4731_v4 = vadd.f32 %v4726_v7, %v4716_v40 }
0x2210   :  { %v4833_v46 = vadd.f32 1e-05, %v4829_v47  ;;  %v4828_v38 = vsub.f32 %v4824_v61, %v4826_v41 }
0x2211   :  { %v4740_v59 = vpop.permute.xlu1 %4739  ;;  %v4728_v43 = vpop.permute.xlu0 %4727 }
0x2212   :  { %6625 = vrsqrt.f32 %v4833_v46  ;;  %v4830_v34 = vmax.f32 %v4828_v38, 0.0  ;;  %v4742_v19 = vadd.f32 %v4740_v59, %v4731_v4  ;;  %v4732_v24 = vadd.f32 %v4728_v43, %v4719_v36  ;;  %v115_v36 = vld [vmem:[#allocation3 + $0x268] sm:$0xff] }
0x2213   :  { %v160_v22 = vpack.c.bf16 %v115_v36, %v114_v11  ;;  %v5728_v11 = vld [vmem:[%s8303_s5 + $0x4b] ss:$0 sm:$0xff]  ;;  %v5729_v36 = vld [vmem:[%s8303_s5 + $0x4c] ss:$0 sm:$0xff] }
0x2214   :  { %v4834_v53 = vadd.f32 1e-05, %v4830_v34  ;;  %v4743_v32 = vadd.f32 %v4740_v59, %v4732_v24  ;;  %v4744_v37 = vmax.f32 %v4742_v19, 0.0 }
0x2215   :  { %v4903_v23 = vpop.permute.xlu0 %4902 }
0x2216   :  { %6627 = vrsqrt.f32 %v4834_v53  ;;  %v4745_v13 = vmax.f32 %v4743_v32, 0.0 }
0x2218   :  { %v4746_v3 = vpack.c.bf16 %v4745_v13, %v4744_v37 }
0x221a   :  { %4748 = vrot.lane.b32.xlu0 %v4746_v3, %s6685_s28 }
0x221f   :  { %v6626_v52 = vpop.eup %6625 }
0x2220   :  { %v4837_v2 = vmul.f32 %v6626_v52, %v4831_v14 }
0x2222   :  { %v4843_v26 = vmul.f32 %v5721_v45, %v4837_v2 }
0x2223   :  { %v6628_v20 = vpop.eup %6627 }
0x2224   :  { %v4838_v31 = vmul.f32 %v6628_v20, %v4832_v58  ;;  %v4849_v9 = vadd.f32 %v5722_v60, %v4843_v26 }
0x2226   :  { %v4844_v35 = vmul.f32 %v5721_v45, %v4838_v31  ;;  %v5733_v31 = vld [vmem:[%s8303_s5 + $0x4f] ss:$0 sm:$0xff] }
0x2228   :  { %v4850_v5 = vadd.f32 %v5722_v60, %v4844_v35  ;;  %v5732_v60 = vld [vmem:[%s8303_s5 + $0x4e] ss:$0 sm:$0xff] }
0x222a   :  { %v4851_v8 = vpack.c.bf16 %v4850_v5, %v4849_v9 }
0x222c   :  { %v4853_v40 = vrot.slane %v4851_v8, 2 }
0x222e   :  { %6415 = vmatmul.mubr.msk.bf16.vlgmr.msra.gmra.mxu0 %vm269_vm3, %v4853_v40 }
0x222f   :  { %6427 = vmatpush3.bf16.msra.mxu0 %v161_v57  ;;  %6430 = vmatprep.mubr.msk.bf16.mxu0 %vm6683_vm0, %v6682_v0 }
0x2230   :  { %6428 = vmatprep.subr.bf16.mxu0 %v6682_v0 }
0x2233   :  { %6429 = vmatpush3.bf16.msra.mxu0 %v160_v22 }
0x2234   :  { %6442 = vmatprep.subr.bf16.mxu0 %v6682_v0 }
0x2236   :  { %6431 = vmatmul.mubr.msk.bf16.vlgmr.msra.gmra.mxu0 %vm269_vm3, %v7591_v18  ;;  %v4901_v18 = vpop.permute.xlu1 %4900 }
0x2237   :  { %6443 = vmatpush3.bf16.msra.mxu0 %v161_v57  ;;  %6446 = vmatprep.mubr.msk.bf16.mxu0 %vm6683_vm0, %v6682_v0 }
0x2238   :  { %6444 = vmatprep.subr.bf16.mxu0 %v6682_v0 }
0x223a   :  { %v4915_v12 = vpop.permute.xlu1 %4914 }
0x223b   :  { %6445 = vmatpush3.bf16.msra.mxu0 %v160_v22 }
0x223c   :  { %6458 = vmatprep.subr.bf16.mxu0 %v6682_v0 }
0x228c   :  { %v4749_v10 = vpop.permute.xlu0 %4748 }
0x228d   :  { %6407 = vmatmul.mubr.msk.bf16.vlgmr.msra.gmra.mxu1 %vm269_vm3, %v4749_v10 }
0x228e   :  { %6419 = vmatpush3.bf16.msra.mxu1 %v8038_v1  ;;  %6422 = vmatprep.mubr.msk.bf16.mxu1 %vm6683_vm0, %v6682_v0  ;;  %v5726_v1 = vld [vmem:[%s8303_s5 + $0x45] ss:$0 sm:$0xff] }
0x228f   :  { %6420 = vmatprep.subr.bf16.mxu1 %v6682_v0  ;;  %4975 = vrot.lane.b32.xlu0 %v5726_v1, %s6688_s23 }
0x2292   :  { %6421 = vmatpush3.bf16.msra.mxu1 %v8042_v51 }
0x2293   :  { %6434 = vmatprep.subr.bf16.mxu1 %v6682_v0 }
0x22ee   :  { %v4891_v39 = vpop.f32.mrf.mxu0 }
0x22ef   :  { %v4906_v44 = vadd.f32 %v4901_v18, %v4891_v39 }
0x22f0   :  { %v6416_v16 = vpop.f32.mrf.mxu0 }
0x22f1   :  { %v4917_v48 = vadd.f32 %v4915_v12, %v4906_v44 }
0x22f2   :  { %v4894_v25 = vpop.f32.mrf.mxu0 }
0x22f3   :  { %v4907_v33 = vadd.f32 %v4903_v23, %v4894_v25  ;;  %v4919_v51 = vmax.f32 %v4917_v48, 0.0 }
0x22f4   :  { %v6417_v54 = vpop.f32.mrf.mxu0 }
0x22f5   :  { %v4918_v63 = vadd.f32 %v4915_v12, %v4907_v33 }
0x22f6   :  { %v8159_v30 = vpop.f32.mrf.mxu0 }
0x22f7   :  { %v4920_v27 = vmax.f32 %v4918_v63, 0.0 }
0x22f8   :  { %v6432_v50 = vpop.f32.mrf.mxu0 }
0x22f9   :  { %v4921_v15 = vpack.c.bf16 %v4920_v27, %v4919_v51 }
0x22fa   :  { %v5017_v21 = vpop.f32.mrf.mxu0 }
0x22fb   :  { %4923 = vrot.lane.b32.xlu1 %v4921_v15, %s6685_s28 }
0x22fc   :  { %v6433_v17 = vpop.f32.mrf.mxu0 }
0x22ff   :  { %4800 = vrot.lane.b32.xlu1 %v5720_v28, %s6688_s23 }
0x2301   :  { %v4976_v41 = vpop.permute.xlu0 %4975 }
0x234d   :  { %v4787_v42 = vpop.f32.mrf.mxu1 }
0x234f   :  { %v6408_v49 = vpop.f32.mrf.mxu1 }
0x2351   :  { %v4790_v7 = vpop.f32.mrf.mxu1 }
0x2353   :  { %v6409_v6 = vpop.f32.mrf.mxu1 }
0x236d   :  { %v4924_v47 = vpop.permute.xlu1 %4923 }
0x236e   :  { %6423 = vmatmul.mubr.msk.bf16.vlgmr.msra.gmra.mxu1 %vm269_vm3, %v4924_v47 }
0x236f   :  { %6435 = vmatpush3.bf16.msra.mxu1 %v161_v57  ;;  %6438 = vmatprep.mubr.msk.bf16.mxu1 %vm6683_vm0, %v6682_v0 }
0x2370   :  { %6436 = vmatprep.subr.bf16.mxu1 %v6682_v0 }
0x2371   :  { %v4801_v34 = vpop.permute.xlu1 %4800 }
0x2372   :  { %v8182_v24 = vadd.f32 %v4801_v34, %v4787_v42  ;;  %v8189_v32 = vadd.f32 %v4801_v34, %v4790_v7 }
0x2373   :  { %6437 = vmatpush3.bf16.msra.mxu1 %v160_v22 }
0x2374   :  { %6450 = vmatprep.subr.bf16.mxu1 %v6682_v0  ;;  %v5040_v37 = vmul.f32 %v8182_v24, %v8182_v24  ;;  %v5041_v13 = vmul.f32 %v8189_v32, %v8189_v32 }
0x242e   :  { %v4962_v61 = vpop.f32.mrf.mxu1 }
0x242f   :  { %v8171_v46 = vadd.f32 %v4976_v41, %v4962_v61 }
0x2430   :  { %v6424_v4 = vpop.f32.mrf.mxu1 }
0x2431   :  { %5177 = vrot.lane.b32.xlu0 %v8171_v46, %s6688_s23  ;;  %v5191_v59 = vmul.f32 %v8171_v46, %v8171_v46 }
0x2432   :  { %v4965_v38 = vpop.f32.mrf.mxu1 }
0x2433   :  { %v8177_v43 = vadd.f32 %v4976_v41, %v4965_v38 }
0x2434   :  { %v6425_v19 = vpop.f32.mrf.mxu1 }
0x2435   :  { %5179 = vrot.lane.b32.xlu1 %v8177_v43, %s6688_s23  ;;  %5195 = vrot.lane.b32.xlu0 %v5191_v59, %s6688_s23  ;;  %v5192_v53 = vmul.f32 %v8177_v43, %v8177_v43 }
0x2439   :  { %5197 = vrot.lane.b32.xlu1 %v5192_v53, %s6688_s23  ;;  %5026 = vrot.lane.b32.xlu0 %v8182_v24, %s6688_s23 }
0x243d   :  { %5028 = vrot.lane.b32.xlu1 %v8189_v32, %s6688_s23  ;;  %5044 = vrot.lane.b32.xlu0 %v5040_v37, %s6688_s23 }
0x2441   :  { %5046 = vrot.lane.b32.xlu1 %v5041_v13, %s6688_s23 }
0x24a3   :  { %v5178_v3 = vpop.permute.xlu0 %5177 }
0x24a4   :  { %v5183_v14 = vsel %vm269_vm3, %v5178_v3, 0.0 }
0x24a5   :  { %5184 = vadd.xlane.f32.xlu0 %v5183_v14 }
0x24a7   :  { %v5180_v52 = vpop.permute.xlu1 %5179  ;;  %v5196_v2 = vpop.permute.xlu0 %5195 }
0x24a8   :  { %v5186_v45 = vsel %vm889_vm11, %v5180_v52, 0.0  ;;  %v5201_v58 = vsel %vm269_vm3, %v5196_v2, 0.0 }
0x24a9   :  { %5187 = vadd.xlane.f32.xlu1 %v5186_v45  ;;  %5202 = vadd.xlane.f32.xlu0 %v5201_v58 }
0x24ab   :  { %v5198_v20 = vpop.permute.xlu1 %5197  ;;  %v5027_v35 = vpop.permute.xlu0 %5026 }
0x24ac   :  { %v5204_v26 = vsel %vm889_vm11, %v5198_v20, 0.0  ;;  %v5032_v5 = vsel %vm269_vm3, %v5027_v35, 0.0 }
0x24ad   :  { %5205 = vadd.xlane.f32.xlu1 %v5204_v26 }
0x24af   :  { %v5029_v9 = vpop.permute.xlu1 %5028  ;;  %v5045_v56 = vpop.permute.xlu0 %5044 }
0x24b0   :  { %v5035_v55 = vsel %vm886_vm10, %v5029_v9, 0.0  ;;  %v5050_v8 = vsel %vm269_vm3, %v5045_v56, 0.0 }
0x24b3   :  { %v5047_v57 = vpop.permute.xlu1 %5046 }
0x24b4   :  { %v5053_v40 = vsel %vm886_vm10, %v5047_v57, 0.0 }
0x24be   :  { %5238 = vrot.lane.b32.xlu1 %v5733_v31, %s6688_s23 }
0x24bf   :  { %5228 = vrot.lane.b32.xlu0 %v5732_v60, %s6688_s23 }
0x24de   :  { %5033 = vadd.xlane.f32.xlu0 %v5032_v5 }
0x24e2   :  { %5036 = vadd.xlane.f32.xlu1 %v5035_v55  ;;  %5051 = vadd.xlane.f32.xlu0 %v5050_v8 }
0x24e6   :  { %5054 = vadd.xlane.f32.xlu0 %v5053_v40 }
0x24f3   :  { %5077 = vrot.lane.b32.xlu1 %v5728_v11, %s6688_s23 }
0x24fc   :  { %5087 = vrot.lane.b32.xlu0 %v5729_v36, %s6688_s23 }
0x252e   :  { %v5185_v22 = vpop.xlane.xlu0 %5184 }
0x252f   :  { %v5189_v23 = vmul.f32 0.03125, %v5185_v22 }
0x2531   :  { %v5209_v39 = vmul.f32 %v5189_v23, %v5189_v23  ;;  %v5215_v50 = vsub.f32 %v8171_v46, %v5189_v23 }
0x2532   :  { %v5188_v10 = vpop.xlane.xlu1 %5187  ;;  %v5203_v18 = vpop.xlane.xlu0 %5202 }
0x2533   :  { %v5190_v44 = vmul.f32 0.03125, %v5188_v10  ;;  %v5207_v12 = vmul.f32 0.03125, %v5203_v18 }
0x2535   :  { %v5211_v16 = vsub.f32 %v5207_v12, %v5209_v39  ;;  %v5210_v48 = vmul.f32 %v5190_v44, %v5190_v44  ;;  %v5216_v42 = vsub.f32 %v8177_v43, %v5190_v44 }
0x2536   :  { %v5206_v25 = vpop.xlane.xlu1 %5205  ;;  %v5229_v21 = vpop.permute.xlu0 %5228 }
0x2537   :  { %v5213_v33 = vmax.f32 %v5211_v16, 0.0  ;;  %v5208_v54 = vmul.f32 0.03125, %v5206_v25 }
0x2539   :  { %v5217_v1 = vadd.f32 1e-05, %v5213_v33  ;;  %v5212_v63 = vsub.f32 %v5208_v54, %v5210_v48 }
0x253a   :  { %v5239_v28 = vpop.permute.xlu1 %5238 }
0x253b   :  { %6629 = vrsqrt.f32 %v5217_v1  ;;  %v5214_v51 = vmax.f32 %v5212_v63, 0.0 }
0x253d   :  { %v5218_v27 = vadd.f32 1e-05, %v5214_v51 }
0x253f   :  { %6631 = vrsqrt.f32 %v5218_v27 }
0x2548   :  { %v6630_v15 = vpop.eup %6629 }
0x2549   :  { %v5221_v17 = vmul.f32 %v6630_v15, %v5215_v50 }
0x254b   :  { %v5231_v49 = vmul.f32 %v5229_v21, %v5221_v17  ;;  %v5020_v17 = vld [vmem:[%s8303_s5 + $0x4a] sm:$0x1] }
0x254c   :  { %v6632_v7 = vpop.eup %6631 }
0x254d   :  { %v5222_v6 = vmul.f32 %v6632_v7, %v5216_v42  ;;  %v5241_v47 = vadd.f32 %v5239_v28, %v5231_v49  ;;  %v5021_v49 = vadd.f32 %v5020_v17, %v8159_v30  ;;  %v5731_v30 = vld [vmem:[%s8303_s5 + $0x4d] ss:$0 sm:$0xff] }
0x254f   :  { %v5232_v41 = vmul.f32 %v5229_v21, %v5222_v6  ;;  %v5243_v61 = vsub.f32 0.0, %v5241_v47  ;;  %v5735_v6 = vld [vmem:[%s8303_s5 + $0x50] ss:$0 sm:$0xff] }
0x2550   :  { %5309 = vrot.lane.b32.xlu0 %v5735_v6, %s6688_s23 }
0x2551   :  { %v5242_v4 = vadd.f32 %v5239_v28, %v5232_v41  ;;  %v5245_v38 = vmul.f32 1.442695, %v5243_v61  ;;  %v5166_v41 = vrot.slane %v5021_v49, %v2857_v29  ;;  %v5741_v61 = vld [vmem:[%s8303_s5 + $0x58] ss:$0 sm:$0xff]  ;;  %v5737_v29 = vld [vmem:[%s8303_s5 + $0x55] ss:$0 sm:$0xff] }
0x2553   :  { %v5244_v59 = vsub.f32 0.0, %v5242_v4  ;;  %6633 = vpow2.f32 %v5245_v38 }
0x2555   :  { %v5247_v34 = vmul.f32 1.442695, %v5244_v59  ;;  %v120_v59 = vld [vmem:[#allocation3 + $0x290] sm:$0xff] }
0x2557   :  { %6635 = vpow2.f32 %v5247_v34  ;;  %v121_v34 = vld [vmem:[#allocation3 + $0x298] sm:$0xff] }
0x2560   :  { %v6634_v19 = vpop.eup %6633 }
0x2561   :  { %v5249_v46 = vadd.f32 1.0, %v6634_v19  ;;  %v118_v19 = vld [vmem:[#allocation3 + $0x280] sm:$0xff] }
0x2563   :  { %6637 = vrcp.f32 %v5249_v46  ;;  %v163_v46 = vpack.c.bf16 %v121_v34, %v120_v59 }
0x2564   :  { %v6636_v53 = vpop.eup %6635 }
0x2565   :  { %v5250_v37 = vadd.f32 1.0, %v6636_v53  ;;  %v119_v53 = vld [vmem:[#allocation3 + $0x288] sm:$0xff] }
0x2567   :  { %6639 = vrcp.f32 %v5250_v37  ;;  %v5034_v13 = vpop.xlane.xlu0 %5033  ;;  %v162_v37 = vpack.c.bf16 %v119_v53, %v118_v19 }
0x2568   :  { %v5038_v43 = vmul.f32 0.03125, %v5034_v13 }
0x256a   :  { %v5058_v52 = vmul.f32 %v5038_v43, %v5038_v43  ;;  %v5064_v36 = vsub.f32 %v8182_v24, %v5038_v43 }
0x256b   :  { %v5037_v3 = vpop.xlane.xlu1 %5036  ;;  %v5052_v14 = vpop.xlane.xlu0 %5051 }
0x256c   :  { %v5039_v2 = vmul.f32 0.03125, %v5037_v3  ;;  %v5056_v45 = vmul.f32 0.03125, %v5052_v14 }
0x256e   :  { %v5060_v58 = vsub.f32 %v5056_v45, %v5058_v52  ;;  %v5059_v26 = vmul.f32 %v5039_v2, %v5039_v2  ;;  %v5065_v39 = vsub.f32 %v8189_v32, %v5039_v2 }
0x256f   :  { %v5055_v20 = vpop.xlane.xlu0 %5054  ;;  %v5078_v23 = vpop.permute.xlu1 %5077 }
0x2570   :  { %v5062_v31 = vmax.f32 %v5060_v58, 0.0  ;;  %v5057_v60 = vmul.f32 0.03125, %v5055_v20  ;;  %v6638_v35 = vpop.eup %6637 }
0x2571   :  { %v5253_v8 = vmul.f32 %v6638_v35, %v5241_v47  ;;  %v5740_v47 = vld [vmem:[%s8303_s5 + $0x57] ss:$0 sm:$0xff] }
0x2572   :  { %v5066_v9 = vadd.f32 1e-05, %v5062_v31  ;;  %v5061_v5 = vsub.f32 %v5057_v60, %v5059_v26  ;;  %5472 = vrot.lane.b32.xlu0 %v5740_v47, %s6688_s23 }
0x2573   :  { %v5088_v18 = vpop.permute.xlu0 %5087 }
0x2574   :  { %v6640_v56 = vpop.eup %6639  ;;  %6641 = vrsqrt.f32 %v5066_v9  ;;  %v5063_v55 = vmax.f32 %v5061_v5, 0.0 }
0x2575   :  { %v5254_v57 = vmul.f32 %v6640_v56, %v5242_v4 }
0x2576   :  { %v5067_v40 = vadd.f32 1e-05, %v5063_v55  ;;  %5158 = vrot.lane.b32.xlu0 %v5731_v30, %s6684_s14 }
0x2577   :  { %v5255_v11 = vpack.c.bf16 %v5254_v57, %v5253_v8 }
0x2578   :  { %6643 = vrsqrt.f32 %v5067_v40 }
0x2579   :  { %5257 = vrot.lane.b32.xlu1 %v5255_v11, %s6688_s23 }
0x257a   :  { %5358 = vrot.lane.b32.xlu0 %v5736_v62, %s6684_s14 }
0x2581   :  { %v6642_v22 = vpop.eup %6641 }
0x2582   :  { %v5070_v10 = vmul.f32 %v6642_v22, %v5064_v36 }
0x2584   :  { %v5080_v44 = vmul.f32 %v5078_v23, %v5070_v10 }
0x2585   :  { %v6644_v12 = vpop.eup %6643 }
0x2586   :  { %v5071_v16 = vmul.f32 %v6644_v12, %v5065_v39  ;;  %v5090_v25 = vadd.f32 %v5088_v18, %v5080_v44 }
0x2588   :  { %v5081_v48 = vmul.f32 %v5078_v23, %v5071_v16  ;;  %v5092_v33 = vsub.f32 0.0, %v5090_v25 }
0x258a   :  { %v5091_v54 = vadd.f32 %v5088_v18, %v5081_v48  ;;  %v5094_v1 = vmul.f32 1.442695, %v5092_v33 }
0x258c   :  { %v5093_v63 = vsub.f32 0.0, %v5091_v54  ;;  %6645 = vpow2.f32 %v5094_v1 }
0x258e   :  { %v5096_v51 = vmul.f32 1.442695, %v5093_v63 }
0x2590   :  { %6647 = vpow2.f32 %v5096_v51 }
0x2599   :  { %v6646_v27 = vpop.eup %6645 }
0x259a   :  { %v5098_v24 = vadd.f32 1.0, %v6646_v27 }
0x259c   :  { %6649 = vrcp.f32 %v5098_v24 }
0x259d   :  { %v6648_v50 = vpop.eup %6647 }
0x259e   :  { %v5099_v15 = vadd.f32 1.0, %v6648_v50 }
0x25a0   :  { %6651 = vrcp.f32 %v5099_v15 }
0x25a9   :  { %v6650_v21 = vpop.eup %6649 }
0x25aa   :  { %v5102_v28 = vmul.f32 %v6650_v21, %v5090_v25 }
0x25ad   :  { %v6652_v32 = vpop.eup %6651 }
0x25ae   :  { %v5103_v42 = vmul.f32 %v6652_v32, %v5091_v54 }
0x25b0   :  { %v5104_v7 = vpack.c.bf16 %v5103_v42, %v5102_v28 }
0x25b2   :  { %5106 = vrot.lane.b32.xlu1 %v5104_v7, %s6688_s23 }
0x25b6   :  { %5314 = vrot.lane.b32.xlu1 %v5166_v41, %s6688_s23 }
0x25ba   :  { %5483 = vrot.lane.b32.xlu1 %v5741_v61, %s6688_s23 }
0x25be   :  { %5168 = vrot.lane.b32.xlu1 %v5166_v41, %s6684_s14 }
0x25c2   :  { %5369 = vrot.lane.b32.xlu1 %v5737_v29, %s6684_s14  ;;  %v5310_v13 = vpop.permute.xlu0 %5309 }
0x25e4   :  { %v5473_v24 = vpop.permute.xlu0 %5472 }
0x25e8   :  { %v5159_v6 = vpop.permute.xlu0 %5158 }
0x25eb   :  { %v5258_v4 = vpop.permute.xlu1 %5257 }
0x25ec   :  { %6447 = vmatmul.mubr.msk.bf16.vlgmr.msra.gmra.mxu0 %vm269_vm3, %v5258_v4 }
0x25ed   :  { %6462 = vmatprep.mubr.msk.bf16.mxu0 %vm6683_vm0, %v6682_v0  ;;  %6459 = vmatpush3.bf16.msra.mxu0 %v163_v46 }
0x25ee   :  { %6460 = vmatprep.subr.bf16.mxu0 %v6682_v0 }
0x25f1   :  { %6461 = vmatpush3.bf16.msra.mxu0 %v162_v37 }
0x2624   :  { %v5107_v38 = vpop.permute.xlu1 %5106 }
0x2625   :  { %6439 = vmatmul.mubr.msk.bf16.vlgmr.msra.gmra.mxu1 %vm269_vm3, %v5107_v38 }
0x2626   :  { %6454 = vmatprep.mubr.msk.bf16.mxu1 %vm6683_vm0, %v6682_v0  ;;  %6451 = vmatpush3.bf16.msra.mxu1 %v163_v46  ;;  %vm5433_vm0 = vcmask 785920  }
0x2627   :  { %6452 = vmatprep.subr.bf16.mxu1 %v6682_v0 }
0x2628   :  { %v5315_v14 = vpop.permute.xlu1 %5314 }
0x262a   :  { %6453 = vmatpush3.bf16.msra.mxu1 %v162_v37 }
0x262c   :  { %v5484_v17 = vpop.permute.xlu1 %5483 }
0x2630   :  { %v5169_v61 = vpop.permute.xlu1 %5168 }
0x26ac   :  { %v5296_v43 = vpop.f32.mrf.mxu0 }
0x26ad   :  { %v5312_v3 = vadd.f32 %v5310_v13, %v5296_v43 }
0x26ae   :  { %v6448_v52 = vpop.f32.mrf.mxu0 }
0x26af   :  { %v5317_v2 = vadd.f32 %v5315_v14, %v5312_v3 }
0x26b0   :  { %v5299_v45 = vpop.f32.mrf.mxu0 }
0x26b1   :  { %v5313_v58 = vadd.f32 %v5310_v13, %v5299_v45  ;;  %v5445_v26 = vmul.f32 %v5317_v2, %v5317_v2  ;;  %v5434_v60 = vsel %vm5433_vm0, %v5317_v2, 0.0 }
0x26b2   :  { %v6449_v20 = vpop.f32.mrf.mxu0 }
0x26b3   :  { %v5318_v31 = vadd.f32 %v5315_v14, %v5313_v58  ;;  %v5447_v0 = vsel %vm5433_vm0, %v5445_v26, 0.0 }
0x26b5   :  { %v5436_v35 = vsel %vm5435_vm6, %v5318_v31, 0.0  ;;  %v5446_v9 = vmul.f32 %v5318_v31, %v5318_v31 }
0x26b6   :  { %v5437_v5 = vadd.f32 %v5436_v35, %v5434_v60 }
0x26b7   :  { %v5448_v56 = vsel %vm5435_vm6, %v5446_v9, 0.0 }
0x26b8   :  { %v5438_v55 = vrot.slane %v5437_v5, 4  ;;  %v5449_v8 = vadd.f32 %v5448_v56, %v5447_v0 }
0x26ba   :  { %v5439_v57 = vadd.f32 %v5438_v55, %v5437_v5  ;;  %v5450_v40 = vrot.slane %v5449_v8, 4 }
0x26bc   :  { %v5440_v11 = vrot.slane %v5439_v57, 2  ;;  %v5451_v36 = vadd.f32 %v5450_v40, %v5449_v8 }
0x26be   :  { %v5441_v22 = vadd.f32 %v5440_v11, %v5439_v57  ;;  %v5452_v23 = vrot.slane %v5451_v36, 2 }
0x26c0   :  { %v5453_v10 = vadd.f32 %v5452_v23, %v5451_v36  ;;  %v5442_v18 = vrot.slane %v5441_v22, 1  ;;  %v5743_v36 = vld [vmem:[%s8303_s5 + $0x59] ss:$0 sm:$0xff] }
0x26c2   :  { %v5454_v39 = vrot.slane %v5453_v10, 1  ;;  %v5443_v44 = vadd.f32 %v5442_v18, %v5441_v22  ;;  %v5359_v18 = vpop.permute.xlu0 %5358 }
0x26c4   :  { %v5455_v12 = vadd.f32 %v5454_v39, %v5453_v10  ;;  %v5444_v16 = vmul.f32 0.1, %v5443_v44 }
0x26c6   :  { %v5456_v25 = vmul.f32 0.1, %v5455_v12  ;;  %v5457_v48 = vmul.f32 %v5444_v16, %v5444_v16  ;;  %v5460_v63 = vsub.f32 %v5317_v2, %v5444_v16  ;;  %v5461_v51 = vsub.f32 %v5318_v31, %v5444_v16  ;;  %v5370_v12 = vpop.permute.xlu1 %5369 }
0x26c8   :  { %v5458_v33 = vsub.f32 %v5456_v25, %v5457_v48 }
0x26ca   :  { %v5459_v54 = vmax.f32 %v5458_v33, 0.0 }
0x26cc   :  { %v5462_v1 = vadd.f32 1e-05, %v5459_v54 }
0x26ce   :  { %6653 = vrsqrt.f32 %v5462_v1 }
0x26db   :  { %v6654_v27 = vpop.eup %6653 }
0x26dc   :  { %v5464_v50 = vmul.f32 %v6654_v27, %v5460_v63  ;;  %v5465_v15 = vmul.f32 %v6654_v27, %v5461_v51 }
0x26de   :  { %v5475_v21 = vmul.f32 %v5473_v24, %v5464_v50  ;;  %v5476_v32 = vmul.f32 %v5473_v24, %v5465_v15 }
0x26e0   :  { %v5486_v28 = vadd.f32 %v5484_v17, %v5475_v21  ;;  %v5487_v42 = vadd.f32 %v5484_v17, %v5476_v32 }
0x26e2   :  { %v5488_v49 = vmax.f32 %v5486_v28, 0.0  ;;  %v5489_v7 = vmax.f32 %v5487_v42, 0.0  ;;  %v5739_v42 = vld [vmem:[%s8303_s5 + $0x56] ss:$0 sm:$0xff] }
0x26e4   :  { %v5490_v47 = vpack.c.bf16 %v5489_v7, %v5488_v49 }
0x26e5   :  { %v5145_v41 = vpop.f32.mrf.mxu1 }
0x26e6   :  { %v5161_v30 = vadd.f32 %v5159_v6, %v5145_v41  ;;  %5492 = vrot.lane.b32.xlu0 %v5490_v47, %s6688_s23 }
0x26e7   :  { %v6440_v62 = vpop.f32.mrf.mxu1 }
0x26e8   :  { %v5171_v29 = vadd.f32 %v5169_v61, %v5161_v30 }
0x26e9   :  { %v5148_v4 = vpop.f32.mrf.mxu1 }
0x26ea   :  { %v5162_v38 = vadd.f32 %v5159_v6, %v5148_v4  ;;  %v5331_v34 = vmul.f32 %v5171_v29, %v5171_v29  ;;  %v5320_v46 = vsel %vm5319_vm7, %v5171_v29, 0.0  ;;  %5544 = vrot.lane.b32.xlu0 %v5743_v36, %s6684_s14 }
0x26eb   :  { %v6441_v59 = vpop.f32.mrf.mxu1 }
0x26ec   :  { %v5172_v19 = vadd.f32 %v5169_v61, %v5162_v38  ;;  %v5333_v43 = vsel %vm5319_vm7, %v5331_v34, 0.0 }
0x26ee   :  { %v5322_v53 = vsel %vm5321_vm8, %v5172_v19, 0.0  ;;  %v5332_v37 = vmul.f32 %v5172_v19, %v5172_v19 }
0x26ef   :  { %v5323_v13 = vadd.f32 %v5322_v53, %v5320_v46 }
0x26f0   :  { %v5334_v3 = vsel %vm5321_vm8, %v5332_v37, 0.0 }
0x26f1   :  { %v5324_v14 = vrot.slane %v5323_v13, 4  ;;  %v5335_v52 = vadd.f32 %v5334_v3, %v5333_v43 }
0x26f3   :  { %v5325_v2 = vadd.f32 %v5324_v14, %v5323_v13  ;;  %v5336_v45 = vrot.slane %v5335_v52, 4 }
0x26f5   :  { %v5326_v58 = vrot.slane %v5325_v2, 2  ;;  %v5337_v20 = vadd.f32 %v5336_v45, %v5335_v52 }
0x26f7   :  { %v5327_v26 = vadd.f32 %v5326_v58, %v5325_v2  ;;  %v5338_v31 = vrot.slane %v5337_v20, 2 }
0x26f9   :  { %v5339_v60 = vadd.f32 %v5338_v31, %v5337_v20  ;;  %v5328_v35 = vrot.slane %v5327_v26, 1 }
0x26fb   :  { %v5340_v9 = vrot.slane %v5339_v60, 1  ;;  %v5329_v5 = vadd.f32 %v5328_v35, %v5327_v26 }
0x26fd   :  { %v5341_v0 = vadd.f32 %v5340_v9, %v5339_v60  ;;  %v5330_v56 = vmul.f32 0.083333336, %v5329_v5 }
0x26ff   :  { %v5342_v55 = vmul.f32 0.083333336, %v5341_v0  ;;  %v5343_v8 = vmul.f32 %v5330_v56, %v5330_v56  ;;  %v5346_v22 = vsub.f32 %v5171_v29, %v5330_v56  ;;  %v5347_v23 = vsub.f32 %v5172_v19, %v5330_v56 }
0x2701   :  { %v5344_v57 = vsub.f32 %v5342_v55, %v5343_v8 }
0x2703   :  { %v5345_v40 = vmax.f32 %v5344_v57, 0.0 }
0x2705   :  { %v5348_v11 = vadd.f32 1e-05, %v5345_v40 }
0x2707   :  { %6655 = vrsqrt.f32 %v5348_v11 }
0x2714   :  { %v6656_v10 = vpop.eup %6655 }
0x2715   :  { %v5350_v39 = vmul.f32 %v6656_v10, %v5346_v22  ;;  %v5351_v44 = vmul.f32 %v6656_v10, %v5347_v23 }
0x2717   :  { %v5361_v16 = vmul.f32 %v5359_v18, %v5350_v39  ;;  %v5362_v25 = vmul.f32 %v5359_v18, %v5351_v44 }
0x2719   :  { %v5372_v48 = vadd.f32 %v5370_v12, %v5361_v16  ;;  %v5373_v33 = vadd.f32 %v5370_v12, %v5362_v25 }
0x271b   :  { %v5374_v54 = vmax.f32 %v5372_v48, 0.0  ;;  %v5375_v1 = vmax.f32 %v5373_v33, 0.0 }
0x271d   :  { %v5376_v63 = vpack.c.bf16 %v5375_v1, %v5374_v54 }
0x271f   :  { %5378 = vrot.lane.b32.xlu1 %v5376_v63, %s6685_s28 }
0x2758   :  { %v5493_v51 = vpop.permute.xlu0 %5492 }
0x2759   :  { %6463 = vmatmul.mubr.msk.bf16.vlgmr.msra.gmra.mxu0 %vm269_vm3, %v5493_v51 }
0x275c   :  { %v5545_v24 = vpop.permute.xlu0 %5544 }
0x2791   :  { %v5379_v27 = vpop.permute.xlu1 %5378 }
0x2792   :  { %6455 = vmatmul.mubr.msk.bf16.vlgmr.msra.gmra.mxu1 %vm269_vm3, %v5379_v27 }
0x2819   :  { %v5531_v50 = vpop.f32.mrf.mxu0 }
0x281a   :  { %v5547_v15 = vadd.f32 %v5545_v24, %v5531_v50 }
0x281b   :  { %v6464_v21 = vpop.f32.mrf.mxu0 }
0x281c   :  { %5551 = vrot.lane.b32.xlu1 %v5547_v15, %s6685_s28 }
0x281d   :  { %v5534_v32 = vpop.f32.mrf.mxu0 }
0x281e   :  { %v5548_v17 = vadd.f32 %v5545_v24, %v5534_v32 }
0x281f   :  { %v6465_v28 = vpop.f32.mrf.mxu0 }
0x2820   :  { %5553 = vrot.lane.b32.xlu0 %v5548_v17, %s6685_s28 }
0x2852   :  { %v5417_v49 = vpop.f32.mrf.mxu1 }
0x2853   :  { %v5429_v7 = vadd.f32 %v5739_v42, %v5417_v49 }
0x2854   :  { %v6456_v6 = vpop.f32.mrf.mxu1 }
0x2855   :  { %5431 = vst.msk [vmem:[%s8304_s6] sm:$0xff] %vm269_vm3, %v5429_v7 }
0x2856   :  { %v5420_v47 = vpop.f32.mrf.mxu1 }
0x2857   :  { %v5430_v41 = vadd.f32 %v5739_v42, %v5420_v47 }
0x2858   :  { %v6457_v30 = vpop.f32.mrf.mxu1 }
0x2859   :  { %5432 = vst.msk [vmem:[%s8304_s6 + $0x8] sm:$0xf] %vm886_vm10, %v5430_v41 }
0x288e   :  { %v5552_v61 = vpop.permute.xlu1 %5551 }
0x288f   :  { %5557 = vst.msk [vmem:[%s8304_s6 + $0xc] sm:$0xff] %vm269_vm3, %v5552_v61 }
0x2892   :  { %v5554_v62 = vpop.permute.xlu0 %5553 }
0x2893   :  { %5558 = vst.msk [vmem:[%s8304_s6 + $0x14] sm:$0x3] %vm889_vm11, %v5554_v62 }
0x2894   :  { %5563 = vsyncpa [#allocation4], 1 }

</bundles_post_ra>
